<compile_context>
chip_gen: v7x
topology: tpu7x:2x2x1
jax: 0.10.0
libtpu: 0.0.40
codegen_flags: <defaults>
</compile_context>

<pallas_src>
import functools
import math

import jax
import jax.numpy as jnp
from jax.experimental import pallas as pl
from jax.experimental.pallas import tpu as pltpu

BN_EPS = 1e-5
LANE = 128


def _round_up(v, m):
    return (v + m - 1) // m * m


def _pick_tile(d, candidates, align):
    """Largest candidate tile that divides d; otherwise pad-friendly fallback."""
    for c in candidates:
        if d >= c and d % c == 0:
            return c
    if d > candidates[0]:
        return candidates[0]                  # pad d up to a multiple of this
    return _round_up(max(d, 1), align)        # single block covering all of d


@functools.lru_cache(maxsize=None)
def _vmem_limit_bytes():
    """Generation-aware scoped-VMEM limit: ~100 MiB on v5e/v6e, ~48 MiB on v7x."""
    cap = 64 * 1024 * 1024
    try:
        cap = int(getattr(pltpu.get_tpu_info(), "vmem_capacity_bytes", cap))
    except Exception:
        pass
    return int(min(max(cap - 16 * 1024 * 1024, 32 * 1024 * 1024),
                   100 * 1024 * 1024))


# ----------------------------- Pallas kernels ------------------------------

def _matmul_bn_fullk_kernel(x_ref, w_ref, scale_ref, bias_ref, *rest,
                            relu, has_skip):
    """Single-reduction-step (tm,K)@(K,tn) + fused scale/bias (+skip,+ReLU)."""
    if has_skip:
        skip_ref, o_ref = rest
    else:
        (o_ref,) = rest
    out = jnp.dot(x_ref[...], w_ref[...], preferred_element_type=jnp.float32)
    out = out * scale_ref[...] + bias_ref[...]
    if has_skip:
        out = out + skip_ref[...].astype(jnp.float32)
    if relu:
        out = jnp.maximum(out, 0.0)
    o_ref[...] = out.astype(o_ref.dtype)


def _matmul_bn_ksplit_kernel(x_ref, w_ref, scale_ref, bias_ref, *rest,
                             relu, has_skip):
    """K-tiled fallback: f32 VMEM accumulator with @pl.when init/epilogue."""
    if has_skip:
        skip_ref, o_ref, acc_ref = rest
    else:
        o_ref, acc_ref = rest
    k = pl.program_id(2)

    @pl.when(k == 0)
    def _():
        acc_ref[...] = jnp.zeros_like(acc_ref)

    acc_ref[...] += jnp.dot(x_ref[...], w_ref[...],
                            preferred_element_type=jnp.float32)

    @pl.when(k == pl.num_programs(2) - 1)
    def _():
        out = acc_ref[...] * scale_ref[...] + bias_ref[...]
        if has_skip:
            out = out + skip_ref[...].astype(jnp.float32)
        if relu:
            out = jnp.maximum(out, 0.0)
        o_ref[...] = out.astype(o_ref.dtype)


def _dwconv_bn_kernel(src_ref, w_ref, bias_ref, o_ref, *,
                      stride, out_h, out_w, relu):
    """Depthwise 3x3 conv on one (image, channel-block); BN scale pre-folded
    into the taps, so the epilogue is just +bias (+ReLU)."""
    s = stride
    acc = None
    # kw-outer / kh-inner: the sublane-shifting W slice is materialized once
    # per kw (and per stride phase); per-kh H slices are cheap major-dim cuts.
    for kw in range(3):
        views = {}
        for kh in range(3):
            ph = (kh % s) * s + (kw % s)
            if ph not in views:
                views[ph] = src_ref[ph, :, kw // s: kw // s + out_w, :]
            tap = views[ph][kh // s: kh // s + out_h]
            w = w_ref[kh * 3 + kw, :].reshape(1, 1, -1)
            term = tap.astype(jnp.float32) * w
            acc = term if acc is None else acc + term
    acc = acc + bias_ref[0, :].reshape(1, 1, -1)
    if relu:
        acc = jnp.maximum(acc, 0.0)
    o_ref[0] = acc.astype(o_ref.dtype)


def _global_mean_kernel(x_ref, o_ref):
    # x: (N, H*W, tc) -> mean over spatial axis -> (N, tc)
    o_ref[...] = jnp.mean(x_ref[...].astype(jnp.float32), axis=1)


# ------------------------------ kernel wrappers -----------------------------

def matmul_bn(x2d, w2d, scale, bias, *, skip=None, relu=True,
              out_dtype=jnp.bfloat16):
    """(M,K)@(K,N) with fused folded-BN epilogue. bf16 MXU, f32 accumulation."""
    M, K = x2d.shape
    K2, N = w2d.shape
    assert K == K2, (K, K2)
    has_skip = skip is not None
    out_b = jnp.dtype(out_dtype).itemsize
    vmem_limit = _vmem_limit_bytes()
    budget = int(vmem_limit * 0.6)

    def plan_bytes(tm, tk, tn, kgrid):
        b = 2 * 2 * (tm * tk + tk * tn)          # double-buffered bf16 inputs
        b += 2 * 2 * tn * 4                      # scale + bias tiles (f32)
        b += 2 * tm * tn * out_b                 # double-buffered output
        if has_skip:
            b += 2 * tm * tn * 2
        if kgrid > 1:
            b += tm * tn * 4                     # f32 accumulator scratch
        return b

    tm = _pick_tile(M, (512, 256, 128), 8)
    Np = _round_up(N, LANE)
    # Prefer a full-N block (weights & activations each stream once).
    tn = Np
    if plan_bytes(tm, min(K, 512), tn, 1) > budget:
        tn = _pick_tile(Np, (512, 256, 128), LANE)
        Np = _round_up(Np, tn)
    # Prefer a full-K block (no reduction grid axis, no K padding).
    tk, kgrid = K, 1
    if plan_bytes(tm, K, tn, 1) > budget:
        tk = _pick_tile(K, (512, 256, 128), LANE)
        kgrid = _round_up(K, tk) // tk
    Mp = _round_up(M, tm)
    Kp = K if kgrid == 1 else _round_up(K, tk)

    x2d = x2d.astype(jnp.bfloat16)
    w2d = w2d.astype(jnp.bfloat16)
    if (Mp, Kp) != (M, K):
        x2d = jnp.pad(x2d, ((0, Mp - M), (0, Kp - K)))
    if (Kp, Np) != (K, N):
        w2d = jnp.pad(w2d, ((0, Kp - K), (0, Np - N)))
    scale = jnp.pad(scale.reshape(1, -1).astype(jnp.float32),
                    ((0, 0), (0, Np - N)))
    bias = jnp.pad(bias.reshape(1, -1).astype(jnp.float32),
                   ((0, 0), (0, Np - N)))
    if has_skip:
        skip = skip.astype(jnp.bfloat16)
        sm, sn = skip.shape
        if (sm, sn) != (Mp, Np):
            skip = jnp.pad(skip, ((0, Mp - sm), (0, Np - sn)))

    gm, gn = Mp // tm, Np // tn
    cost = pl.CostEstimate(flops=2 * Mp * Np * Kp, transcendentals=0,
                           bytes_accessed=2 * (Mp * Kp + Kp * Np) + Mp * Np * out_b)

    if kgrid == 1:
        in_specs = [
            pl.BlockSpec((tm, tk), lambda i, j: (i, 0)),
            pl.BlockSpec((tk, tn), lambda i, j: (0, j)),
            pl.BlockSpec((1, tn), lambda i, j: (0, j)),
            pl.BlockSpec((1, tn), lambda i, j: (0, j)),
        ]
        args = [x2d, w2d, scale, bias]
        if has_skip:
            in_specs.append(pl.BlockSpec((tm, tn), lambda i, j: (i, j)))
            args.append(skip)
        out = pl.pallas_call(
            functools.partial(_matmul_bn_fullk_kernel, relu=relu,
                              has_skip=has_skip),
            out_shape=jax.ShapeDtypeStruct((Mp, Np), out_dtype),
            grid_spec=pltpu.PrefetchScalarGridSpec(
                num_scalar_prefetch=0,
                grid=(gm, gn),
                in_specs=in_specs,
                out_specs=pl.BlockSpec((tm, tn), lambda i, j: (i, j)),
            ),
            compiler_params=pltpu.CompilerParams(
                dimension_semantics=("parallel", "parallel"),
                vmem_limit_bytes=vmem_limit,
            ),
            cost_estimate=cost,
        )(*args)
    else:
        in_specs = [
            pl.BlockSpec((tm, tk), lambda i, j, k: (i, k)),
            pl.BlockSpec((tk, tn), lambda i, j, k: (k, j)),
            pl.BlockSpec((1, tn), lambda i, j, k: (0, j)),
            pl.BlockSpec((1, tn), lambda i, j, k: (0, j)),
        ]
        args = [x2d, w2d, scale, bias]
        if has_skip:
            in_specs.append(pl.BlockSpec((tm, tn), lambda i, j, k: (i, j)))
            args.append(skip)
        out = pl.pallas_call(
            functools.partial(_matmul_bn_ksplit_kernel, relu=relu,
                              has_skip=has_skip),
            out_shape=jax.ShapeDtypeStruct((Mp, Np), out_dtype),
            grid_spec=pltpu.PrefetchScalarGridSpec(
                num_scalar_prefetch=0,
                grid=(gm, gn, Kp // tk),
                in_specs=in_specs,
                out_specs=pl.BlockSpec((tm, tn), lambda i, j, k: (i, j)),
                scratch_shapes=[pltpu.VMEM((tm, tn), jnp.float32)],
            ),
            compiler_params=pltpu.CompilerParams(
                dimension_semantics=("parallel", "parallel", "arbitrary"),
                vmem_limit_bytes=vmem_limit,
            ),
            cost_estimate=cost,
        )(*args)
    return out[:M, :N]


def depthwise_conv_bn(x, w_taps, bias, stride, relu=True):
    """Depthwise 3x3 conv (+ folded BN bias, scale pre-folded into w_taps).
    x: (N, H, W, Cp) bf16 with Cp a multiple of 128."""
    N, H, W, Cp = x.shape
    assert Cp % LANE == 0, Cp
    s = stride
    if s == 1:
        Ho, Wo = H, W
        xp = jnp.pad(x, ((0, 0), (1, 1), (1, 1), (0, 0)))
        Hq, Wq = H + 2, W + 2
        src = xp.reshape(N, 1, Hq, Wq, Cp)
    else:
        Ho = (H - 1) // 2 + 1
        Wo = (W - 1) // 2 + 1
        pad_h = (H + 2) % 2
        pad_w = (W + 2) % 2
        xp = jnp.pad(x, ((0, 0), (1, 1 + pad_h), (1, 1 + pad_w), (0, 0)))
        Hq, Wq = (H + 2 + pad_h) // 2, (W + 2 + pad_w) // 2
        # even/odd phase split so all in-kernel tap slices stay contiguous;
        # phase (a, b) holds xp[:, a::2, b::2, :].
        # TODO(synk): fold this split into the producing matmul's output layout
        # (or use strided in-kernel slices) to avoid one extra HBM round trip.
        phases = [xp[:, a::2, b::2, :] for a in range(2) for b in range(2)]
        src = jnp.stack(phases, axis=1)                 # (N, 4, Hq, Wq, Cp)
    src = src.reshape(N * s * s, Hq, Wq, Cp).astype(jnp.bfloat16)

    cb = LANE                                  # channel tile (lane-dense)
    # TODO(synk): row-tile with 1-row halos at very large resolutions.
    return pl.pallas_call(
        functools.partial(_dwconv_bn_kernel, stride=s, out_h=Ho, out_w=Wo,
                          relu=relu),
        out_shape=jax.ShapeDtypeStruct((N, Ho, Wo, Cp), jnp.bfloat16),
        grid_spec=pltpu.PrefetchScalarGridSpec(
            num_scalar_prefetch=0,
            grid=(N, Cp // cb),
            in_specs=[
                pl.BlockSpec((s * s, Hq, Wq, cb), lambda n, c: (n, 0, 0, c)),
                pl.BlockSpec((9, cb), lambda n, c: (0, c)),
                pl.BlockSpec((1, cb), lambda n, c: (0, c)),
            ],
            out_specs=pl.BlockSpec((1, Ho, Wo, cb), lambda n, c: (n, 0, 0, c)),
        ),
        compiler_params=pltpu.CompilerParams(
            dimension_semantics=("parallel", "parallel"),
            vmem_limit_bytes=_vmem_limit_bytes(),
        ),
    )(src, w_taps, bias)


def global_mean(x):
    """x: (N, H, W, Cp) bf16 -> (N, Cp) f32 spatial mean (== x.mean([2,3]))."""
    N, H, W, Cp = x.shape
    x3 = x.reshape(N, H * W, Cp)
    tc = _pick_tile(Cp, (512, 256, 128), LANE)
    Cpp = _round_up(Cp, tc)
    if Cpp != Cp:
        x3 = jnp.pad(x3, ((0, 0), (0, 0), (0, Cpp - Cp)))
    out = pl.pallas_call(
        _global_mean_kernel,
        out_shape=jax.ShapeDtypeStruct((N, Cpp), jnp.float32),
        grid_spec=pltpu.PrefetchScalarGridSpec(
            num_scalar_prefetch=0,
            grid=(Cpp // tc,),
            in_specs=[pl.BlockSpec((N, H * W, tc), lambda j: (0, 0, j))],
            out_specs=pl.BlockSpec((N, tc), lambda j: (0, j)),
        ),
        compiler_params=pltpu.CompilerParams(
            dimension_semantics=("parallel",),
            vmem_limit_bytes=_vmem_limit_bytes(),
        ),
    )(x3)
    return out[:, :Cp]


# ------------------------------ parameter setup -----------------------------

def _make_divisible(v, divisor, min_value=None):
    if min_value is None:
        min_value = divisor
    new_v = max(min_value, int(v + divisor / 2) // divisor * divisor)
    if new_v < 0.9 * v:
        new_v += divisor
    return new_v


def _init_conv_bn(key, cin, cout, k, groups=1):
    # kaiming_normal_(mode='fan_out'): std = sqrt(2 / (out_ch * kH * kW))
    fan_out = cout * k * k
    std = math.sqrt(2.0 / fan_out)
    w = std * jax.random.normal(key, (cout, cin // groups, k, k), dtype=jnp.float32)
    bn = {
        'gamma': jnp.ones((cout,), jnp.float32),
        'beta': jnp.zeros((cout,), jnp.float32),
        'mean': jnp.zeros((cout,), jnp.float32),
        'var': jnp.ones((cout,), jnp.float32),
    }
    return {'w': w, 'bn': bn}


def init_mobilenetv2(key, num_classes=10, width_mult=1.0,
                     inverted_residual_setting=None, round_nearest=8):
    if inverted_residual_setting is None:
        # NOTE: reduced setting (the original default uses the typo 'DwCov'
        # which raises in _get_layer_by_name, and nni is unavailable).
        inverted_residual_setting = [
            [1, 16, 1, 1, 'DwConv'],
            [6, 24, 2, 2, 'DwConv'],
            [6, 32, 2, 2, 'DwConv'],
        ]
    input_channel = _make_divisible(32 * width_mult, round_nearest)
    last_channel = _make_divisible(1280 * max(1.0, width_mult), round_nearest)

    keys = iter(jax.random.split(key, 256))
    features = []
    # stem: ConvBNReLU(3, input_channel, stride=2)
    features.append({'type': 'conv', 'stride': 2,
                     'p': _init_conv_bn(next(keys), 3, input_channel, 3)})
    for t, c, n, s, name in inverted_residual_setting:
        output_channel = _make_divisible(c * width_mult, round_nearest)
        for i in range(n):
            stride = s if i == 0 else 1
            if name == 'None':
                features.append({'type': 'identity'})
                continue
            if name == 'Conv':
                features.append({'type': 'conv', 'stride': stride,
                                 'p': _init_conv_bn(next(keys), input_channel,
                                                    output_channel, 3)})
                input_channel = output_channel
                continue
            # 'DwConv' -> InvertedResidual
            inp, oup = input_channel, output_channel
            hidden = int(round(inp * t))
            blk = {'type': 'ir', 'stride': stride,
                   'use_res': (stride == 1 and inp == oup)}
            if t != 1:
                blk['expand'] = _init_conv_bn(next(keys), inp, hidden, 1)
            blk['dw'] = _init_conv_bn(next(keys), hidden, hidden, 3, groups=hidden)
            blk['project'] = _init_conv_bn(next(keys), hidden, oup, 1)
            features.append(blk)
            input_channel = output_channel
    # last ConvBNReLU(input_channel, last_channel, kernel_size=1)
    features.append({'type': 'conv', 'stride': 1,
                     'p': _init_conv_bn(next(keys), input_channel, last_channel, 1)})

    k1, _ = jax.random.split(next(keys))
    classifier = {
        'w': 0.01 * jax.random.normal(k1, (num_classes, last_channel), jnp.float32),
        'b': jnp.zeros((num_classes,), jnp.float32),
    }
    return {'features': features, 'classifier': classifier}


# --------------------------- inference preparation ---------------------------
# Fold BN into per-channel scale/bias, zero-pad channels to multiples of 128
# (lane-dense), transpose weights into matmul layout, and cast to bf16 once.

def _fold_bn(bn):
    scale = bn['gamma'] / jnp.sqrt(bn['var'] + BN_EPS)
    bias = bn['beta'] - bn['mean'] * scale
    return scale, bias


def _prep_conv(p, cin_pad, cout_pad):
    w = p['w']                                          # (Cout, Cin, k, k)
    cout, cin, k, _ = w.shape
    scale, bias = _fold_bn(p['bn'])
    scale = jnp.pad(scale, (0, cout_pad - cout)).reshape(1, -1).astype(jnp.float32)
    bias = jnp.pad(bias, (0, cout_pad - cout)).reshape(1, -1).astype(jnp.float32)
    if k == 1:
        wmat = jnp.pad(w.reshape(cout, cin).T,
                       ((0, cin_pad - cin), (0, cout_pad - cout)))
    else:
        wk = jnp.transpose(w, (2, 3, 1, 0))             # (k, k, Cin, Cout)
        wk = jnp.pad(wk, ((0, 0), (0, 0),
                          (0, cin_pad - cin), (0, cout_pad - cout)))
        wmat = wk.reshape(k * k * cin_pad, cout_pad)
    return {'w': wmat.astype(jnp.bfloat16), 'scale': scale, 'bias': bias, 'k': k}


def _prep_dw(p, c_pad):
    w = p['w']                                          # (C, 1, 3, 3)
    c = w.shape[0]
    scale, bias = _fold_bn(p['bn'])
    w_taps = jnp.transpose(w[:, 0], (1, 2, 0)).reshape(9, c)   # (9, C)
    w_taps = w_taps * scale.reshape(1, c)    # fold BN scale into the taps
    return {
        'w': jnp.pad(w_taps, ((0, 0), (0, c_pad - c))).astype(jnp.float32),
        'bias': jnp.pad(bias, (0, c_pad - c)).reshape(1, -1).astype(jnp.float32),
    }


def prepare_mobilenetv2(params):
    prep = {'features': []}
    cin_pad = 3                      # stem consumes raw RGB; no channel padding
    for layer in params['features']:
        if layer['type'] == 'identity':
            prep['features'].append({'type': 'identity'})
            continue
        if layer['type'] == 'conv':
            cout = layer['p']['w'].shape[0]
            cout_pad = _round_up(cout, LANE)
            prep['features'].append({'type': 'conv', 'stride': layer['stride'],
                                     'p': _prep_conv(layer['p'], cin_pad, cout_pad)})
            cin_pad = cout_pad
            continue
        # inverted residual
        blk = layer
        hidden = blk['dw']['w'].shape[0]
        oup = blk['project']['w'].shape[0]
        hidden_pad = _round_up(hidden, LANE) if 'expand' in blk else cin_pad
        oup_pad = _round_up(oup, LANE)
        pb = {'type': 'ir', 'stride': blk['stride'], 'use_res': blk['use_res']}
        if 'expand' in blk:
            pb['expand'] = _prep_conv(blk['expand'], cin_pad, hidden_pad)
        pb['dw'] = _prep_dw(blk['dw'], hidden_pad)
        pb['project'] = _prep_conv(blk['project'], hidden_pad, oup_pad)
        prep['features'].append(pb)
        cin_pad = oup_pad

    cls = params['classifier']
    num_classes, last_channel = cls['w'].shape
    ncls_pad = _round_up(num_classes, LANE)
    wc = jnp.pad(cls['w'].T, ((0, cin_pad - last_channel),
                              (0, ncls_pad - num_classes)))
    prep['classifier'] = {
        'w': wc.astype(jnp.bfloat16),
        'scale': jnp.ones((1, ncls_pad), jnp.float32),
        'bias': jnp.pad(cls['b'], (0, ncls_pad - num_classes)
                        ).reshape(1, -1).astype(jnp.float32),
        'num_classes': num_classes,
    }
    return prep


# ------------------------------- forward glue -------------------------------

def _im2col(x, k, stride):
    """x: (N, H, W, C) -> (N*Ho*Wo, k*k*C) patches; padding = (k-1)//2."""
    N, H, W, C = x.shape
    pad = (k - 1) // 2
    xp = jnp.pad(x, ((0, 0), (pad, pad), (pad, pad), (0, 0)))
    Ho = (H + 2 * pad - k) // stride + 1
    Wo = (W + 2 * pad - k) // stride + 1
    taps = []
    for kh in range(k):
        for kw in range(k):
            taps.append(xp[:, kh:kh + stride * (Ho - 1) + 1:stride,
                           kw:kw + stride * (Wo - 1) + 1:stride, :])
    patches = jnp.stack(taps, axis=3).reshape(N * Ho * Wo, k * k * C)
    return patches, Ho, Wo


def conv_bn(x, p, stride, relu=True):
    """Standard (groups=1) conv + folded BN (+ReLU). x: NHWC (channel-padded)."""
    N, H, W, C = x.shape
    if p['k'] == 1:
        y = matmul_bn(x.reshape(N * H * W, C), p['w'], p['scale'], p['bias'],
                      relu=relu)
        return y.reshape(N, H, W, -1)
    patches, Ho, Wo = _im2col(x, p['k'], stride)
    y = matmul_bn(patches, p['w'], p['scale'], p['bias'], relu=relu)
    return y.reshape(N, Ho, Wo, -1)


def inverted_residual_forward(x, blk):
    # TODO(synk): fuse expand->dw->project into one pallas_call with the
    # expanded activation resident in VMEM (removes 2 HBM round trips).
    out = x
    if 'expand' in blk:
        out = conv_bn(out, blk['expand'], stride=1, relu=True)
    dw = blk['dw']
    out = depthwise_conv_bn(out, dw['w'], dw['bias'],
                            stride=blk['stride'], relu=True)
    # project (linear bottleneck); residual add fused into the matmul epilogue.
    N, H, W, C = out.shape
    p = blk['project']
    skip = x.reshape(N * H * W, -1) if blk['use_res'] else None
    y = matmul_bn(out.reshape(N * H * W, C), p['w'], p['scale'], p['bias'],
                  skip=skip, relu=False)
    return y.reshape(N, H, W, -1)


def mobilenetv2_forward(prep, x_nchw):
    x = jnp.transpose(x_nchw, (0, 2, 3, 1)).astype(jnp.bfloat16)  # NCHW -> NHWC
    for layer in prep['features']:
        if layer['type'] == 'identity':
            continue
        if layer['type'] == 'conv':
            x = conv_bn(x, layer['p'], stride=layer['stride'], relu=True)
        else:
            x = inverted_residual_forward(x, layer)
    pooled = global_mean(x)                        # == x.mean([2, 3]) in NCHW
    # TODO(synk): nn.Dropout(args.drop_path) is identity at inference; omitted.
    cls = prep['classifier']
    logits = matmul_bn(pooled, cls['w'], cls['scale'], cls['bias'],
                       relu=False, out_dtype=jnp.float32)
    return logits[:, :cls['num_classes']]


# ----------------------------------- main ------------------------------------

if __name__ == "__main__":
    key = jax.random.PRNGKey(0)
    pkey, xkey = jax.random.split(key)
    params = init_mobilenetv2(pkey, num_classes=10)
    prep = prepare_mobilenetv2(params)

    # PyTorch-style NCHW input: batch=2, 3 channels, 16x16 spatial.
    x = jax.random.normal(xkey, (2, 3, 16, 16), dtype=jnp.float32)

    fwd = jax.jit(lambda inp: mobilenetv2_forward(prep, inp))
    out = jax.block_until_ready(fwd(x))

    assert out.shape == (2, 10), out.shape
    assert bool(jnp.all(jnp.isfinite(out)))
    print("KERNEL_OK")
</pallas_src>

<mosaic_0001>
module attributes {stable_mosaic.version = 11 : i64} {
  func.func @_dwconv_bn_kernel(%arg0: i32, %arg1: i32, %arg2: memref<1x10x10x128xbf16, #tpu.memory_space<vmem>>, %arg3: memref<9x128xf32, #tpu.memory_space<vmem>>, %arg4: memref<1x128xf32, #tpu.memory_space<vmem>>, %arg5: memref<1x8x8x128xbf16, #tpu.memory_space<vmem>>) attributes {dimension_semantics = [#tpu.dimension_semantics<parallel>, #tpu.dimension_semantics<parallel>], iteration_bounds = array<i64: 2, 1>, scalar_prefetch = 0 : i64, scratch_operands = 0 : i64, tpu.core_type = #tpu.core_type<tc>, window_params = [{transform_indices = @transform_0, window_bounds = array<i64: 1, 10, 10, 128>}, {transform_indices = @transform_1, window_bounds = array<i64: 9, 128>}, {transform_indices = @transform_2, window_bounds = array<i64: 1, 128>}, {transform_indices = @transform_3, window_bounds = array<i64: 1, 8, 8, 128>}]} {
    %c0 = arith.constant 0 : index
    %c0_0 = arith.constant 0 : index
    %c0_1 = arith.constant 0 : index
    %c0_2 = arith.constant 0 : index
    %0 = vector.load %arg2[%c0, %c0_0, %c0_1, %c0_2] : memref<1x10x10x128xbf16, #tpu.memory_space<vmem>>, vector<1x10x8x128xbf16>
    %1 = vector.shape_cast %0 : vector<1x10x8x128xbf16> to vector<10x8x128xbf16>
    %2 = vector.extract_strided_slice %1 {offsets = [0, 0, 0], sizes = [8, 8, 128], strides = [1, 1, 1]} : vector<10x8x128xbf16> to vector<8x8x128xbf16>
    %c0_3 = arith.constant 0 : index
    %c0_4 = arith.constant 0 : index
    %3 = vector.load %arg3[%c0_3, %c0_4] : memref<9x128xf32, #tpu.memory_space<vmem>>, vector<1x128xf32>
    %4 = vector.shape_cast %3 : vector<1x128xf32> to vector<128xf32>
    %5 = vector.shape_cast %4 : vector<128xf32> to vector<1x1x128xf32>
    %6 = arith.extf %2 : vector<8x8x128xbf16> to vector<8x8x128xf32>
    %7 = vector.broadcast %5 : vector<1x1x128xf32> to vector<8x8x128xf32>
    %8 = arith.mulf %6, %7 : vector<8x8x128xf32>
    %9 = vector.extract_strided_slice %1 {offsets = [1, 0, 0], sizes = [8, 8, 128], strides = [1, 1, 1]} : vector<10x8x128xbf16> to vector<8x8x128xbf16>
    %c3 = arith.constant 3 : index
    %c0_5 = arith.constant 0 : index
    %10 = vector.load %arg3[%c3, %c0_5] : memref<9x128xf32, #tpu.memory_space<vmem>>, vector<1x128xf32>
    %11 = vector.shape_cast %10 : vector<1x128xf32> to vector<128xf32>
    %12 = vector.shape_cast %11 : vector<128xf32> to vector<1x1x128xf32>
    %13 = arith.extf %9 : vector<8x8x128xbf16> to vector<8x8x128xf32>
    %14 = vector.broadcast %12 : vector<1x1x128xf32> to vector<8x8x128xf32>
    %15 = arith.mulf %13, %14 : vector<8x8x128xf32>
    %16 = arith.addf %8, %15 : vector<8x8x128xf32>
    %17 = vector.extract_strided_slice %1 {offsets = [2, 0, 0], sizes = [8, 8, 128], strides = [1, 1, 1]} : vector<10x8x128xbf16> to vector<8x8x128xbf16>
    %c6 = arith.constant 6 : index
    %c0_6 = arith.constant 0 : index
    %18 = vector.load %arg3[%c6, %c0_6] : memref<9x128xf32, #tpu.memory_space<vmem>>, vector<1x128xf32>
    %19 = vector.shape_cast %18 : vector<1x128xf32> to vector<128xf32>
    %20 = vector.shape_cast %19 : vector<128xf32> to vector<1x1x128xf32>
    %21 = arith.extf %17 : vector<8x8x128xbf16> to vector<8x8x128xf32>
    %22 = vector.broadcast %20 : vector<1x1x128xf32> to vector<8x8x128xf32>
    %23 = arith.mulf %21, %22 : vector<8x8x128xf32>
    %24 = arith.addf %16, %23 : vector<8x8x128xf32>
    %c0_7 = arith.constant 0 : index
    %c0_8 = arith.constant 0 : index
    %c1 = arith.constant 1 : index
    %c0_9 = arith.constant 0 : index
    %25 = vector.load %arg2[%c0_7, %c0_8, %c1, %c0_9] : memref<1x10x10x128xbf16, #tpu.memory_space<vmem>>, vector<1x10x8x128xbf16>
    %26 = vector.shape_cast %25 : vector<1x10x8x128xbf16> to vector<10x8x128xbf16>
    %27 = vector.extract_strided_slice %26 {offsets = [0, 0, 0], sizes = [8, 8, 128], strides = [1, 1, 1]} : vector<10x8x128xbf16> to vector<8x8x128xbf16>
    %c1_10 = arith.constant 1 : index
    %c0_11 = arith.constant 0 : index
    %28 = vector.load %arg3[%c1_10, %c0_11] : memref<9x128xf32, #tpu.memory_space<vmem>>, vector<1x128xf32>
    %29 = vector.shape_cast %28 : vector<1x128xf32> to vector<128xf32>
    %30 = vector.shape_cast %29 : vector<128xf32> to vector<1x1x128xf32>
    %31 = arith.extf %27 : vector<8x8x128xbf16> to vector<8x8x128xf32>
    %32 = vector.broadcast %30 : vector<1x1x128xf32> to vector<8x8x128xf32>
    %33 = arith.mulf %31, %32 : vector<8x8x128xf32>
    %34 = arith.addf %24, %33 : vector<8x8x128xf32>
    %35 = vector.extract_strided_slice %26 {offsets = [1, 0, 0], sizes = [8, 8, 128], strides = [1, 1, 1]} : vector<10x8x128xbf16> to vector<8x8x128xbf16>
    %c4 = arith.constant 4 : index
    %c0_12 = arith.constant 0 : index
    %36 = vector.load %arg3[%c4, %c0_12] : memref<9x128xf32, #tpu.memory_space<vmem>>, vector<1x128xf32>
    %37 = vector.shape_cast %36 : vector<1x128xf32> to vector<128xf32>
    %38 = vector.shape_cast %37 : vector<128xf32> to vector<1x1x128xf32>
    %39 = arith.extf %35 : vector<8x8x128xbf16> to vector<8x8x128xf32>
    %40 = vector.broadcast %38 : vector<1x1x128xf32> to vector<8x8x128xf32>
    %41 = arith.mulf %39, %40 : vector<8x8x128xf32>
    %42 = arith.addf %34, %41 : vector<8x8x128xf32>
    %43 = vector.extract_strided_slice %26 {offsets = [2, 0, 0], sizes = [8, 8, 128], strides = [1, 1, 1]} : vector<10x8x128xbf16> to vector<8x8x128xbf16>
    %c7 = arith.constant 7 : index
    %c0_13 = arith.constant 0 : index
    %44 = vector.load %arg3[%c7, %c0_13] : memref<9x128xf32, #tpu.memory_space<vmem>>, vector<1x128xf32>
    %45 = vector.shape_cast %44 : vector<1x128xf32> to vector<128xf32>
    %46 = vector.shape_cast %45 : vector<128xf32> to vector<1x1x128xf32>
    %47 = arith.extf %43 : vector<8x8x128xbf16> to vector<8x8x128xf32>
    %48 = vector.broadcast %46 : vector<1x1x128xf32> to vector<8x8x128xf32>
    %49 = arith.mulf %47, %48 : vector<8x8x128xf32>
    %50 = arith.addf %42, %49 : vector<8x8x128xf32>
    %c0_14 = arith.constant 0 : index
    %c0_15 = arith.constant 0 : index
    %c2 = arith.constant 2 : index
    %c0_16 = arith.constant 0 : index
    %51 = vector.load %arg2[%c0_14, %c0_15, %c2, %c0_16] : memref<1x10x10x128xbf16, #tpu.memory_space<vmem>>, vector<1x10x8x128xbf16>
    %52 = vector.shape_cast %51 : vector<1x10x8x128xbf16> to vector<10x8x128xbf16>
    %53 = vector.extract_strided_slice %52 {offsets = [0, 0, 0], sizes = [8, 8, 128], strides = [1, 1, 1]} : vector<10x8x128xbf16> to vector<8x8x128xbf16>
    %c2_17 = arith.constant 2 : index
    %c0_18 = arith.constant 0 : index
    %54 = vector.load %arg3[%c2_17, %c0_18] : memref<9x128xf32, #tpu.memory_space<vmem>>, vector<1x128xf32>
    %55 = vector.shape_cast %54 : vector<1x128xf32> to vector<128xf32>
    %56 = vector.shape_cast %55 : vector<128xf32> to vector<1x1x128xf32>
    %57 = arith.extf %53 : vector<8x8x128xbf16> to vector<8x8x128xf32>
    %58 = vector.broadcast %56 : vector<1x1x128xf32> to vector<8x8x128xf32>
    %59 = arith.mulf %57, %58 : vector<8x8x128xf32>
    %60 = arith.addf %50, %59 : vector<8x8x128xf32>
    %61 = vector.extract_strided_slice %52 {offsets = [1, 0, 0], sizes = [8, 8, 128], strides = [1, 1, 1]} : vector<10x8x128xbf16> to vector<8x8x128xbf16>
    %c5 = arith.constant 5 : index
    %c0_19 = arith.constant 0 : index
    %62 = vector.load %arg3[%c5, %c0_19] : memref<9x128xf32, #tpu.memory_space<vmem>>, vector<1x128xf32>
    %63 = vector.shape_cast %62 : vector<1x128xf32> to vector<128xf32>
    %64 = vector.shape_cast %63 : vector<128xf32> to vector<1x1x128xf32>
    %65 = arith.extf %61 : vector<8x8x128xbf16> to vector<8x8x128xf32>
    %66 = vector.broadcast %64 : vector<1x1x128xf32> to vector<8x8x128xf32>
    %67 = arith.mulf %65, %66 : vector<8x8x128xf32>
    %68 = arith.addf %60, %67 : vector<8x8x128xf32>
    %69 = vector.extract_strided_slice %52 {offsets = [2, 0, 0], sizes = [8, 8, 128], strides = [1, 1, 1]} : vector<10x8x128xbf16> to vector<8x8x128xbf16>
    %c8 = arith.constant 8 : index
    %c0_20 = arith.constant 0 : index
    %70 = vector.load %arg3[%c8, %c0_20] : memref<9x128xf32, #tpu.memory_space<vmem>>, vector<1x128xf32>
    %71 = vector.shape_cast %70 : vector<1x128xf32> to vector<128xf32>
    %72 = vector.shape_cast %71 : vector<128xf32> to vector<1x1x128xf32>
    %73 = arith.extf %69 : vector<8x8x128xbf16> to vector<8x8x128xf32>
    %74 = vector.broadcast %72 : vector<1x1x128xf32> to vector<8x8x128xf32>
    %75 = arith.mulf %73, %74 : vector<8x8x128xf32>
    %76 = arith.addf %68, %75 : vector<8x8x128xf32>
    %c0_21 = arith.constant 0 : index
    %c0_22 = arith.constant 0 : index
    %77 = vector.load %arg4[%c0_21, %c0_22] : memref<1x128xf32, #tpu.memory_space<vmem>>, vector<1x128xf32>
    %78 = vector.shape_cast %77 : vector<1x128xf32> to vector<128xf32>
    %79 = vector.shape_cast %78 : vector<128xf32> to vector<1x1x128xf32>
    %80 = vector.broadcast %79 : vector<1x1x128xf32> to vector<8x8x128xf32>
    %81 = arith.addf %76, %80 : vector<8x8x128xf32>
    %cst = arith.constant 0.000000e+00 : f32
    %82 = vector.broadcast %cst : f32 to vector<8x8x128xf32>
    %83 = arith.maximumf %81, %82 : vector<8x8x128xf32>
    %84 = arith.truncf %83 : vector<8x8x128xf32> to vector<8x8x128xbf16>
    %c0_23 = arith.constant 0 : index
    %c0_24 = arith.constant 0 : index
    %c0_25 = arith.constant 0 : index
    %c0_26 = arith.constant 0 : index
    %85 = vector.load %arg5[%c0_23, %c0_24, %c0_25, %c0_26] : memref<1x8x8x128xbf16, #tpu.memory_space<vmem>>, vector<1x8x8x128xbf16>
    %86 = vector.shape_cast %85 : vector<1x8x8x128xbf16> to vector<8x8x128xbf16>
    %87 = vector.shape_cast %84 : vector<8x8x128xbf16> to vector<1x8x8x128xbf16>
    tpu.vector_store %arg5[%c0_23, %c0_24, %c0_25, %c0_26], %87 {strides = array<i32>} : memref<1x8x8x128xbf16, #tpu.memory_space<vmem>>, vector<1x8x8x128xbf16>,
    return
  }
  func.func @transform_0(%arg0: i32, %arg1: i32) -> (i32, i32, i32, i32) {
    %c0_i32 = arith.constant 0 : i32
    %c0_i32_0 = arith.constant 0 : i32
    %c0_i32_1 = arith.constant 0 : i32
    return %arg0, %c0_i32, %c0_i32_0, %arg1 : i32, i32, i32, i32
  }
  func.func @transform_1(%arg0: i32, %arg1: i32) -> (i32, i32) {
    %c0_i32 = arith.constant 0 : i32
    %c0_i32_0 = arith.constant 0 : i32
    return %c0_i32, %arg1 : i32, i32
  }
  func.func @transform_2(%arg0: i32, %arg1: i32) -> (i32, i32) {
    %c0_i32 = arith.constant 0 : i32
    %c0_i32_0 = arith.constant 0 : i32
    return %c0_i32, %arg1 : i32, i32
  }
  func.func @transform_3(%arg0: i32, %arg1: i32) -> (i32, i32, i32, i32) {
    %c0_i32 = arith.constant 0 : i32
    %c0_i32_0 = arith.constant 0 : i32
    %c0_i32_1 = arith.constant 0 : i32
    return %arg0, %c0_i32, %c0_i32_0, %arg1 : i32, i32, i32, i32
  }
}

module attributes {stable_mosaic.version = 11 : i64} {
  func.func @_matmul_bn_fullk_kernel(%arg0: i32, %arg1: i32, %arg2: memref<128x27xbf16, #tpu.memory_space<vmem>>, %arg3: memref<27x128xbf16, #tpu.memory_space<vmem>>, %arg4: memref<1x128xf32, #tpu.memory_space<vmem>>, %arg5: memref<1x128xf32, #tpu.memory_space<vmem>>, %arg6: memref<128x128xbf16, #tpu.memory_space<vmem>>) attributes {dimension_semantics = [#tpu.dimension_semantics<parallel>, #tpu.dimension_semantics<parallel>], iteration_bounds = array<i64: 1, 1>, scalar_prefetch = 0 : i64, scratch_operands = 0 : i64, tpu.core_type = #tpu.core_type<tc>, window_params = [{transform_indices = @transform_0, window_bounds = array<i64: 128, 27>}, {transform_indices = @transform_1, window_bounds = array<i64: 27, 128>}, {transform_indices = @transform_2, window_bounds = array<i64: 1, 128>}, {transform_indices = @transform_3, window_bounds = array<i64: 1, 128>}, {transform_indices = @transform_4, window_bounds = array<i64: 128, 128>}]} {
    %c0 = arith.constant 0 : index
    %c0_0 = arith.constant 0 : index
    %0 = vector.load %arg2[%c0, %c0_0] : memref<128x27xbf16, #tpu.memory_space<vmem>>, vector<128x27xbf16>
    %c0_1 = arith.constant 0 : index
    %c0_2 = arith.constant 0 : index
    %1 = vector.load %arg3[%c0_1, %c0_2] : memref<27x128xbf16, #tpu.memory_space<vmem>>, vector<27x128xbf16>
    %cst = arith.constant dense<0.000000e+00> : vector<128x128xf32>
    %2 = tpu.matmul %0, %1, %cst {dimension_numbers = #tpu.dot_dimension_numbers<[1], [0], [0], [1], [0, 0, 1, 1], [], []>} : vector<128x27xbf16>, vector<27x128xbf16>, vector<128x128xf32> -> vector<128x128xf32>
    %c0_3 = arith.constant 0 : index
    %c0_4 = arith.constant 0 : index
    %3 = vector.load %arg4[%c0_3, %c0_4] : memref<1x128xf32, #tpu.memory_space<vmem>>, vector<1x128xf32>
    %4 = vector.broadcast %3 : vector<1x128xf32> to vector<128x128xf32>
    %5 = arith.mulf %2, %4 : vector<128x128xf32>
    %c0_5 = arith.constant 0 : index
    %c0_6 = arith.constant 0 : index
    %6 = vector.load %arg5[%c0_5, %c0_6] : memref<1x128xf32, #tpu.memory_space<vmem>>, vector<1x128xf32>
    %7 = vector.broadcast %6 : vector<1x128xf32> to vector<128x128xf32>
    %8 = arith.addf %5, %7 : vector<128x128xf32>
    %cst_7 = arith.constant 0.000000e+00 : f32
    %9 = vector.broadcast %cst_7 : f32 to vector<128x128xf32>
    %10 = arith.maximumf %8, %9 : vector<128x128xf32>
    %11 = arith.truncf %10 : vector<128x128xf32> to vector<128x128xbf16>
    %c0_8 = arith.constant 0 : index
    %c0_9 = arith.constant 0 : index
    %12 = vector.load %arg6[%c0_8, %c0_9] : memref<128x128xbf16, #tpu.memory_space<vmem>>, vector<128x128xbf16>
    tpu.vector_store %arg6[%c0_8, %c0_9], %11 {strides = array<i32>} : memref<128x128xbf16, #tpu.memory_space<vmem>>, vector<128x128xbf16>,
    return
  }
  func.func @transform_0(%arg0: i32, %arg1: i32) -> (i32, i32) {
    %c0_i32 = arith.constant 0 : i32
    %c0_i32_0 = arith.constant 0 : i32
    return %arg0, %c0_i32 : i32, i32
  }
  func.func @transform_1(%arg0: i32, %arg1: i32) -> (i32, i32) {
    %c0_i32 = arith.constant 0 : i32
    %c0_i32_0 = arith.constant 0 : i32
    return %c0_i32, %arg1 : i32, i32
  }
  func.func @transform_2(%arg0: i32, %arg1: i32) -> (i32, i32) {
    %c0_i32 = arith.constant 0 : i32
    %c0_i32_0 = arith.constant 0 : i32
    return %c0_i32, %arg1 : i32, i32
  }
  func.func @transform_3(%arg0: i32, %arg1: i32) -> (i32, i32) {
    %c0_i32 = arith.constant 0 : i32
    %c0_i32_0 = arith.constant 0 : i32
    return %c0_i32, %arg1 : i32, i32
  }
  func.func @transform_4(%arg0: i32, %arg1: i32) -> (i32, i32) {
    %c0_i32 = arith.constant 0 : i32
    return %arg0, %arg1 : i32, i32
  }
}

module attributes {stable_mosaic.version = 11 : i64} {
  func.func @_matmul_bn_fullk_kernel(%arg0: i32, %arg1: i32, %arg2: memref<128x128xbf16, #tpu.memory_space<vmem>>, %arg3: memref<128x128xbf16, #tpu.memory_space<vmem>>, %arg4: memref<1x128xf32, #tpu.memory_space<vmem>>, %arg5: memref<1x128xf32, #tpu.memory_space<vmem>>, %arg6: memref<128x128xbf16, #tpu.memory_space<vmem>>) attributes {dimension_semantics = [#tpu.dimension_semantics<parallel>, #tpu.dimension_semantics<parallel>], iteration_bounds = array<i64: 1, 1>, scalar_prefetch = 0 : i64, scratch_operands = 0 : i64, tpu.core_type = #tpu.core_type<tc>, window_params = [{transform_indices = @transform_0, window_bounds = array<i64: 128, 128>}, {transform_indices = @transform_1, window_bounds = array<i64: 128, 128>}, {transform_indices = @transform_2, window_bounds = array<i64: 1, 128>}, {transform_indices = @transform_3, window_bounds = array<i64: 1, 128>}, {transform_indices = @transform_4, window_bounds = array<i64: 128, 128>}]} {
    %c0 = arith.constant 0 : index
    %c0_0 = arith.constant 0 : index
    %0 = vector.load %arg2[%c0, %c0_0] : memref<128x128xbf16, #tpu.memory_space<vmem>>, vector<128x128xbf16>
    %c0_1 = arith.constant 0 : index
    %c0_2 = arith.constant 0 : index
    %1 = vector.load %arg3[%c0_1, %c0_2] : memref<128x128xbf16, #tpu.memory_space<vmem>>, vector<128x128xbf16>
    %cst = arith.constant dense<0.000000e+00> : vector<128x128xf32>
    %2 = tpu.matmul %0, %1, %cst {dimension_numbers = #tpu.dot_dimension_numbers<[1], [0], [0], [1], [0, 0, 1, 1], [], []>} : vector<128x128xbf16>, vector<128x128xbf16>, vector<128x128xf32> -> vector<128x128xf32>
    %c0_3 = arith.constant 0 : index
    %c0_4 = arith.constant 0 : index
    %3 = vector.load %arg4[%c0_3, %c0_4] : memref<1x128xf32, #tpu.memory_space<vmem>>, vector<1x128xf32>
    %4 = vector.broadcast %3 : vector<1x128xf32> to vector<128x128xf32>
    %5 = arith.mulf %2, %4 : vector<128x128xf32>
    %c0_5 = arith.constant 0 : index
    %c0_6 = arith.constant 0 : index
    %6 = vector.load %arg5[%c0_5, %c0_6] : memref<1x128xf32, #tpu.memory_space<vmem>>, vector<1x128xf32>
    %7 = vector.broadcast %6 : vector<1x128xf32> to vector<128x128xf32>
    %8 = arith.addf %5, %7 : vector<128x128xf32>
    %9 = arith.truncf %8 : vector<128x128xf32> to vector<128x128xbf16>
    %c0_7 = arith.constant 0 : index
    %c0_8 = arith.constant 0 : index
    %10 = vector.load %arg6[%c0_7, %c0_8] : memref<128x128xbf16, #tpu.memory_space<vmem>>, vector<128x128xbf16>
    tpu.vector_store %arg6[%c0_7, %c0_8], %9 {strides = array<i32>} : memref<128x128xbf16, #tpu.memory_space<vmem>>, vector<128x128xbf16>,
    return
  }
  func.func @transform_0(%arg0: i32, %arg1: i32) -> (i32, i32) {
    %c0_i32 = arith.constant 0 : i32
    %c0_i32_0 = arith.constant 0 : i32
    return %arg0, %c0_i32 : i32, i32
  }
  func.func @transform_1(%arg0: i32, %arg1: i32) -> (i32, i32) {
    %c0_i32 = arith.constant 0 : i32
    %c0_i32_0 = arith.constant 0 : i32
    return %c0_i32, %arg1 : i32, i32
  }
  func.func @transform_2(%arg0: i32, %arg1: i32) -> (i32, i32) {
    %c0_i32 = arith.constant 0 : i32
    %c0_i32_0 = arith.constant 0 : i32
    return %c0_i32, %arg1 : i32, i32
  }
  func.func @transform_3(%arg0: i32, %arg1: i32) -> (i32, i32) {
    %c0_i32 = arith.constant 0 : i32
    %c0_i32_0 = arith.constant 0 : i32
    return %c0_i32, %arg1 : i32, i32
  }
  func.func @transform_4(%arg0: i32, %arg1: i32) -> (i32, i32) {
    %c0_i32 = arith.constant 0 : i32
    return %arg0, %arg1 : i32, i32
  }
}

module attributes {stable_mosaic.version = 11 : i64} {
  func.func @_matmul_bn_fullk_kernel(%arg0: i32, %arg1: i32, %arg2: memref<128x128xbf16, #tpu.memory_space<vmem>>, %arg3: memref<128x128xbf16, #tpu.memory_space<vmem>>, %arg4: memref<1x128xf32, #tpu.memory_space<vmem>>, %arg5: memref<1x128xf32, #tpu.memory_space<vmem>>, %arg6: memref<128x128xbf16, #tpu.memory_space<vmem>>) attributes {dimension_semantics = [#tpu.dimension_semantics<parallel>, #tpu.dimension_semantics<parallel>], iteration_bounds = array<i64: 1, 1>, scalar_prefetch = 0 : i64, scratch_operands = 0 : i64, tpu.core_type = #tpu.core_type<tc>, window_params = [{transform_indices = @transform_0, window_bounds = array<i64: 128, 128>}, {transform_indices = @transform_1, window_bounds = array<i64: 128, 128>}, {transform_indices = @transform_2, window_bounds = array<i64: 1, 128>}, {transform_indices = @transform_3, window_bounds = array<i64: 1, 128>}, {transform_indices = @transform_4, window_bounds = array<i64: 128, 128>}]} {
    %c0 = arith.constant 0 : index
    %c0_0 = arith.constant 0 : index
    %0 = vector.load %arg2[%c0, %c0_0] : memref<128x128xbf16, #tpu.memory_space<vmem>>, vector<128x128xbf16>
    %c0_1 = arith.constant 0 : index
    %c0_2 = arith.constant 0 : index
    %1 = vector.load %arg3[%c0_1, %c0_2] : memref<128x128xbf16, #tpu.memory_space<vmem>>, vector<128x128xbf16>
    %cst = arith.constant dense<0.000000e+00> : vector<128x128xf32>
    %2 = tpu.matmul %0, %1, %cst {dimension_numbers = #tpu.dot_dimension_numbers<[1], [0], [0], [1], [0, 0, 1, 1], [], []>} : vector<128x128xbf16>, vector<128x128xbf16>, vector<128x128xf32> -> vector<128x128xf32>
    %c0_3 = arith.constant 0 : index
    %c0_4 = arith.constant 0 : index
    %3 = vector.load %arg4[%c0_3, %c0_4] : memref<1x128xf32, #tpu.memory_space<vmem>>, vector<1x128xf32>
    %4 = vector.broadcast %3 : vector<1x128xf32> to vector<128x128xf32>
    %5 = arith.mulf %2, %4 : vector<128x128xf32>
    %c0_5 = arith.constant 0 : index
    %c0_6 = arith.constant 0 : index
    %6 = vector.load %arg5[%c0_5, %c0_6] : memref<1x128xf32, #tpu.memory_space<vmem>>, vector<1x128xf32>
    %7 = vector.broadcast %6 : vector<1x128xf32> to vector<128x128xf32>
    %8 = arith.addf %5, %7 : vector<128x128xf32>
    %cst_7 = arith.constant 0.000000e+00 : f32
    %9 = vector.broadcast %cst_7 : f32 to vector<128x128xf32>
    %10 = arith.maximumf %8, %9 : vector<128x128xf32>
    %11 = arith.truncf %10 : vector<128x128xf32> to vector<128x128xbf16>
    %c0_8 = arith.constant 0 : index
    %c0_9 = arith.constant 0 : index
    %12 = vector.load %arg6[%c0_8, %c0_9] : memref<128x128xbf16, #tpu.memory_space<vmem>>, vector<128x128xbf16>
    tpu.vector_store %arg6[%c0_8, %c0_9], %11 {strides = array<i32>} : memref<128x128xbf16, #tpu.memory_space<vmem>>, vector<128x128xbf16>,
    return
  }
  func.func @transform_0(%arg0: i32, %arg1: i32) -> (i32, i32) {
    %c0_i32 = arith.constant 0 : i32
    %c0_i32_0 = arith.constant 0 : i32
    return %arg0, %c0_i32 : i32, i32
  }
  func.func @transform_1(%arg0: i32, %arg1: i32) -> (i32, i32) {
    %c0_i32 = arith.constant 0 : i32
    %c0_i32_0 = arith.constant 0 : i32
    return %c0_i32, %arg1 : i32, i32
  }
  func.func @transform_2(%arg0: i32, %arg1: i32) -> (i32, i32) {
    %c0_i32 = arith.constant 0 : i32
    %c0_i32_0 = arith.constant 0 : i32
    return %c0_i32, %arg1 : i32, i32
  }
  func.func @transform_3(%arg0: i32, %arg1: i32) -> (i32, i32) {
    %c0_i32 = arith.constant 0 : i32
    %c0_i32_0 = arith.constant 0 : i32
    return %c0_i32, %arg1 : i32, i32
  }
  func.func @transform_4(%arg0: i32, %arg1: i32) -> (i32, i32) {
    %c0_i32 = arith.constant 0 : i32
    return %arg0, %arg1 : i32, i32
  }
}

module attributes {stable_mosaic.version = 11 : i64} {
  func.func @_matmul_bn_fullk_kernel(%arg0: i32, %arg1: i32, %arg2: memref<32x128xbf16, #tpu.memory_space<vmem>>, %arg3: memref<128x128xbf16, #tpu.memory_space<vmem>>, %arg4: memref<1x128xf32, #tpu.memory_space<vmem>>, %arg5: memref<1x128xf32, #tpu.memory_space<vmem>>, %arg6: memref<32x128xbf16, #tpu.memory_space<vmem>>) attributes {dimension_semantics = [#tpu.dimension_semantics<parallel>, #tpu.dimension_semantics<parallel>], iteration_bounds = array<i64: 1, 1>, scalar_prefetch = 0 : i64, scratch_operands = 0 : i64, tpu.core_type = #tpu.core_type<tc>, window_params = [{transform_indices = @transform_0, window_bounds = array<i64: 32, 128>}, {transform_indices = @transform_1, window_bounds = array<i64: 128, 128>}, {transform_indices = @transform_2, window_bounds = array<i64: 1, 128>}, {transform_indices = @transform_3, window_bounds = array<i64: 1, 128>}, {transform_indices = @transform_4, window_bounds = array<i64: 32, 128>}]} {
    %c0 = arith.constant 0 : index
    %c0_0 = arith.constant 0 : index
    %0 = vector.load %arg2[%c0, %c0_0] : memref<32x128xbf16, #tpu.memory_space<vmem>>, vector<32x128xbf16>
    %c0_1 = arith.constant 0 : index
    %c0_2 = arith.constant 0 : index
    %1 = vector.load %arg3[%c0_1, %c0_2] : memref<128x128xbf16, #tpu.memory_space<vmem>>, vector<128x128xbf16>
    %cst = arith.constant dense<0.000000e+00> : vector<32x128xf32>
    %2 = tpu.matmul %0, %1, %cst {dimension_numbers = #tpu.dot_dimension_numbers<[1], [0], [0], [1], [0, 0, 1, 1], [], []>} : vector<32x128xbf16>, vector<128x128xbf16>, vector<32x128xf32> -> vector<32x128xf32>
    %c0_3 = arith.constant 0 : index
    %c0_4 = arith.constant 0 : index
    %3 = vector.load %arg4[%c0_3, %c0_4] : memref<1x128xf32, #tpu.memory_space<vmem>>, vector<1x128xf32>
    %4 = vector.broadcast %3 : vector<1x128xf32> to vector<32x128xf32>
    %5 = arith.mulf %2, %4 : vector<32x128xf32>
    %c0_5 = arith.constant 0 : index
    %c0_6 = arith.constant 0 : index
    %6 = vector.load %arg5[%c0_5, %c0_6] : memref<1x128xf32, #tpu.memory_space<vmem>>, vector<1x128xf32>
    %7 = vector.broadcast %6 : vector<1x128xf32> to vector<32x128xf32>
    %8 = arith.addf %5, %7 : vector<32x128xf32>
    %9 = arith.truncf %8 : vector<32x128xf32> to vector<32x128xbf16>
    %c0_7 = arith.constant 0 : index
    %c0_8 = arith.constant 0 : index
    %10 = vector.load %arg6[%c0_7, %c0_8] : memref<32x128xbf16, #tpu.memory_space<vmem>>, vector<32x128xbf16>
    tpu.vector_store %arg6[%c0_7, %c0_8], %9 {strides = array<i32>} : memref<32x128xbf16, #tpu.memory_space<vmem>>, vector<32x128xbf16>,
    return
  }
  func.func @transform_0(%arg0: i32, %arg1: i32) -> (i32, i32) {
    %c0_i32 = arith.constant 0 : i32
    %c0_i32_0 = arith.constant 0 : i32
    return %arg0, %c0_i32 : i32, i32
  }
  func.func @transform_1(%arg0: i32, %arg1: i32) -> (i32, i32) {
    %c0_i32 = arith.constant 0 : i32
    %c0_i32_0 = arith.constant 0 : i32
    return %c0_i32, %arg1 : i32, i32
  }
  func.func @transform_2(%arg0: i32, %arg1: i32) -> (i32, i32) {
    %c0_i32 = arith.constant 0 : i32
    %c0_i32_0 = arith.constant 0 : i32
    return %c0_i32, %arg1 : i32, i32
  }
  func.func @transform_3(%arg0: i32, %arg1: i32) -> (i32, i32) {
    %c0_i32 = arith.constant 0 : i32
    %c0_i32_0 = arith.constant 0 : i32
    return %c0_i32, %arg1 : i32, i32
  }
  func.func @transform_4(%arg0: i32, %arg1: i32) -> (i32, i32) {
    %c0_i32 = arith.constant 0 : i32
    return %arg0, %arg1 : i32, i32
  }
}

module attributes {stable_mosaic.version = 11 : i64} {
  func.func @_dwconv_bn_kernel(%arg0: i32, %arg1: i32, %arg2: memref<4x5x5x128xbf16, #tpu.memory_space<vmem>>, %arg3: memref<9x128xf32, #tpu.memory_space<vmem>>, %arg4: memref<1x128xf32, #tpu.memory_space<vmem>>, %arg5: memref<1x4x4x128xbf16, #tpu.memory_space<vmem>>) attributes {dimension_semantics = [#tpu.dimension_semantics<parallel>, #tpu.dimension_semantics<parallel>], iteration_bounds = array<i64: 2, 1>, scalar_prefetch = 0 : i64, scratch_operands = 0 : i64, tpu.core_type = #tpu.core_type<tc>, window_params = [{transform_indices = @transform_0, window_bounds = array<i64: 4, 5, 5, 128>}, {transform_indices = @transform_1, window_bounds = array<i64: 9, 128>}, {transform_indices = @transform_2, window_bounds = array<i64: 1, 128>}, {transform_indices = @transform_3, window_bounds = array<i64: 1, 4, 4, 128>}]} {
    %c0 = arith.constant 0 : index
    %c0_0 = arith.constant 0 : index
    %c0_1 = arith.constant 0 : index
    %c0_2 = arith.constant 0 : index
    %0 = vector.load %arg2[%c0, %c0_0, %c0_1, %c0_2] : memref<4x5x5x128xbf16, #tpu.memory_space<vmem>>, vector<1x5x4x128xbf16>
    %1 = vector.shape_cast %0 : vector<1x5x4x128xbf16> to vector<5x4x128xbf16>
    %2 = vector.extract_strided_slice %1 {offsets = [0, 0, 0], sizes = [4, 4, 128], strides = [1, 1, 1]} : vector<5x4x128xbf16> to vector<4x4x128xbf16>
    %c0_3 = arith.constant 0 : index
    %c0_4 = arith.constant 0 : index
    %3 = vector.load %arg3[%c0_3, %c0_4] : memref<9x128xf32, #tpu.memory_space<vmem>>, vector<1x128xf32>
    %4 = vector.shape_cast %3 : vector<1x128xf32> to vector<128xf32>
    %5 = vector.shape_cast %4 : vector<128xf32> to vector<1x1x128xf32>
    %6 = arith.extf %2 : vector<4x4x128xbf16> to vector<4x4x128xf32>
    %7 = vector.broadcast %5 : vector<1x1x128xf32> to vector<4x4x128xf32>
    %8 = arith.mulf %6, %7 : vector<4x4x128xf32>
    %c2 = arith.constant 2 : index
    %c0_5 = arith.constant 0 : index
    %c0_6 = arith.constant 0 : index
    %c0_7 = arith.constant 0 : index
    %9 = vector.load %arg2[%c2, %c0_5, %c0_6, %c0_7] : memref<4x5x5x128xbf16, #tpu.memory_space<vmem>>, vector<1x5x4x128xbf16>
    %10 = vector.shape_cast %9 : vector<1x5x4x128xbf16> to vector<5x4x128xbf16>
    %11 = vector.extract_strided_slice %10 {offsets = [0, 0, 0], sizes = [4, 4, 128], strides = [1, 1, 1]} : vector<5x4x128xbf16> to vector<4x4x128xbf16>
    %c3 = arith.constant 3 : index
    %c0_8 = arith.constant 0 : index
    %12 = vector.load %arg3[%c3, %c0_8] : memref<9x128xf32, #tpu.memory_space<vmem>>, vector<1x128xf32>
    %13 = vector.shape_cast %12 : vector<1x128xf32> to vector<128xf32>
    %14 = vector.shape_cast %13 : vector<128xf32> to vector<1x1x128xf32>
    %15 = arith.extf %11 : vector<4x4x128xbf16> to vector<4x4x128xf32>
    %16 = vector.broadcast %14 : vector<1x1x128xf32> to vector<4x4x128xf32>
    %17 = arith.mulf %15, %16 : vector<4x4x128xf32>
    %18 = arith.addf %8, %17 : vector<4x4x128xf32>
    %19 = vector.extract_strided_slice %1 {offsets = [1, 0, 0], sizes = [4, 4, 128], strides = [1, 1, 1]} : vector<5x4x128xbf16> to vector<4x4x128xbf16>
    %c6 = arith.constant 6 : index
    %c0_9 = arith.constant 0 : index
    %20 = vector.load %arg3[%c6, %c0_9] : memref<9x128xf32, #tpu.memory_space<vmem>>, vector<1x128xf32>
    %21 = vector.shape_cast %20 : vector<1x128xf32> to vector<128xf32>
    %22 = vector.shape_cast %21 : vector<128xf32> to vector<1x1x128xf32>
    %23 = arith.extf %19 : vector<4x4x128xbf16> to vector<4x4x128xf32>
    %24 = vector.broadcast %22 : vector<1x1x128xf32> to vector<4x4x128xf32>
    %25 = arith.mulf %23, %24 : vector<4x4x128xf32>
    %26 = arith.addf %18, %25 : vector<4x4x128xf32>
    %c1 = arith.constant 1 : index
    %c0_10 = arith.constant 0 : index
    %c0_11 = arith.constant 0 : index
    %c0_12 = arith.constant 0 : index
    %27 = vector.load %arg2[%c1, %c0_10, %c0_11, %c0_12] : memref<4x5x5x128xbf16, #tpu.memory_space<vmem>>, vector<1x5x4x128xbf16>
    %28 = vector.shape_cast %27 : vector<1x5x4x128xbf16> to vector<5x4x128xbf16>
    %29 = vector.extract_strided_slice %28 {offsets = [0, 0, 0], sizes = [4, 4, 128], strides = [1, 1, 1]} : vector<5x4x128xbf16> to vector<4x4x128xbf16>
    %c1_13 = arith.constant 1 : index
    %c0_14 = arith.constant 0 : index
    %30 = vector.load %arg3[%c1_13, %c0_14] : memref<9x128xf32, #tpu.memory_space<vmem>>, vector<1x128xf32>
    %31 = vector.shape_cast %30 : vector<1x128xf32> to vector<128xf32>
    %32 = vector.shape_cast %31 : vector<128xf32> to vector<1x1x128xf32>
    %33 = arith.extf %29 : vector<4x4x128xbf16> to vector<4x4x128xf32>
    %34 = vector.broadcast %32 : vector<1x1x128xf32> to vector<4x4x128xf32>
    %35 = arith.mulf %33, %34 : vector<4x4x128xf32>
    %36 = arith.addf %26, %35 : vector<4x4x128xf32>
    %c3_15 = arith.constant 3 : index
    %c0_16 = arith.constant 0 : index
    %c0_17 = arith.constant 0 : index
    %c0_18 = arith.constant 0 : index
    %37 = vector.load %arg2[%c3_15, %c0_16, %c0_17, %c0_18] : memref<4x5x5x128xbf16, #tpu.memory_space<vmem>>, vector<1x5x4x128xbf16>
    %38 = vector.shape_cast %37 : vector<1x5x4x128xbf16> to vector<5x4x128xbf16>
    %39 = vector.extract_strided_slice %38 {offsets = [0, 0, 0], sizes = [4, 4, 128], strides = [1, 1, 1]} : vector<5x4x128xbf16> to vector<4x4x128xbf16>
    %c4 = arith.constant 4 : index
    %c0_19 = arith.constant 0 : index
    %40 = vector.load %arg3[%c4, %c0_19] : memref<9x128xf32, #tpu.memory_space<vmem>>, vector<1x128xf32>
    %41 = vector.shape_cast %40 : vector<1x128xf32> to vector<128xf32>
    %42 = vector.shape_cast %41 : vector<128xf32> to vector<1x1x128xf32>
    %43 = arith.extf %39 : vector<4x4x128xbf16> to vector<4x4x128xf32>
    %44 = vector.broadcast %42 : vector<1x1x128xf32> to vector<4x4x128xf32>
    %45 = arith.mulf %43, %44 : vector<4x4x128xf32>
    %46 = arith.addf %36, %45 : vector<4x4x128xf32>
    %47 = vector.extract_strided_slice %28 {offsets = [1, 0, 0], sizes = [4, 4, 128], strides = [1, 1, 1]} : vector<5x4x128xbf16> to vector<4x4x128xbf16>
    %c7 = arith.constant 7 : index
    %c0_20 = arith.constant 0 : index
    %48 = vector.load %arg3[%c7, %c0_20] : memref<9x128xf32, #tpu.memory_space<vmem>>, vector<1x128xf32>
    %49 = vector.shape_cast %48 : vector<1x128xf32> to vector<128xf32>
    %50 = vector.shape_cast %49 : vector<128xf32> to vector<1x1x128xf32>
    %51 = arith.extf %47 : vector<4x4x128xbf16> to vector<4x4x128xf32>
    %52 = vector.broadcast %50 : vector<1x1x128xf32> to vector<4x4x128xf32>
    %53 = arith.mulf %51, %52 : vector<4x4x128xf32>
    %54 = arith.addf %46, %53 : vector<4x4x128xf32>
    %c0_21 = arith.constant 0 : index
    %c0_22 = arith.constant 0 : index
    %c1_23 = arith.constant 1 : index
    %c0_24 = arith.constant 0 : index
    %55 = vector.load %arg2[%c0_21, %c0_22, %c1_23, %c0_24] : memref<4x5x5x128xbf16, #tpu.memory_space<vmem>>, vector<1x5x4x128xbf16>
    %56 = vector.shape_cast %55 : vector<1x5x4x128xbf16> to vector<5x4x128xbf16>
    %57 = vector.extract_strided_slice %56 {offsets = [0, 0, 0], sizes = [4, 4, 128], strides = [1, 1, 1]} : vector<5x4x128xbf16> to vector<4x4x128xbf16>
    %c2_25 = arith.constant 2 : index
    %c0_26 = arith.constant 0 : index
    %58 = vector.load %arg3[%c2_25, %c0_26] : memref<9x128xf32, #tpu.memory_space<vmem>>, vector<1x128xf32>
    %59 = vector.shape_cast %58 : vector<1x128xf32> to vector<128xf32>
    %60 = vector.shape_cast %59 : vector<128xf32> to vector<1x1x128xf32>
    %61 = arith.extf %57 : vector<4x4x128xbf16> to vector<4x4x128xf32>
    %62 = vector.broadcast %60 : vector<1x1x128xf32> to vector<4x4x128xf32>
    %63 = arith.mulf %61, %62 : vector<4x4x128xf32>
    %64 = arith.addf %54, %63 : vector<4x4x128xf32>
    %c2_27 = arith.constant 2 : index
    %c0_28 = arith.constant 0 : index
    %c1_29 = arith.constant 1 : index
    %c0_30 = arith.constant 0 : index
    %65 = vector.load %arg2[%c2_27, %c0_28, %c1_29, %c0_30] : memref<4x5x5x128xbf16, #tpu.memory_space<vmem>>, vector<1x5x4x128xbf16>
    %66 = vector.shape_cast %65 : vector<1x5x4x128xbf16> to vector<5x4x128xbf16>
    %67 = vector.extract_strided_slice %66 {offsets = [0, 0, 0], sizes = [4, 4, 128], strides = [1, 1, 1]} : vector<5x4x128xbf16> to vector<4x4x128xbf16>
    %c5 = arith.constant 5 : index
    %c0_31 = arith.constant 0 : index
    %68 = vector.load %arg3[%c5, %c0_31] : memref<9x128xf32, #tpu.memory_space<vmem>>, vector<1x128xf32>
    %69 = vector.shape_cast %68 : vector<1x128xf32> to vector<128xf32>
    %70 = vector.shape_cast %69 : vector<128xf32> to vector<1x1x128xf32>
    %71 = arith.extf %67 : vector<4x4x128xbf16> to vector<4x4x128xf32>
    %72 = vector.broadcast %70 : vector<1x1x128xf32> to vector<4x4x128xf32>
    %73 = arith.mulf %71, %72 : vector<4x4x128xf32>
    %74 = arith.addf %64, %73 : vector<4x4x128xf32>
    %75 = vector.extract_strided_slice %56 {offsets = [1, 0, 0], sizes = [4, 4, 128], strides = [1, 1, 1]} : vector<5x4x128xbf16> to vector<4x4x128xbf16>
    %c8 = arith.constant 8 : index
    %c0_32 = arith.constant 0 : index
    %76 = vector.load %arg3[%c8, %c0_32] : memref<9x128xf32, #tpu.memory_space<vmem>>, vector<1x128xf32>
    %77 = vector.shape_cast %76 : vector<1x128xf32> to vector<128xf32>
    %78 = vector.shape_cast %77 : vector<128xf32> to vector<1x1x128xf32>
    %79 = arith.extf %75 : vector<4x4x128xbf16> to vector<4x4x128xf32>
    %80 = vector.broadcast %78 : vector<1x1x128xf32> to vector<4x4x128xf32>
    %81 = arith.mulf %79, %80 : vector<4x4x128xf32>
    %82 = arith.addf %74, %81 : vector<4x4x128xf32>
    %c0_33 = arith.constant 0 : index
    %c0_34 = arith.constant 0 : index
    %83 = vector.load %arg4[%c0_33, %c0_34] : memref<1x128xf32, #tpu.memory_space<vmem>>, vector<1x128xf32>
    %84 = vector.shape_cast %83 : vector<1x128xf32> to vector<128xf32>
    %85 = vector.shape_cast %84 : vector<128xf32> to vector<1x1x128xf32>
    %86 = vector.broadcast %85 : vector<1x1x128xf32> to vector<4x4x128xf32>
    %87 = arith.addf %82, %86 : vector<4x4x128xf32>
    %cst = arith.constant 0.000000e+00 : f32
    %88 = vector.broadcast %cst : f32 to vector<4x4x128xf32>
    %89 = arith.maximumf %87, %88 : vector<4x4x128xf32>
    %90 = arith.truncf %89 : vector<4x4x128xf32> to vector<4x4x128xbf16>
    %c0_35 = arith.constant 0 : index
    %c0_36 = arith.constant 0 : index
    %c0_37 = arith.constant 0 : index
    %c0_38 = arith.constant 0 : index
    %91 = vector.load %arg5[%c0_35, %c0_36, %c0_37, %c0_38] : memref<1x4x4x128xbf16, #tpu.memory_space<vmem>>, vector<1x4x4x128xbf16>
    %92 = vector.shape_cast %91 : vector<1x4x4x128xbf16> to vector<4x4x128xbf16>
    %93 = vector.shape_cast %90 : vector<4x4x128xbf16> to vector<1x4x4x128xbf16>
    tpu.vector_store %arg5[%c0_35, %c0_36, %c0_37, %c0_38], %93 {strides = array<i32>} : memref<1x4x4x128xbf16, #tpu.memory_space<vmem>>, vector<1x4x4x128xbf16>,
    return
  }
  func.func @transform_0(%arg0: i32, %arg1: i32) -> (i32, i32, i32, i32) {
    %c0_i32 = arith.constant 0 : i32
    %c0_i32_0 = arith.constant 0 : i32
    %c0_i32_1 = arith.constant 0 : i32
    return %arg0, %c0_i32, %c0_i32_0, %arg1 : i32, i32, i32, i32
  }
  func.func @transform_1(%arg0: i32, %arg1: i32) -> (i32, i32) {
    %c0_i32 = arith.constant 0 : i32
    %c0_i32_0 = arith.constant 0 : i32
    return %c0_i32, %arg1 : i32, i32
  }
  func.func @transform_2(%arg0: i32, %arg1: i32) -> (i32, i32) {
    %c0_i32 = arith.constant 0 : i32
    %c0_i32_0 = arith.constant 0 : i32
    return %c0_i32, %arg1 : i32, i32
  }
  func.func @transform_3(%arg0: i32, %arg1: i32) -> (i32, i32, i32, i32) {
    %c0_i32 = arith.constant 0 : i32
    %c0_i32_0 = arith.constant 0 : i32
    %c0_i32_1 = arith.constant 0 : i32
    return %arg0, %c0_i32, %c0_i32_0, %arg1 : i32, i32, i32, i32
  }
}

module attributes {stable_mosaic.version = 11 : i64} {
  func.func @_matmul_bn_fullk_kernel(%arg0: i32, %arg1: i32, %arg2: memref<32x128xbf16, #tpu.memory_space<vmem>>, %arg3: memref<128x256xbf16, #tpu.memory_space<vmem>>, %arg4: memref<1x256xf32, #tpu.memory_space<vmem>>, %arg5: memref<1x256xf32, #tpu.memory_space<vmem>>, %arg6: memref<32x256xbf16, #tpu.memory_space<vmem>>) attributes {dimension_semantics = [#tpu.dimension_semantics<parallel>, #tpu.dimension_semantics<parallel>], iteration_bounds = array<i64: 1, 1>, scalar_prefetch = 0 : i64, scratch_operands = 0 : i64, tpu.core_type = #tpu.core_type<tc>, window_params = [{transform_indices = @transform_0, window_bounds = array<i64: 32, 128>}, {transform_indices = @transform_1, window_bounds = array<i64: 128, 256>}, {transform_indices = @transform_2, window_bounds = array<i64: 1, 256>}, {transform_indices = @transform_3, window_bounds = array<i64: 1, 256>}, {transform_indices = @transform_4, window_bounds = array<i64: 32, 256>}]} {
    %c0 = arith.constant 0 : index
    %c0_0 = arith.constant 0 : index
    %0 = vector.load %arg2[%c0, %c0_0] : memref<32x128xbf16, #tpu.memory_space<vmem>>, vector<32x128xbf16>
    %c0_1 = arith.constant 0 : index
    %c0_2 = arith.constant 0 : index
    %1 = vector.load %arg3[%c0_1, %c0_2] : memref<128x256xbf16, #tpu.memory_space<vmem>>, vector<128x256xbf16>
    %cst = arith.constant dense<0.000000e+00> : vector<32x256xf32>
    %2 = tpu.matmul %0, %1, %cst {dimension_numbers = #tpu.dot_dimension_numbers<[1], [0], [0], [1], [0, 0, 1, 1], [], []>} : vector<32x128xbf16>, vector<128x256xbf16>, vector<32x256xf32> -> vector<32x256xf32>
    %c0_3 = arith.constant 0 : index
    %c0_4 = arith.constant 0 : index
    %3 = vector.load %arg4[%c0_3, %c0_4] : memref<1x256xf32, #tpu.memory_space<vmem>>, vector<1x256xf32>
    %4 = vector.broadcast %3 : vector<1x256xf32> to vector<32x256xf32>
    %5 = arith.mulf %2, %4 : vector<32x256xf32>
    %c0_5 = arith.constant 0 : index
    %c0_6 = arith.constant 0 : index
    %6 = vector.load %arg5[%c0_5, %c0_6] : memref<1x256xf32, #tpu.memory_space<vmem>>, vector<1x256xf32>
    %7 = vector.broadcast %6 : vector<1x256xf32> to vector<32x256xf32>
    %8 = arith.addf %5, %7 : vector<32x256xf32>
    %cst_7 = arith.constant 0.000000e+00 : f32
    %9 = vector.broadcast %cst_7 : f32 to vector<32x256xf32>
    %10 = arith.maximumf %8, %9 : vector<32x256xf32>
    %11 = arith.truncf %10 : vector<32x256xf32> to vector<32x256xbf16>
    %c0_8 = arith.constant 0 : index
    %c0_9 = arith.constant 0 : index
    %12 = vector.load %arg6[%c0_8, %c0_9] : memref<32x256xbf16, #tpu.memory_space<vmem>>, vector<32x256xbf16>
    tpu.vector_store %arg6[%c0_8, %c0_9], %11 {strides = array<i32>} : memref<32x256xbf16, #tpu.memory_space<vmem>>, vector<32x256xbf16>,
    return
  }
  func.func @transform_0(%arg0: i32, %arg1: i32) -> (i32, i32) {
    %c0_i32 = arith.constant 0 : i32
    %c0_i32_0 = arith.constant 0 : i32
    return %arg0, %c0_i32 : i32, i32
  }
  func.func @transform_1(%arg0: i32, %arg1: i32) -> (i32, i32) {
    %c0_i32 = arith.constant 0 : i32
    %c0_i32_0 = arith.constant 0 : i32
    return %c0_i32, %arg1 : i32, i32
  }
  func.func @transform_2(%arg0: i32, %arg1: i32) -> (i32, i32) {
    %c0_i32 = arith.constant 0 : i32
    %c0_i32_0 = arith.constant 0 : i32
    return %c0_i32, %arg1 : i32, i32
  }
  func.func @transform_3(%arg0: i32, %arg1: i32) -> (i32, i32) {
    %c0_i32 = arith.constant 0 : i32
    %c0_i32_0 = arith.constant 0 : i32
    return %c0_i32, %arg1 : i32, i32
  }
  func.func @transform_4(%arg0: i32, %arg1: i32) -> (i32, i32) {
    %c0_i32 = arith.constant 0 : i32
    return %arg0, %arg1 : i32, i32
  }
}

module attributes {stable_mosaic.version = 11 : i64} {
  func.func @_dwconv_bn_kernel(%arg0: i32, %arg1: i32, %arg2: memref<1x6x6x128xbf16, #tpu.memory_space<vmem>>, %arg3: memref<9x128xf32, #tpu.memory_space<vmem>>, %arg4: memref<1x128xf32, #tpu.memory_space<vmem>>, %arg5: memref<1x4x4x128xbf16, #tpu.memory_space<vmem>>) attributes {dimension_semantics = [#tpu.dimension_semantics<parallel>, #tpu.dimension_semantics<parallel>], iteration_bounds = array<i64: 2, 2>, scalar_prefetch = 0 : i64, scratch_operands = 0 : i64, tpu.core_type = #tpu.core_type<tc>, window_params = [{transform_indices = @transform_0, window_bounds = array<i64: 1, 6, 6, 128>}, {transform_indices = @transform_1, window_bounds = array<i64: 9, 128>}, {transform_indices = @transform_2, window_bounds = array<i64: 1, 128>}, {transform_indices = @transform_3, window_bounds = array<i64: 1, 4, 4, 128>}]} {
    %c0 = arith.constant 0 : index
    %c0_0 = arith.constant 0 : index
    %c0_1 = arith.constant 0 : index
    %c0_2 = arith.constant 0 : index
    %0 = vector.load %arg2[%c0, %c0_0, %c0_1, %c0_2] : memref<1x6x6x128xbf16, #tpu.memory_space<vmem>>, vector<1x6x4x128xbf16>
    %1 = vector.shape_cast %0 : vector<1x6x4x128xbf16> to vector<6x4x128xbf16>
    %2 = vector.extract_strided_slice %1 {offsets = [0, 0, 0], sizes = [4, 4, 128], strides = [1, 1, 1]} : vector<6x4x128xbf16> to vector<4x4x128xbf16>
    %c0_3 = arith.constant 0 : index
    %c0_4 = arith.constant 0 : index
    %3 = vector.load %arg3[%c0_3, %c0_4] : memref<9x128xf32, #tpu.memory_space<vmem>>, vector<1x128xf32>
    %4 = vector.shape_cast %3 : vector<1x128xf32> to vector<128xf32>
    %5 = vector.shape_cast %4 : vector<128xf32> to vector<1x1x128xf32>
    %6 = arith.extf %2 : vector<4x4x128xbf16> to vector<4x4x128xf32>
    %7 = vector.broadcast %5 : vector<1x1x128xf32> to vector<4x4x128xf32>
    %8 = arith.mulf %6, %7 : vector<4x4x128xf32>
    %9 = vector.extract_strided_slice %1 {offsets = [1, 0, 0], sizes = [4, 4, 128], strides = [1, 1, 1]} : vector<6x4x128xbf16> to vector<4x4x128xbf16>
    %c3 = arith.constant 3 : index
    %c0_5 = arith.constant 0 : index
    %10 = vector.load %arg3[%c3, %c0_5] : memref<9x128xf32, #tpu.memory_space<vmem>>, vector<1x128xf32>
    %11 = vector.shape_cast %10 : vector<1x128xf32> to vector<128xf32>
    %12 = vector.shape_cast %11 : vector<128xf32> to vector<1x1x128xf32>
    %13 = arith.extf %9 : vector<4x4x128xbf16> to vector<4x4x128xf32>
    %14 = vector.broadcast %12 : vector<1x1x128xf32> to vector<4x4x128xf32>
    %15 = arith.mulf %13, %14 : vector<4x4x128xf32>
    %16 = arith.addf %8, %15 : vector<4x4x128xf32>
    %17 = vector.extract_strided_slice %1 {offsets = [2, 0, 0], sizes = [4, 4, 128], strides = [1, 1, 1]} : vector<6x4x128xbf16> to vector<4x4x128xbf16>
    %c6 = arith.constant 6 : index
    %c0_6 = arith.constant 0 : index
    %18 = vector.load %arg3[%c6, %c0_6] : memref<9x128xf32, #tpu.memory_space<vmem>>, vector<1x128xf32>
    %19 = vector.shape_cast %18 : vector<1x128xf32> to vector<128xf32>
    %20 = vector.shape_cast %19 : vector<128xf32> to vector<1x1x128xf32>
    %21 = arith.extf %17 : vector<4x4x128xbf16> to vector<4x4x128xf32>
    %22 = vector.broadcast %20 : vector<1x1x128xf32> to vector<4x4x128xf32>
    %23 = arith.mulf %21, %22 : vector<4x4x128xf32>
    %24 = arith.addf %16, %23 : vector<4x4x128xf32>
    %c0_7 = arith.constant 0 : index
    %c0_8 = arith.constant 0 : index
    %c1 = arith.constant 1 : index
    %c0_9 = arith.constant 0 : index
    %25 = vector.load %arg2[%c0_7, %c0_8, %c1, %c0_9] : memref<1x6x6x128xbf16, #tpu.memory_space<vmem>>, vector<1x6x4x128xbf16>
    %26 = vector.shape_cast %25 : vector<1x6x4x128xbf16> to vector<6x4x128xbf16>
    %27 = vector.extract_strided_slice %26 {offsets = [0, 0, 0], sizes = [4, 4, 128], strides = [1, 1, 1]} : vector<6x4x128xbf16> to vector<4x4x128xbf16>
    %c1_10 = arith.constant 1 : index
    %c0_11 = arith.constant 0 : index
    %28 = vector.load %arg3[%c1_10, %c0_11] : memref<9x128xf32, #tpu.memory_space<vmem>>, vector<1x128xf32>
    %29 = vector.shape_cast %28 : vector<1x128xf32> to vector<128xf32>
    %30 = vector.shape_cast %29 : vector<128xf32> to vector<1x1x128xf32>
    %31 = arith.extf %27 : vector<4x4x128xbf16> to vector<4x4x128xf32>
    %32 = vector.broadcast %30 : vector<1x1x128xf32> to vector<4x4x128xf32>
    %33 = arith.mulf %31, %32 : vector<4x4x128xf32>
    %34 = arith.addf %24, %33 : vector<4x4x128xf32>
    %35 = vector.extract_strided_slice %26 {offsets = [1, 0, 0], sizes = [4, 4, 128], strides = [1, 1, 1]} : vector<6x4x128xbf16> to vector<4x4x128xbf16>
    %c4 = arith.constant 4 : index
    %c0_12 = arith.constant 0 : index
    %36 = vector.load %arg3[%c4, %c0_12] : memref<9x128xf32, #tpu.memory_space<vmem>>, vector<1x128xf32>
    %37 = vector.shape_cast %36 : vector<1x128xf32> to vector<128xf32>
    %38 = vector.shape_cast %37 : vector<128xf32> to vector<1x1x128xf32>
    %39 = arith.extf %35 : vector<4x4x128xbf16> to vector<4x4x128xf32>
    %40 = vector.broadcast %38 : vector<1x1x128xf32> to vector<4x4x128xf32>
    %41 = arith.mulf %39, %40 : vector<4x4x128xf32>
    %42 = arith.addf %34, %41 : vector<4x4x128xf32>
    %43 = vector.extract_strided_slice %26 {offsets = [2, 0, 0], sizes = [4, 4, 128], strides = [1, 1, 1]} : vector<6x4x128xbf16> to vector<4x4x128xbf16>
    %c7 = arith.constant 7 : index
    %c0_13 = arith.constant 0 : index
    %44 = vector.load %arg3[%c7, %c0_13] : memref<9x128xf32, #tpu.memory_space<vmem>>, vector<1x128xf32>
    %45 = vector.shape_cast %44 : vector<1x128xf32> to vector<128xf32>
    %46 = vector.shape_cast %45 : vector<128xf32> to vector<1x1x128xf32>
    %47 = arith.extf %43 : vector<4x4x128xbf16> to vector<4x4x128xf32>
    %48 = vector.broadcast %46 : vector<1x1x128xf32> to vector<4x4x128xf32>
    %49 = arith.mulf %47, %48 : vector<4x4x128xf32>
    %50 = arith.addf %42, %49 : vector<4x4x128xf32>
    %c0_14 = arith.constant 0 : index
    %c0_15 = arith.constant 0 : index
    %c2 = arith.constant 2 : index
    %c0_16 = arith.constant 0 : index
    %51 = vector.load %arg2[%c0_14, %c0_15, %c2, %c0_16] : memref<1x6x6x128xbf16, #tpu.memory_space<vmem>>, vector<1x6x4x128xbf16>
    %52 = vector.shape_cast %51 : vector<1x6x4x128xbf16> to vector<6x4x128xbf16>
    %53 = vector.extract_strided_slice %52 {offsets = [0, 0, 0], sizes = [4, 4, 128], strides = [1, 1, 1]} : vector<6x4x128xbf16> to vector<4x4x128xbf16>
    %c2_17 = arith.constant 2 : index
    %c0_18 = arith.constant 0 : index
    %54 = vector.load %arg3[%c2_17, %c0_18] : memref<9x128xf32, #tpu.memory_space<vmem>>, vector<1x128xf32>
    %55 = vector.shape_cast %54 : vector<1x128xf32> to vector<128xf32>
    %56 = vector.shape_cast %55 : vector<128xf32> to vector<1x1x128xf32>
    %57 = arith.extf %53 : vector<4x4x128xbf16> to vector<4x4x128xf32>
    %58 = vector.broadcast %56 : vector<1x1x128xf32> to vector<4x4x128xf32>
    %59 = arith.mulf %57, %58 : vector<4x4x128xf32>
    %60 = arith.addf %50, %59 : vector<4x4x128xf32>
    %61 = vector.extract_strided_slice %52 {offsets = [1, 0, 0], sizes = [4, 4, 128], strides = [1, 1, 1]} : vector<6x4x128xbf16> to vector<4x4x128xbf16>
    %c5 = arith.constant 5 : index
    %c0_19 = arith.constant 0 : index
    %62 = vector.load %arg3[%c5, %c0_19] : memref<9x128xf32, #tpu.memory_space<vmem>>, vector<1x128xf32>
    %63 = vector.shape_cast %62 : vector<1x128xf32> to vector<128xf32>
    %64 = vector.shape_cast %63 : vector<128xf32> to vector<1x1x128xf32>
    %65 = arith.extf %61 : vector<4x4x128xbf16> to vector<4x4x128xf32>
    %66 = vector.broadcast %64 : vector<1x1x128xf32> to vector<4x4x128xf32>
    %67 = arith.mulf %65, %66 : vector<4x4x128xf32>
    %68 = arith.addf %60, %67 : vector<4x4x128xf32>
    %69 = vector.extract_strided_slice %52 {offsets = [2, 0, 0], sizes = [4, 4, 128], strides = [1, 1, 1]} : vector<6x4x128xbf16> to vector<4x4x128xbf16>
    %c8 = arith.constant 8 : index
    %c0_20 = arith.constant 0 : index
    %70 = vector.load %arg3[%c8, %c0_20] : memref<9x128xf32, #tpu.memory_space<vmem>>, vector<1x128xf32>
    %71 = vector.shape_cast %70 : vector<1x128xf32> to vector<128xf32>
    %72 = vector.shape_cast %71 : vector<128xf32> to vector<1x1x128xf32>
    %73 = arith.extf %69 : vector<4x4x128xbf16> to vector<4x4x128xf32>
    %74 = vector.broadcast %72 : vector<1x1x128xf32> to vector<4x4x128xf32>
    %75 = arith.mulf %73, %74 : vector<4x4x128xf32>
    %76 = arith.addf %68, %75 : vector<4x4x128xf32>
    %c0_21 = arith.constant 0 : index
    %c0_22 = arith.constant 0 : index
    %77 = vector.load %arg4[%c0_21, %c0_22] : memref<1x128xf32, #tpu.memory_space<vmem>>, vector<1x128xf32>
    %78 = vector.shape_cast %77 : vector<1x128xf32> to vector<128xf32>
    %79 = vector.shape_cast %78 : vector<128xf32> to vector<1x1x128xf32>
    %80 = vector.broadcast %79 : vector<1x1x128xf32> to vector<4x4x128xf32>
    %81 = arith.addf %76, %80 : vector<4x4x128xf32>
    %cst = arith.constant 0.000000e+00 : f32
    %82 = vector.broadcast %cst : f32 to vector<4x4x128xf32>
    %83 = arith.maximumf %81, %82 : vector<4x4x128xf32>
    %84 = arith.truncf %83 : vector<4x4x128xf32> to vector<4x4x128xbf16>
    %c0_23 = arith.constant 0 : index
    %c0_24 = arith.constant 0 : index
    %c0_25 = arith.constant 0 : index
    %c0_26 = arith.constant 0 : index
    %85 = vector.load %arg5[%c0_23, %c0_24, %c0_25, %c0_26] : memref<1x4x4x128xbf16, #tpu.memory_space<vmem>>, vector<1x4x4x128xbf16>
    %86 = vector.shape_cast %85 : vector<1x4x4x128xbf16> to vector<4x4x128xbf16>
    %87 = vector.shape_cast %84 : vector<4x4x128xbf16> to vector<1x4x4x128xbf16>
    tpu.vector_store %arg5[%c0_23, %c0_24, %c0_25, %c0_26], %87 {strides = array<i32>} : memref<1x4x4x128xbf16, #tpu.memory_space<vmem>>, vector<1x4x4x128xbf16>,
    return
  }
  func.func @transform_0(%arg0: i32, %arg1: i32) -> (i32, i32, i32, i32) {
    %c0_i32 = arith.constant 0 : i32
    %c0_i32_0 = arith.constant 0 : i32
    %c0_i32_1 = arith.constant 0 : i32
    return %arg0, %c0_i32, %c0_i32_0, %arg1 : i32, i32, i32, i32
  }
  func.func @transform_1(%arg0: i32, %arg1: i32) -> (i32, i32) {
    %c0_i32 = arith.constant 0 : i32
    %c0_i32_0 = arith.constant 0 : i32
    return %c0_i32, %arg1 : i32, i32
  }
  func.func @transform_2(%arg0: i32, %arg1: i32) -> (i32, i32) {
    %c0_i32 = arith.constant 0 : i32
    %c0_i32_0 = arith.constant 0 : i32
    return %c0_i32, %arg1 : i32, i32
  }
  func.func @transform_3(%arg0: i32, %arg1: i32) -> (i32, i32, i32, i32) {
    %c0_i32 = arith.constant 0 : i32
    %c0_i32_0 = arith.constant 0 : i32
    %c0_i32_1 = arith.constant 0 : i32
    return %arg0, %c0_i32, %c0_i32_0, %arg1 : i32, i32, i32, i32
  }
}

module attributes {stable_mosaic.version = 11 : i64} {
  func.func @_matmul_bn_fullk_kernel(%arg0: i32, %arg1: i32, %arg2: memref<32x256xbf16, #tpu.memory_space<vmem>>, %arg3: memref<256x128xbf16, #tpu.memory_space<vmem>>, %arg4: memref<1x128xf32, #tpu.memory_space<vmem>>, %arg5: memref<1x128xf32, #tpu.memory_space<vmem>>, %arg6: memref<32x128xbf16, #tpu.memory_space<vmem>>, %arg7: memref<32x128xbf16, #tpu.memory_space<vmem>>) attributes {dimension_semantics = [#tpu.dimension_semantics<parallel>, #tpu.dimension_semantics<parallel>], iteration_bounds = array<i64: 1, 1>, scalar_prefetch = 0 : i64, scratch_operands = 0 : i64, tpu.core_type = #tpu.core_type<tc>, window_params = [{transform_indices = @transform_0, window_bounds = array<i64: 32, 256>}, {transform_indices = @transform_1, window_bounds = array<i64: 256, 128>}, {transform_indices = @transform_2, window_bounds = array<i64: 1, 128>}, {transform_indices = @transform_3, window_bounds = array<i64: 1, 128>}, {transform_indices = @transform_4, window_bounds = array<i64: 32, 128>}, {transform_indices = @transform_5, window_bounds = array<i64: 32, 128>}]} {
    %c0 = arith.constant 0 : index
    %c0_0 = arith.constant 0 : index
    %0 = vector.load %arg2[%c0, %c0_0] : memref<32x256xbf16, #tpu.memory_space<vmem>>, vector<32x256xbf16>
    %c0_1 = arith.constant 0 : index
    %c0_2 = arith.constant 0 : index
    %1 = vector.load %arg3[%c0_1, %c0_2] : memref<256x128xbf16, #tpu.memory_space<vmem>>, vector<256x128xbf16>
    %cst = arith.constant dense<0.000000e+00> : vector<32x128xf32>
    %2 = tpu.matmul %0, %1, %cst {dimension_numbers = #tpu.dot_dimension_numbers<[1], [0], [0], [1], [0, 0, 1, 1], [], []>} : vector<32x256xbf16>, vector<256x128xbf16>, vector<32x128xf32> -> vector<32x128xf32>
    %c0_3 = arith.constant 0 : index
    %c0_4 = arith.constant 0 : index
    %3 = vector.load %arg4[%c0_3, %c0_4] : memref<1x128xf32, #tpu.memory_space<vmem>>, vector<1x128xf32>
    %4 = vector.broadcast %3 : vector<1x128xf32> to vector<32x128xf32>
    %5 = arith.mulf %2, %4 : vector<32x128xf32>
    %c0_5 = arith.constant 0 : index
    %c0_6 = arith.constant 0 : index
    %6 = vector.load %arg5[%c0_5, %c0_6] : memref<1x128xf32, #tpu.memory_space<vmem>>, vector<1x128xf32>
    %7 = vector.broadcast %6 : vector<1x128xf32> to vector<32x128xf32>
    %8 = arith.addf %5, %7 : vector<32x128xf32>
    %c0_7 = arith.constant 0 : index
    %c0_8 = arith.constant 0 : index
    %9 = vector.load %arg6[%c0_7, %c0_8] : memref<32x128xbf16, #tpu.memory_space<vmem>>, vector<32x128xbf16>
    %10 = arith.extf %9 : vector<32x128xbf16> to vector<32x128xf32>
    %11 = arith.addf %8, %10 : vector<32x128xf32>
    %12 = arith.truncf %11 : vector<32x128xf32> to vector<32x128xbf16>
    %c0_9 = arith.constant 0 : index
    %c0_10 = arith.constant 0 : index
    %13 = vector.load %arg7[%c0_9, %c0_10] : memref<32x128xbf16, #tpu.memory_space<vmem>>, vector<32x128xbf16>
    tpu.vector_store %arg7[%c0_9, %c0_10], %12 {strides = array<i32>} : memref<32x128xbf16, #tpu.memory_space<vmem>>, vector<32x128xbf16>,
    return
  }
  func.func @transform_0(%arg0: i32, %arg1: i32) -> (i32, i32) {
    %c0_i32 = arith.constant 0 : i32
    %c0_i32_0 = arith.constant 0 : i32
    return %arg0, %c0_i32 : i32, i32
  }
  func.func @transform_1(%arg0: i32, %arg1: i32) -> (i32, i32) {
    %c0_i32 = arith.constant 0 : i32
    %c0_i32_0 = arith.constant 0 : i32
    return %c0_i32, %arg1 : i32, i32
  }
  func.func @transform_2(%arg0: i32, %arg1: i32) -> (i32, i32) {
    %c0_i32 = arith.constant 0 : i32
    %c0_i32_0 = arith.constant 0 : i32
    return %c0_i32, %arg1 : i32, i32
  }
  func.func @transform_3(%arg0: i32, %arg1: i32) -> (i32, i32) {
    %c0_i32 = arith.constant 0 : i32
    %c0_i32_0 = arith.constant 0 : i32
    return %c0_i32, %arg1 : i32, i32
  }
  func.func @transform_4(%arg0: i32, %arg1: i32) -> (i32, i32) {
    %c0_i32 = arith.constant 0 : i32
    return %arg0, %arg1 : i32, i32
  }
  func.func @transform_5(%arg0: i32, %arg1: i32) -> (i32, i32) {
    %c0_i32 = arith.constant 0 : i32
    return %arg0, %arg1 : i32, i32
  }
}

module attributes {stable_mosaic.version = 11 : i64} {
  func.func @_dwconv_bn_kernel(%arg0: i32, %arg1: i32, %arg2: memref<4x3x3x128xbf16, #tpu.memory_space<vmem>>, %arg3: memref<9x128xf32, #tpu.memory_space<vmem>>, %arg4: memref<1x128xf32, #tpu.memory_space<vmem>>, %arg5: memref<1x2x2x128xbf16, #tpu.memory_space<vmem>>) attributes {dimension_semantics = [#tpu.dimension_semantics<parallel>, #tpu.dimension_semantics<parallel>], iteration_bounds = array<i64: 2, 2>, scalar_prefetch = 0 : i64, scratch_operands = 0 : i64, tpu.core_type = #tpu.core_type<tc>, window_params = [{transform_indices = @transform_0, window_bounds = array<i64: 4, 3, 3, 128>}, {transform_indices = @transform_1, window_bounds = array<i64: 9, 128>}, {transform_indices = @transform_2, window_bounds = array<i64: 1, 128>}, {transform_indices = @transform_3, window_bounds = array<i64: 1, 2, 2, 128>}]} {
    %c0 = arith.constant 0 : index
    %c0_0 = arith.constant 0 : index
    %c0_1 = arith.constant 0 : index
    %c0_2 = arith.constant 0 : index
    %0 = vector.load %arg2[%c0, %c0_0, %c0_1, %c0_2] : memref<4x3x3x128xbf16, #tpu.memory_space<vmem>>, vector<1x3x2x128xbf16>
    %1 = vector.shape_cast %0 : vector<1x3x2x128xbf16> to vector<3x2x128xbf16>
    %2 = vector.extract_strided_slice %1 {offsets = [0, 0, 0], sizes = [2, 2, 128], strides = [1, 1, 1]} : vector<3x2x128xbf16> to vector<2x2x128xbf16>
    %c0_3 = arith.constant 0 : index
    %c0_4 = arith.constant 0 : index
    %3 = vector.load %arg3[%c0_3, %c0_4] : memref<9x128xf32, #tpu.memory_space<vmem>>, vector<1x128xf32>
    %4 = vector.shape_cast %3 : vector<1x128xf32> to vector<128xf32>
    %5 = vector.shape_cast %4 : vector<128xf32> to vector<1x1x128xf32>
    %6 = arith.extf %2 : vector<2x2x128xbf16> to vector<2x2x128xf32>
    %7 = vector.broadcast %5 : vector<1x1x128xf32> to vector<2x2x128xf32>
    %8 = arith.mulf %6, %7 : vector<2x2x128xf32>
    %c2 = arith.constant 2 : index
    %c0_5 = arith.constant 0 : index
    %c0_6 = arith.constant 0 : index
    %c0_7 = arith.constant 0 : index
    %9 = vector.load %arg2[%c2, %c0_5, %c0_6, %c0_7] : memref<4x3x3x128xbf16, #tpu.memory_space<vmem>>, vector<1x3x2x128xbf16>
    %10 = vector.shape_cast %9 : vector<1x3x2x128xbf16> to vector<3x2x128xbf16>
    %11 = vector.extract_strided_slice %10 {offsets = [0, 0, 0], sizes = [2, 2, 128], strides = [1, 1, 1]} : vector<3x2x128xbf16> to vector<2x2x128xbf16>
    %c3 = arith.constant 3 : index
    %c0_8 = arith.constant 0 : index
    %12 = vector.load %arg3[%c3, %c0_8] : memref<9x128xf32, #tpu.memory_space<vmem>>, vector<1x128xf32>
    %13 = vector.shape_cast %12 : vector<1x128xf32> to vector<128xf32>
    %14 = vector.shape_cast %13 : vector<128xf32> to vector<1x1x128xf32>
    %15 = arith.extf %11 : vector<2x2x128xbf16> to vector<2x2x128xf32>
    %16 = vector.broadcast %14 : vector<1x1x128xf32> to vector<2x2x128xf32>
    %17 = arith.mulf %15, %16 : vector<2x2x128xf32>
    %18 = arith.addf %8, %17 : vector<2x2x128xf32>
    %19 = vector.extract_strided_slice %1 {offsets = [1, 0, 0], sizes = [2, 2, 128], strides = [1, 1, 1]} : vector<3x2x128xbf16> to vector<2x2x128xbf16>
    %c6 = arith.constant 6 : index
    %c0_9 = arith.constant 0 : index
    %20 = vector.load %arg3[%c6, %c0_9] : memref<9x128xf32, #tpu.memory_space<vmem>>, vector<1x128xf32>
    %21 = vector.shape_cast %20 : vector<1x128xf32> to vector<128xf32>
    %22 = vector.shape_cast %21 : vector<128xf32> to vector<1x1x128xf32>
    %23 = arith.extf %19 : vector<2x2x128xbf16> to vector<2x2x128xf32>
    %24 = vector.broadcast %22 : vector<1x1x128xf32> to vector<2x2x128xf32>
    %25 = arith.mulf %23, %24 : vector<2x2x128xf32>
    %26 = arith.addf %18, %25 : vector<2x2x128xf32>
    %c1 = arith.constant 1 : index
    %c0_10 = arith.constant 0 : index
    %c0_11 = arith.constant 0 : index
    %c0_12 = arith.constant 0 : index
    %27 = vector.load %arg2[%c1, %c0_10, %c0_11, %c0_12] : memref<4x3x3x128xbf16, #tpu.memory_space<vmem>>, vector<1x3x2x128xbf16>
    %28 = vector.shape_cast %27 : vector<1x3x2x128xbf16> to vector<3x2x128xbf16>
    %29 = vector.extract_strided_slice %28 {offsets = [0, 0, 0], sizes = [2, 2, 128], strides = [1, 1, 1]} : vector<3x2x128xbf16> to vector<2x2x128xbf16>
    %c1_13 = arith.constant 1 : index
    %c0_14 = arith.constant 0 : index
    %30 = vector.load %arg3[%c1_13, %c0_14] : memref<9x128xf32, #tpu.memory_space<vmem>>, vector<1x128xf32>
    %31 = vector.shape_cast %30 : vector<1x128xf32> to vector<128xf32>
    %32 = vector.shape_cast %31 : vector<128xf32> to vector<1x1x128xf32>
    %33 = arith.extf %29 : vector<2x2x128xbf16> to vector<2x2x128xf32>
    %34 = vector.broadcast %32 : vector<1x1x128xf32> to vector<2x2x128xf32>
    %35 = arith.mulf %33, %34 : vector<2x2x128xf32>
    %36 = arith.addf %26, %35 : vector<2x2x128xf32>
    %c3_15 = arith.constant 3 : index
    %c0_16 = arith.constant 0 : index
    %c0_17 = arith.constant 0 : index
    %c0_18 = arith.constant 0 : index
    %37 = vector.load %arg2[%c3_15, %c0_16, %c0_17, %c0_18] : memref<4x3x3x128xbf16, #tpu.memory_space<vmem>>, vector<1x3x2x128xbf16>
    %38 = vector.shape_cast %37 : vector<1x3x2x128xbf16> to vector<3x2x128xbf16>
    %39 = vector.extract_strided_slice %38 {offsets = [0, 0, 0], sizes = [2, 2, 128], strides = [1, 1, 1]} : vector<3x2x128xbf16> to vector<2x2x128xbf16>
    %c4 = arith.constant 4 : index
    %c0_19 = arith.constant 0 : index
    %40 = vector.load %arg3[%c4, %c0_19] : memref<9x128xf32, #tpu.memory_space<vmem>>, vector<1x128xf32>
    %41 = vector.shape_cast %40 : vector<1x128xf32> to vector<128xf32>
    %42 = vector.shape_cast %41 : vector<128xf32> to vector<1x1x128xf32>
    %43 = arith.extf %39 : vector<2x2x128xbf16> to vector<2x2x128xf32>
    %44 = vector.broadcast %42 : vector<1x1x128xf32> to vector<2x2x128xf32>
    %45 = arith.mulf %43, %44 : vector<2x2x128xf32>
    %46 = arith.addf %36, %45 : vector<2x2x128xf32>
    %47 = vector.extract_strided_slice %28 {offsets = [1, 0, 0], sizes = [2, 2, 128], strides = [1, 1, 1]} : vector<3x2x128xbf16> to vector<2x2x128xbf16>
    %c7 = arith.constant 7 : index
    %c0_20 = arith.constant 0 : index
    %48 = vector.load %arg3[%c7, %c0_20] : memref<9x128xf32, #tpu.memory_space<vmem>>, vector<1x128xf32>
    %49 = vector.shape_cast %48 : vector<1x128xf32> to vector<128xf32>
    %50 = vector.shape_cast %49 : vector<128xf32> to vector<1x1x128xf32>
    %51 = arith.extf %47 : vector<2x2x128xbf16> to vector<2x2x128xf32>
    %52 = vector.broadcast %50 : vector<1x1x128xf32> to vector<2x2x128xf32>
    %53 = arith.mulf %51, %52 : vector<2x2x128xf32>
    %54 = arith.addf %46, %53 : vector<2x2x128xf32>
    %c0_21 = arith.constant 0 : index
    %c0_22 = arith.constant 0 : index
    %c1_23 = arith.constant 1 : index
    %c0_24 = arith.constant 0 : index
    %55 = vector.load %arg2[%c0_21, %c0_22, %c1_23, %c0_24] : memref<4x3x3x128xbf16, #tpu.memory_space<vmem>>, vector<1x3x2x128xbf16>
    %56 = vector.shape_cast %55 : vector<1x3x2x128xbf16> to vector<3x2x128xbf16>
    %57 = vector.extract_strided_slice %56 {offsets = [0, 0, 0], sizes = [2, 2, 128], strides = [1, 1, 1]} : vector<3x2x128xbf16> to vector<2x2x128xbf16>
    %c2_25 = arith.constant 2 : index
    %c0_26 = arith.constant 0 : index
    %58 = vector.load %arg3[%c2_25, %c0_26] : memref<9x128xf32, #tpu.memory_space<vmem>>, vector<1x128xf32>
    %59 = vector.shape_cast %58 : vector<1x128xf32> to vector<128xf32>
    %60 = vector.shape_cast %59 : vector<128xf32> to vector<1x1x128xf32>
    %61 = arith.extf %57 : vector<2x2x128xbf16> to vector<2x2x128xf32>
    %62 = vector.broadcast %60 : vector<1x1x128xf32> to vector<2x2x128xf32>
    %63 = arith.mulf %61, %62 : vector<2x2x128xf32>
    %64 = arith.addf %54, %63 : vector<2x2x128xf32>
    %c2_27 = arith.constant 2 : index
    %c0_28 = arith.constant 0 : index
    %c1_29 = arith.constant 1 : index
    %c0_30 = arith.constant 0 : index
    %65 = vector.load %arg2[%c2_27, %c0_28, %c1_29, %c0_30] : memref<4x3x3x128xbf16, #tpu.memory_space<vmem>>, vector<1x3x2x128xbf16>
    %66 = vector.shape_cast %65 : vector<1x3x2x128xbf16> to vector<3x2x128xbf16>
    %67 = vector.extract_strided_slice %66 {offsets = [0, 0, 0], sizes = [2, 2, 128], strides = [1, 1, 1]} : vector<3x2x128xbf16> to vector<2x2x128xbf16>
    %c5 = arith.constant 5 : index
    %c0_31 = arith.constant 0 : index
    %68 = vector.load %arg3[%c5, %c0_31] : memref<9x128xf32, #tpu.memory_space<vmem>>, vector<1x128xf32>
    %69 = vector.shape_cast %68 : vector<1x128xf32> to vector<128xf32>
    %70 = vector.shape_cast %69 : vector<128xf32> to vector<1x1x128xf32>
    %71 = arith.extf %67 : vector<2x2x128xbf16> to vector<2x2x128xf32>
    %72 = vector.broadcast %70 : vector<1x1x128xf32> to vector<2x2x128xf32>
    %73 = arith.mulf %71, %72 : vector<2x2x128xf32>
    %74 = arith.addf %64, %73 : vector<2x2x128xf32>
    %75 = vector.extract_strided_slice %56 {offsets = [1, 0, 0], sizes = [2, 2, 128], strides = [1, 1, 1]} : vector<3x2x128xbf16> to vector<2x2x128xbf16>
    %c8 = arith.constant 8 : index
    %c0_32 = arith.constant 0 : index
    %76 = vector.load %arg3[%c8, %c0_32] : memref<9x128xf32, #tpu.memory_space<vmem>>, vector<1x128xf32>
    %77 = vector.shape_cast %76 : vector<1x128xf32> to vector<128xf32>
    %78 = vector.shape_cast %77 : vector<128xf32> to vector<1x1x128xf32>
    %79 = arith.extf %75 : vector<2x2x128xbf16> to vector<2x2x128xf32>
    %80 = vector.broadcast %78 : vector<1x1x128xf32> to vector<2x2x128xf32>
    %81 = arith.mulf %79, %80 : vector<2x2x128xf32>
    %82 = arith.addf %74, %81 : vector<2x2x128xf32>
    %c0_33 = arith.constant 0 : index
    %c0_34 = arith.constant 0 : index
    %83 = vector.load %arg4[%c0_33, %c0_34] : memref<1x128xf32, #tpu.memory_space<vmem>>, vector<1x128xf32>
    %84 = vector.shape_cast %83 : vector<1x128xf32> to vector<128xf32>
    %85 = vector.shape_cast %84 : vector<128xf32> to vector<1x1x128xf32>
    %86 = vector.broadcast %85 : vector<1x1x128xf32> to vector<2x2x128xf32>
    %87 = arith.addf %82, %86 : vector<2x2x128xf32>
    %cst = arith.constant 0.000000e+00 : f32
    %88 = vector.broadcast %cst : f32 to vector<2x2x128xf32>
    %89 = arith.maximumf %87, %88 : vector<2x2x128xf32>
    %90 = arith.truncf %89 : vector<2x2x128xf32> to vector<2x2x128xbf16>
    %c0_35 = arith.constant 0 : index
    %c0_36 = arith.constant 0 : index
    %c0_37 = arith.constant 0 : index
    %c0_38 = arith.constant 0 : index
    %91 = vector.load %arg5[%c0_35, %c0_36, %c0_37, %c0_38] : memref<1x2x2x128xbf16, #tpu.memory_space<vmem>>, vector<1x2x2x128xbf16>
    %92 = vector.shape_cast %91 : vector<1x2x2x128xbf16> to vector<2x2x128xbf16>
    %93 = vector.shape_cast %90 : vector<2x2x128xbf16> to vector<1x2x2x128xbf16>
    tpu.vector_store %arg5[%c0_35, %c0_36, %c0_37, %c0_38], %93 {strides = array<i32>} : memref<1x2x2x128xbf16, #tpu.memory_space<vmem>>, vector<1x2x2x128xbf16>,
    return
  }
  func.func @transform_0(%arg0: i32, %arg1: i32) -> (i32, i32, i32, i32) {
    %c0_i32 = arith.constant 0 : i32
    %c0_i32_0 = arith.constant 0 : i32
    %c0_i32_1 = arith.constant 0 : i32
    return %arg0, %c0_i32, %c0_i32_0, %arg1 : i32, i32, i32, i32
  }
  func.func @transform_1(%arg0: i32, %arg1: i32) -> (i32, i32) {
    %c0_i32 = arith.constant 0 : i32
    %c0_i32_0 = arith.constant 0 : i32
    return %c0_i32, %arg1 : i32, i32
  }
  func.func @transform_2(%arg0: i32, %arg1: i32) -> (i32, i32) {
    %c0_i32 = arith.constant 0 : i32
    %c0_i32_0 = arith.constant 0 : i32
    return %c0_i32, %arg1 : i32, i32
  }
  func.func @transform_3(%arg0: i32, %arg1: i32) -> (i32, i32, i32, i32) {
    %c0_i32 = arith.constant 0 : i32
    %c0_i32_0 = arith.constant 0 : i32
    %c0_i32_1 = arith.constant 0 : i32
    return %arg0, %c0_i32, %c0_i32_0, %arg1 : i32, i32, i32, i32
  }
}

module attributes {stable_mosaic.version = 11 : i64} {
  func.func @_matmul_bn_fullk_kernel(%arg0: i32, %arg1: i32, %arg2: memref<8x256xbf16, #tpu.memory_space<vmem>>, %arg3: memref<256x128xbf16, #tpu.memory_space<vmem>>, %arg4: memref<1x128xf32, #tpu.memory_space<vmem>>, %arg5: memref<1x128xf32, #tpu.memory_space<vmem>>, %arg6: memref<8x128xbf16, #tpu.memory_space<vmem>>) attributes {dimension_semantics = [#tpu.dimension_semantics<parallel>, #tpu.dimension_semantics<parallel>], iteration_bounds = array<i64: 1, 1>, scalar_prefetch = 0 : i64, scratch_operands = 0 : i64, tpu.core_type = #tpu.core_type<tc>, window_params = [{transform_indices = @transform_0, window_bounds = array<i64: 8, 256>}, {transform_indices = @transform_1, window_bounds = array<i64: 256, 128>}, {transform_indices = @transform_2, window_bounds = array<i64: 1, 128>}, {transform_indices = @transform_3, window_bounds = array<i64: 1, 128>}, {transform_indices = @transform_4, window_bounds = array<i64: 8, 128>}]} {
    %c0 = arith.constant 0 : index
    %c0_0 = arith.constant 0 : index
    %0 = vector.load %arg2[%c0, %c0_0] : memref<8x256xbf16, #tpu.memory_space<vmem>>, vector<8x256xbf16>
    %c0_1 = arith.constant 0 : index
    %c0_2 = arith.constant 0 : index
    %1 = vector.load %arg3[%c0_1, %c0_2] : memref<256x128xbf16, #tpu.memory_space<vmem>>, vector<256x128xbf16>
    %cst = arith.constant dense<0.000000e+00> : vector<8x128xf32>
    %2 = tpu.matmul %0, %1, %cst {dimension_numbers = #tpu.dot_dimension_numbers<[1], [0], [0], [1], [0, 0, 1, 1], [], []>} : vector<8x256xbf16>, vector<256x128xbf16>, vector<8x128xf32> -> vector<8x128xf32>
    %c0_3 = arith.constant 0 : index
    %c0_4 = arith.constant 0 : index
    %3 = vector.load %arg4[%c0_3, %c0_4] : memref<1x128xf32, #tpu.memory_space<vmem>>, vector<1x128xf32>
    %4 = vector.broadcast %3 : vector<1x128xf32> to vector<8x128xf32>
    %5 = arith.mulf %2, %4 : vector<8x128xf32>
    %c0_5 = arith.constant 0 : index
    %c0_6 = arith.constant 0 : index
    %6 = vector.load %arg5[%c0_5, %c0_6] : memref<1x128xf32, #tpu.memory_space<vmem>>, vector<1x128xf32>
    %7 = vector.broadcast %6 : vector<1x128xf32> to vector<8x128xf32>
    %8 = arith.addf %5, %7 : vector<8x128xf32>
    %9 = arith.truncf %8 : vector<8x128xf32> to vector<8x128xbf16>
    %c0_7 = arith.constant 0 : index
    %c0_8 = arith.constant 0 : index
    %10 = vector.load %arg6[%c0_7, %c0_8] : memref<8x128xbf16, #tpu.memory_space<vmem>>, vector<8x128xbf16>
    tpu.vector_store %arg6[%c0_7, %c0_8], %9 {strides = array<i32>} : memref<8x128xbf16, #tpu.memory_space<vmem>>, vector<8x128xbf16>,
    return
  }
  func.func @transform_0(%arg0: i32, %arg1: i32) -> (i32, i32) {
    %c0_i32 = arith.constant 0 : i32
    %c0_i32_0 = arith.constant 0 : i32
    return %arg0, %c0_i32 : i32, i32
  }
  func.func @transform_1(%arg0: i32, %arg1: i32) -> (i32, i32) {
    %c0_i32 = arith.constant 0 : i32
    %c0_i32_0 = arith.constant 0 : i32
    return %c0_i32, %arg1 : i32, i32
  }
  func.func @transform_2(%arg0: i32, %arg1: i32) -> (i32, i32) {
    %c0_i32 = arith.constant 0 : i32
    %c0_i32_0 = arith.constant 0 : i32
    return %c0_i32, %arg1 : i32, i32
  }
  func.func @transform_3(%arg0: i32, %arg1: i32) -> (i32, i32) {
    %c0_i32 = arith.constant 0 : i32
    %c0_i32_0 = arith.constant 0 : i32
    return %c0_i32, %arg1 : i32, i32
  }
  func.func @transform_4(%arg0: i32, %arg1: i32) -> (i32, i32) {
    %c0_i32 = arith.constant 0 : i32
    return %arg0, %arg1 : i32, i32
  }
}

module attributes {stable_mosaic.version = 11 : i64} {
  func.func @_matmul_bn_fullk_kernel(%arg0: i32, %arg1: i32, %arg2: memref<8x128xbf16, #tpu.memory_space<vmem>>, %arg3: memref<128x256xbf16, #tpu.memory_space<vmem>>, %arg4: memref<1x256xf32, #tpu.memory_space<vmem>>, %arg5: memref<1x256xf32, #tpu.memory_space<vmem>>, %arg6: memref<8x256xbf16, #tpu.memory_space<vmem>>) attributes {dimension_semantics = [#tpu.dimension_semantics<parallel>, #tpu.dimension_semantics<parallel>], iteration_bounds = array<i64: 1, 1>, scalar_prefetch = 0 : i64, scratch_operands = 0 : i64, tpu.core_type = #tpu.core_type<tc>, window_params = [{transform_indices = @transform_0, window_bounds = array<i64: 8, 128>}, {transform_indices = @transform_1, window_bounds = array<i64: 128, 256>}, {transform_indices = @transform_2, window_bounds = array<i64: 1, 256>}, {transform_indices = @transform_3, window_bounds = array<i64: 1, 256>}, {transform_indices = @transform_4, window_bounds = array<i64: 8, 256>}]} {
    %c0 = arith.constant 0 : index
    %c0_0 = arith.constant 0 : index
    %0 = vector.load %arg2[%c0, %c0_0] : memref<8x128xbf16, #tpu.memory_space<vmem>>, vector<8x128xbf16>
    %c0_1 = arith.constant 0 : index
    %c0_2 = arith.constant 0 : index
    %1 = vector.load %arg3[%c0_1, %c0_2] : memref<128x256xbf16, #tpu.memory_space<vmem>>, vector<128x256xbf16>
    %cst = arith.constant dense<0.000000e+00> : vector<8x256xf32>
    %2 = tpu.matmul %0, %1, %cst {dimension_numbers = #tpu.dot_dimension_numbers<[1], [0], [0], [1], [0, 0, 1, 1], [], []>} : vector<8x128xbf16>, vector<128x256xbf16>, vector<8x256xf32> -> vector<8x256xf32>
    %c0_3 = arith.constant 0 : index
    %c0_4 = arith.constant 0 : index
    %3 = vector.load %arg4[%c0_3, %c0_4] : memref<1x256xf32, #tpu.memory_space<vmem>>, vector<1x256xf32>
    %4 = vector.broadcast %3 : vector<1x256xf32> to vector<8x256xf32>
    %5 = arith.mulf %2, %4 : vector<8x256xf32>
    %c0_5 = arith.constant 0 : index
    %c0_6 = arith.constant 0 : index
    %6 = vector.load %arg5[%c0_5, %c0_6] : memref<1x256xf32, #tpu.memory_space<vmem>>, vector<1x256xf32>
    %7 = vector.broadcast %6 : vector<1x256xf32> to vector<8x256xf32>
    %8 = arith.addf %5, %7 : vector<8x256xf32>
    %cst_7 = arith.constant 0.000000e+00 : f32
    %9 = vector.broadcast %cst_7 : f32 to vector<8x256xf32>
    %10 = arith.maximumf %8, %9 : vector<8x256xf32>
    %11 = arith.truncf %10 : vector<8x256xf32> to vector<8x256xbf16>
    %c0_8 = arith.constant 0 : index
    %c0_9 = arith.constant 0 : index
    %12 = vector.load %arg6[%c0_8, %c0_9] : memref<8x256xbf16, #tpu.memory_space<vmem>>, vector<8x256xbf16>
    tpu.vector_store %arg6[%c0_8, %c0_9], %11 {strides = array<i32>} : memref<8x256xbf16, #tpu.memory_space<vmem>>, vector<8x256xbf16>,
    return
  }
  func.func @transform_0(%arg0: i32, %arg1: i32) -> (i32, i32) {
    %c0_i32 = arith.constant 0 : i32
    %c0_i32_0 = arith.constant 0 : i32
    return %arg0, %c0_i32 : i32, i32
  }
  func.func @transform_1(%arg0: i32, %arg1: i32) -> (i32, i32) {
    %c0_i32 = arith.constant 0 : i32
    %c0_i32_0 = arith.constant 0 : i32
    return %c0_i32, %arg1 : i32, i32
  }
  func.func @transform_2(%arg0: i32, %arg1: i32) -> (i32, i32) {
    %c0_i32 = arith.constant 0 : i32
    %c0_i32_0 = arith.constant 0 : i32
    return %c0_i32, %arg1 : i32, i32
  }
  func.func @transform_3(%arg0: i32, %arg1: i32) -> (i32, i32) {
    %c0_i32 = arith.constant 0 : i32
    %c0_i32_0 = arith.constant 0 : i32
    return %c0_i32, %arg1 : i32, i32
  }
  func.func @transform_4(%arg0: i32, %arg1: i32) -> (i32, i32) {
    %c0_i32 = arith.constant 0 : i32
    return %arg0, %arg1 : i32, i32
  }
}

module attributes {stable_mosaic.version = 11 : i64} {
  func.func @_dwconv_bn_kernel(%arg0: i32, %arg1: i32, %arg2: memref<1x4x4x128xbf16, #tpu.memory_space<vmem>>, %arg3: memref<9x128xf32, #tpu.memory_space<vmem>>, %arg4: memref<1x128xf32, #tpu.memory_space<vmem>>, %arg5: memref<1x2x2x128xbf16, #tpu.memory_space<vmem>>) attributes {dimension_semantics = [#tpu.dimension_semantics<parallel>, #tpu.dimension_semantics<parallel>], iteration_bounds = array<i64: 2, 2>, scalar_prefetch = 0 : i64, scratch_operands = 0 : i64, tpu.core_type = #tpu.core_type<tc>, window_params = [{transform_indices = @transform_0, window_bounds = array<i64: 1, 4, 4, 128>}, {transform_indices = @transform_1, window_bounds = array<i64: 9, 128>}, {transform_indices = @transform_2, window_bounds = array<i64: 1, 128>}, {transform_indices = @transform_3, window_bounds = array<i64: 1, 2, 2, 128>}]} {
    %c0 = arith.constant 0 : index
    %c0_0 = arith.constant 0 : index
    %c0_1 = arith.constant 0 : index
    %c0_2 = arith.constant 0 : index
    %0 = vector.load %arg2[%c0, %c0_0, %c0_1, %c0_2] : memref<1x4x4x128xbf16, #tpu.memory_space<vmem>>, vector<1x4x2x128xbf16>
    %1 = vector.shape_cast %0 : vector<1x4x2x128xbf16> to vector<4x2x128xbf16>
    %2 = vector.extract_strided_slice %1 {offsets = [0, 0, 0], sizes = [2, 2, 128], strides = [1, 1, 1]} : vector<4x2x128xbf16> to vector<2x2x128xbf16>
    %c0_3 = arith.constant 0 : index
    %c0_4 = arith.constant 0 : index
    %3 = vector.load %arg3[%c0_3, %c0_4] : memref<9x128xf32, #tpu.memory_space<vmem>>, vector<1x128xf32>
    %4 = vector.shape_cast %3 : vector<1x128xf32> to vector<128xf32>
    %5 = vector.shape_cast %4 : vector<128xf32> to vector<1x1x128xf32>
    %6 = arith.extf %2 : vector<2x2x128xbf16> to vector<2x2x128xf32>
    %7 = vector.broadcast %5 : vector<1x1x128xf32> to vector<2x2x128xf32>
    %8 = arith.mulf %6, %7 : vector<2x2x128xf32>
    %9 = vector.extract_strided_slice %1 {offsets = [1, 0, 0], sizes = [2, 2, 128], strides = [1, 1, 1]} : vector<4x2x128xbf16> to vector<2x2x128xbf16>
    %c3 = arith.constant 3 : index
    %c0_5 = arith.constant 0 : index
    %10 = vector.load %arg3[%c3, %c0_5] : memref<9x128xf32, #tpu.memory_space<vmem>>, vector<1x128xf32>
    %11 = vector.shape_cast %10 : vector<1x128xf32> to vector<128xf32>
    %12 = vector.shape_cast %11 : vector<128xf32> to vector<1x1x128xf32>
    %13 = arith.extf %9 : vector<2x2x128xbf16> to vector<2x2x128xf32>
    %14 = vector.broadcast %12 : vector<1x1x128xf32> to vector<2x2x128xf32>
    %15 = arith.mulf %13, %14 : vector<2x2x128xf32>
    %16 = arith.addf %8, %15 : vector<2x2x128xf32>
    %17 = vector.extract_strided_slice %1 {offsets = [2, 0, 0], sizes = [2, 2, 128], strides = [1, 1, 1]} : vector<4x2x128xbf16> to vector<2x2x128xbf16>
    %c6 = arith.constant 6 : index
    %c0_6 = arith.constant 0 : index
    %18 = vector.load %arg3[%c6, %c0_6] : memref<9x128xf32, #tpu.memory_space<vmem>>, vector<1x128xf32>
    %19 = vector.shape_cast %18 : vector<1x128xf32> to vector<128xf32>
    %20 = vector.shape_cast %19 : vector<128xf32> to vector<1x1x128xf32>
    %21 = arith.extf %17 : vector<2x2x128xbf16> to vector<2x2x128xf32>
    %22 = vector.broadcast %20 : vector<1x1x128xf32> to vector<2x2x128xf32>
    %23 = arith.mulf %21, %22 : vector<2x2x128xf32>
    %24 = arith.addf %16, %23 : vector<2x2x128xf32>
    %c0_7 = arith.constant 0 : index
    %c0_8 = arith.constant 0 : index
    %c1 = arith.constant 1 : index
    %c0_9 = arith.constant 0 : index
    %25 = vector.load %arg2[%c0_7, %c0_8, %c1, %c0_9] : memref<1x4x4x128xbf16, #tpu.memory_space<vmem>>, vector<1x4x2x128xbf16>
    %26 = vector.shape_cast %25 : vector<1x4x2x128xbf16> to vector<4x2x128xbf16>
    %27 = vector.extract_strided_slice %26 {offsets = [0, 0, 0], sizes = [2, 2, 128], strides = [1, 1, 1]} : vector<4x2x128xbf16> to vector<2x2x128xbf16>
    %c1_10 = arith.constant 1 : index
    %c0_11 = arith.constant 0 : index
    %28 = vector.load %arg3[%c1_10, %c0_11] : memref<9x128xf32, #tpu.memory_space<vmem>>, vector<1x128xf32>
    %29 = vector.shape_cast %28 : vector<1x128xf32> to vector<128xf32>
    %30 = vector.shape_cast %29 : vector<128xf32> to vector<1x1x128xf32>
    %31 = arith.extf %27 : vector<2x2x128xbf16> to vector<2x2x128xf32>
    %32 = vector.broadcast %30 : vector<1x1x128xf32> to vector<2x2x128xf32>
    %33 = arith.mulf %31, %32 : vector<2x2x128xf32>
    %34 = arith.addf %24, %33 : vector<2x2x128xf32>
    %35 = vector.extract_strided_slice %26 {offsets = [1, 0, 0], sizes = [2, 2, 128], strides = [1, 1, 1]} : vector<4x2x128xbf16> to vector<2x2x128xbf16>
    %c4 = arith.constant 4 : index
    %c0_12 = arith.constant 0 : index
    %36 = vector.load %arg3[%c4, %c0_12] : memref<9x128xf32, #tpu.memory_space<vmem>>, vector<1x128xf32>
    %37 = vector.shape_cast %36 : vector<1x128xf32> to vector<128xf32>
    %38 = vector.shape_cast %37 : vector<128xf32> to vector<1x1x128xf32>
    %39 = arith.extf %35 : vector<2x2x128xbf16> to vector<2x2x128xf32>
    %40 = vector.broadcast %38 : vector<1x1x128xf32> to vector<2x2x128xf32>
    %41 = arith.mulf %39, %40 : vector<2x2x128xf32>
    %42 = arith.addf %34, %41 : vector<2x2x128xf32>
    %43 = vector.extract_strided_slice %26 {offsets = [2, 0, 0], sizes = [2, 2, 128], strides = [1, 1, 1]} : vector<4x2x128xbf16> to vector<2x2x128xbf16>
    %c7 = arith.constant 7 : index
    %c0_13 = arith.constant 0 : index
    %44 = vector.load %arg3[%c7, %c0_13] : memref<9x128xf32, #tpu.memory_space<vmem>>, vector<1x128xf32>
    %45 = vector.shape_cast %44 : vector<1x128xf32> to vector<128xf32>
    %46 = vector.shape_cast %45 : vector<128xf32> to vector<1x1x128xf32>
    %47 = arith.extf %43 : vector<2x2x128xbf16> to vector<2x2x128xf32>
    %48 = vector.broadcast %46 : vector<1x1x128xf32> to vector<2x2x128xf32>
    %49 = arith.mulf %47, %48 : vector<2x2x128xf32>
    %50 = arith.addf %42, %49 : vector<2x2x128xf32>
    %c0_14 = arith.constant 0 : index
    %c0_15 = arith.constant 0 : index
    %c2 = arith.constant 2 : index
    %c0_16 = arith.constant 0 : index
    %51 = vector.load %arg2[%c0_14, %c0_15, %c2, %c0_16] : memref<1x4x4x128xbf16, #tpu.memory_space<vmem>>, vector<1x4x2x128xbf16>
    %52 = vector.shape_cast %51 : vector<1x4x2x128xbf16> to vector<4x2x128xbf16>
    %53 = vector.extract_strided_slice %52 {offsets = [0, 0, 0], sizes = [2, 2, 128], strides = [1, 1, 1]} : vector<4x2x128xbf16> to vector<2x2x128xbf16>
    %c2_17 = arith.constant 2 : index
    %c0_18 = arith.constant 0 : index
    %54 = vector.load %arg3[%c2_17, %c0_18] : memref<9x128xf32, #tpu.memory_space<vmem>>, vector<1x128xf32>
    %55 = vector.shape_cast %54 : vector<1x128xf32> to vector<128xf32>
    %56 = vector.shape_cast %55 : vector<128xf32> to vector<1x1x128xf32>
    %57 = arith.extf %53 : vector<2x2x128xbf16> to vector<2x2x128xf32>
    %58 = vector.broadcast %56 : vector<1x1x128xf32> to vector<2x2x128xf32>
    %59 = arith.mulf %57, %58 : vector<2x2x128xf32>
    %60 = arith.addf %50, %59 : vector<2x2x128xf32>
    %61 = vector.extract_strided_slice %52 {offsets = [1, 0, 0], sizes = [2, 2, 128], strides = [1, 1, 1]} : vector<4x2x128xbf16> to vector<2x2x128xbf16>
    %c5 = arith.constant 5 : index
    %c0_19 = arith.constant 0 : index
    %62 = vector.load %arg3[%c5, %c0_19] : memref<9x128xf32, #tpu.memory_space<vmem>>, vector<1x128xf32>
    %63 = vector.shape_cast %62 : vector<1x128xf32> to vector<128xf32>
    %64 = vector.shape_cast %63 : vector<128xf32> to vector<1x1x128xf32>
    %65 = arith.extf %61 : vector<2x2x128xbf16> to vector<2x2x128xf32>
    %66 = vector.broadcast %64 : vector<1x1x128xf32> to vector<2x2x128xf32>
    %67 = arith.mulf %65, %66 : vector<2x2x128xf32>
    %68 = arith.addf %60, %67 : vector<2x2x128xf32>
    %69 = vector.extract_strided_slice %52 {offsets = [2, 0, 0], sizes = [2, 2, 128], strides = [1, 1, 1]} : vector<4x2x128xbf16> to vector<2x2x128xbf16>
    %c8 = arith.constant 8 : index
    %c0_20 = arith.constant 0 : index
    %70 = vector.load %arg3[%c8, %c0_20] : memref<9x128xf32, #tpu.memory_space<vmem>>, vector<1x128xf32>
    %71 = vector.shape_cast %70 : vector<1x128xf32> to vector<128xf32>
    %72 = vector.shape_cast %71 : vector<128xf32> to vector<1x1x128xf32>
    %73 = arith.extf %69 : vector<2x2x128xbf16> to vector<2x2x128xf32>
    %74 = vector.broadcast %72 : vector<1x1x128xf32> to vector<2x2x128xf32>
    %75 = arith.mulf %73, %74 : vector<2x2x128xf32>
    %76 = arith.addf %68, %75 : vector<2x2x128xf32>
    %c0_21 = arith.constant 0 : index
    %c0_22 = arith.constant 0 : index
    %77 = vector.load %arg4[%c0_21, %c0_22] : memref<1x128xf32, #tpu.memory_space<vmem>>, vector<1x128xf32>
    %78 = vector.shape_cast %77 : vector<1x128xf32> to vector<128xf32>
    %79 = vector.shape_cast %78 : vector<128xf32> to vector<1x1x128xf32>
    %80 = vector.broadcast %79 : vector<1x1x128xf32> to vector<2x2x128xf32>
    %81 = arith.addf %76, %80 : vector<2x2x128xf32>
    %cst = arith.constant 0.000000e+00 : f32
    %82 = vector.broadcast %cst : f32 to vector<2x2x128xf32>
    %83 = arith.maximumf %81, %82 : vector<2x2x128xf32>
    %84 = arith.truncf %83 : vector<2x2x128xf32> to vector<2x2x128xbf16>
    %c0_23 = arith.constant 0 : index
    %c0_24 = arith.constant 0 : index
    %c0_25 = arith.constant 0 : index
    %c0_26 = arith.constant 0 : index
    %85 = vector.load %arg5[%c0_23, %c0_24, %c0_25, %c0_26] : memref<1x2x2x128xbf16, #tpu.memory_space<vmem>>, vector<1x2x2x128xbf16>
    %86 = vector.shape_cast %85 : vector<1x2x2x128xbf16> to vector<2x2x128xbf16>
    %87 = vector.shape_cast %84 : vector<2x2x128xbf16> to vector<1x2x2x128xbf16>
    tpu.vector_store %arg5[%c0_23, %c0_24, %c0_25, %c0_26], %87 {strides = array<i32>} : memref<1x2x2x128xbf16, #tpu.memory_space<vmem>>, vector<1x2x2x128xbf16>,
    return
  }
  func.func @transform_0(%arg0: i32, %arg1: i32) -> (i32, i32, i32, i32) {
    %c0_i32 = arith.constant 0 : i32
    %c0_i32_0 = arith.constant 0 : i32
    %c0_i32_1 = arith.constant 0 : i32
    return %arg0, %c0_i32, %c0_i32_0, %arg1 : i32, i32, i32, i32
  }
  func.func @transform_1(%arg0: i32, %arg1: i32) -> (i32, i32) {
    %c0_i32 = arith.constant 0 : i32
    %c0_i32_0 = arith.constant 0 : i32
    return %c0_i32, %arg1 : i32, i32
  }
  func.func @transform_2(%arg0: i32, %arg1: i32) -> (i32, i32) {
    %c0_i32 = arith.constant 0 : i32
    %c0_i32_0 = arith.constant 0 : i32
    return %c0_i32, %arg1 : i32, i32
  }
  func.func @transform_3(%arg0: i32, %arg1: i32) -> (i32, i32, i32, i32) {
    %c0_i32 = arith.constant 0 : i32
    %c0_i32_0 = arith.constant 0 : i32
    %c0_i32_1 = arith.constant 0 : i32
    return %arg0, %c0_i32, %c0_i32_0, %arg1 : i32, i32, i32, i32
  }
}

module attributes {stable_mosaic.version = 11 : i64} {
  func.func @_matmul_bn_fullk_kernel(%arg0: i32, %arg1: i32, %arg2: memref<8x256xbf16, #tpu.memory_space<vmem>>, %arg3: memref<256x128xbf16, #tpu.memory_space<vmem>>, %arg4: memref<1x128xf32, #tpu.memory_space<vmem>>, %arg5: memref<1x128xf32, #tpu.memory_space<vmem>>, %arg6: memref<8x128xbf16, #tpu.memory_space<vmem>>, %arg7: memref<8x128xbf16, #tpu.memory_space<vmem>>) attributes {dimension_semantics = [#tpu.dimension_semantics<parallel>, #tpu.dimension_semantics<parallel>], iteration_bounds = array<i64: 1, 1>, scalar_prefetch = 0 : i64, scratch_operands = 0 : i64, tpu.core_type = #tpu.core_type<tc>, window_params = [{transform_indices = @transform_0, window_bounds = array<i64: 8, 256>}, {transform_indices = @transform_1, window_bounds = array<i64: 256, 128>}, {transform_indices = @transform_2, window_bounds = array<i64: 1, 128>}, {transform_indices = @transform_3, window_bounds = array<i64: 1, 128>}, {transform_indices = @transform_4, window_bounds = array<i64: 8, 128>}, {transform_indices = @transform_5, window_bounds = array<i64: 8, 128>}]} {
    %c0 = arith.constant 0 : index
    %c0_0 = arith.constant 0 : index
    %0 = vector.load %arg2[%c0, %c0_0] : memref<8x256xbf16, #tpu.memory_space<vmem>>, vector<8x256xbf16>
    %c0_1 = arith.constant 0 : index
    %c0_2 = arith.constant 0 : index
    %1 = vector.load %arg3[%c0_1, %c0_2] : memref<256x128xbf16, #tpu.memory_space<vmem>>, vector<256x128xbf16>
    %cst = arith.constant dense<0.000000e+00> : vector<8x128xf32>
    %2 = tpu.matmul %0, %1, %cst {dimension_numbers = #tpu.dot_dimension_numbers<[1], [0], [0], [1], [0, 0, 1, 1], [], []>} : vector<8x256xbf16>, vector<256x128xbf16>, vector<8x128xf32> -> vector<8x128xf32>
    %c0_3 = arith.constant 0 : index
    %c0_4 = arith.constant 0 : index
    %3 = vector.load %arg4[%c0_3, %c0_4] : memref<1x128xf32, #tpu.memory_space<vmem>>, vector<1x128xf32>
    %4 = vector.broadcast %3 : vector<1x128xf32> to vector<8x128xf32>
    %5 = arith.mulf %2, %4 : vector<8x128xf32>
    %c0_5 = arith.constant 0 : index
    %c0_6 = arith.constant 0 : index
    %6 = vector.load %arg5[%c0_5, %c0_6] : memref<1x128xf32, #tpu.memory_space<vmem>>, vector<1x128xf32>
    %7 = vector.broadcast %6 : vector<1x128xf32> to vector<8x128xf32>
    %8 = arith.addf %5, %7 : vector<8x128xf32>
    %c0_7 = arith.constant 0 : index
    %c0_8 = arith.constant 0 : index
    %9 = vector.load %arg6[%c0_7, %c0_8] : memref<8x128xbf16, #tpu.memory_space<vmem>>, vector<8x128xbf16>
    %10 = arith.extf %9 : vector<8x128xbf16> to vector<8x128xf32>
    %11 = arith.addf %8, %10 : vector<8x128xf32>
    %12 = arith.truncf %11 : vector<8x128xf32> to vector<8x128xbf16>
    %c0_9 = arith.constant 0 : index
    %c0_10 = arith.constant 0 : index
    %13 = vector.load %arg7[%c0_9, %c0_10] : memref<8x128xbf16, #tpu.memory_space<vmem>>, vector<8x128xbf16>
    tpu.vector_store %arg7[%c0_9, %c0_10], %12 {strides = array<i32>} : memref<8x128xbf16, #tpu.memory_space<vmem>>, vector<8x128xbf16>,
    return
  }
  func.func @transform_0(%arg0: i32, %arg1: i32) -> (i32, i32) {
    %c0_i32 = arith.constant 0 : i32
    %c0_i32_0 = arith.constant 0 : i32
    return %arg0, %c0_i32 : i32, i32
  }
  func.func @transform_1(%arg0: i32, %arg1: i32) -> (i32, i32) {
    %c0_i32 = arith.constant 0 : i32
    %c0_i32_0 = arith.constant 0 : i32
    return %c0_i32, %arg1 : i32, i32
  }
  func.func @transform_2(%arg0: i32, %arg1: i32) -> (i32, i32) {
    %c0_i32 = arith.constant 0 : i32
    %c0_i32_0 = arith.constant 0 : i32
    return %c0_i32, %arg1 : i32, i32
  }
  func.func @transform_3(%arg0: i32, %arg1: i32) -> (i32, i32) {
    %c0_i32 = arith.constant 0 : i32
    %c0_i32_0 = arith.constant 0 : i32
    return %c0_i32, %arg1 : i32, i32
  }
  func.func @transform_4(%arg0: i32, %arg1: i32) -> (i32, i32) {
    %c0_i32 = arith.constant 0 : i32
    return %arg0, %arg1 : i32, i32
  }
  func.func @transform_5(%arg0: i32, %arg1: i32) -> (i32, i32) {
    %c0_i32 = arith.constant 0 : i32
    return %arg0, %arg1 : i32, i32
  }
}

module attributes {stable_mosaic.version = 11 : i64} {
  func.func @_matmul_bn_fullk_kernel(%arg0: i32, %arg1: i32, %arg2: memref<8x128xbf16, #tpu.memory_space<vmem>>, %arg3: memref<128x1280xbf16, #tpu.memory_space<vmem>>, %arg4: memref<1x1280xf32, #tpu.memory_space<vmem>>, %arg5: memref<1x1280xf32, #tpu.memory_space<vmem>>, %arg6: memref<8x1280xbf16, #tpu.memory_space<vmem>>) attributes {dimension_semantics = [#tpu.dimension_semantics<parallel>, #tpu.dimension_semantics<parallel>], iteration_bounds = array<i64: 1, 1>, scalar_prefetch = 0 : i64, scratch_operands = 0 : i64, tpu.core_type = #tpu.core_type<tc>, window_params = [{transform_indices = @transform_0, window_bounds = array<i64: 8, 128>}, {transform_indices = @transform_1, window_bounds = array<i64: 128, 1280>}, {transform_indices = @transform_2, window_bounds = array<i64: 1, 1280>}, {transform_indices = @transform_3, window_bounds = array<i64: 1, 1280>}, {transform_indices = @transform_4, window_bounds = array<i64: 8, 1280>}]} {
    %c0 = arith.constant 0 : index
    %c0_0 = arith.constant 0 : index
    %0 = vector.load %arg2[%c0, %c0_0] : memref<8x128xbf16, #tpu.memory_space<vmem>>, vector<8x128xbf16>
    %c0_1 = arith.constant 0 : index
    %c0_2 = arith.constant 0 : index
    %1 = vector.load %arg3[%c0_1, %c0_2] : memref<128x1280xbf16, #tpu.memory_space<vmem>>, vector<128x1280xbf16>
    %cst = arith.constant dense<0.000000e+00> : vector<8x1280xf32>
    %2 = tpu.matmul %0, %1, %cst {dimension_numbers = #tpu.dot_dimension_numbers<[1], [0], [0], [1], [0, 0, 1, 1], [], []>} : vector<8x128xbf16>, vector<128x1280xbf16>, vector<8x1280xf32> -> vector<8x1280xf32>
    %c0_3 = arith.constant 0 : index
    %c0_4 = arith.constant 0 : index
    %3 = vector.load %arg4[%c0_3, %c0_4] : memref<1x1280xf32, #tpu.memory_space<vmem>>, vector<1x1280xf32>
    %4 = vector.broadcast %3 : vector<1x1280xf32> to vector<8x1280xf32>
    %5 = arith.mulf %2, %4 : vector<8x1280xf32>
    %c0_5 = arith.constant 0 : index
    %c0_6 = arith.constant 0 : index
    %6 = vector.load %arg5[%c0_5, %c0_6] : memref<1x1280xf32, #tpu.memory_space<vmem>>, vector<1x1280xf32>
    %7 = vector.broadcast %6 : vector<1x1280xf32> to vector<8x1280xf32>
    %8 = arith.addf %5, %7 : vector<8x1280xf32>
    %cst_7 = arith.constant 0.000000e+00 : f32
    %9 = vector.broadcast %cst_7 : f32 to vector<8x1280xf32>
    %10 = arith.maximumf %8, %9 : vector<8x1280xf32>
    %11 = arith.truncf %10 : vector<8x1280xf32> to vector<8x1280xbf16>
    %c0_8 = arith.constant 0 : index
    %c0_9 = arith.constant 0 : index
    %12 = vector.load %arg6[%c0_8, %c0_9] : memref<8x1280xbf16, #tpu.memory_space<vmem>>, vector<8x1280xbf16>
    tpu.vector_store %arg6[%c0_8, %c0_9], %11 {strides = array<i32>} : memref<8x1280xbf16, #tpu.memory_space<vmem>>, vector<8x1280xbf16>,
    return
  }
  func.func @transform_0(%arg0: i32, %arg1: i32) -> (i32, i32) {
    %c0_i32 = arith.constant 0 : i32
    %c0_i32_0 = arith.constant 0 : i32
    return %arg0, %c0_i32 : i32, i32
  }
  func.func @transform_1(%arg0: i32, %arg1: i32) -> (i32, i32) {
    %c0_i32 = arith.constant 0 : i32
    %c0_i32_0 = arith.constant 0 : i32
    return %c0_i32, %arg1 : i32, i32
  }
  func.func @transform_2(%arg0: i32, %arg1: i32) -> (i32, i32) {
    %c0_i32 = arith.constant 0 : i32
    %c0_i32_0 = arith.constant 0 : i32
    return %c0_i32, %arg1 : i32, i32
  }
  func.func @transform_3(%arg0: i32, %arg1: i32) -> (i32, i32) {
    %c0_i32 = arith.constant 0 : i32
    %c0_i32_0 = arith.constant 0 : i32
    return %c0_i32, %arg1 : i32, i32
  }
  func.func @transform_4(%arg0: i32, %arg1: i32) -> (i32, i32) {
    %c0_i32 = arith.constant 0 : i32
    return %arg0, %arg1 : i32, i32
  }
}

module attributes {stable_mosaic.version = 11 : i64} {
  func.func @_global_mean_kernel(%arg0: i32, %arg1: memref<2x4x256xbf16, #tpu.memory_space<vmem>>, %arg2: memref<2x256xf32, #tpu.memory_space<vmem>>) attributes {dimension_semantics = [#tpu.dimension_semantics<parallel>], iteration_bounds = array<i64: 5>, scalar_prefetch = 0 : i64, scratch_operands = 0 : i64, tpu.core_type = #tpu.core_type<tc>, window_params = [{transform_indices = @transform_0, window_bounds = array<i64: 2, 4, 256>}, {transform_indices = @transform_1, window_bounds = array<i64: 2, 256>}]} {
    %c0 = arith.constant 0 : index
    %c0_0 = arith.constant 0 : index
    %c0_1 = arith.constant 0 : index
    %0 = vector.load %arg1[%c0, %c0_0, %c0_1] : memref<2x4x256xbf16, #tpu.memory_space<vmem>>, vector<2x4x256xbf16>
    %1 = arith.extf %0 : vector<2x4x256xbf16> to vector<2x4x256xf32>
    %cst = arith.constant dense<0.000000e+00> : vector<2x256xf32>
    %2 = vector.multi_reduction <add>, %1, %cst [1] : vector<2x4x256xf32> to vector<2x256xf32>
    %cst_2 = arith.constant 4.000000e+00 : f32
    %3 = vector.broadcast %cst_2 : f32 to vector<2x256xf32>
    %4 = arith.divf %2, %3 : vector<2x256xf32>
    %c0_3 = arith.constant 0 : index
    %c0_4 = arith.constant 0 : index
    %5 = vector.load %arg2[%c0_3, %c0_4] : memref<2x256xf32, #tpu.memory_space<vmem>>, vector<2x256xf32>
    tpu.vector_store %arg2[%c0_3, %c0_4], %4 {strides = array<i32>} : memref<2x256xf32, #tpu.memory_space<vmem>>, vector<2x256xf32>,
    return
  }
  func.func @transform_0(%arg0: i32) -> (i32, i32, i32) {
    %c0_i32 = arith.constant 0 : i32
    %c0_i32_0 = arith.constant 0 : i32
    %c0_i32_1 = arith.constant 0 : i32
    return %c0_i32, %c0_i32_0, %arg0 : i32, i32, i32
  }
  func.func @transform_1(%arg0: i32) -> (i32, i32) {
    %c0_i32 = arith.constant 0 : i32
    %c0_i32_0 = arith.constant 0 : i32
    return %c0_i32, %arg0 : i32, i32
  }
}

module attributes {stable_mosaic.version = 11 : i64} {
  func.func @_matmul_bn_fullk_kernel(%arg0: i32, %arg1: i32, %arg2: memref<8x1280xbf16, #tpu.memory_space<vmem>>, %arg3: memref<1280x128xbf16, #tpu.memory_space<vmem>>, %arg4: memref<1x128xf32, #tpu.memory_space<vmem>>, %arg5: memref<1x128xf32, #tpu.memory_space<vmem>>, %arg6: memref<8x128xf32, #tpu.memory_space<vmem>>) attributes {dimension_semantics = [#tpu.dimension_semantics<parallel>, #tpu.dimension_semantics<parallel>], iteration_bounds = array<i64: 1, 1>, scalar_prefetch = 0 : i64, scratch_operands = 0 : i64, tpu.core_type = #tpu.core_type<tc>, window_params = [{transform_indices = @transform_0, window_bounds = array<i64: 8, 1280>}, {transform_indices = @transform_1, window_bounds = array<i64: 1280, 128>}, {transform_indices = @transform_2, window_bounds = array<i64: 1, 128>}, {transform_indices = @transform_3, window_bounds = array<i64: 1, 128>}, {transform_indices = @transform_4, window_bounds = array<i64: 8, 128>}]} {
    %c0 = arith.constant 0 : index
    %c0_0 = arith.constant 0 : index
    %0 = vector.load %arg2[%c0, %c0_0] : memref<8x1280xbf16, #tpu.memory_space<vmem>>, vector<8x1280xbf16>
    %c0_1 = arith.constant 0 : index
    %c0_2 = arith.constant 0 : index
    %1 = vector.load %arg3[%c0_1, %c0_2] : memref<1280x128xbf16, #tpu.memory_space<vmem>>, vector<1280x128xbf16>
    %cst = arith.constant dense<0.000000e+00> : vector<8x128xf32>
    %2 = tpu.matmul %0, %1, %cst {dimension_numbers = #tpu.dot_dimension_numbers<[1], [0], [0], [1], [0, 0, 1, 1], [], []>} : vector<8x1280xbf16>, vector<1280x128xbf16>, vector<8x128xf32> -> vector<8x128xf32>
    %c0_3 = arith.constant 0 : index
    %c0_4 = arith.constant 0 : index
    %3 = vector.load %arg4[%c0_3, %c0_4] : memref<1x128xf32, #tpu.memory_space<vmem>>, vector<1x128xf32>
    %4 = vector.broadcast %3 : vector<1x128xf32> to vector<8x128xf32>
    %5 = arith.mulf %2, %4 : vector<8x128xf32>
    %c0_5 = arith.constant 0 : index
    %c0_6 = arith.constant 0 : index
    %6 = vector.load %arg5[%c0_5, %c0_6] : memref<1x128xf32, #tpu.memory_space<vmem>>, vector<1x128xf32>
    %7 = vector.broadcast %6 : vector<1x128xf32> to vector<8x128xf32>
    %8 = arith.addf %5, %7 : vector<8x128xf32>
    %c0_7 = arith.constant 0 : index
    %c0_8 = arith.constant 0 : index
    %9 = vector.load %arg6[%c0_7, %c0_8] : memref<8x128xf32, #tpu.memory_space<vmem>>, vector<8x128xf32>
    tpu.vector_store %arg6[%c0_7, %c0_8], %8 {strides = array<i32>} : memref<8x128xf32, #tpu.memory_space<vmem>>, vector<8x128xf32>,
    return
  }
  func.func @transform_0(%arg0: i32, %arg1: i32) -> (i32, i32) {
    %c0_i32 = arith.constant 0 : i32
    %c0_i32_0 = arith.constant 0 : i32
    return %arg0, %c0_i32 : i32, i32
  }
  func.func @transform_1(%arg0: i32, %arg1: i32) -> (i32, i32) {
    %c0_i32 = arith.constant 0 : i32
    %c0_i32_0 = arith.constant 0 : i32
    return %c0_i32, %arg1 : i32, i32
  }
  func.func @transform_2(%arg0: i32, %arg1: i32) -> (i32, i32) {
    %c0_i32 = arith.constant 0 : i32
    %c0_i32_0 = arith.constant 0 : i32
    return %c0_i32, %arg1 : i32, i32
  }
  func.func @transform_3(%arg0: i32, %arg1: i32) -> (i32, i32) {
    %c0_i32 = arith.constant 0 : i32
    %c0_i32_0 = arith.constant 0 : i32
    return %c0_i32, %arg1 : i32, i32
  }
  func.func @transform_4(%arg0: i32, %arg1: i32) -> (i32, i32) {
    %c0_i32 = arith.constant 0 : i32
    return %arg0, %arg1 : i32, i32
  }
}

</mosaic_0001>

<bundles_post_ra>
// kernel: _lambda_.18
= control target key start
LH: loop header
LB: loop body
LE: loop exit
PB: predicated region body
PF: predicated region fallthrough
CT: control target
= control target key end

     0   :  { %vm114_vm0 = vcmask 1044480   ;;  %vm115_vm1 = vcmask 1045504   ;;  %vm89_vm2 = vcmask 220160   ;;  %v508_v1 = vmov 65535   ;;  %s620_s1 = inlined_call_operand.vmem [shape: bf16[27,128], index: 1, kind: input, shape index: {}]   ;;  %s621_s0 = inlined_call_operand.vmem [shape: bf16[128,27], index: 0, kind: input, shape index: {}]   ;;  %s622_s2 = inlined_call_operand.vmem [shape: f32[1,128], index: 2, kind: input, shape index: {}]   ;;  %s623_s3 = inlined_call_operand.vmem [shape: f32[1,128], index: 3, kind: input, shape index: {}]   ;;  %s624_s4 = inlined_call_operand.vmem [shape: bf16[128,128], index: 4, kind: output, shape index: {}]  }
   0x1   :  { %v498_v0 = vld [vmem:[%s620_s1] sm:$0xff]   ;;  %v116_v2 = vsel %vm114_vm0, 4294967295, %v508_v1  ;;  %v499_v3 = vld [vmem:[%s620_s1 + $0x8] sm:$0x3f]   ;;  %v504_v10 = vld [vmem:[%s621_s0 + $0x10] sm:$0xff]  }
   0x2   :  { %473 = vmatprep.subr.bf16.mxu0 %v498_v0  ;;  %493 = vmatprep.subr.bf16.mxu1 %v498_v0  ;;  %v117_v4 = vsel %vm115_vm1, %v116_v2, 0  ;;  %v500_v5 = vld [vmem:[%s621_s0] sm:$0xff]   ;;  %v502_v8 = vld [vmem:[%s621_s0 + $0x8] sm:$0xff]   ;;  %v505_v11 = vld [vmem:[%s621_s0 + $0x30] sm:$0xff]  }
   0x3   :  { %474 = vmatpush3.bf16.msra.mxu0 %v498_v0  ;;  %495 = vmatpush3.bf16.msra.mxu1 %v498_v0  ;;  %v119_v6 = vand.u32 %v499_v3, %v117_v4  ;;  %v501_v7 = vld [vmem:[%s621_s0 + $0x20] sm:$0xff]   ;;  %v503_v9 = vld [vmem:[%s621_s0 + $0x28] sm:$0xff]   ;;  %v506_v12 = vld [vmem:[%s621_s0 + $0x18] sm:$0xff]  }
   0x4   :  { %477 = vmatprep.mubr.msk.bf16.mxu0 %vm89_vm2, %v500_v5  ;;  %485 = vmatprep.mubr.msk.bf16.mxu1 %vm89_vm2, %v501_v7  ;;  %v507_v13 = vld [vmem:[%s621_s0 + $0x38] sm:$0xff]   ;;  %v382_v14 = vld [vmem:[%s622_s2] ss:$0 sm:$0xff] }
   0x5   :  { %475 = vmatprep.subr.bf16.mxu0 %v119_v6  ;;  %494 = vmatprep.subr.bf16.mxu1 %v119_v6  ;;  %v578_v16 = vld [vmem:[%s623_s3] ss:$0 sm:$0xff] }
   0x7   :  { %476 = vmatpush3.bf16.msra.mxu0 %v119_v6  ;;  %496 = vmatpush3.bf16.msra.mxu1 %v119_v6 }
   0xa   :  { %478 = vmatmul.mubr.msk.bf16.vlgmr.msra.gmra.mrb[0].mxu0 %vm89_vm2, %v502_v8  ;;  %486 = vmatmul.mubr.msk.bf16.vlgmr.msra.gmra.mrb[0].mxu1 %vm89_vm2, %v503_v9 }
   0xb   :  { %481 = vmatprep.mubr.msk.bf16.mxu0 %vm89_vm2, %v504_v10  ;;  %489 = vmatprep.mubr.msk.bf16.mxu1 %vm89_vm2, %v505_v11 }
  0x12   :  { %482 = vmatmul.mubr.msk.bf16.gmra.mrb[4].mxu0 %vm89_vm2, %v506_v12  ;;  %490 = vmatmul.mubr.msk.bf16.gmra.mrb[4].mxu1 %vm89_vm2, %v507_v13 }
  0xdd   :  { %v479_v15 = vpop.f32.mrb[0].mxu0  ;;  %v487_v17 = vpop.f32.mrb[0].mxu1 }
  0xde   :  { %v227_v18 = vmul.f32 %v479_v15, %v382_v14  ;;  %v235_v19 = vmul.f32 %v487_v17, %v382_v14  ;;  %v155_v20 = vpop.f32.mrb[1].mxu0  ;;  %v187_v21 = vpop.f32.mrb[1].mxu1 }
  0xdf   :  { %v225_v22 = vmul.f32 %v382_v14, %v155_v20  ;;  %v233_v23 = vmul.f32 %v382_v14, %v187_v21  ;;  %v480_v24 = vpop.f32.mrb[2].mxu0  ;;  %v488_v25 = vpop.f32.mrb[2].mxu1 }
  0xe0   :  { %v250_v26 = vadd.f32 %v578_v16, %v227_v18  ;;  %v258_v27 = vadd.f32 %v578_v16, %v235_v19  ;;  %v228_v28 = vmul.f32 %v480_v24, %v382_v14  ;;  %v236_v29 = vmul.f32 %v488_v25, %v382_v14  ;;  %v158_v30 = vpop.f32.mrb[3].mxu0  ;;  %v190_v31 = vpop.f32.mrb[3].mxu1 }
  0xe1   :  { %v248_v32 = vadd.f32 %v578_v16, %v225_v22  ;;  %v256_v33 = vadd.f32 %v578_v16, %v233_v23  ;;  %v226_v34 = vmul.f32 %v382_v14, %v158_v30  ;;  %v234_v35 = vmul.f32 %v382_v14, %v190_v31 }
  0xe2   :  { %v251_v36 = vadd.f32 %v578_v16, %v228_v28  ;;  %v259_v37 = vadd.f32 %v578_v16, %v236_v29  ;;  %v266_v40 = vmax.f32 %v250_v26, 0.0  ;;  %v274_v41 = vmax.f32 %v258_v27, 0.0 }
  0xe3   :  { %v249_v38 = vadd.f32 %v578_v16, %v226_v34  ;;  %v257_v39 = vadd.f32 %v578_v16, %v234_v35  ;;  %v264_v44 = vmax.f32 %v248_v32, 0.0  ;;  %v272_v45 = vmax.f32 %v256_v33, 0.0 }
  0xe4   :  { %v267_v42 = vmax.f32 %v251_v36, 0.0  ;;  %v275_v43 = vmax.f32 %v259_v37, 0.0 }
  0xe5   :  { %v265_v46 = vmax.f32 %v249_v38, 0.0  ;;  %v273_v47 = vmax.f32 %v257_v39, 0.0  ;;  %v483_v48 = vpop.f32.mrb[4].mxu0  ;;  %v491_v49 = vpop.f32.mrb[4].mxu1 }
  0xe6   :  { %v424_v50 = vpack.c.bf16 %v267_v42, %v266_v40  ;;  %v444_v51 = vpack.c.bf16 %v275_v43, %v274_v41  ;;  %v231_v52 = vmul.f32 %v483_v48, %v382_v14  ;;  %v239_v53 = vmul.f32 %v491_v49, %v382_v14  ;;  %v171_v54 = vpop.f32.mrb[5].mxu0  ;;  %v203_v55 = vpop.f32.mrb[5].mxu1 }
  0xe7   :  { %v419_v56 = vpack.c.bf16 %v265_v46, %v264_v44  ;;  %v439_v57 = vpack.c.bf16 %v273_v47, %v272_v45  ;;  %v229_v58 = vmul.f32 %v382_v14, %v171_v54  ;;  %v237_v59 = vmul.f32 %v382_v14, %v203_v55  ;;  %v484_v60 = vpop.f32.mrb[6].mxu0  ;;  %v492_v61 = vpop.f32.mrb[6].mxu1 }
  0xe8   :  { %456 = vst [vmem:[%s624_s4 + $0x8] sm:$0xff] %v424_v50   ;;  %460 = vst [vmem:[%s624_s4 + $0x28] sm:$0xff] %v444_v51   ;;  %v254_v62 = vadd.f32 %v578_v16, %v231_v52  ;;  %v262_v63 = vadd.f32 %v578_v16, %v239_v53  ;;  %v232_v0 = vmul.f32 %v484_v60, %v382_v14  ;;  %v174_v2 = vpop.f32.mrb[7].mxu0  ;;  %v206_v3 = vpop.f32.mrb[7].mxu1 }
  0xe9   :  { %v240_v1 = vmul.f32 %v492_v61, %v382_v14  ;;  %420 = vst [vmem:[%s624_s4] sm:$0xff] %v419_v56   ;;  %459 = vst [vmem:[%s624_s4 + $0x20] sm:$0xff] %v439_v57   ;;  %v252_v4 = vadd.f32 %v578_v16, %v229_v58  ;;  %v260_v5 = vadd.f32 %v578_v16, %v237_v59 }
  0xea   :  { %v230_v6 = vmul.f32 %v382_v14, %v174_v2  ;;  %v238_v7 = vmul.f32 %v382_v14, %v206_v3  ;;  %v255_v8 = vadd.f32 %v578_v16, %v232_v0  ;;  %v270_v12 = vmax.f32 %v254_v62, 0.0 }
  0xeb   :  { %v263_v9 = vadd.f32 %v578_v16, %v240_v1  ;;  %v278_v13 = vmax.f32 %v262_v63, 0.0  ;;  %v268_v18 = vmax.f32 %v252_v4, 0.0  ;;  %v276_v19 = vmax.f32 %v260_v5, 0.0 }
  0xec   :  { %v253_v10 = vadd.f32 %v578_v16, %v230_v6  ;;  %v261_v11 = vadd.f32 %v578_v16, %v238_v7  ;;  %v271_v15 = vmax.f32 %v255_v8, 0.0 }
  0xed   :  { %v279_v17 = vmax.f32 %v263_v9, 0.0 }
  0xee   :  { %v269_v20 = vmax.f32 %v253_v10, 0.0  ;;  %v277_v21 = vmax.f32 %v261_v11, 0.0  ;;  %v434_v22 = vpack.c.bf16 %v271_v15, %v270_v12 }
  0xef   :  { %v454_v23 = vpack.c.bf16 %v279_v17, %v278_v13 }
  0xf0   :  { %v429_v24 = vpack.c.bf16 %v269_v20, %v268_v18  ;;  %v449_v14 = vpack.c.bf16 %v277_v21, %v276_v19  ;;  %458 = vst [vmem:[%s624_s4 + $0x18] sm:$0xff] %v434_v22  }
  0xf1   :  { %462 = vst [vmem:[%s624_s4 + $0x38] sm:$0xff] %v454_v23  }
  0xf2   :  { %457 = vst [vmem:[%s624_s4 + $0x10] sm:$0xff] %v429_v24   ;;  %461 = vst [vmem:[%s624_s4 + $0x30] sm:$0xff] %v449_v14  }

// kernel: _lambda_.20
= control target key start
LH: loop header
LB: loop body
LE: loop exit
PB: predicated region body
PF: predicated region fallthrough
CT: control target
= control target key end

     0   :  { %s653_s1 = inlined_call_operand.vmem [shape: bf16[128,128], index: 1, kind: input, shape index: {}]   ;;  %s654_s0 = inlined_call_operand.vmem [shape: bf16[128,128], index: 0, kind: input, shape index: {}]   ;;  %s655_s2 = inlined_call_operand.vmem [shape: f32[1,128], index: 2, kind: input, shape index: {}]   ;;  %s656_s3 = inlined_call_operand.vmem [shape: f32[1,128], index: 3, kind: input, shape index: {}]   ;;  %s657_s4 = inlined_call_operand.vmem [shape: bf16[128,128], index: 4, kind: output, shape index: {}]  }
   0x1   :  { %v534_v0 = vld [vmem:[%s653_s1] sm:$0xff]   ;;  %v535_v1 = vld [vmem:[%s653_s1 + $0x8] sm:$0xff]   ;;  %v536_v2 = vld [vmem:[%s653_s1 + $0x10] sm:$0xff]  }
   0x2   :  { %486 = vmatprep.subr.bf16.mxu0 %v534_v0  ;;  %518 = vmatprep.subr.bf16.mxu1 %v534_v0  ;;  %v537_v3 = vld [vmem:[%s653_s1 + $0x18] sm:$0xff]   ;;  %v542_v4 = vld [vmem:[%s654_s0] sm:$0xff]   ;;  %v539_v7 = vld [vmem:[%s653_s1 + $0x28] sm:$0xff]  }
   0x3   :  { %487 = vmatpush3.bf16.msra.mxu0 %v534_v0  ;;  %526 = vmatpush3.bf16.msra.mxu1 %v534_v0  ;;  %v543_v5 = vld [vmem:[%s654_s0 + $0x20] sm:$0xff]   ;;  %v540_v8 = vld [vmem:[%s653_s1 + $0x30] sm:$0xff]   ;;  %v541_v9 = vld [vmem:[%s653_s1 + $0x38] sm:$0xff]  }
   0x4   :  { %488 = vmatprep.subr.bf16.mxu0 %v535_v1  ;;  %519 = vmatprep.subr.bf16.mxu1 %v535_v1  ;;  %v538_v6 = vld [vmem:[%s653_s1 + $0x20] sm:$0xff]   ;;  %v544_v10 = vld [vmem:[%s654_s0 + $0x8] sm:$0xff]   ;;  %v546_v12 = vld [vmem:[%s654_s0 + $0x10] sm:$0xff]  }
   0x5   :  { %502 = vmatprep.mubr.bf16.mxu0 %v542_v4  ;;  %510 = vmatprep.mubr.bf16.mxu1 %v543_v5  ;;  %v545_v11 = vld [vmem:[%s654_s0 + $0x28] sm:$0xff]   ;;  %v547_v13 = vld [vmem:[%s654_s0 + $0x30] sm:$0xff]   ;;  %v548_v14 = vld [vmem:[%s654_s0 + $0x18] sm:$0xff]  }
   0x6   :  { %v549_v15 = vld [vmem:[%s654_s0 + $0x38] sm:$0xff]   ;;  %v389_v16 = vld [vmem:[%s655_s2] ss:$0 sm:$0xff] }
   0x7   :  { %489 = vmatpush3.bf16.msra.mxu0 %v535_v1  ;;  %527 = vmatpush3.bf16.msra.mxu1 %v535_v1  ;;  %v390_v23 = vld [vmem:[%s656_s3] ss:$0 sm:$0xff] }
   0x8   :  { %490 = vmatprep.subr.bf16.mxu0 %v536_v2  ;;  %520 = vmatprep.subr.bf16.mxu1 %v536_v2 }
   0xb   :  { %491 = vmatpush3.bf16.msra.mxu0 %v536_v2  ;;  %528 = vmatpush3.bf16.msra.mxu1 %v536_v2 }
   0xc   :  { %492 = vmatprep.subr.bf16.mxu0 %v537_v3  ;;  %521 = vmatprep.subr.bf16.mxu1 %v537_v3 }
   0xf   :  { %493 = vmatpush3.bf16.msra.mxu0 %v537_v3  ;;  %529 = vmatpush3.bf16.msra.mxu1 %v537_v3 }
  0x10   :  { %494 = vmatprep.subr.bf16.mxu0 %v538_v6  ;;  %522 = vmatprep.subr.bf16.mxu1 %v538_v6 }
  0x13   :  { %495 = vmatpush3.bf16.msra.mxu0 %v538_v6  ;;  %530 = vmatpush3.bf16.msra.mxu1 %v538_v6 }
  0x14   :  { %496 = vmatprep.subr.bf16.mxu0 %v539_v7  ;;  %523 = vmatprep.subr.bf16.mxu1 %v539_v7 }
  0x17   :  { %497 = vmatpush3.bf16.msra.mxu0 %v539_v7  ;;  %531 = vmatpush3.bf16.msra.mxu1 %v539_v7 }
  0x18   :  { %498 = vmatprep.subr.bf16.mxu0 %v540_v8  ;;  %524 = vmatprep.subr.bf16.mxu1 %v540_v8 }
  0x1b   :  { %499 = vmatpush3.bf16.msra.mxu0 %v540_v8  ;;  %532 = vmatpush3.bf16.msra.mxu1 %v540_v8 }
  0x1c   :  { %500 = vmatprep.subr.bf16.mxu0 %v541_v9  ;;  %525 = vmatprep.subr.bf16.mxu1 %v541_v9 }
  0x1f   :  { %501 = vmatpush3.bf16.msra.mxu0 %v541_v9  ;;  %533 = vmatpush3.bf16.msra.mxu1 %v541_v9 }
  0x22   :  { %503 = vmatmul.mubr.bf16.vlgmr.msra.gmra.mrb[0].mxu0 %v544_v10  ;;  %511 = vmatmul.mubr.bf16.vlgmr.msra.gmra.mrb[0].mxu1 %v545_v11 }
  0x23   :  { %506 = vmatprep.mubr.bf16.mxu0 %v546_v12  ;;  %514 = vmatprep.mubr.bf16.mxu1 %v547_v13 }
  0x2a   :  { %507 = vmatmul.mubr.bf16.gmra.mrb[4].mxu0 %v548_v14  ;;  %515 = vmatmul.mubr.bf16.gmra.mrb[4].mxu1 %v549_v15 }
  0xf5   :  { %v504_v17 = vpop.f32.mrb[0].mxu0  ;;  %v512_v18 = vpop.f32.mrb[0].mxu1 }
  0xf6   :  { %v252_v19 = vmul.f32 %v504_v17, %v389_v16  ;;  %v260_v20 = vmul.f32 %v512_v18, %v389_v16  ;;  %v180_v21 = vpop.f32.mrb[1].mxu0  ;;  %v212_v22 = vpop.f32.mrb[1].mxu1 }
  0xf7   :  { %v250_v24 = vmul.f32 %v389_v16, %v180_v21  ;;  %v258_v25 = vmul.f32 %v389_v16, %v212_v22  ;;  %v505_v26 = vpop.f32.mrb[2].mxu0  ;;  %v513_v27 = vpop.f32.mrb[2].mxu1 }
  0xf8   :  { %v253_v28 = vmul.f32 %v505_v26, %v389_v16  ;;  %v261_v29 = vmul.f32 %v513_v27, %v389_v16  ;;  %v183_v30 = vpop.f32.mrb[3].mxu0  ;;  %v215_v31 = vpop.f32.mrb[3].mxu1  ;;  %v275_v34 = vadd.f32 %v390_v23, %v252_v19  ;;  %v283_v35 = vadd.f32 %v390_v23, %v260_v20 }
  0xf9   :  { %v251_v32 = vmul.f32 %v389_v16, %v183_v30  ;;  %v259_v33 = vmul.f32 %v389_v16, %v215_v31  ;;  %v273_v38 = vadd.f32 %v390_v23, %v250_v24  ;;  %v281_v39 = vadd.f32 %v390_v23, %v258_v25 }
  0xfa   :  { %v276_v36 = vadd.f32 %v390_v23, %v253_v28  ;;  %v284_v37 = vadd.f32 %v390_v23, %v261_v29 }
  0xfb   :  { %v274_v40 = vadd.f32 %v390_v23, %v251_v32  ;;  %v282_v41 = vadd.f32 %v390_v23, %v259_v33 }
  0xfc   :  { %v431_v42 = vpack.c.bf16 %v276_v36, %v275_v34  ;;  %v451_v43 = vpack.c.bf16 %v284_v37, %v283_v35 }
  0xfd   :  { %v426_v44 = vpack.c.bf16 %v274_v40, %v273_v38  ;;  %v446_v45 = vpack.c.bf16 %v282_v41, %v281_v39  ;;  %v508_v46 = vpop.f32.mrb[4].mxu0  ;;  %v516_v47 = vpop.f32.mrb[4].mxu1 }
  0xfe   :  { %463 = vst [vmem:[%s657_s4 + $0x8] sm:$0xff] %v431_v42   ;;  %467 = vst [vmem:[%s657_s4 + $0x28] sm:$0xff] %v451_v43   ;;  %v256_v48 = vmul.f32 %v508_v46, %v389_v16  ;;  %v264_v49 = vmul.f32 %v516_v47, %v389_v16  ;;  %v196_v50 = vpop.f32.mrb[5].mxu0  ;;  %v228_v51 = vpop.f32.mrb[5].mxu1 }
  0xff   :  { %427 = vst [vmem:[%s657_s4] sm:$0xff] %v426_v44   ;;  %466 = vst [vmem:[%s657_s4 + $0x20] sm:$0xff] %v446_v45   ;;  %v254_v52 = vmul.f32 %v389_v16, %v196_v50  ;;  %v262_v53 = vmul.f32 %v389_v16, %v228_v51  ;;  %v509_v54 = vpop.f32.mrb[6].mxu0  ;;  %v517_v55 = vpop.f32.mrb[6].mxu1 }
 0x100   :  { %v257_v56 = vmul.f32 %v509_v54, %v389_v16  ;;  %v265_v57 = vmul.f32 %v517_v55, %v389_v16  ;;  %v199_v58 = vpop.f32.mrb[7].mxu0  ;;  %v231_v59 = vpop.f32.mrb[7].mxu1  ;;  %v279_v62 = vadd.f32 %v390_v23, %v256_v48  ;;  %v287_v63 = vadd.f32 %v390_v23, %v264_v49 }
 0x101   :  { %v255_v60 = vmul.f32 %v389_v16, %v199_v58  ;;  %v263_v61 = vmul.f32 %v389_v16, %v231_v59  ;;  %v277_v2 = vadd.f32 %v390_v23, %v254_v52  ;;  %v285_v3 = vadd.f32 %v390_v23, %v262_v53 }
 0x102   :  { %v280_v0 = vadd.f32 %v390_v23, %v257_v56  ;;  %v288_v1 = vadd.f32 %v390_v23, %v265_v57 }
 0x103   :  { %v278_v4 = vadd.f32 %v390_v23, %v255_v60  ;;  %v286_v5 = vadd.f32 %v390_v23, %v263_v61 }
 0x104   :  { %v441_v6 = vpack.c.bf16 %v280_v0, %v279_v62  ;;  %v461_v7 = vpack.c.bf16 %v288_v1, %v287_v63 }
 0x105   :  { %v436_v8 = vpack.c.bf16 %v278_v4, %v277_v2  ;;  %v456_v9 = vpack.c.bf16 %v286_v5, %v285_v3 }
 0x106   :  { %465 = vst [vmem:[%s657_s4 + $0x18] sm:$0xff] %v441_v6   ;;  %469 = vst [vmem:[%s657_s4 + $0x38] sm:$0xff] %v461_v7  }
 0x107   :  { %464 = vst [vmem:[%s657_s4 + $0x10] sm:$0xff] %v436_v8   ;;  %468 = vst [vmem:[%s657_s4 + $0x30] sm:$0xff] %v456_v9  }

// kernel: _lambda_.19
= control target key start
LH: loop header
LB: loop body
LE: loop exit
PB: predicated region body
PF: predicated region fallthrough
CT: control target
= control target key end

     0   :  { %s1077_s12 = smov 0   ;;  %s1079_s13 = smov 0   ;;  %s1421_s0 = inlined_call_operand.vmem [shape: bf16[2,10,10,128], index: 0, kind: input, shape index: {}]   ;;  %s1422_s1 = inlined_call_operand.vmem [shape: f32[9,128], index: 1, kind: input, shape index: {}]   ;;  %s1423_s2 = inlined_call_operand.vmem [shape: f32[1,128], index: 2, kind: input, shape index: {}]   ;;  %s1424_s3 = inlined_call_operand.vmem [shape: bf16[2,8,8,128], index: 3, kind: output, shape index: {}]  }
   0x1   :  { %s1081_s14 = smov 0  }
   0x2 LB: > { %s25_s15 = sadd.s32 1, %s1051_s13  ;;  %p968_p0 = scmp.ge.s32.totalorder %s1055_s14, 1  ;;  %s1055_s14 = sphi %s1081_s14, %s13_s14   ;;  %s1051_s13 = sphi %s1079_s13, %s1426_s13   ;;  %s1047_s12 = sphi %s1077_s12, %s1425_s12  }
   0x3   : > { %p27_p1 = scmp.ge.s32.totalorder %s25_s15, 2  ;;  %p173_p2 = scmp.lt.s32.totalorder %s1055_s14, 3 }
   0x5   : > { %s1428_s15 = smov (%p27_p1, %s25_s15), 0  ;;  %p174_p3 = pnand %p968_p0, %p173_p2 }
   0x6   : > { %p210_p4 = scmp.lt.s32.totalorder (!%p174_p3), %s1047_s12, 1  ;;  %v972_v0 = vld [vmem:[%s1422_s1] ss:$0 sm:$0xff] (!%p174_p3)  ;;  %v973_v14 = vld [vmem:[%s1422_s1 + $0x3] ss:$0 sm:$0xff] (!%p174_p3)  ;;  %vm363_vm0 = vcmask (!%p174_p3), 1046528  }
   0x7   : > { %177 = sbr.rel (%p174_p3) target bundleno = 117 (0x75), region = 32  ;;  %v974_v31 = vld [vmem:[%s1422_s1 + $0x6] ss:$0 sm:$0xff] (!%p174_p3)  ;;  %vm615_vm1 = vcmask (!%p174_p3), 1045504  }
   0xe   : > { %s1430_s12 = smov (!%p210_p4, %s1047_s12), 1 }
   0xf   : > { %s1008_s16 = smul.u32 80, %s1430_s12  ;;  %s984_s17 = sshll.u32 %s1430_s12, 5 }
  0x10   : > { %s232_s20 = scalar_lea.vmem %s1424_s3, %s984_s17 }
  0x11   : > { %s1101_s19 = scalar_lea.vmem %s1421_s0, %s1008_s16 }
  0x12   : > { %v1107_v1 = vld [vmem:[%s1101_s19] ss:$8 sps:$4 sm:$0xff]   ;;  %v235_v2 = vld [vmem:[%s1101_s19 + $0x10] ss:$8 sps:$4 sm:$0xff]   ;;  %v1165_v48 = vld [vmem:[%s1101_s19 + $0x4] sm:$0x1] }
  0x13   : > { %v237_v3 = vld [vmem:[%s1101_s19 + $0x20] ss:$8 sps:$4 sm:$0xff]   ;;  %v239_v4 = vld [vmem:[%s1101_s19 + $0x30] ss:$8 sps:$4 sm:$0xff]   ;;  %v244_v5 = vunpack.c.l.bf16 %v1107_v1  ;;  %v1114_v6 = vunpack.c.h.bf16 %v1107_v1  ;;  %v1116_v7 = vunpack.c.l.bf16 %v235_v2  ;;  %v1118_v8 = vunpack.c.h.bf16 %v235_v2  ;;  %v309_v49 = vld [vmem:[%s1101_s19 + $0xc] sm:$0x1] }
  0x14   : > { %v1121_v9 = vld [vmem:[%s1101_s19 + $0x40] ss:$8 sps:$4 sm:$0xff]   ;;  %v1123_v10 = vunpack.c.l.bf16 %v237_v3  ;;  %v1125_v11 = vunpack.c.h.bf16 %v237_v3  ;;  %v1127_v12 = vunpack.c.l.bf16 %v239_v4  ;;  %v1129_v13 = vunpack.c.h.bf16 %v239_v4  ;;  %v310_v50 = vld [vmem:[%s1101_s19 + $0x14] sm:$0x1]  ;;  %v311_v55 = vld [vmem:[%s1101_s19 + $0x1c] sm:$0x1] }
  0x15   : > { %v256_v15 = vmul.f32 %v972_v0, %v244_v5  ;;  %v257_v16 = vmul.f32 %v972_v0, %v1114_v6  ;;  %v258_v17 = vmul.f32 %v972_v0, %v1116_v7  ;;  %v259_v18 = vmul.f32 %v972_v0, %v1118_v8  ;;  %v312_v56 = vld [vmem:[%s1101_s19 + $0x24] sm:$0x1]  ;;  %v313_v57 = vld [vmem:[%s1101_s19 + $0x2c] sm:$0x1]  ;;  %v314_v62 = vld [vmem:[%s1101_s19 + $0x34] sm:$0x1] }
  0x16   : > { %v260_v19 = vmul.f32 %v972_v0, %v1123_v10  ;;  %v261_v20 = vmul.f32 %v972_v0, %v1125_v11  ;;  %v262_v21 = vmul.f32 %v972_v0, %v1127_v12  ;;  %v263_v22 = vmul.f32 %v972_v0, %v1129_v13  ;;  %v315_v63 = vld [vmem:[%s1101_s19 + $0x3c] sm:$0x1]  ;;  %v975_v0 = vld [vmem:[%s1422_s1 + $0x1] ss:$0 sm:$0xff] }
  0x17   : > { %v1144_v23 = vunpack.c.l.bf16 %v1121_v9  ;;  %v270_v24 = vmul.f32 %v973_v14, %v1114_v6  ;;  %v271_v25 = vmul.f32 %v973_v14, %v1116_v7  ;;  %v272_v26 = vmul.f32 %v973_v14, %v1118_v8 }
  0x18   : > { %v273_v27 = vmul.f32 %v973_v14, %v1123_v10  ;;  %v274_v28 = vmul.f32 %v973_v14, %v1125_v11  ;;  %v275_v29 = vmul.f32 %v973_v14, %v1127_v12  ;;  %v276_v30 = vmul.f32 %v973_v14, %v1129_v13 }
  0x19   : > { %v277_v32 = vmul.f32 %v973_v14, %v1144_v23  ;;  %v278_v33 = vadd.f32 %v270_v24, %v256_v15  ;;  %v279_v34 = vadd.f32 %v271_v25, %v257_v16  ;;  %v280_v35 = vadd.f32 %v272_v26, %v258_v17 }
  0x1a   : > { %v281_v36 = vadd.f32 %v273_v27, %v259_v18  ;;  %v282_v37 = vadd.f32 %v274_v28, %v260_v19  ;;  %v283_v38 = vadd.f32 %v275_v29, %v261_v20  ;;  %v284_v39 = vadd.f32 %v276_v30, %v262_v21 }
  0x1b   : > { %v285_v40 = vadd.f32 %v277_v32, %v263_v22  ;;  %v287_v41 = vunpack.c.h.bf16 %v1121_v9  ;;  %v292_v42 = vmul.f32 %v974_v31, %v1116_v7  ;;  %v293_v43 = vmul.f32 %v974_v31, %v1118_v8 }
  0x1c   : > { %v294_v44 = vmul.f32 %v974_v31, %v1123_v10  ;;  %v295_v45 = vmul.f32 %v974_v31, %v1125_v11  ;;  %v296_v46 = vmul.f32 %v974_v31, %v1127_v12  ;;  %v297_v47 = vmul.f32 %v974_v31, %v1129_v13 }
  0x1d   : > { %v298_v51 = vmul.f32 %v974_v31, %v1144_v23  ;;  %v299_v52 = vmul.f32 %v974_v31, %v287_v41  ;;  %v300_v53 = vadd.f32 %v292_v42, %v278_v33  ;;  %v1172_v54 = vadd.f32 %v293_v43, %v279_v34 }
  0x1e   : > { %v302_v58 = vadd.f32 %v294_v44, %v280_v35  ;;  %v303_v59 = vadd.f32 %v295_v45, %v281_v36  ;;  %v304_v60 = vadd.f32 %v296_v46, %v282_v37  ;;  %v305_v61 = vadd.f32 %v297_v47, %v283_v38 }
  0x1f   : > { %v306_v2 = vadd.f32 %v298_v51, %v284_v39  ;;  %v307_v3 = vadd.f32 %v299_v52, %v285_v40  ;;  %v319_v4 = vunpack.c.l.bf16 %v1165_v48  ;;  %v1183_v14 = vunpack.c.l.bf16 %v309_v49 }
  0x20   : > { %v1185_v15 = vunpack.c.l.bf16 %v310_v50  ;;  %v1187_v16 = vunpack.c.l.bf16 %v311_v55  ;;  %v1189_v17 = vunpack.c.l.bf16 %v312_v56  ;;  %v1191_v18 = vunpack.c.l.bf16 %v313_v57 }
  0x21   : > { %v1193_v19 = vunpack.c.l.bf16 %v314_v62  ;;  %v1195_v20 = vunpack.c.l.bf16 %v315_v63  ;;  %v331_v21 = vmul.f32 %v975_v0, %v244_v5  ;;  %v332_v22 = vmul.f32 %v975_v0, %v319_v4  ;;  %v316_v62 = vld [vmem:[%s1101_s19 + $0x44] sm:$0x1] }
  0x22   : > { %v333_v24 = vmul.f32 %v975_v0, %v1114_v6  ;;  %v334_v25 = vmul.f32 %v975_v0, %v1183_v14  ;;  %v335_v26 = vmul.f32 %v975_v0, %v1116_v7  ;;  %v336_v27 = vmul.f32 %v975_v0, %v1185_v15 }
  0x23   : > { %v337_v28 = vmul.f32 %v975_v0, %v1118_v8  ;;  %v338_v29 = vmul.f32 %v975_v0, %v1187_v16  ;;  %v339_v30 = vmul.f32 %v975_v0, %v1123_v10  ;;  %v340_v1 = vmul.f32 %v975_v0, %v1189_v17 }
  0x24   : > { %v341_v5 = vmul.f32 %v975_v0, %v1125_v11  ;;  %v342_v31 = vmul.f32 %v975_v0, %v1191_v18  ;;  %v343_v32 = vmul.f32 %v975_v0, %v1127_v12  ;;  %v344_v33 = vmul.f32 %v975_v0, %v1193_v19 }
  0x25   : > { %v345_v34 = vmul.f32 %v975_v0, %v1129_v13  ;;  %v346_v35 = vmul.f32 %v975_v0, %v1195_v20  ;;  %v364_v36 = vrot.slane %v331_v21, 1  ;;  %v365_v37 = vrot.slane %v332_v22, 1 }
  0x26   : > { %v367_v38 = vrot.slane %v333_v24, 1  ;;  %v368_v39 = vrot.slane %v334_v25, 1  ;;  %v370_v40 = vrot.slane %v335_v26, 1  ;;  %v371_v42 = vrot.slane %v336_v27, 1  ;;  %v976_v24 = vld [vmem:[%s1422_s1 + $0x4] ss:$0 sm:$0xff] }
  0x27   : > { %v366_v43 = vsel %vm363_vm0, %v364_v36, %v365_v37  ;;  %v373_v44 = vrot.slane %v337_v28, 1  ;;  %v374_v45 = vrot.slane %v338_v29, 1  ;;  %v376_v46 = vrot.slane %v339_v30, 1 }
  0x28   : > { %v369_v47 = vsel %vm363_vm0, %v367_v38, %v368_v39  ;;  %v372_v49 = vsel %vm363_vm0, %v370_v40, %v371_v42  ;;  %v377_v50 = vrot.slane %v340_v1, 1  ;;  %v379_v51 = vrot.slane %v341_v5, 1 }
  0x29   : > { %v375_v52 = vsel %vm363_vm0, %v373_v44, %v374_v45  ;;  %v380_v55 = vrot.slane %v342_v31, 1  ;;  %v382_v56 = vrot.slane %v343_v32, 1  ;;  %v383_v57 = vrot.slane %v344_v33, 1 }
  0x2a   : > { %v378_v63 = vsel %vm363_vm0, %v376_v46, %v377_v50  ;;  %v385_v0 = vrot.slane %v345_v34, 1  ;;  %v386_v21 = vrot.slane %v346_v35, 1  ;;  %v396_v22 = vadd.f32 %v366_v43, %v300_v53 }
  0x2b   : > { %v381_v25 = vsel %vm363_vm0, %v379_v51, %v380_v55  ;;  %v384_v26 = vsel %vm363_vm0, %v382_v56, %v383_v57  ;;  %v397_v27 = vadd.f32 %v369_v47, %v1172_v54  ;;  %v398_v28 = vadd.f32 %v372_v49, %v302_v58 }
  0x2c   : > { %v387_v29 = vsel %vm363_vm0, %v385_v0, %v386_v21  ;;  %v399_v30 = vadd.f32 %v375_v52, %v303_v59  ;;  %v400_v1 = vadd.f32 %v378_v63, %v304_v60  ;;  %v401_v5 = vadd.f32 %v381_v25, %v305_v61 }
  0x2d   : > { %v402_v31 = vadd.f32 %v384_v26, %v306_v2  ;;  %v403_v32 = vadd.f32 %v387_v29, %v307_v3  ;;  %v1228_v33 = vunpack.c.l.bf16 %v316_v62  ;;  %v410_v53 = vmul.f32 %v976_v24, %v1114_v6 }
  0x2e   : > { %v411_v34 = vmul.f32 %v976_v24, %v1183_v14  ;;  %v412_v35 = vmul.f32 %v976_v24, %v1116_v7  ;;  %v413_v36 = vmul.f32 %v976_v24, %v1185_v15  ;;  %v414_v54 = vmul.f32 %v976_v24, %v1118_v8 }
  0x2f   : > { %v415_v58 = vmul.f32 %v976_v24, %v1187_v16  ;;  %v416_v59 = vmul.f32 %v976_v24, %v1123_v10  ;;  %v417_v60 = vmul.f32 %v976_v24, %v1189_v17  ;;  %v418_v61 = vmul.f32 %v976_v24, %v1125_v11 }
  0x30   : > { %v419_v2 = vmul.f32 %v976_v24, %v1191_v18  ;;  %v420_v6 = vmul.f32 %v976_v24, %v1127_v12  ;;  %v421_v3 = vmul.f32 %v976_v24, %v1193_v19  ;;  %v422_v37 = vmul.f32 %v976_v24, %v1129_v13 }
  0x31   : > { %v423_v38 = vmul.f32 %v976_v24, %v1195_v20  ;;  %v424_v39 = vmul.f32 %v976_v24, %v1144_v23  ;;  %v425_v40 = vmul.f32 %v976_v24, %v1228_v33  ;;  %v442_v42 = vrot.slane %v410_v53, 1  ;;  %v1251_v24 = vld [vmem:[%s1101_s19 + $0x4c] sm:$0x1] }
  0x32   : > { %v443_v43 = vrot.slane %v411_v34, 1  ;;  %v445_v44 = vrot.slane %v412_v35, 1  ;;  %v446_v45 = vrot.slane %v413_v36, 1  ;;  %v448_v46 = vrot.slane %v414_v54, 1 }
  0x33   : > { %v449_v47 = vrot.slane %v415_v58, 1  ;;  %v451_v49 = vrot.slane %v416_v59, 1  ;;  %v452_v50 = vrot.slane %v417_v60, 1  ;;  %v454_v51 = vrot.slane %v418_v61, 1  ;;  %v977_v58 = vld [vmem:[%s1422_s1 + $0x7] ss:$0 sm:$0xff] }
  0x34   : > { %v444_v52 = vsel %vm363_vm0, %v442_v42, %v443_v43  ;;  %v447_v55 = vsel %vm363_vm0, %v445_v44, %v446_v45  ;;  %v455_v56 = vrot.slane %v419_v2, 1  ;;  %v457_v57 = vrot.slane %v420_v6, 1 }
  0x35   : > { %v450_v62 = vsel %vm363_vm0, %v448_v46, %v449_v47  ;;  %v453_v63 = vsel %vm363_vm0, %v451_v49, %v452_v50  ;;  %v458_v0 = vrot.slane %v421_v3, 1  ;;  %v460_v21 = vrot.slane %v422_v37, 1 }
  0x36   : > { %v456_v25 = vsel %vm363_vm0, %v454_v51, %v455_v56  ;;  %v461_v26 = vrot.slane %v423_v38, 1  ;;  %v463_v29 = vrot.slane %v424_v39, 1  ;;  %v464_v53 = vrot.slane %v425_v40, 1 }
  0x37   : > { %v459_v34 = vsel %vm363_vm0, %v457_v57, %v458_v0  ;;  %v474_v35 = vadd.f32 %v444_v52, %v396_v22  ;;  %v475_v36 = vadd.f32 %v447_v55, %v397_v27  ;;  %v476_v54 = vadd.f32 %v450_v62, %v398_v28  ;;  %v560_v62 = vld [vmem:[%s1101_s19] sm:$0xe] }
  0x38   : > { %v462_v59 = vsel %vm363_vm0, %v460_v21, %v461_v26  ;;  %v465_v60 = vsel %vm363_vm0, %v463_v29, %v464_v53  ;;  %v477_v61 = vadd.f32 %v453_v63, %v399_v30  ;;  %v478_v2 = vadd.f32 %v456_v25, %v400_v1  ;;  %v1285_v63 = vld [vmem:[%s1101_s19 + $0x8] sm:$0xe]  ;;  %v562_v29 = vld [vmem:[%s1101_s19 + $0x10] sm:$0xe] }
  0x39   : > { %v479_v6 = vadd.f32 %v459_v34, %v401_v5  ;;  %v480_v3 = vadd.f32 %v462_v59, %v402_v31  ;;  %v481_v37 = vadd.f32 %v465_v60, %v403_v32  ;;  %v483_v38 = vunpack.c.l.bf16 %v1251_v24  ;;  %v563_v60 = vld [vmem:[%s1101_s19 + $0x18] sm:$0xe] }
  0x3a   : > { %v488_v39 = vmul.f32 %v977_v58, %v1116_v7  ;;  %v489_v22 = vmul.f32 %v977_v58, %v1185_v15  ;;  %v490_v27 = vmul.f32 %v977_v58, %v1118_v8  ;;  %v491_v28 = vmul.f32 %v977_v58, %v1187_v16 }
  0x3b   : > { %v492_v40 = vmul.f32 %v977_v58, %v1123_v10  ;;  %v493_v42 = vmul.f32 %v977_v58, %v1189_v17  ;;  %v494_v30 = vmul.f32 %v977_v58, %v1125_v11  ;;  %v495_v1 = vmul.f32 %v977_v58, %v1191_v18 }
  0x3c   : > { %v496_v5 = vmul.f32 %v977_v58, %v1127_v12  ;;  %v497_v31 = vmul.f32 %v977_v58, %v1193_v19  ;;  %v498_v7 = vmul.f32 %v977_v58, %v1129_v13  ;;  %v499_v32 = vmul.f32 %v977_v58, %v1195_v20 }
  0x3d   : > { %v500_v8 = vmul.f32 %v977_v58, %v1144_v23  ;;  %v501_v43 = vmul.f32 %v977_v58, %v1228_v33  ;;  %v502_v10 = vmul.f32 %v977_v58, %v287_v41  ;;  %v503_v11 = vmul.f32 %v977_v58, %v483_v38 }
  0x3e   : > { %v520_v44 = vrot.slane %v488_v39, 1  ;;  %v521_v45 = vrot.slane %v489_v22, 1  ;;  %v523_v12 = vrot.slane %v490_v27, 1  ;;  %v524_v46 = vrot.slane %v491_v28, 1  ;;  %v564_v39 = vld [vmem:[%s1101_s19 + $0x20] sm:$0xe] }
  0x3f   : > { %v526_v47 = vrot.slane %v492_v40, 1  ;;  %v527_v13 = vrot.slane %v493_v42, 1  ;;  %v529_v49 = vrot.slane %v494_v30, 1  ;;  %v530_v50 = vrot.slane %v495_v1, 1  ;;  %v565_v42 = vld [vmem:[%s1101_s19 + $0x28] sm:$0xe] }
  0x40   : > { %v522_v23 = vsel %vm363_vm0, %v520_v44, %v521_v45  ;;  %v525_v51 = vsel %vm363_vm0, %v523_v12, %v524_v46  ;;  %v532_v9 = vrot.slane %v496_v5, 1  ;;  %v533_v41 = vrot.slane %v497_v31, 1  ;;  %v566_v30 = vld [vmem:[%s1101_s19 + $0x30] sm:$0xe]  ;;  %v567_v1 = vld [vmem:[%s1101_s19 + $0x38] sm:$0xe] }
  0x41   : > { %v528_v52 = vsel %vm363_vm0, %v526_v47, %v527_v13  ;;  %v531_v55 = vsel %vm363_vm0, %v529_v49, %v530_v50  ;;  %v535_v56 = vrot.slane %v498_v7, 1  ;;  %v536_v57 = vrot.slane %v499_v32, 1 }
  0x42   : > { %v534_v0 = vsel %vm363_vm0, %v532_v9, %v533_v41  ;;  %v538_v21 = vrot.slane %v500_v8, 1  ;;  %v539_v25 = vrot.slane %v501_v43, 1  ;;  %v541_v26 = vrot.slane %v502_v10, 1 }
  0x43   : > { %v537_v53 = vsel %vm363_vm0, %v535_v56, %v536_v57  ;;  %v542_v34 = vrot.slane %v503_v11, 1  ;;  %v1290_v58 = vadd.f32 %v522_v23, %v474_v35  ;;  %v1292_v59 = vadd.f32 %v525_v51, %v475_v36  ;;  %v978_v35 = vld [vmem:[%s1422_s1 + $0x2] ss:$0 sm:$0xff] }
  0x44   : > { %v540_v22 = vsel %vm363_vm0, %v538_v21, %v539_v25  ;;  %v1297_v27 = vadd.f32 %v528_v52, %v476_v54  ;;  %v555_v28 = vadd.f32 %v531_v55, %v477_v61  ;;  %v556_v40 = vadd.f32 %v534_v0, %v478_v2 }
  0x45   : > { %v543_v5 = vsel %vm363_vm0, %v541_v26, %v542_v34  ;;  %v557_v31 = vadd.f32 %v537_v53, %v479_v6  ;;  %v558_v7 = vadd.f32 %v540_v22, %v480_v3  ;;  %v571_v36 = vunpack.c.l.bf16 %v560_v62  ;;  %v1339_v22 = vld [vmem:[%s1101_s19 + $0x40] sm:$0xe] }
  0x46   : > { %v559_v32 = vadd.f32 %v543_v5, %v481_v37  ;;  %v572_v8 = vunpack.c.l.bf16 %v1285_v63  ;;  %v1307_v43 = vunpack.c.l.bf16 %v562_v29  ;;  %v1309_v54 = vunpack.c.l.bf16 %v563_v60 }
  0x47   : > { %v1311_v61 = vunpack.c.l.bf16 %v564_v39  ;;  %v1313_v2 = vunpack.c.l.bf16 %v565_v42  ;;  %v1315_v10 = vunpack.c.l.bf16 %v566_v30  ;;  %v1317_v6 = vunpack.c.l.bf16 %v567_v1 }
  0x48   : > { %v583_v3 = vmul.f32 %v978_v35, %v571_v36  ;;  %v584_v11 = vmul.f32 %v978_v35, %v319_v4  ;;  %v585_v44 = vmul.f32 %v978_v35, %v572_v8  ;;  %v586_v37 = vmul.f32 %v978_v35, %v1183_v14 }
  0x49   : > { %v587_v45 = vmul.f32 %v978_v35, %v1307_v43  ;;  %v588_v12 = vmul.f32 %v978_v35, %v1185_v15  ;;  %v589_v46 = vmul.f32 %v978_v35, %v1309_v54  ;;  %v590_v47 = vmul.f32 %v978_v35, %v1187_v16 }
  0x4a   : > { %v591_v13 = vmul.f32 %v978_v35, %v1311_v61  ;;  %v592_v49 = vmul.f32 %v978_v35, %v1189_v17  ;;  %v593_v50 = vmul.f32 %v978_v35, %v1313_v2  ;;  %v594_v48 = vmul.f32 %v978_v35, %v1191_v18 }
  0x4b   : > { %v595_v4 = vmul.f32 %v978_v35, %v1315_v10  ;;  %v596_v23 = vmul.f32 %v978_v35, %v1193_v19  ;;  %v597_v51 = vmul.f32 %v978_v35, %v1317_v6  ;;  %v598_v9 = vmul.f32 %v978_v35, %v1195_v20 }
  0x4c   : > { %v616_v41 = vrot.slane %v583_v3, 2  ;;  %v617_v52 = vrot.slane %v584_v11, 2  ;;  %v619_v55 = vrot.slane %v585_v44, 2  ;;  %v620_v56 = vrot.slane %v586_v37, 2  ;;  %v979_v44 = vld [vmem:[%s1422_s1 + $0x5] ss:$0 sm:$0xff] }
  0x4d   : > { %v622_v57 = vrot.slane %v587_v45, 2  ;;  %v623_v62 = vrot.slane %v588_v12, 2  ;;  %v625_v63 = vrot.slane %v589_v46, 2  ;;  %v626_v0 = vrot.slane %v590_v47, 2 }
  0x4e   : > { %v618_v21 = vsel %vm615_vm1, %v616_v41, %v617_v52  ;;  %v621_v25 = vsel %vm615_vm1, %v619_v55, %v620_v56  ;;  %v628_v26 = vrot.slane %v591_v13, 2  ;;  %v629_v29 = vrot.slane %v592_v49, 2 }
  0x4f   : > { %v624_v53 = vsel %vm615_vm1, %v622_v57, %v623_v62  ;;  %v627_v34 = vsel %vm615_vm1, %v625_v63, %v626_v0  ;;  %v631_v60 = vrot.slane %v593_v50, 2  ;;  %v632_v39 = vrot.slane %v594_v48, 2 }
  0x50   : > { %v630_v42 = vsel %vm615_vm1, %v628_v26, %v629_v29  ;;  %v634_v30 = vrot.slane %v595_v4, 2  ;;  %v635_v1 = vrot.slane %v596_v23, 2  ;;  %v637_v5 = vrot.slane %v597_v51, 2 }
  0x51   : > { %v633_v35 = vsel %vm615_vm1, %v631_v60, %v632_v39  ;;  %v638_v36 = vrot.slane %v598_v9, 2  ;;  %v648_v3 = vadd.f32 %v618_v21, %v1290_v58  ;;  %v649_v11 = vadd.f32 %v621_v25, %v1292_v59 }
  0x52   : > { %v636_v37 = vsel %vm615_vm1, %v634_v30, %v635_v1  ;;  %v650_v45 = vadd.f32 %v624_v53, %v1297_v27  ;;  %v651_v12 = vadd.f32 %v627_v34, %v555_v28  ;;  %v652_v46 = vadd.f32 %v630_v42, %v556_v40 }
  0x53   : > { %v639_v47 = vsel %vm615_vm1, %v637_v5, %v638_v36  ;;  %v653_v13 = vadd.f32 %v633_v35, %v557_v31  ;;  %v654_v49 = vadd.f32 %v636_v37, %v558_v7  ;;  %v657_v50 = vunpack.c.l.bf16 %v1339_v22  ;;  %v569_v36 = vld [vmem:[%s1101_s19 + $0x48] sm:$0xe] }
  0x54   : > { %v655_v48 = vadd.f32 %v639_v47, %v559_v32  ;;  %v662_v58 = vmul.f32 %v979_v44, %v572_v8  ;;  %v663_v59 = vmul.f32 %v979_v44, %v1183_v14  ;;  %v664_v4 = vmul.f32 %v979_v44, %v1307_v43 }
  0x55   : > { %v665_v23 = vmul.f32 %v979_v44, %v1185_v15  ;;  %v666_v51 = vmul.f32 %v979_v44, %v1309_v54  ;;  %v667_v27 = vmul.f32 %v979_v44, %v1187_v16  ;;  %v668_v28 = vmul.f32 %v979_v44, %v1311_v61 }
  0x56   : > { %v669_v40 = vmul.f32 %v979_v44, %v1189_v17  ;;  %v670_v31 = vmul.f32 %v979_v44, %v1313_v2  ;;  %v671_v7 = vmul.f32 %v979_v44, %v1191_v18  ;;  %v672_v32 = vmul.f32 %v979_v44, %v1315_v10 }
  0x57   : > { %v673_v14 = vmul.f32 %v979_v44, %v1193_v19  ;;  %v674_v8 = vmul.f32 %v979_v44, %v1317_v6  ;;  %v675_v9 = vmul.f32 %v979_v44, %v1195_v20  ;;  %v676_v41 = vmul.f32 %v979_v44, %v657_v50 }
  0x58   : > { %v677_v52 = vmul.f32 %v979_v44, %v1228_v33  ;;  %v694_v55 = vrot.slane %v662_v58, 2  ;;  %v695_v56 = vrot.slane %v663_v59, 2  ;;  %v697_v57 = vrot.slane %v664_v4, 2  ;;  %v980_v59 = vld [vmem:[%s1422_s1 + $0x8] ss:$0 sm:$0xff] }
  0x59   : > { %v698_v62 = vrot.slane %v665_v23, 2  ;;  %v700_v63 = vrot.slane %v666_v51, 2  ;;  %v701_v0 = vrot.slane %v667_v27, 2  ;;  %v703_v21 = vrot.slane %v668_v28, 2 }
  0x5a   : > { %v696_v25 = vsel %vm615_vm1, %v694_v55, %v695_v56  ;;  %v704_v26 = vrot.slane %v669_v40, 2  ;;  %v706_v29 = vrot.slane %v670_v31, 2  ;;  %v707_v53 = vrot.slane %v671_v7, 2 }
  0x5b   : > { %v699_v34 = vsel %vm615_vm1, %v697_v57, %v698_v62  ;;  %v702_v60 = vsel %vm615_vm1, %v700_v63, %v701_v0  ;;  %v709_v39 = vrot.slane %v672_v32, 2  ;;  %v710_v42 = vrot.slane %v673_v14, 2 }
  0x5c   : > { %v705_v30 = vsel %vm615_vm1, %v703_v21, %v704_v26  ;;  %v708_v1 = vsel %vm615_vm1, %v706_v29, %v707_v53  ;;  %v712_v5 = vrot.slane %v674_v8, 2  ;;  %v713_v35 = vrot.slane %v675_v9, 2  ;;  %v981_v29 = vld [vmem:[%s1423_s2] ss:$0 sm:$0xff] }
  0x5d   : > { %v711_v44 = vsel %vm615_vm1, %v709_v39, %v710_v42  ;;  %v715_v37 = vrot.slane %v676_v41, 2  ;;  %v716_v47 = vrot.slane %v677_v52, 2  ;;  %v726_v58 = vadd.f32 %v696_v25, %v648_v3 }
  0x5e   : > { %v714_v4 = vsel %vm615_vm1, %v712_v5, %v713_v35  ;;  %v727_v23 = vadd.f32 %v699_v34, %v649_v11  ;;  %v728_v51 = vadd.f32 %v702_v60, %v650_v45  ;;  %v729_v27 = vadd.f32 %v705_v30, %v651_v12 }
  0x5f   : > { %v717_v28 = vsel %vm615_vm1, %v715_v37, %v716_v47  ;;  %v730_v40 = vadd.f32 %v708_v1, %v652_v46  ;;  %v731_v31 = vadd.f32 %v711_v44, %v653_v13  ;;  %v732_v7 = vadd.f32 %v714_v4, %v654_v49 }
  0x60   : > { %v733_v32 = vadd.f32 %v717_v28, %v655_v48  ;;  %v735_v14 = vunpack.c.l.bf16 %v569_v36  ;;  %v740_v8 = vmul.f32 %v980_v59, %v1307_v43  ;;  %v741_v3 = vmul.f32 %v980_v59, %v1185_v15 }
  0x61   : > { %v742_v9 = vmul.f32 %v980_v59, %v1309_v54  ;;  %v743_v41 = vmul.f32 %v980_v59, %v1187_v16  ;;  %v744_v52 = vmul.f32 %v980_v59, %v1311_v61  ;;  %v745_v11 = vmul.f32 %v980_v59, %v1189_v17 }
  0x62   : > { %v746_v45 = vmul.f32 %v980_v59, %v1313_v2  ;;  %v747_v12 = vmul.f32 %v980_v59, %v1191_v18  ;;  %v748_v46 = vmul.f32 %v980_v59, %v1315_v10  ;;  %v749_v13 = vmul.f32 %v980_v59, %v1193_v19 }
  0x63   : > { %v750_v43 = vmul.f32 %v980_v59, %v1317_v6  ;;  %v751_v15 = vmul.f32 %v980_v59, %v1195_v20  ;;  %v752_v54 = vmul.f32 %v980_v59, %v657_v50  ;;  %v753_v16 = vmul.f32 %v980_v59, %v1228_v33 }
  0x64   : > { %v754_v61 = vmul.f32 %v980_v59, %v735_v14  ;;  %v755_v17 = vmul.f32 %v980_v59, %v483_v38  ;;  %v772_v2 = vrot.slane %v740_v8, 2  ;;  %v773_v49 = vrot.slane %v741_v3, 2 }
  0x65   : > { %v775_v18 = vrot.slane %v742_v9, 2  ;;  %v776_v48 = vrot.slane %v743_v41, 2  ;;  %v778_v10 = vrot.slane %v744_v52, 2  ;;  %v779_v55 = vrot.slane %v745_v11, 2 }
  0x66   : > { %v774_v19 = vsel %vm615_vm1, %v772_v2, %v773_v49  ;;  %v781_v6 = vrot.slane %v746_v45, 2  ;;  %v782_v56 = vrot.slane %v747_v12, 2  ;;  %v784_v20 = vrot.slane %v748_v46, 2 }
  0x67   : > { %v777_v22 = vsel %vm615_vm1, %v775_v18, %v776_v48  ;;  %v780_v50 = vsel %vm615_vm1, %v778_v10, %v779_v55  ;;  %v785_v33 = vrot.slane %v749_v13, 2  ;;  %v787_v57 = vrot.slane %v750_v43, 2 }
  0x68   : > { %v783_v24 = vsel %vm615_vm1, %v781_v6, %v782_v56  ;;  %v788_v38 = vrot.slane %v751_v15, 2  ;;  %v790_v62 = vrot.slane %v752_v54, 2  ;;  %v791_v63 = vrot.slane %v753_v16, 2 }
  0x69   : > { %v786_v0 = vsel %vm615_vm1, %v784_v20, %v785_v33  ;;  %v793_v21 = vrot.slane %v754_v61, 2  ;;  %v794_v25 = vrot.slane %v755_v17, 2  ;;  %v804_v26 = vadd.f32 %v774_v19, %v726_v58 }
  0x6a   : > { %v789_v53 = vsel %vm615_vm1, %v787_v57, %v788_v38  ;;  %v792_v34 = vsel %vm615_vm1, %v790_v62, %v791_v63  ;;  %v805_v60 = vadd.f32 %v777_v22, %v727_v23  ;;  %v806_v39 = vadd.f32 %v780_v50, %v728_v51 }
  0x6b   : > { %v795_v42 = vsel %vm615_vm1, %v793_v21, %v794_v25  ;;  %v807_v30 = vadd.f32 %v783_v24, %v729_v27  ;;  %v808_v1 = vadd.f32 %v786_v0, %v730_v40  ;;  %v809_v5 = vadd.f32 %v789_v53, %v731_v31 }
  0x6c   : > { %v810_v35 = vadd.f32 %v792_v34, %v732_v7  ;;  %v811_v36 = vadd.f32 %v795_v42, %v733_v32  ;;  %v819_v44 = vadd.f32 %v981_v29, %v804_v26  ;;  %v820_v37 = vadd.f32 %v981_v29, %v805_v60 }
  0x6d   : > { %v821_v47 = vadd.f32 %v981_v29, %v806_v39  ;;  %v822_v58 = vadd.f32 %v981_v29, %v807_v30  ;;  %v823_v59 = vadd.f32 %v981_v29, %v808_v1  ;;  %v824_v4 = vadd.f32 %v981_v29, %v809_v5 }
  0x6e   : > { %v825_v28 = vadd.f32 %v981_v29, %v810_v35  ;;  %v826_v14 = vadd.f32 %v981_v29, %v811_v36  ;;  %v827_v8 = vmax.f32 %v819_v44, 0.0  ;;  %v828_v3 = vmax.f32 %v820_v37, 0.0 }
  0x6f   : > { %v829_v23 = vmax.f32 %v821_v47, 0.0  ;;  %v830_v51 = vmax.f32 %v822_v58, 0.0  ;;  %v831_v27 = vmax.f32 %v823_v59, 0.0  ;;  %v832_v40 = vmax.f32 %v824_v4, 0.0 }
  0x70   : > { %v833_v31 = vmax.f32 %v825_v28, 0.0  ;;  %v834_v7 = vmax.f32 %v826_v14, 0.0  ;;  %v988_v32 = vpack.c.bf16 %v828_v3, %v827_v8 }
  0x71   : > { %v993_v9 = vpack.c.bf16 %v830_v51, %v829_v23  ;;  %v998_v41 = vpack.c.bf16 %v832_v40, %v831_v27 }
  0x72   : > { %989 = vst [vmem:[%s232_s20] sm:$0xff] %v988_v32   ;;  %v1003_v52 = vpack.c.bf16 %v834_v7, %v833_v31 }
  0x73   : > { %1005 = vst [vmem:[%s232_s20 + $0x8] sm:$0xff] %v993_v9   ;;  %1006 = vst [vmem:[%s232_s20 + $0x10] sm:$0xff] %v998_v41  }
  0x74   : > { %1007 = vst [vmem:[%s232_s20 + $0x18] sm:$0xff] %v1003_v52  }
  0x75 PF: > { %s13_s14 = sadd.s32 1, %s1055_s14   ;;  %s1425_s12 = smov %s1051_s13 }
  0x76   : > { %p10_p5 = scmp.ge.s32.totalorder %s13_s14, 4   ;;  %s1426_s13 = smov %s1428_s15 }
  0x78   :  { %12 = sbr.rel (!%p10_p5) target bundleno = 2 (0x2), region = 68 }

// kernel: _lambda_.21
= control target key start
LH: loop header
LB: loop body
LE: loop exit
PB: predicated region body
PF: predicated region fallthrough
CT: control target
= control target key end

     0   :  { %s687_s1 = inlined_call_operand.vmem [shape: bf16[128,128], index: 1, kind: input, shape index: {}]   ;;  %s688_s0 = inlined_call_operand.vmem [shape: bf16[128,128], index: 0, kind: input, shape index: {}]   ;;  %s689_s2 = inlined_call_operand.vmem [shape: f32[1,128], index: 2, kind: input, shape index: {}]   ;;  %s690_s3 = inlined_call_operand.vmem [shape: f32[1,128], index: 3, kind: input, shape index: {}]   ;;  %s691_s4 = inlined_call_operand.vmem [shape: bf16[128,128], index: 4, kind: output, shape index: {}]  }
   0x1   :  { %v550_v0 = vld [vmem:[%s687_s1] sm:$0xff]   ;;  %v551_v1 = vld [vmem:[%s687_s1 + $0x8] sm:$0xff]   ;;  %v552_v2 = vld [vmem:[%s687_s1 + $0x10] sm:$0xff]  }
   0x2   :  { %502 = vmatprep.subr.bf16.mxu0 %v550_v0  ;;  %534 = vmatprep.subr.bf16.mxu1 %v550_v0  ;;  %v553_v3 = vld [vmem:[%s687_s1 + $0x18] sm:$0xff]   ;;  %v558_v4 = vld [vmem:[%s688_s0] sm:$0xff]   ;;  %v555_v7 = vld [vmem:[%s687_s1 + $0x28] sm:$0xff]  }
   0x3   :  { %503 = vmatpush3.bf16.msra.mxu0 %v550_v0  ;;  %542 = vmatpush3.bf16.msra.mxu1 %v550_v0  ;;  %v559_v5 = vld [vmem:[%s688_s0 + $0x20] sm:$0xff]   ;;  %v556_v8 = vld [vmem:[%s687_s1 + $0x30] sm:$0xff]   ;;  %v557_v9 = vld [vmem:[%s687_s1 + $0x38] sm:$0xff]  }
   0x4   :  { %504 = vmatprep.subr.bf16.mxu0 %v551_v1  ;;  %535 = vmatprep.subr.bf16.mxu1 %v551_v1  ;;  %v554_v6 = vld [vmem:[%s687_s1 + $0x20] sm:$0xff]   ;;  %v560_v10 = vld [vmem:[%s688_s0 + $0x8] sm:$0xff]   ;;  %v562_v12 = vld [vmem:[%s688_s0 + $0x10] sm:$0xff]  }
   0x5   :  { %518 = vmatprep.mubr.bf16.mxu0 %v558_v4  ;;  %526 = vmatprep.mubr.bf16.mxu1 %v559_v5  ;;  %v561_v11 = vld [vmem:[%s688_s0 + $0x28] sm:$0xff]   ;;  %v563_v13 = vld [vmem:[%s688_s0 + $0x30] sm:$0xff]   ;;  %v564_v14 = vld [vmem:[%s688_s0 + $0x18] sm:$0xff]  }
   0x6   :  { %v565_v15 = vld [vmem:[%s688_s0 + $0x38] sm:$0xff]   ;;  %v405_v16 = vld [vmem:[%s689_s2] ss:$0 sm:$0xff] }
   0x7   :  { %505 = vmatpush3.bf16.msra.mxu0 %v551_v1  ;;  %543 = vmatpush3.bf16.msra.mxu1 %v551_v1  ;;  %v645_v18 = vld [vmem:[%s690_s3] ss:$0 sm:$0xff] }
   0x8   :  { %506 = vmatprep.subr.bf16.mxu0 %v552_v2  ;;  %536 = vmatprep.subr.bf16.mxu1 %v552_v2 }
   0xb   :  { %507 = vmatpush3.bf16.msra.mxu0 %v552_v2  ;;  %544 = vmatpush3.bf16.msra.mxu1 %v552_v2 }
   0xc   :  { %508 = vmatprep.subr.bf16.mxu0 %v553_v3  ;;  %537 = vmatprep.subr.bf16.mxu1 %v553_v3 }
   0xf   :  { %509 = vmatpush3.bf16.msra.mxu0 %v553_v3  ;;  %545 = vmatpush3.bf16.msra.mxu1 %v553_v3 }
  0x10   :  { %510 = vmatprep.subr.bf16.mxu0 %v554_v6  ;;  %538 = vmatprep.subr.bf16.mxu1 %v554_v6 }
  0x13   :  { %511 = vmatpush3.bf16.msra.mxu0 %v554_v6  ;;  %546 = vmatpush3.bf16.msra.mxu1 %v554_v6 }
  0x14   :  { %512 = vmatprep.subr.bf16.mxu0 %v555_v7  ;;  %539 = vmatprep.subr.bf16.mxu1 %v555_v7 }
  0x17   :  { %513 = vmatpush3.bf16.msra.mxu0 %v555_v7  ;;  %547 = vmatpush3.bf16.msra.mxu1 %v555_v7 }
  0x18   :  { %514 = vmatprep.subr.bf16.mxu0 %v556_v8  ;;  %540 = vmatprep.subr.bf16.mxu1 %v556_v8 }
  0x1b   :  { %515 = vmatpush3.bf16.msra.mxu0 %v556_v8  ;;  %548 = vmatpush3.bf16.msra.mxu1 %v556_v8 }
  0x1c   :  { %516 = vmatprep.subr.bf16.mxu0 %v557_v9  ;;  %541 = vmatprep.subr.bf16.mxu1 %v557_v9 }
  0x1f   :  { %517 = vmatpush3.bf16.msra.mxu0 %v557_v9  ;;  %549 = vmatpush3.bf16.msra.mxu1 %v557_v9 }
  0x22   :  { %519 = vmatmul.mubr.bf16.vlgmr.msra.gmra.mrb[0].mxu0 %v560_v10  ;;  %527 = vmatmul.mubr.bf16.vlgmr.msra.gmra.mrb[0].mxu1 %v561_v11 }
  0x23   :  { %522 = vmatprep.mubr.bf16.mxu0 %v562_v12  ;;  %530 = vmatprep.mubr.bf16.mxu1 %v563_v13 }
  0x2a   :  { %523 = vmatmul.mubr.bf16.gmra.mrb[4].mxu0 %v564_v14  ;;  %531 = vmatmul.mubr.bf16.gmra.mrb[4].mxu1 %v565_v15 }
  0xf5   :  { %v520_v17 = vpop.f32.mrb[0].mxu0  ;;  %v528_v19 = vpop.f32.mrb[0].mxu1 }
  0xf6   :  { %v252_v20 = vmul.f32 %v520_v17, %v405_v16  ;;  %v260_v21 = vmul.f32 %v528_v19, %v405_v16  ;;  %v180_v22 = vpop.f32.mrb[1].mxu0  ;;  %v212_v23 = vpop.f32.mrb[1].mxu1 }
  0xf7   :  { %v250_v24 = vmul.f32 %v405_v16, %v180_v22  ;;  %v258_v25 = vmul.f32 %v405_v16, %v212_v23  ;;  %v521_v26 = vpop.f32.mrb[2].mxu0  ;;  %v529_v27 = vpop.f32.mrb[2].mxu1 }
  0xf8   :  { %v275_v28 = vadd.f32 %v645_v18, %v252_v20  ;;  %v283_v29 = vadd.f32 %v645_v18, %v260_v21  ;;  %v253_v30 = vmul.f32 %v521_v26, %v405_v16  ;;  %v261_v31 = vmul.f32 %v529_v27, %v405_v16  ;;  %v183_v32 = vpop.f32.mrb[3].mxu0  ;;  %v215_v33 = vpop.f32.mrb[3].mxu1 }
  0xf9   :  { %v273_v34 = vadd.f32 %v645_v18, %v250_v24  ;;  %v281_v35 = vadd.f32 %v645_v18, %v258_v25  ;;  %v251_v36 = vmul.f32 %v405_v16, %v183_v32  ;;  %v259_v37 = vmul.f32 %v405_v16, %v215_v33 }
  0xfa   :  { %v276_v38 = vadd.f32 %v645_v18, %v253_v30  ;;  %v284_v39 = vadd.f32 %v645_v18, %v261_v31  ;;  %v291_v42 = vmax.f32 %v275_v28, 0.0  ;;  %v299_v43 = vmax.f32 %v283_v29, 0.0 }
  0xfb   :  { %v274_v40 = vadd.f32 %v645_v18, %v251_v36  ;;  %v282_v41 = vadd.f32 %v645_v18, %v259_v37  ;;  %v289_v46 = vmax.f32 %v273_v34, 0.0  ;;  %v297_v47 = vmax.f32 %v281_v35, 0.0 }
  0xfc   :  { %v292_v44 = vmax.f32 %v276_v38, 0.0  ;;  %v300_v45 = vmax.f32 %v284_v39, 0.0 }
  0xfd   :  { %v290_v48 = vmax.f32 %v274_v40, 0.0  ;;  %v298_v49 = vmax.f32 %v282_v41, 0.0  ;;  %v524_v50 = vpop.f32.mrb[4].mxu0  ;;  %v532_v51 = vpop.f32.mrb[4].mxu1 }
  0xfe   :  { %v447_v52 = vpack.c.bf16 %v292_v44, %v291_v42  ;;  %v467_v53 = vpack.c.bf16 %v300_v45, %v299_v43  ;;  %v256_v54 = vmul.f32 %v524_v50, %v405_v16  ;;  %v264_v55 = vmul.f32 %v532_v51, %v405_v16  ;;  %v196_v56 = vpop.f32.mrb[5].mxu0  ;;  %v228_v57 = vpop.f32.mrb[5].mxu1 }
  0xff   :  { %v442_v58 = vpack.c.bf16 %v290_v48, %v289_v46  ;;  %v462_v59 = vpack.c.bf16 %v298_v49, %v297_v47  ;;  %v254_v60 = vmul.f32 %v405_v16, %v196_v56  ;;  %v262_v61 = vmul.f32 %v405_v16, %v228_v57  ;;  %v525_v62 = vpop.f32.mrb[6].mxu0  ;;  %v533_v63 = vpop.f32.mrb[6].mxu1 }
 0x100   :  { %479 = vst [vmem:[%s691_s4 + $0x8] sm:$0xff] %v447_v52   ;;  %483 = vst [vmem:[%s691_s4 + $0x28] sm:$0xff] %v467_v53   ;;  %v279_v0 = vadd.f32 %v645_v18, %v256_v54  ;;  %v287_v1 = vadd.f32 %v645_v18, %v264_v55  ;;  %v257_v2 = vmul.f32 %v525_v62, %v405_v16  ;;  %v199_v4 = vpop.f32.mrb[7].mxu0  ;;  %v231_v5 = vpop.f32.mrb[7].mxu1 }
 0x101   :  { %v265_v3 = vmul.f32 %v533_v63, %v405_v16  ;;  %443 = vst [vmem:[%s691_s4] sm:$0xff] %v442_v58   ;;  %482 = vst [vmem:[%s691_s4 + $0x20] sm:$0xff] %v462_v59   ;;  %v277_v6 = vadd.f32 %v645_v18, %v254_v60  ;;  %v285_v7 = vadd.f32 %v645_v18, %v262_v61 }
 0x102   :  { %v255_v8 = vmul.f32 %v405_v16, %v199_v4  ;;  %v263_v9 = vmul.f32 %v405_v16, %v231_v5  ;;  %v280_v10 = vadd.f32 %v645_v18, %v257_v2  ;;  %v295_v14 = vmax.f32 %v279_v0, 0.0 }
 0x103   :  { %v288_v11 = vadd.f32 %v645_v18, %v265_v3  ;;  %v303_v15 = vmax.f32 %v287_v1, 0.0  ;;  %v293_v20 = vmax.f32 %v277_v6, 0.0  ;;  %v301_v21 = vmax.f32 %v285_v7, 0.0 }
 0x104   :  { %v278_v12 = vadd.f32 %v645_v18, %v255_v8  ;;  %v286_v13 = vadd.f32 %v645_v18, %v263_v9  ;;  %v296_v17 = vmax.f32 %v280_v10, 0.0 }
 0x105   :  { %v304_v19 = vmax.f32 %v288_v11, 0.0 }
 0x106   :  { %v294_v22 = vmax.f32 %v278_v12, 0.0  ;;  %v302_v23 = vmax.f32 %v286_v13, 0.0  ;;  %v457_v24 = vpack.c.bf16 %v296_v17, %v295_v14 }
 0x107   :  { %v477_v25 = vpack.c.bf16 %v304_v19, %v303_v15 }
 0x108   :  { %v452_v26 = vpack.c.bf16 %v294_v22, %v293_v20  ;;  %v472_v16 = vpack.c.bf16 %v302_v23, %v301_v21  ;;  %481 = vst [vmem:[%s691_s4 + $0x18] sm:$0xff] %v457_v24  }
 0x109   :  { %485 = vst [vmem:[%s691_s4 + $0x38] sm:$0xff] %v477_v25  }
 0x10a   :  { %480 = vst [vmem:[%s691_s4 + $0x10] sm:$0xff] %v452_v26   ;;  %484 = vst [vmem:[%s691_s4 + $0x30] sm:$0xff] %v472_v16  }

// kernel: _lambda_.23
= control target key start
LH: loop header
LB: loop body
LE: loop exit
PB: predicated region body
PF: predicated region fallthrough
CT: control target
= control target key end

     0   :  { %s331_s1 = inlined_call_operand.vmem [shape: bf16[128,128], index: 1, kind: input, shape index: {}]   ;;  %s332_s0 = inlined_call_operand.vmem [shape: bf16[32,128], index: 0, kind: input, shape index: {}]   ;;  %s333_s2 = inlined_call_operand.vmem [shape: f32[1,128], index: 2, kind: input, shape index: {}]   ;;  %s334_s3 = inlined_call_operand.vmem [shape: f32[1,128], index: 3, kind: input, shape index: {}]   ;;  %s335_s4 = inlined_call_operand.vmem [shape: bf16[32,128], index: 4, kind: output, shape index: {}]  }
   0x1   :  { %v254_v0 = vld [vmem:[%s331_s1] sm:$0xff]   ;;  %v255_v1 = vld [vmem:[%s331_s1 + $0x8] sm:$0xff]   ;;  %v256_v2 = vld [vmem:[%s331_s1 + $0x10] sm:$0xff]  }
   0x2   :  { %234 = vmatprep.subr.bf16.mxu0 %v254_v0  ;;  %v257_v3 = vld [vmem:[%s331_s1 + $0x18] sm:$0xff]   ;;  %v262_v4 = vld [vmem:[%s332_s0] sm:$0xff]   ;;  %v259_v6 = vld [vmem:[%s331_s1 + $0x28] sm:$0xff]  }
   0x3   :  { %235 = vmatpush3.bf16.msra.mxu0 %v254_v0  ;;  %250 = vmatprep.mubr.bf16.mxu0 %v262_v4  ;;  %v258_v5 = vld [vmem:[%s331_s1 + $0x20] sm:$0xff]   ;;  %v260_v7 = vld [vmem:[%s331_s1 + $0x30] sm:$0xff]   ;;  %v261_v8 = vld [vmem:[%s331_s1 + $0x38] sm:$0xff]  }
   0x4   :  { %236 = vmatprep.subr.bf16.mxu0 %v255_v1  ;;  %v263_v9 = vld [vmem:[%s332_s0 + $0x8] sm:$0xff]   ;;  %v203_v10 = vld [vmem:[%s333_s2] ss:$0 sm:$0xff] }
   0x5   :  { %v204_v14 = vld [vmem:[%s334_s3] ss:$0 sm:$0xff] }
   0x7   :  { %237 = vmatpush3.bf16.msra.mxu0 %v255_v1 }
   0x8   :  { %238 = vmatprep.subr.bf16.mxu0 %v256_v2 }
   0xb   :  { %239 = vmatpush3.bf16.msra.mxu0 %v256_v2 }
   0xc   :  { %240 = vmatprep.subr.bf16.mxu0 %v257_v3 }
   0xf   :  { %241 = vmatpush3.bf16.msra.mxu0 %v257_v3 }
  0x10   :  { %242 = vmatprep.subr.bf16.mxu0 %v258_v5 }
  0x13   :  { %243 = vmatpush3.bf16.msra.mxu0 %v258_v5 }
  0x14   :  { %244 = vmatprep.subr.bf16.mxu0 %v259_v6 }
  0x17   :  { %245 = vmatpush3.bf16.msra.mxu0 %v259_v6 }
  0x18   :  { %246 = vmatprep.subr.bf16.mxu0 %v260_v7 }
  0x1b   :  { %247 = vmatpush3.bf16.msra.mxu0 %v260_v7 }
  0x1c   :  { %248 = vmatprep.subr.bf16.mxu0 %v261_v8 }
  0x1f   :  { %249 = vmatpush3.bf16.msra.mxu0 %v261_v8 }
  0x22   :  { %251 = vmatmul.mubr.bf16.vlgmr.msra.gmra.mrb[0].mxu0 %v263_v9 }
  0xf5   :  { %v252_v11 = vpop.f32.mrb[0].mxu0 }
  0xf6   :  { %v156_v12 = vmul.f32 %v252_v11, %v203_v10  ;;  %v132_v13 = vpop.f32.mrb[1].mxu0 }
  0xf7   :  { %v154_v15 = vmul.f32 %v203_v10, %v132_v13  ;;  %v253_v16 = vpop.f32.mrb[2].mxu0 }
  0xf8   :  { %v157_v17 = vmul.f32 %v253_v16, %v203_v10  ;;  %v135_v18 = vpop.f32.mrb[3].mxu0  ;;  %v167_v20 = vadd.f32 %v204_v14, %v156_v12 }
  0xf9   :  { %v155_v19 = vmul.f32 %v203_v10, %v135_v18  ;;  %v165_v22 = vadd.f32 %v204_v14, %v154_v15 }
  0xfa   :  { %v168_v21 = vadd.f32 %v204_v14, %v157_v17 }
  0xfb   :  { %v166_v23 = vadd.f32 %v204_v14, %v155_v19 }
  0xfc   :  { %v221_v24 = vpack.c.bf16 %v168_v21, %v167_v20 }
  0xfd   :  { %v216_v25 = vpack.c.bf16 %v166_v23, %v165_v22 }
  0xfe   :  { %223 = vst [vmem:[%s335_s4 + $0x8] sm:$0xff] %v221_v24  }
  0xff   :  { %217 = vst [vmem:[%s335_s4] sm:$0xff] %v216_v25  }

// kernel: _lambda_.22
= control target key start
LH: loop header
LB: loop body
LE: loop exit
PB: predicated region body
PF: predicated region fallthrough
CT: control target
= control target key end

     0   :  { %s688_s12 = smov 0   ;;  %s690_s13 = smov 0   ;;  %s859_s0 = inlined_call_operand.vmem [shape: bf16[8,5,5,128], index: 0, kind: input, shape index: {}]   ;;  %s860_s1 = inlined_call_operand.vmem [shape: f32[9,128], index: 1, kind: input, shape index: {}]   ;;  %s861_s2 = inlined_call_operand.vmem [shape: f32[1,128], index: 2, kind: input, shape index: {}]   ;;  %s862_s3 = inlined_call_operand.vmem [shape: bf16[2,4,4,128], index: 3, kind: output, shape index: {}]  }
   0x1   :  { %s692_s14 = smov 0  }
   0x2 LB: > { %s25_s15 = sadd.s32 1, %s662_s13  ;;  %p584_p0 = scmp.ge.s32.totalorder %s666_s14, 1  ;;  %s666_s14 = sphi %s692_s14, %s13_s14   ;;  %s662_s13 = sphi %s690_s13, %s864_s13   ;;  %s658_s12 = sphi %s688_s12, %s863_s12  }
   0x3   : > { %p27_p1 = scmp.ge.s32.totalorder %s25_s15, 2  ;;  %p175_p2 = scmp.lt.s32.totalorder %s666_s14, 3 }
   0x5   : > { %s866_s15 = smov (%p27_p1, %s25_s15), 0  ;;  %p176_p3 = pnand %p584_p0, %p175_p2 }
   0x6   : > { %s585_s16 = sshll.u32 (!%p176_p3), %s658_s12, 2  ;;  %v712_v0 = vld [vmem:[%s860_s1] ss:$0 sm:$0xff] (!%p176_p3)  ;;  %v722_v1 = vld [vmem:[%s860_s1 + $0x3] ss:$0 sm:$0xff] (!%p176_p3)  ;;  %p230_p5 = scmp.lt.s32.totalorder (!%p176_p3), %s658_s12, 1 }
   0x7   : > { %179 = sbr.rel (%p176_p3) target bundleno = 63 (0x3f), region = 32  ;;  %p214_p4 = scmp.lt.s32.totalorder (!%p176_p3), %s585_s16, 7  ;;  %v727_v2 = vld [vmem:[%s860_s1 + $0x6] ss:$0 sm:$0xff] (!%p176_p3)  ;;  %v732_v3 = vld [vmem:[%s860_s1 + $0x1] ss:$0 sm:$0xff] (!%p176_p3) }
   0x8   : > { %v740_v7 = vld [vmem:[%s860_s1 + $0x2] ss:$0 sm:$0xff] (!%p176_p3)  ;;  %v757_v27 = vld [vmem:[%s860_s1 + $0x4] ss:$0 sm:$0xff] (!%p176_p3)  ;;  %v762_v28 = vld [vmem:[%s860_s1 + $0x7] ss:$0 sm:$0xff] (!%p176_p3) }
   0x9   : > { %v767_v29 = vld [vmem:[%s860_s1 + $0x8] ss:$0 sm:$0xff] (!%p176_p3)  ;;  %v775_v36 = vld [vmem:[%s860_s1 + $0x5] ss:$0 sm:$0xff] (!%p176_p3) }
   0xe   : > { %s868_s16 = smov (!%p214_p4, %s585_s16), 7  ;;  %s870_s12 = smov (!%p230_p5, %s658_s12), 1 }
   0xf   : > { %s619_s17 = smul.u32 20, %s868_s16  ;;  %s618_s18 = sshll.u32 %s870_s12, 3 }
  0x10   : > { %s836_s12 = scalar_lea.vmem %s862_s3, %s618_s18 }
  0x11   : > { %s717_s22 = scalar_lea.vmem %s859_s0, %s619_s17 }
  0x12   : > { %v238_v4 = vld [vmem:[%s717_s22] sm:$0x3]  ;;  %v239_v5 = vld [vmem:[%s717_s22 + $0x4] sm:$0x3]  ;;  %v590_v6 = vld [vmem:[%s717_s22 + $0x28] sm:$0x3] }
  0x13   : > { %v244_v8 = vunpack.c.l.bf16 %v238_v4  ;;  %v245_v9 = vunpack.c.l.bf16 %v239_v5  ;;  %v262_v10 = vunpack.c.l.bf16 %v590_v6  ;;  %v596_v11 = vld [vmem:[%s717_s22 + $0x14] sm:$0x3]  ;;  %v597_v12 = vld [vmem:[%s717_s22 + $0x18] sm:$0x3]  ;;  %v602_v13 = vld [vmem:[%s717_s22 + $0x3c] sm:$0x3] }
  0x14   : > { %v299_v14 = vunpack.c.l.bf16 %v596_v11  ;;  %v321_v15 = vunpack.c.l.bf16 %v602_v13  ;;  %v351_v16 = vld [vmem:[%s717_s22] sm:$0x7]  ;;  %v352_v17 = vld [vmem:[%s717_s22 + $0x4] sm:$0x7]  ;;  %v609_v18 = vld [vmem:[%s717_s22 + $0x28] sm:$0x7]  ;;  %v300_v25 = vunpack.c.l.bf16 %v597_v12 }
  0x15   : > { %v252_v19 = vmul.f32 %v712_v0, %v244_v8  ;;  %v270_v20 = vmul.f32 %v722_v1, %v262_v10  ;;  %v284_v21 = vmul.f32 %v727_v2, %v245_v9  ;;  %v357_v22 = vunpack.c.l.bf16 %v351_v16  ;;  %v240_v23 = vld [vmem:[%s717_s22 + $0x8] sm:$0x3]  ;;  %v591_v24 = vld [vmem:[%s717_s22 + $0x2c] sm:$0x3]  ;;  %v598_v34 = vld [vmem:[%s717_s22 + $0x1c] sm:$0x3] }
  0x16   : > { %v307_v26 = vmul.f32 %v732_v3, %v299_v14  ;;  %v358_v31 = vunpack.c.l.bf16 %v352_v17  ;;  %v390_v33 = vunpack.c.l.bf16 %v609_v18  ;;  %v603_v35 = vld [vmem:[%s717_s22 + $0x40] sm:$0x3]  ;;  %v246_v37 = vunpack.c.l.bf16 %v240_v23  ;;  %v353_v40 = vld [vmem:[%s717_s22 + $0x8] sm:$0x7]  ;;  %v610_v45 = vld [vmem:[%s717_s22 + $0x2c] sm:$0x7] }
  0x17   : > { %v274_v30 = vadd.f32 %v270_v20, %v252_v19  ;;  %v365_v32 = vmul.f32 %v740_v7, %v357_v22  ;;  %v253_v38 = vmul.f32 %v712_v0, %v245_v9  ;;  %v263_v39 = vunpack.c.l.bf16 %v591_v24  ;;  %v241_v54 = vld [vmem:[%s717_s22 + $0xc] sm:$0x3]  ;;  %v592_v55 = vld [vmem:[%s717_s22 + $0x30] sm:$0x3]  ;;  %v599_v9 = vld [vmem:[%s717_s22 + $0x20] sm:$0x3] }
  0x18   : > { %v329_v42 = vmul.f32 %v757_v27, %v321_v15  ;;  %v343_v43 = vmul.f32 %v762_v28, %v300_v25  ;;  %v424_v44 = vmul.f32 %v767_v29, %v358_v31  ;;  %v285_v47 = vmul.f32 %v727_v2, %v246_v37  ;;  %v604_v10 = vld [vmem:[%s717_s22 + $0x44] sm:$0x3]  ;;  %v611_v15 = vld [vmem:[%s717_s22 + $0x30] sm:$0x7]  ;;  %v354_v20 = vld [vmem:[%s717_s22 + $0xc] sm:$0x7] }
  0x19   : > { %v288_v41 = vadd.f32 %v284_v21, %v274_v30  ;;  %v271_v46 = vmul.f32 %v722_v1, %v263_v39  ;;  %v301_v48 = vunpack.c.l.bf16 %v598_v34  ;;  %v322_v49 = vunpack.c.l.bf16 %v603_v35  ;;  %v817_v39 = vld [vmem:[%s861_s2] ss:$0 sm:$0xff] }
  0x1a   : > { %v373_v51 = vrot.slane %v365_v32, 1  ;;  %v398_v52 = vmul.f32 %v775_v36, %v390_v33  ;;  %v359_v53 = vunpack.c.l.bf16 %v353_v40  ;;  %v308_v57 = vmul.f32 %v732_v3, %v300_v25  ;;  %v242_v32 = vld [vmem:[%s717_s22 + $0x10] sm:$0x3]  ;;  %v593_v33 = vld [vmem:[%s717_s22 + $0x34] sm:$0x3] }
  0x1b   : > { %v311_v50 = vadd.f32 %v307_v26, %v288_v41  ;;  %v275_v56 = vadd.f32 %v271_v46, %v253_v38  ;;  %v366_v58 = vmul.f32 %v740_v7, %v358_v31  ;;  %v391_v59 = vunpack.c.l.bf16 %v610_v45 }
  0x1c   : > { %v432_v61 = vrot.slane %v424_v44, 1  ;;  %v330_v62 = vmul.f32 %v757_v27, %v322_v49  ;;  %v792_v63 = vmul.f32 %v767_v29, %v359_v53  ;;  %v247_v5 = vunpack.c.l.bf16 %v241_v54  ;;  %v605_v44 = vld [vmem:[%s717_s22 + $0x48] sm:$0x3]  ;;  %v600_v54 = vld [vmem:[%s717_s22 + $0x24] sm:$0x3] }
  0x1d   : > { %v333_v60 = vadd.f32 %v329_v42, %v311_v50  ;;  %v289_v4 = vadd.f32 %v285_v47, %v275_v56  ;;  %v254_v6 = vmul.f32 %v712_v0, %v246_v37  ;;  %v264_v8 = vunpack.c.l.bf16 %v592_v55  ;;  %v612_v55 = vld [vmem:[%s717_s22 + $0x34] sm:$0x7] }
  0x1e   : > { %v406_v12 = vrot.slane %v398_v52, 1  ;;  %v344_v13 = vmul.f32 %v762_v28, %v301_v48  ;;  %v399_v14 = vmul.f32 %v775_v36, %v391_v59  ;;  %v374_v17 = vrot.slane %v366_v58, 1 }
  0x1f   : > { %v347_v11 = vadd.f32 %v343_v43, %v333_v60  ;;  %v312_v16 = vadd.f32 %v308_v57, %v289_v4  ;;  %v272_v18 = vmul.f32 %v722_v1, %v264_v8  ;;  %v286_v19 = vmul.f32 %v727_v2, %v247_v5 }
  0x20   : > { %v433_v22 = vrot.slane %v792_v63, 1  ;;  %v302_v23 = vunpack.c.l.bf16 %v599_v9  ;;  %v323_v24 = vunpack.c.l.bf16 %v604_v10  ;;  %v309_v30 = vmul.f32 %v732_v3, %v301_v48 }
  0x21   : > { %v381_v21 = vadd.f32 %v373_v51, %v347_v11  ;;  %v334_v25 = vadd.f32 %v330_v62, %v312_v16  ;;  %v276_v26 = vadd.f32 %v272_v18, %v254_v6  ;;  %v392_v31 = vunpack.c.l.bf16 %v611_v15  ;;  %v355_v62 = vld [vmem:[%s717_s22 + $0x10] sm:$0x7] }
  0x22   : > { %v407_v35 = vrot.slane %v399_v14, 1  ;;  %v345_v37 = vmul.f32 %v762_v28, %v302_v23  ;;  %v360_v38 = vunpack.c.l.bf16 %v354_v20  ;;  %v331_v42 = vmul.f32 %v757_v27, %v323_v24 }
  0x23   : > { %v414_v34 = vadd.f32 %v406_v12, %v381_v21  ;;  %v348_v40 = vadd.f32 %v344_v13, %v334_v25  ;;  %v290_v41 = vadd.f32 %v286_v19, %v276_v26  ;;  %v367_v43 = vmul.f32 %v740_v7, %v359_v53 }
  0x24   : > { %v255_v46 = vmul.f32 %v712_v0, %v247_v5  ;;  %v265_v47 = vunpack.c.l.bf16 %v593_v33  ;;  %v279_v48 = vunpack.c.l.bf16 %v242_v32  ;;  %v400_v51 = vmul.f32 %v775_v36, %v392_v31 }
  0x25   : > { %v440_v45 = vadd.f32 %v432_v61, %v414_v34  ;;  %v382_v49 = vadd.f32 %v374_v17, %v348_v40  ;;  %v313_v50 = vadd.f32 %v309_v30, %v290_v41  ;;  %v426_v52 = vmul.f32 %v767_v29, %v360_v38 }
  0x26   : > { %v273_v53 = vmul.f32 %v722_v1, %v265_v47  ;;  %v287_v57 = vmul.f32 %v727_v2, %v279_v48  ;;  %v324_v58 = vunpack.c.l.bf16 %v605_v44  ;;  %v375_v60 = vrot.slane %v367_v43, 1 }
  0x27   : > { %v451_v56 = vadd.f32 %v817_v39, %v440_v45  ;;  %v415_v0 = vadd.f32 %v407_v35, %v382_v49  ;;  %v335_v59 = vadd.f32 %v331_v42, %v313_v50  ;;  %v310_v61 = vmul.f32 %v732_v3, %v302_v23 }
  0x28   : > { %v277_v4 = vadd.f32 %v273_v53, %v255_v46  ;;  %v338_v5 = vunpack.c.l.bf16 %v600_v54  ;;  %v393_v6 = vunpack.c.l.bf16 %v612_v55  ;;  %v408_v2 = vrot.slane %v400_v51, 1 }
  0x29   : > { %v455_v63 = vmax.f32 %v451_v56, 0.0  ;;  %v441_v1 = vadd.f32 %v433_v22, %v415_v0  ;;  %v349_v8 = vadd.f32 %v345_v37, %v335_v59  ;;  %v368_v9 = vmul.f32 %v740_v7, %v360_v38 }
  0x2a   : > { %v291_v11 = vadd.f32 %v287_v57, %v277_v4  ;;  %v332_v3 = vmul.f32 %v757_v27, %v324_v58  ;;  %v419_v12 = vunpack.c.l.bf16 %v355_v62  ;;  %v434_v15 = vrot.slane %v426_v52, 1 }
  0x2b   : > { %v459_v10 = vpack.c.bf16 %v455_v63, %v455_v63  ;;  %v452_v13 = vadd.f32 %v817_v39, %v441_v1  ;;  %v383_v14 = vadd.f32 %v375_v60, %v349_v8  ;;  %v346_v17 = vmul.f32 %v762_v28, %v338_v5 }
  0x2c   : > { %v314_v16 = vadd.f32 %v310_v61, %v291_v11  ;;  %v401_v18 = vmul.f32 %v775_v36, %v393_v6  ;;  %v376_v21 = vrot.slane %v368_v9, 1  ;;  %v427_v22 = vmul.f32 %v767_v29, %v419_v12 }
  0x2d   : > { %463 = vst [vmem:[%s836_s12] sm:$0x3] %v459_v10  ;;  %v456_v19 = vmax.f32 %v452_v13, 0.0  ;;  %v416_v20 = vadd.f32 %v408_v2, %v383_v14 }
  0x2e   : > { %v336_v7 = vadd.f32 %v332_v3, %v314_v16  ;;  %v409_v25 = vrot.slane %v401_v18, 1  ;;  %v435_v31 = vrot.slane %v427_v22, 1 }
  0x2f   : > { %v460_v27 = vpack.c.bf16 %v456_v19, %v456_v19  ;;  %v442_v23 = vadd.f32 %v434_v15, %v416_v20 }
  0x30   : > { %v350_v24 = vadd.f32 %v346_v17, %v336_v7 }
  0x31   : > { %464 = vst [vmem:[%s836_s12 + $0x2] sm:$0x3] %v460_v27  ;;  %v453_v26 = vadd.f32 %v817_v39, %v442_v23 }
  0x32   : > { %v384_v30 = vadd.f32 %v376_v21, %v350_v24 }
  0x33   : > { %v457_v28 = vmax.f32 %v453_v26, 0.0 }
  0x34   : > { %v417_v32 = vadd.f32 %v409_v25, %v384_v30 }
  0x35   : > { %v461_v36 = vpack.c.bf16 %v457_v28, %v457_v28 }
  0x36   : > { %v443_v33 = vadd.f32 %v435_v31, %v417_v32 }
  0x37   : > { %465 = vst [vmem:[%s836_s12 + $0x4] sm:$0x3] %v461_v36 }
  0x38   : > { %v454_v34 = vadd.f32 %v817_v39, %v443_v33 }
  0x3a   : > { %v458_v35 = vmax.f32 %v454_v34, 0.0 }
  0x3c   : > { %v462_v37 = vpack.c.bf16 %v458_v35, %v458_v35 }
  0x3e   : > { %466 = vst [vmem:[%s836_s12 + $0x6] sm:$0x3] %v462_v37 }
  0x3f PF: > { %s13_s14 = sadd.s32 1, %s666_s14   ;;  %s863_s12 = smov %s662_s13 }
  0x40   : > { %p10_p6 = scmp.ge.s32.totalorder %s13_s14, 4   ;;  %s864_s13 = smov %s866_s15 }
  0x42   :  { %12 = sbr.rel (!%p10_p6) target bundleno = 2 (0x2), region = 71 }

// kernel: _lambda_.24
= control target key start
LH: loop header
LB: loop body
LE: loop exit
PB: predicated region body
PF: predicated region fallthrough
CT: control target
= control target key end

     0   :  { %v332_v1 = vmov 0   ;;  %v185_v19 = vlaneseq  ;;  %s430_s1 = inlined_call_operand.vmem [shape: bf16[128,256], index: 1, kind: input, shape index: {}]   ;;  %s431_s0 = inlined_call_operand.vmem [shape: bf16[32,128], index: 0, kind: input, shape index: {}]   ;;  %s432_s2 = inlined_call_operand.vmem [shape: f32[1,256], index: 2, kind: input, shape index: {}]   ;;  %s433_s3 = inlined_call_operand.vmem [shape: f32[1,256], index: 3, kind: input, shape index: {}]   ;;  %s434_s4 = inlined_call_operand.vmem [shape: bf16[32,256], index: 4, kind: output, shape index: {}]  }
   0x1   :  { %v306_v0 = vld [vmem:[%s430_s1 + $0x4] ss:$8 sps:$4 sm:$0xff]   ;;  %162 = vmatprep.mubr.bf16.mxu0 %v332_v1  ;;  %172 = vmatprep.mubr.bf16.mxu1 %v332_v1  ;;  %v308_v2 = vld [vmem:[%s430_s1] ss:$8 sps:$4 sm:$0xff]   ;;  %v309_v3 = vld [vmem:[%s430_s1 + $0x14] ss:$8 sps:$4 sm:$0xff]  }
   0x2   :  { %130 = vmatprep.subr.bf16.mxu0 %v306_v0  ;;  %289 = vmatprep.subr.bf16.mxu1 %v306_v0  ;;  %v311_v4 = vld [vmem:[%s430_s1 + $0x10] ss:$8 sps:$4 sm:$0xff]   ;;  %v312_v5 = vld [vmem:[%s430_s1 + $0x24] ss:$8 sps:$4 sm:$0xff]   ;;  %v314_v6 = vld [vmem:[%s430_s1 + $0x20] ss:$8 sps:$4 sm:$0xff]  }
   0x3   :  { %131 = vmatpush1.bf16.msra.mxu0 %v308_v2  ;;  %297 = vmatpush1.bf16.msra.mxu1 %v308_v2  ;;  %v315_v7 = vld [vmem:[%s430_s1 + $0x34] ss:$8 sps:$4 sm:$0xff]   ;;  %v317_v8 = vld [vmem:[%s430_s1 + $0x30] ss:$8 sps:$4 sm:$0xff]   ;;  %v318_v9 = vld [vmem:[%s430_s1 + $0x44] ss:$8 sps:$4 sm:$0xff]  }
   0x4   :  { %132 = vmatprep.subr.bf16.mxu0 %v309_v3  ;;  %290 = vmatprep.subr.bf16.mxu1 %v309_v3  ;;  %v320_v10 = vld [vmem:[%s430_s1 + $0x40] ss:$8 sps:$4 sm:$0xff]   ;;  %v321_v11 = vld [vmem:[%s430_s1 + $0x54] ss:$8 sps:$4 sm:$0xff]   ;;  %v323_v12 = vld [vmem:[%s430_s1 + $0x50] ss:$8 sps:$4 sm:$0xff]  }
   0x5   :  { %v324_v13 = vld [vmem:[%s430_s1 + $0x64] ss:$8 sps:$4 sm:$0xff]   ;;  %v326_v14 = vld [vmem:[%s430_s1 + $0x60] ss:$8 sps:$4 sm:$0xff]   ;;  %v327_v15 = vld [vmem:[%s430_s1 + $0x74] ss:$8 sps:$4 sm:$0xff]  }
   0x6   :  { %v329_v16 = vld [vmem:[%s430_s1 + $0x70] ss:$8 sps:$4 sm:$0xff]   ;;  %v330_v17 = vld [vmem:[%s431_s0] sm:$0xff]   ;;  %v331_v18 = vld [vmem:[%s431_s0 + $0x8] sm:$0xff]   ;;  %v186_v20 = vshrl.u32 %v185_v19, 7 }
   0x7   :  { %133 = vmatpush1.bf16.msra.mxu0 %v311_v4  ;;  %298 = vmatpush1.bf16.msra.mxu1 %v311_v4  ;;  %v183_v22 = vld [vmem:[%s432_s2] sm:$0x3] }
   0x8   :  { %134 = vmatprep.subr.bf16.mxu0 %v312_v5  ;;  %291 = vmatprep.subr.bf16.mxu1 %v312_v5  ;;  %v187_v21 = vsub.s32 0, %v186_v20  ;;  %v191_v23 = vsub.s32 1, %v186_v20  ;;  %v203_v24 = vld [vmem:[%s433_s3] sm:$0x3] }
   0xa   :  { %v188_v25 = vrot.slane %v183_v22, %v187_v21  ;;  %v192_v26 = vrot.slane %v183_v22, %v191_v23  ;;  %v208_v27 = vrot.slane %v203_v24, %v187_v21  ;;  %v212_v30 = vrot.slane %v203_v24, %v191_v23 }
   0xb   :  { %135 = vmatpush1.bf16.msra.mxu0 %v314_v6  ;;  %299 = vmatpush1.bf16.msra.mxu1 %v314_v6 }
   0xc   :  { %136 = vmatprep.subr.bf16.mxu0 %v315_v7  ;;  %292 = vmatprep.subr.bf16.mxu1 %v315_v7 }
   0xf   :  { %137 = vmatpush1.bf16.msra.mxu0 %v317_v8  ;;  %300 = vmatpush1.bf16.msra.mxu1 %v317_v8 }
  0x10   :  { %138 = vmatprep.subr.bf16.mxu0 %v318_v9  ;;  %293 = vmatprep.subr.bf16.mxu1 %v318_v9 }
  0x13   :  { %139 = vmatpush1.bf16.msra.mxu0 %v320_v10  ;;  %301 = vmatpush1.bf16.msra.mxu1 %v320_v10 }
  0x14   :  { %140 = vmatprep.subr.bf16.mxu0 %v321_v11  ;;  %294 = vmatprep.subr.bf16.mxu1 %v321_v11 }
  0x17   :  { %141 = vmatpush1.bf16.msra.mxu0 %v323_v12  ;;  %302 = vmatpush1.bf16.msra.mxu1 %v323_v12 }
  0x18   :  { %142 = vmatprep.subr.bf16.mxu0 %v324_v13  ;;  %295 = vmatprep.subr.bf16.mxu1 %v324_v13 }
  0x1b   :  { %143 = vmatpush1.bf16.msra.mxu0 %v326_v14  ;;  %303 = vmatpush1.bf16.msra.mxu1 %v326_v14 }
  0x1c   :  { %144 = vmatprep.subr.bf16.mxu0 %v327_v15  ;;  %296 = vmatprep.subr.bf16.mxu1 %v327_v15 }
  0x1f   :  { %145 = vmatpush1.bf16.msra.mxu0 %v329_v16  ;;  %304 = vmatpush1.bf16.msra.mxu1 %v329_v16 }
  0x22   :  { %163 = vmatmul.mubr.bf16.vlgmr.msra.gmra.mrb[0].mxu0 %v330_v17  ;;  %173 = vmatmul.mubr.bf16.vlgmr.msra.gmra.mrb[0].mxu1 %v331_v18 }
  0xf5   :  { %v164_v28 = vpop.f32.mrb[0].mxu0  ;;  %v174_v29 = vpop.f32.mrb[0].mxu1 }
  0xf6   :  { %v195_v31 = vmul.f32 %v188_v25, %v164_v28  ;;  %v199_v32 = vmul.f32 %v188_v25, %v174_v29  ;;  %v166_v33 = vpop.f32.mrb[1].mxu0  ;;  %v176_v34 = vpop.f32.mrb[1].mxu1 }
  0xf7   :  { %v196_v35 = vmul.f32 %v192_v26, %v166_v33  ;;  %v200_v36 = vmul.f32 %v192_v26, %v176_v34  ;;  %v168_v37 = vpop.f32.mrb[2].mxu0  ;;  %v178_v38 = vpop.f32.mrb[2].mxu1 }
  0xf8   :  { %v215_v39 = vadd.f32 %v208_v27, %v195_v31  ;;  %v219_v40 = vadd.f32 %v208_v27, %v199_v32  ;;  %v197_v41 = vmul.f32 %v188_v25, %v168_v37  ;;  %v201_v42 = vmul.f32 %v188_v25, %v178_v38  ;;  %v170_v43 = vpop.f32.mrb[3].mxu0  ;;  %v180_v44 = vpop.f32.mrb[3].mxu1 }
  0xf9   :  { %v216_v45 = vadd.f32 %v212_v30, %v196_v35  ;;  %v220_v46 = vadd.f32 %v212_v30, %v200_v36  ;;  %v198_v47 = vmul.f32 %v192_v26, %v170_v43  ;;  %v202_v48 = vmul.f32 %v192_v26, %v180_v44 }
  0xfa   :  { %v223_v49 = vmax.f32 %v215_v39, 0.0  ;;  %v227_v50 = vmax.f32 %v219_v40, 0.0  ;;  %v217_v51 = vadd.f32 %v208_v27, %v197_v41  ;;  %v221_v52 = vadd.f32 %v208_v27, %v201_v42 }
  0xfb   :  { %v224_v53 = vmax.f32 %v216_v45, 0.0  ;;  %v228_v54 = vmax.f32 %v220_v46, 0.0  ;;  %v218_v55 = vadd.f32 %v212_v30, %v198_v47  ;;  %v222_v56 = vadd.f32 %v212_v30, %v202_v48 }
  0xfc   :  { %v225_v57 = vmax.f32 %v217_v51, 0.0  ;;  %v229_v58 = vmax.f32 %v221_v52, 0.0 }
  0xfd   :  { %v285_v59 = vpack.c.bf16 %v224_v53, %v223_v49  ;;  %v287_v60 = vpack.c.bf16 %v228_v54, %v227_v50  ;;  %v226_v61 = vmax.f32 %v218_v55, 0.0  ;;  %v230_v62 = vmax.f32 %v222_v56, 0.0 }
  0xff   :  { %255 = vst [vmem:[%s434_s4] sm:$0xff] %v285_v59  ;;  %257 = vst [vmem:[%s434_s4 + $0x10] sm:$0xff] %v287_v60  ;;  %v286_v63 = vpack.c.bf16 %v226_v61, %v225_v57  ;;  %v288_v0 = vpack.c.bf16 %v230_v62, %v229_v58 }
 0x101   :  { %256 = vst [vmem:[%s434_s4 + $0x8] sm:$0xff] %v286_v63  ;;  %258 = vst [vmem:[%s434_s4 + $0x18] sm:$0xff] %v288_v0 }

// kernel: _lambda_.25
= control target key start
LH: loop header
LB: loop body
LE: loop exit
PB: predicated region body
PF: predicated region fallthrough
CT: control target
= control target key end

     0   :  { %s913_s12 = smov 0   ;;  %s915_s13 = smov 0   ;;  %s1185_s0 = inlined_call_operand.vmem [shape: bf16[2,6,6,256], index: 0, kind: input, shape index: {}]   ;;  %s1186_s1 = inlined_call_operand.vmem [shape: f32[9,256], index: 1, kind: input, shape index: {}]   ;;  %s1187_s2 = inlined_call_operand.vmem [shape: f32[1,256], index: 2, kind: input, shape index: {}]   ;;  %s1188_s3 = inlined_call_operand.vmem [shape: bf16[2,4,4,256], index: 3, kind: output, shape index: {}]  }
   0x1   :  { %s917_s14 = smov 0   ;;  %s919_s15 = smov 0  }
   0x2   :  { %s921_s16 = smov 0   ;;  %s923_s17 = smov 0  }
   0x3   :  { %s925_s18 = smov 0   ;;  %s927_s19 = smov 0  }
   0x4   :  { %s929_s20 = smov 0  }
   0x5 LB: > { %s721_s21 = sadd.s32 4294967295, %s891_s20   ;;  %s22_s22 = sadd.s32 1, %s883_s18  ;;  %s891_s20 = sphi %s929_s20, %s13_s20   ;;  %s887_s19 = sphi %s927_s19, %s1199_s19   ;;  %s883_s18 = sphi %s925_s18, %s1198_s18   ;;  %s879_s17 = sphi %s923_s17, %s1197_s17   ;;  %s875_s16 = sphi %s921_s16, %s1196_s16   ;;  %s871_s15 = sphi %s919_s15, %s1195_s15   ;;  %s867_s14 = sphi %s917_s14, %s1194_s14   ;;  %s863_s13 = sphi %s915_s13, %s1193_s13   ;;  %s859_s12 = sphi %s913_s12, %s1192_s12  }
   0x6   : > { %p23_p0 = scmp.ge.s32.totalorder %s22_s22, 2  ;;  %s25_s23 = sadd.s32 1, %s887_s19 }
   0x7   : > { %s34_s24 = sadd.s32 1, %s871_s15  ;;  %p41_p1 = scmp.ne.s32.totalorder %s871_s15, %s867_s14 }
   0x8   : > { %s1201_s22 = smov (%p23_p0, %s22_s22), 0  ;;  %s1203_s23 = smov (!%p23_p0, %s25_s23), %s887_s19 }
   0x9   : > { %s30_s25 = ssub.s32 %s883_s18, %s1201_s22  ;;  %p42_p2 = scmp.eq.s32.totalorder %s891_s20, 0 }
   0xa   : > { %p27_p3 = scmp.ge.s32.totalorder %s1203_s23, 2  ;;  %p58_p4 = scmp.eq.s32.totalorder %s30_s25, 0 }
   0xb   : > { %p973_p5 = por %p42_p2, %p41_p1  ;;  %s60_s27 = sadd.s32 1, %s863_s13 }
   0xc   : > { %s1205_s23 = smov (%p27_p3, %s1203_s23), 0  ;;  %p67_p6 = scmp.ne.s32.totalorder %s863_s13, %s859_s12 }
   0xd   : > { %s981_s28 = scalar_select %p58_p4, %s863_s13, %s60_s27  }
   0xe   : > { %s29_s29 = ssub.s32 %s887_s19, %s1205_s23  ;;  %p125_p7 = scmp.eq.s32.totalorder %s721_s21, 3 }
   0xf   : > { %s31_s30 = sor.u32 %s30_s25, %s29_s29  ;;  %p987_p9 = por %p67_p6, %p42_p2 }
  0x10   : > { %p32_p8 = scmp.eq.s32.totalorder %s31_s30, 0  ;;  %p994_p10 = por %p125_p7, %p41_p1 }
  0x11   : > { %p724_p11 = scmp.ge.s32.totalorder %s891_s20, 4 }
  0x12   : > { %s999_s6 = scalar_select %p32_p8, %s871_s15, %s34_s24  }
  0x13   : > { %147 = sbr.rel (%p724_p11) target bundleno = 44 (0x2c), region = 16 }
  0x1a   : > { %150 = sbr.rel (!%p973_p5) target bundleno = 37 (0x25), region = 20  ;;  %s152_s7 = sand.u32 (%p973_p5), 1, %s871_s15  }
  0x1b   : > { %s747_s8 = smul.u32 (%p973_p5), 12, %s887_s19 }
  0x1c   : > { %s746_s9 = smul.u32 (%p973_p5), 24, %s152_s7 }
  0x1d   : > { %s156_s10 = sadd.s32 (%p973_p5), %s883_s18, %s747_s8 }
  0x1e   : > { %s725_s11 = sshll.u32 (%p973_p5), %s156_s10, 2  ;;  %s154_s24 = scalar_lea.vmem (%p973_p5), [#allocation2], %s746_s9 }
  0x1f   : > { %s158_s27 = scalar_lea.vmem (%p973_p5), %s1185_s0, %s725_s11 }
  0x20   : > { %v174_v0 = vld [vmem:[%s158_s27] sm:$0xf] (%p973_p5)  ;;  %v176_v1 = vld [vmem:[%s158_s27 + $0x8] sm:$0xf] (%p973_p5)  ;;  %v178_v2 = vld [vmem:[%s158_s27 + $0x10] sm:$0xf] (%p973_p5) }
  0x21   : > { %175 = vst [vmem:[%s154_s24] sm:$0xf] %v174_v0  ;;  %177 = vst [vmem:[%s154_s24 + $0x4] sm:$0xf] %v176_v1  ;;  %v180_v3 = vld [vmem:[%s158_s27 + $0x18] sm:$0xf] }
  0x22   : > { %179 = vst [vmem:[%s154_s24 + $0x8] sm:$0xf] %v178_v2  ;;  %v182_v4 = vld [vmem:[%s158_s27 + $0x20] sm:$0xf]  ;;  %v184_v5 = vld [vmem:[%s158_s27 + $0x28] sm:$0xf] }
  0x23   : > { %181 = vst [vmem:[%s154_s24 + $0xc] sm:$0xf] %v180_v3  ;;  %183 = vst [vmem:[%s154_s24 + $0x10] sm:$0xf] %v182_v4 }
  0x24   : > { %185 = vst [vmem:[%s154_s24 + $0x14] sm:$0xf] %v184_v5 }
  0x25 PF: > { %220 = sbr.rel (!%p987_p9) target bundleno = 44 (0x2c), region = 61  ;;  %s222_s26 = sand.u32 (%p987_p9), 1, %s863_s13  }
  0x26   : > { %s727_s29 = sshll.u32 (%p987_p9), %s883_s18, 3  ;;  %s726_s30 = sshll.u32 (%p987_p9), %s222_s26, 4 }
  0x27   : > { %s226_s9 = scalar_lea.vmem (%p987_p9), %s1186_s1, %s727_s29  ;;  %s224_s10 = scalar_lea.vmem (%p987_p9), [#allocation3], %s726_s30 }
  0x28   : > { %v256_v6 = vld [vmem:[%s226_s9] sm:$0xff] (%p987_p9)  ;;  %v258_v7 = vld [vmem:[%s226_s9 + $0x10] sm:$0xff] (%p987_p9) }
  0x29   : > { %257 = vst [vmem:[%s224_s10] sm:$0xff] (%p987_p9), %v256_v6  ;;  %259 = vst [vmem:[%s224_s10 + $0x8] sm:$0xff] (%p987_p9), %v258_v7 }
  0x2c PF: > { %p728_p12 = scmp.ge.s32.totalorder %s891_s20, 1  ;;  %p270_p13 = scmp.lt.s32.totalorder %s891_s20, 5 }
  0x2e   : > { %p271_p0 = pnand %p728_p12, %p270_p13 }
  0x2f   : > { %s277_s4 = sand.u32 (!%p271_p0), 1, %s867_s14   ;;  %s284_s11 = sand.u32 (!%p271_p0), 1, %s859_s12  }
  0x30   : > { %274 = sbr.rel (%p271_p0) target bundleno = 106 (0x6a), region = 103  ;;  %s729_s25 = sshll.u32 (!%p271_p0), %s284_s11, 4 }
  0x31   : > { %s748_s21 = smul.u32 (!%p271_p0), 24, %s277_s4  ;;  %s1023_s27 = scalar_lea.vmem (!%p271_p0), [#allocation3], %s729_s25 }
  0x32   : > { %v1026_v8 = vld [vmem:[%s1023_s27] ss:$0 sm:$0xff] (!%p271_p0)  ;;  %v1033_v11 = vld [vmem:[%s1023_s27 + $0x3] ss:$0 sm:$0xff] (!%p271_p0)  ;;  %v1037_v15 = vld [vmem:[%s1023_s27 + $0x6] ss:$0 sm:$0xff] (!%p271_p0) }
  0x33   : > { %s1028_s24 = scalar_lea.vmem (!%p271_p0), [#allocation2], %s748_s21  ;;  %v1045_v23 = vld [vmem:[%s1023_s27 + $0x1] ss:$0 sm:$0xff] (!%p271_p0)  ;;  %v1050_v26 = vld [vmem:[%s1023_s27 + $0x4] ss:$0 sm:$0xff] (!%p271_p0)  ;;  %p313_p1 = scmp.lt.s32.totalorder (!%p271_p0), %s875_s16, 1 }
  0x34   : > { %v316_v9 = vld [vmem:[%s1028_s24] sm:$0x3] (!%p271_p0)  ;;  %v317_v10 = vld [vmem:[%s1028_s24 + $0x4] sm:$0x3] (!%p271_p0)  ;;  %v318_v12 = vld [vmem:[%s1028_s24 + $0x8] sm:$0x3] (!%p271_p0) }
  0x35   : > { %v323_v13 = vunpack.c.l.bf16 (!%p271_p0), %v316_v9  ;;  %v324_v14 = vunpack.c.l.bf16 (!%p271_p0), %v317_v10  ;;  %v363_v16 = vld [vmem:[%s1028_s24] sm:$0x7] (!%p271_p0)  ;;  %v325_v17 = vunpack.c.l.bf16 (!%p271_p0), %v318_v12  ;;  %v364_v18 = vld [vmem:[%s1028_s24 + $0x4] sm:$0x7] (!%p271_p0)  ;;  %v365_v19 = vld [vmem:[%s1028_s24 + $0x8] sm:$0x7] (!%p271_p0) }
  0x36   : > { %v370_v20 = vunpack.c.l.bf16 (!%p271_p0), %v363_v16  ;;  %v371_v24 = vunpack.c.l.bf16 (!%p271_p0), %v364_v18  ;;  %v1047_v25 = vunpack.c.l.bf16 (!%p271_p0), %v365_v19  ;;  %v1053_v27 = vld [vmem:[%s1023_s27 + $0x7] ss:$0 sm:$0xff] (!%p271_p0)  ;;  %v450_v30 = vld [vmem:[%s1028_s24] sm:$0x6] (!%p271_p0)  ;;  %v451_v31 = vld [vmem:[%s1028_s24 + $0x4] sm:$0x6] (!%p271_p0) }
  0x37   : > { %v331_v21 = vmul.f32 %v1026_v8, %v323_v13  ;;  %v341_v22 = vmul.f32 %v1033_v11, %v324_v14  ;;  %v355_v28 = vmul.f32 %v1037_v15, %v325_v17  ;;  %v452_v32 = vld [vmem:[%s1028_s24 + $0x8] sm:$0x6]  ;;  %v332_v33 = vmul.f32 %v1026_v8, %v324_v14  ;;  %v1069_v40 = vld [vmem:[%s1023_s27 + $0x5] ss:$0 sm:$0xff]  ;;  %v1072_v41 = vld [vmem:[%s1023_s27 + $0x8] ss:$0 sm:$0xff] }
  0x38   : > { %v378_v29 = vmul.f32 %v1045_v23, %v370_v20  ;;  %v342_v34 = vmul.f32 %v1033_v11, %v325_v17  ;;  %v404_v36 = vmul.f32 %v1050_v26, %v371_v24  ;;  %v430_v37 = vmul.f32 %v1053_v27, %v1047_v25  ;;  %v1066_v38 = vld [vmem:[%s1023_s27 + $0x2] ss:$0 sm:$0xff]  ;;  %v319_v45 = vld [vmem:[%s1028_s24 + $0xc] sm:$0x3]  ;;  %v320_v0 = vld [vmem:[%s1028_s24 + $0x10] sm:$0x3] }
  0x39   : > { %v345_v35 = vadd.f32 %v341_v22, %v331_v21  ;;  %v457_v39 = vunpack.c.l.bf16 %v450_v30  ;;  %v458_v43 = vunpack.c.l.bf16 %v451_v31  ;;  %v459_v44 = vunpack.c.l.bf16 %v452_v32  ;;  %v366_v50 = vld [vmem:[%s1028_s24 + $0xc] sm:$0x7]  ;;  %s1093_s12 = scalar_select %p313_p1, %s875_s16, 1  ;;  %v367_v16 = vld [vmem:[%s1028_s24 + $0x10] sm:$0x7] }
  0x3a   : > { %v386_v42 = vrot.slane %v378_v29, 1  ;;  %v412_v47 = vrot.slane %v404_v36, 1  ;;  %v346_v49 = vadd.f32 %v342_v34, %v332_v33  ;;  %v326_v53 = vunpack.c.l.bf16 %v319_v45  ;;  %v453_v55 = vld [vmem:[%s1028_s24 + $0xc] sm:$0x6]  ;;  %v454_v33 = vld [vmem:[%s1028_s24 + $0x10] sm:$0x6] }
  0x3b   : > { %v359_v46 = vadd.f32 %v355_v28, %v345_v35  ;;  %v465_v48 = vmul.f32 %v1066_v38, %v457_v39  ;;  %v491_v51 = vmul.f32 %v1069_v40, %v458_v43  ;;  %v517_v52 = vmul.f32 %v1072_v41, %v459_v44  ;;  %s315_s30 = scalar_lea.vmem %s1187_s2, %s1093_s12  ;;  %s730_s7 = sshll.u32 %s277_s4, 3 }
  0x3c   : > { %v1080_v54 = vunpack.c.l.bf16 %v366_v50  ;;  %v438_v57 = vrot.slane %v430_v37, 1  ;;  %v379_v58 = vmul.f32 %v1045_v23, %v371_v24  ;;  %v405_v59 = vmul.f32 %v1050_v26, %v1047_v25  ;;  %v1115_v39 = vld [vmem:[%s315_s30] ss:$0 sm:$0xff]  ;;  %v321_v50 = vld [vmem:[%s1028_s24 + $0x14] sm:$0x3]  ;;  %s1137_s14 = scalar_lea.vmem [#allocation4], %s730_s7 }
  0x3d   : > { %v394_v56 = vadd.f32 %v386_v42, %v359_v46  ;;  %v473_v60 = vrot.slane %v465_v48, 2  ;;  %v499_v61 = vrot.slane %v491_v51, 2  ;;  %v356_v62 = vmul.f32 %v1037_v15, %v326_v53  ;;  %s742_s8 = sshll.u32 (%p994_p10), %s879_s17, 3 }
  0x3e   : > { %v431_v63 = vmul.f32 %v1053_v27, %v1080_v54  ;;  %v525_v2 = vrot.slane %v517_v52, 2  ;;  %v387_v3 = vrot.slane %v379_v58, 1  ;;  %v1095_v4 = vunpack.c.l.bf16 %v453_v55  ;;  %s568_s9 = sadd.s32 (%p994_p10), %s875_s16, %s742_s8 }
  0x3f   : > { %v420_v1 = vadd.f32 %v412_v47, %v394_v56  ;;  %v360_v5 = vadd.f32 %v356_v62, %v346_v49  ;;  %v413_v6 = vrot.slane %v405_v59, 1  ;;  %v466_v7 = vmul.f32 %v1066_v38, %v458_v43  ;;  %v368_v56 = vld [vmem:[%s1028_s24 + $0x14] sm:$0x7]  ;;  %s743_s10 = sshll.u32 (%p994_p10), %s568_s9, 1 }
  0x40   : > { %v492_v9 = vmul.f32 %v1069_v40, %v459_v44  ;;  %v518_v12 = vmul.f32 %v1072_v41, %v1095_v4  ;;  %v333_v13 = vmul.f32 %v1026_v8, %v325_v17  ;;  %v336_v14 = vunpack.c.l.bf16 %v320_v0  ;;  %s570_s21 = scalar_lea.vmem (%p994_p10), %s1188_s3, %s743_s10 }
  0x41   : > { %v446_v10 = vadd.f32 %v438_v57, %v420_v1  ;;  %v395_v18 = vadd.f32 %v387_v3, %v360_v5  ;;  %v439_v19 = vrot.slane %v431_v63, 1  ;;  %v474_v20 = vrot.slane %v466_v7, 2 }
  0x42   : > { %v343_v21 = vmul.f32 %v1033_v11, %v326_v53  ;;  %v500_v24 = vrot.slane %v492_v9, 2  ;;  %v357_v28 = vmul.f32 %v1037_v15, %v336_v14  ;;  %v380_v29 = vmul.f32 %v1045_v23, %v1047_v25  ;;  %v455_v9 = vld [vmem:[%s1028_s24 + $0x14] sm:$0x6] }
  0x43   : > { %v481_v22 = vadd.f32 %v473_v60, %v446_v10  ;;  %v421_v17 = vadd.f32 %v413_v6, %v395_v18  ;;  %v399_v31 = vunpack.c.l.bf16 %v367_v16  ;;  %v406_v32 = vmul.f32 %v1050_v26, %v1080_v54 }
  0x44   : > { %v347_v30 = vadd.f32 %v343_v21, %v333_v13  ;;  %v526_v35 = vrot.slane %v518_v12, 2  ;;  %v388_v36 = vrot.slane %v380_v29, 1  ;;  %v467_v37 = vmul.f32 %v1066_v38, %v459_v44 }
  0x45   : > { %v507_v34 = vadd.f32 %v499_v61, %v481_v22  ;;  %v447_v42 = vadd.f32 %v439_v19, %v421_v17  ;;  %v414_v25 = vrot.slane %v406_v32, 1  ;;  %v432_v45 = vmul.f32 %v1053_v27, %v399_v31 }
  0x46   : > { %v361_v43 = vadd.f32 %v357_v28, %v347_v30  ;;  %v475_v47 = vrot.slane %v467_v37, 2  ;;  %v486_v48 = vunpack.c.l.bf16 %v454_v33  ;;  %v493_v49 = vmul.f32 %v1069_v40, %v1095_v4 }
  0x47   : > { %v533_v46 = vadd.f32 %v525_v2, %v507_v34  ;;  %v482_v51 = vadd.f32 %v474_v20, %v447_v42  ;;  %v440_v55 = vrot.slane %v432_v45, 1  ;;  %v334_v44 = vmul.f32 %v1026_v8, %v326_v53 }
  0x48   : > { %v396_v52 = vadd.f32 %v388_v36, %v361_v43  ;;  %v501_v58 = vrot.slane %v493_v49, 2  ;;  %v519_v59 = vmul.f32 %v1072_v41, %v486_v48  ;;  %v344_v60 = vmul.f32 %v1033_v11, %v336_v14 }
  0x49   : > { %v544_v57 = vadd.f32 %v1115_v39, %v533_v46  ;;  %v508_v61 = vadd.f32 %v500_v24, %v482_v51  ;;  %v350_v63 = vunpack.c.l.bf16 %v321_v50  ;;  %v381_v0 = vmul.f32 %v1045_v23, %v1080_v54 }
  0x4a   : > { %v422_v62 = vadd.f32 %v414_v25, %v396_v52  ;;  %v348_v2 = vadd.f32 %v344_v60, %v334_v44  ;;  %v407_v8 = vmul.f32 %v1050_v26, %v399_v31  ;;  %v425_v53 = vunpack.c.l.bf16 %v368_v56 }
  0x4b   : > { %v548_v1 = vmax.f32 %v544_v57, 0.0  ;;  %v534_v3 = vadd.f32 %v526_v35, %v508_v61  ;;  %v358_v6 = vmul.f32 %v1037_v15, %v350_v63  ;;  %v389_v7 = vrot.slane %v381_v0, 1 }
  0x4c   : > { %v448_v5 = vadd.f32 %v440_v55, %v422_v62  ;;  %v527_v12 = vrot.slane %v519_v59, 2  ;;  %v433_v11 = vmul.f32 %v1053_v27, %v425_v53  ;;  %v468_v13 = vmul.f32 %v1066_v38, %v1095_v4 }
  0x4d   : > { %v552_v10 = vpack.c.bf16 %v548_v1, %v548_v1  ;;  %v545_v23 = vadd.f32 %v1115_v39, %v534_v3  ;;  %v362_v14 = vadd.f32 %v358_v6, %v348_v2  ;;  %v415_v16 = vrot.slane %v407_v8, 1 }
  0x4e   : > { %v483_v54 = vadd.f32 %v475_v47, %v448_v5  ;;  %v494_v15 = vmul.f32 %v1069_v40, %v486_v48  ;;  %v512_v26 = vunpack.c.l.bf16 %v455_v9  ;;  %v441_v27 = vrot.slane %v433_v11, 1 }
  0x4f   : > { %556 = vst [vmem:[%s1137_s14] sm:$0x3] %v552_v10  ;;  %v549_v18 = vmax.f32 %v545_v23, 0.0  ;;  %v397_v20 = vadd.f32 %v389_v7, %v362_v14  ;;  %v476_v21 = vrot.slane %v468_v13, 2 }
  0x50   : > { %v509_v19 = vadd.f32 %v501_v58, %v483_v54  ;;  %v520_v24 = vmul.f32 %v1072_v41, %v512_v26  ;;  %v502_v17 = vrot.slane %v494_v15, 2 }
  0x51   : > { %v553_v38 = vpack.c.bf16 %v549_v18, %v549_v18  ;;  %v423_v22 = vadd.f32 %v415_v16, %v397_v20 }
  0x52   : > { %v535_v4 = vadd.f32 %v527_v12, %v509_v19  ;;  %v528_v31 = vrot.slane %v520_v24, 2 }
  0x53   : > { %557 = vst [vmem:[%s1137_s14 + $0x2] sm:$0x3] %v553_v38  ;;  %v449_v29 = vadd.f32 %v441_v27, %v423_v22 }
  0x54   : > { %v546_v28 = vadd.f32 %v1115_v39, %v535_v4 }
  0x55   : > { %v484_v40 = vadd.f32 %v476_v21, %v449_v29 }
  0x56   : > { %v550_v30 = vmax.f32 %v546_v28, 0.0  ;;  %v586_v41 = vld [vmem:[%s1137_s14] sm:$0x3] (%p994_p10) }
  0x57   : > { %v510_v33 = vadd.f32 %v502_v17, %v484_v40  ;;  %587 = vst [vmem:[%s570_s21] sm:$0x3] (%p994_p10), %v586_v41 }
  0x58   : > { %v554_v32 = vpack.c.bf16 %v550_v30, %v550_v30 }
  0x59   : > { %v536_v34 = vadd.f32 %v528_v31, %v510_v33 }
  0x5a   : > { %558 = vst [vmem:[%s1137_s14 + $0x4] sm:$0x3] %v554_v32  ;;  %v588_v42 = vld [vmem:[%s1137_s14 + $0x2] sm:$0x3] (%p994_p10) }
  0x5b   : > { %v547_v35 = vadd.f32 %v1115_v39, %v536_v34  ;;  %566 = sbr.rel (!%p994_p10) target bundleno = 106 (0x6a), region = 115  ;;  %589 = vst [vmem:[%s570_s21 + $0x4] sm:$0x3] (%p994_p10), %v588_v42 }
  0x5d   : > { %v551_v36 = vmax.f32 %v547_v35, 0.0 }
  0x5f   : > { %v555_v37 = vpack.c.bf16 %v551_v36, %v551_v36 }
  0x61   : > { %559 = vst [vmem:[%s1137_s14 + $0x6] sm:$0x3] %v555_v37  ;;  %v590_v43 = vld [vmem:[%s1137_s14 + $0x4] sm:$0x3] (%p994_p10) }
  0x62   : > { %591 = vst [vmem:[%s570_s21 + $0x8] sm:$0x3] %v590_v43 }
  0x68   : > { %v592_v25 = vld [vmem:[%s1137_s14 + $0x6] sm:$0x3] }
  0x69   : > { %593 = vst [vmem:[%s570_s21 + $0xc] sm:$0x3] %v592_v25 }
  0x6a PF: > { %s13_s20 = sadd.s32 1, %s891_s20   ;;  %s1192_s12 = smov %s863_s13 }
  0x6b   : > { %p10_p2 = scmp.ge.s32.totalorder %s13_s20, 6   ;;  %s1193_s13 = smov %s981_s28 }
  0x6c   : > { %s1194_s14 = smov %s871_s15  ;;  %s1195_s15 = smov %s999_s6 }
  0x6d   : > { %s1196_s16 = smov %s883_s18  ;;  %s1197_s17 = smov %s887_s19 }
  0x6e   : > { %s1198_s18 = smov %s1201_s22  ;;  %s1199_s19 = smov %s1205_s23 }
  0x6f   :  { %12 = sbr.rel (!%p10_p2) target bundleno = 5 (0x5), region = 198 }

// kernel: _lambda_.26
= control target key start
LH: loop header
LB: loop body
LE: loop exit
PB: predicated region body
PF: predicated region fallthrough
CT: control target
= control target key end

     0   :  { %s504_s1 = inlined_call_operand.vmem [shape: bf16[256,128], index: 1, kind: input, shape index: {}]   ;;  %s505_s0 = inlined_call_operand.vmem [shape: bf16[32,256], index: 0, kind: input, shape index: {}]   ;;  %s506_s2 = inlined_call_operand.vmem [shape: f32[1,128], index: 2, kind: input, shape index: {}]   ;;  %s507_s4 = inlined_call_operand.vmem [shape: bf16[32,128], index: 4, kind: input, shape index: {}]   ;;  %s508_s3 = inlined_call_operand.vmem [shape: f32[1,128], index: 3, kind: input, shape index: {}]   ;;  %s509_s5 = inlined_call_operand.vmem [shape: bf16[32,128], index: 5, kind: output, shape index: {}]  }
   0x1   :  { %v374_v0 = vld [vmem:[%s504_s1 + $0x40] sm:$0xff]   ;;  %v376_v2 = vld [vmem:[%s504_s1 + $0x48] sm:$0xff]   ;;  %v378_v4 = vld [vmem:[%s504_s1 + $0x50] sm:$0xff]  }
   0x2   :  { %v375_v1 = vld [vmem:[%s504_s1] sm:$0xff]   ;;  %330 = vmatprep.subr.bf16.mxu0 %v374_v0  ;;  %358 = vmatprep.subr.bf16.mxu1 %v374_v0  ;;  %v377_v3 = vld [vmem:[%s504_s1 + $0x8] sm:$0xff]   ;;  %v379_v5 = vld [vmem:[%s504_s1 + $0x10] sm:$0xff]  }
   0x3   :  { %331 = vmatpush3.bf16.msra.mxu0 %v375_v1  ;;  %366 = vmatpush3.bf16.msra.mxu1 %v375_v1  ;;  %v380_v6 = vld [vmem:[%s504_s1 + $0x58] sm:$0xff]   ;;  %v382_v8 = vld [vmem:[%s504_s1 + $0x60] sm:$0xff]   ;;  %v384_v10 = vld [vmem:[%s504_s1 + $0x68] sm:$0xff]  }
   0x4   :  { %332 = vmatprep.subr.bf16.mxu0 %v376_v2  ;;  %359 = vmatprep.subr.bf16.mxu1 %v376_v2  ;;  %v381_v7 = vld [vmem:[%s504_s1 + $0x18] sm:$0xff]   ;;  %v383_v9 = vld [vmem:[%s504_s1 + $0x20] sm:$0xff]   ;;  %v385_v13 = vld [vmem:[%s504_s1 + $0x28] sm:$0xff]  }
   0x5   :  { %v392_v11 = vld [vmem:[%s505_s0 + $0x4] ss:$8 sps:$4 sm:$0xff]   ;;  %v395_v12 = vld [vmem:[%s505_s0 + $0x14] ss:$8 sps:$4 sm:$0xff]   ;;  %v390_v18 = vld [vmem:[%s505_s0] ss:$8 sps:$4 sm:$0xff]  }
   0x6   :  { %v386_v14 = vld [vmem:[%s504_s1 + $0x70] sm:$0xff]   ;;  %205 = vmatprep.mubr.bf16.mxu0 %v392_v11  ;;  %213 = vmatprep.mubr.bf16.mxu1 %v395_v12  ;;  %v388_v16 = vld [vmem:[%s504_s1 + $0x78] sm:$0xff]   ;;  %v300_v23 = vld [vmem:[%s506_s2] ss:$0 sm:$0xff] }
   0x7   :  { %333 = vmatpush3.bf16.msra.mxu0 %v377_v3  ;;  %367 = vmatpush3.bf16.msra.mxu1 %v377_v3  ;;  %v387_v15 = vld [vmem:[%s504_s1 + $0x30] sm:$0xff]   ;;  %v389_v17 = vld [vmem:[%s504_s1 + $0x38] sm:$0xff]   ;;  %v311_v26 = vld [vmem:[%s507_s4] sm:$0xff]  }
   0x8   :  { %334 = vmatprep.subr.bf16.mxu0 %v378_v4  ;;  %360 = vmatprep.subr.bf16.mxu1 %v378_v4  ;;  %v393_v19 = vld [vmem:[%s505_s0 + $0x10] ss:$8 sps:$4 sm:$0xff]   ;;  %v328_v28 = vld [vmem:[%s507_s4 + $0x8] sm:$0xff]   ;;  %v301_v31 = vld [vmem:[%s508_s3] ss:$0 sm:$0xff]  ;;  %v312_v38 = vunpack.c.l.bf16 %v311_v26  ;;  %v313_v40 = vunpack.c.h.bf16 %v311_v26 }
   0x9   :  { %v316_v39 = vunpack.c.l.bf16 %v328_v28  ;;  %v317_v41 = vunpack.c.h.bf16 %v328_v28 }
   0xb   :  { %335 = vmatpush3.bf16.msra.mxu0 %v379_v5  ;;  %368 = vmatpush3.bf16.msra.mxu1 %v379_v5 }
   0xc   :  { %336 = vmatprep.subr.bf16.mxu0 %v380_v6  ;;  %361 = vmatprep.subr.bf16.mxu1 %v380_v6 }
   0xf   :  { %337 = vmatpush3.bf16.msra.mxu0 %v381_v7  ;;  %369 = vmatpush3.bf16.msra.mxu1 %v381_v7 }
  0x10   :  { %338 = vmatprep.subr.bf16.mxu0 %v382_v8  ;;  %362 = vmatprep.subr.bf16.mxu1 %v382_v8 }
  0x13   :  { %339 = vmatpush3.bf16.msra.mxu0 %v383_v9  ;;  %370 = vmatpush3.bf16.msra.mxu1 %v383_v9 }
  0x14   :  { %340 = vmatprep.subr.bf16.mxu0 %v384_v10  ;;  %363 = vmatprep.subr.bf16.mxu1 %v384_v10 }
  0x17   :  { %341 = vmatpush3.bf16.msra.mxu0 %v385_v13  ;;  %371 = vmatpush3.bf16.msra.mxu1 %v385_v13 }
  0x18   :  { %342 = vmatprep.subr.bf16.mxu0 %v386_v14  ;;  %364 = vmatprep.subr.bf16.mxu1 %v386_v14 }
  0x1b   :  { %343 = vmatpush3.bf16.msra.mxu0 %v387_v15  ;;  %372 = vmatpush3.bf16.msra.mxu1 %v387_v15 }
  0x1c   :  { %344 = vmatprep.subr.bf16.mxu0 %v388_v16  ;;  %365 = vmatprep.subr.bf16.mxu1 %v388_v16 }
  0x1f   :  { %345 = vmatpush3.bf16.msra.mxu0 %v389_v17  ;;  %373 = vmatpush3.bf16.msra.mxu1 %v389_v17 }
  0x22   :  { %206 = vmatmul.mubr.bf16.vlgmr.msra.gmra.mrb[0].mxu0 %v390_v18  ;;  %214 = vmatmul.mubr.bf16.vlgmr.msra.gmra.mrb[0].mxu1 %v393_v19 }
  0xf5   :  { %v346_v20 = vpop.f32.mrb[0].mxu0  ;;  %v352_v21 = vpop.f32.mrb[0].mxu1 }
  0xf6   :  { %v347_v22 = vpop.f32.mrb[1].mxu0  ;;  %v353_v24 = vpop.f32.mrb[1].mxu1 }
  0xf7   :  { %v348_v25 = vadd.f32 %v347_v22, %v346_v20  ;;  %v354_v27 = vadd.f32 %v353_v24, %v352_v21  ;;  %v349_v29 = vpop.f32.mrb[2].mxu0  ;;  %v355_v30 = vpop.f32.mrb[2].mxu1 }
  0xf8   :  { %v350_v32 = vpop.f32.mrb[3].mxu0  ;;  %v356_v33 = vpop.f32.mrb[3].mxu1 }
  0xf9   :  { %v229_v34 = vmul.f32 %v348_v25, %v300_v23  ;;  %v231_v35 = vmul.f32 %v354_v27, %v300_v23  ;;  %v351_v36 = vadd.f32 %v350_v32, %v349_v29  ;;  %v357_v37 = vadd.f32 %v356_v33, %v355_v30 }
  0xfb   :  { %v240_v42 = vadd.f32 %v301_v31, %v229_v34  ;;  %v242_v43 = vadd.f32 %v301_v31, %v231_v35  ;;  %v230_v44 = vmul.f32 %v351_v36, %v300_v23  ;;  %v232_v45 = vmul.f32 %v357_v37, %v300_v23 }
  0xfd   :  { %v241_v46 = vadd.f32 %v301_v31, %v230_v44  ;;  %v243_v47 = vadd.f32 %v301_v31, %v232_v45  ;;  %v252_v48 = vadd.f32 %v312_v38, %v240_v42  ;;  %v254_v49 = vadd.f32 %v316_v39, %v242_v43 }
  0xff   :  { %v253_v50 = vadd.f32 %v313_v40, %v241_v46  ;;  %v255_v51 = vadd.f32 %v317_v41, %v243_v47 }
 0x101   :  { %v321_v52 = vpack.c.bf16 %v253_v50, %v252_v48  ;;  %v326_v53 = vpack.c.bf16 %v255_v51, %v254_v49 }
 0x103   :  { %322 = vst [vmem:[%s509_s5] sm:$0xff] %v321_v52   ;;  %329 = vst [vmem:[%s509_s5 + $0x8] sm:$0xff] %v326_v53  }

// kernel: _lambda_.28
= control target key start
LH: loop header
LB: loop body
LE: loop exit
PB: predicated region body
PF: predicated region fallthrough
CT: control target
= control target key end

     0   :  { %s844_s12 = smov 0   ;;  %s846_s13 = smov 0   ;;  %s1025_s0 = inlined_call_operand.vmem [shape: bf16[8,3,3,256], index: 0, kind: input, shape index: {}]   ;;  %s1026_s1 = inlined_call_operand.vmem [shape: f32[9,256], index: 1, kind: input, shape index: {}]   ;;  %s1027_s2 = inlined_call_operand.vmem [shape: f32[1,256], index: 2, kind: input, shape index: {}]   ;;  %s1028_s3 = inlined_call_operand.vmem [shape: bf16[2,2,2,256], index: 3, kind: output, shape index: {}]  }
   0x1   :  { %s848_s14 = smov 0   ;;  %s850_s15 = smov 0  }
   0x2   :  { %s852_s16 = smov 0   ;;  %s854_s17 = smov 0  }
   0x3   :  { %s856_s18 = smov 0   ;;  %s858_s19 = smov 0  }
   0x4   :  { %s860_s20 = smov 0  }
   0x5 LB: > { %s636_s21 = sadd.s32 4294967295, %s822_s20   ;;  %s22_s22 = sadd.s32 1, %s814_s18  ;;  %s822_s20 = sphi %s860_s20, %s13_s20   ;;  %s818_s19 = sphi %s858_s19, %s1039_s19   ;;  %s814_s18 = sphi %s856_s18, %s1038_s18   ;;  %s810_s17 = sphi %s854_s17, %s1037_s17   ;;  %s806_s16 = sphi %s852_s16, %s1036_s16   ;;  %s802_s15 = sphi %s850_s15, %s1035_s15   ;;  %s798_s14 = sphi %s848_s14, %s1034_s14   ;;  %s794_s13 = sphi %s846_s13, %s1033_s13   ;;  %s790_s12 = sphi %s844_s12, %s1032_s12  }
   0x6   : > { %p23_p0 = scmp.ge.s32.totalorder %s22_s22, 2  ;;  %s25_s23 = sadd.s32 1, %s818_s19 }
   0x7   : > { %s34_s24 = sadd.s32 1, %s802_s15  ;;  %p41_p1 = scmp.ne.s32.totalorder %s802_s15, %s798_s14 }
   0x8   : > { %s1041_s22 = smov (%p23_p0, %s22_s22), 0  ;;  %s1043_s23 = smov (!%p23_p0, %s25_s23), %s818_s19 }
   0x9   : > { %s30_s25 = ssub.s32 %s814_s18, %s1041_s22  ;;  %p42_p2 = scmp.eq.s32.totalorder %s822_s20, 0 }
   0xa   : > { %p27_p3 = scmp.ge.s32.totalorder %s1043_s23, 2  ;;  %p58_p4 = scmp.eq.s32.totalorder %s30_s25, 0 }
   0xb   : > { %p904_p5 = por %p42_p2, %p41_p1  ;;  %s60_s27 = sadd.s32 1, %s794_s13 }
   0xc   : > { %s1045_s23 = smov (%p27_p3, %s1043_s23), 0  ;;  %p67_p6 = scmp.ne.s32.totalorder %s794_s13, %s790_s12 }
   0xd   : > { %s912_s28 = scalar_select %p58_p4, %s794_s13, %s60_s27  }
   0xe   : > { %s29_s29 = ssub.s32 %s818_s19, %s1045_s23  ;;  %p125_p7 = scmp.eq.s32.totalorder %s636_s21, 3 }
   0xf   : > { %s31_s30 = sor.u32 %s30_s25, %s29_s29  ;;  %p918_p9 = por %p67_p6, %p42_p2 }
  0x10   : > { %p32_p8 = scmp.eq.s32.totalorder %s31_s30, 0  ;;  %p925_p10 = por %p125_p7, %p41_p1 }
  0x11   : > { %p639_p11 = scmp.ge.s32.totalorder %s822_s20, 4 }
  0x12   : > { %s930_s6 = scalar_select %p32_p8, %s802_s15, %s34_s24  }
  0x13   : > { %147 = sbr.rel (%p639_p11) target bundleno = 48 (0x30), region = 16 }
  0x1a   : > { %150 = sbr.rel (!%p904_p5) target bundleno = 41 (0x29), region = 20  ;;  %s152_s7 = sand.u32 (%p904_p5), 1, %s802_s15  }
  0x1b   : > { %s678_s8 = smul.u32 (%p904_p5), 24, %s818_s19 }
  0x1c   : > { %s677_s9 = smul.u32 (%p904_p5), 24, %s152_s7 }
  0x1d   : > { %s157_s10 = sadd.s32 (%p904_p5), %s814_s18, %s678_s8 }
  0x1e   : > { %s642_s11 = sshll.u32 (%p904_p5), %s157_s10, 1  ;;  %s154_s24 = scalar_lea.vmem (%p904_p5), [#allocation2], %s677_s9 }
  0x1f   : > { %s159_s27 = scalar_lea.vmem (%p904_p5), %s1025_s0, %s642_s11 }
  0x20   : > { %v175_v0 = vld [vmem:[%s159_s27] sm:$0x3] (%p904_p5)  ;;  %v177_v1 = vld [vmem:[%s159_s27 + $0x4] sm:$0x3] (%p904_p5)  ;;  %v179_v2 = vld [vmem:[%s159_s27 + $0x8] sm:$0x3] (%p904_p5) }
  0x21   : > { %176 = vst [vmem:[%s154_s24] sm:$0x3] %v175_v0  ;;  %178 = vst [vmem:[%s154_s24 + $0x2] sm:$0x3] %v177_v1  ;;  %v181_v3 = vld [vmem:[%s159_s27 + $0xc] sm:$0x3] }
  0x22   : > { %180 = vst [vmem:[%s154_s24 + $0x4] sm:$0x3] %v179_v2  ;;  %v183_v4 = vld [vmem:[%s159_s27 + $0x10] sm:$0x3]  ;;  %v185_v5 = vld [vmem:[%s159_s27 + $0x14] sm:$0x3] }
  0x23   : > { %182 = vst [vmem:[%s154_s24 + $0x6] sm:$0x3] %v181_v3  ;;  %184 = vst [vmem:[%s154_s24 + $0x8] sm:$0x3] %v183_v4  ;;  %v187_v6 = vld [vmem:[%s159_s27 + $0x18] sm:$0x3] }
  0x24   : > { %186 = vst [vmem:[%s154_s24 + $0xa] sm:$0x3] %v185_v5  ;;  %v189_v7 = vld [vmem:[%s159_s27 + $0x1c] sm:$0x3]  ;;  %v191_v8 = vld [vmem:[%s159_s27 + $0x20] sm:$0x3] }
  0x25   : > { %188 = vst [vmem:[%s154_s24 + $0xc] sm:$0x3] %v187_v6  ;;  %190 = vst [vmem:[%s154_s24 + $0xe] sm:$0x3] %v189_v7  ;;  %v193_v9 = vld [vmem:[%s159_s27 + $0x24] sm:$0x3] }
  0x26   : > { %192 = vst [vmem:[%s154_s24 + $0x10] sm:$0x3] %v191_v8  ;;  %v195_v10 = vld [vmem:[%s159_s27 + $0x28] sm:$0x3]  ;;  %v197_v11 = vld [vmem:[%s159_s27 + $0x2c] sm:$0x3] }
  0x27   : > { %194 = vst [vmem:[%s154_s24 + $0x12] sm:$0x3] %v193_v9  ;;  %196 = vst [vmem:[%s154_s24 + $0x14] sm:$0x3] %v195_v10 }
  0x28   : > { %198 = vst [vmem:[%s154_s24 + $0x16] sm:$0x3] %v197_v11 }
  0x29 PF: > { %245 = sbr.rel (!%p918_p9) target bundleno = 48 (0x30), region = 61  ;;  %s247_s26 = sand.u32 (%p918_p9), 1, %s794_s13  }
  0x2a   : > { %s644_s29 = sshll.u32 (%p918_p9), %s814_s18, 3  ;;  %s643_s30 = sshll.u32 (%p918_p9), %s247_s26, 4 }
  0x2b   : > { %s251_s9 = scalar_lea.vmem (%p918_p9), %s1026_s1, %s644_s29  ;;  %s249_s10 = scalar_lea.vmem (%p918_p9), [#allocation3], %s643_s30 }
  0x2c   : > { %v281_v12 = vld [vmem:[%s251_s9] sm:$0xff] (%p918_p9)  ;;  %v283_v13 = vld [vmem:[%s251_s9 + $0x10] sm:$0xff] (%p918_p9) }
  0x2d   : > { %282 = vst [vmem:[%s249_s10] sm:$0xff] (%p918_p9), %v281_v12  ;;  %284 = vst [vmem:[%s249_s10 + $0x8] sm:$0xff] (%p918_p9), %v283_v13 }
  0x30 PF: > { %p645_p12 = scmp.ge.s32.totalorder %s822_s20, 1  ;;  %p295_p13 = scmp.lt.s32.totalorder %s822_s20, 5 }
  0x32   : > { %p296_p0 = pnand %p645_p12, %p295_p13 }
  0x33   : > { %s302_s4 = sand.u32 (!%p296_p0), 1, %s798_s14   ;;  %s309_s11 = sand.u32 (!%p296_p0), 1, %s790_s12  }
  0x34   : > { %299 = sbr.rel (%p296_p0) target bundleno = 95 (0x5f), region = 103  ;;  %s646_s25 = sshll.u32 (!%p296_p0), %s309_s11, 4 }
  0x35   : > { %s679_s21 = smul.u32 (!%p296_p0), 24, %s302_s4  ;;  %s954_s27 = scalar_lea.vmem (!%p296_p0), [#allocation3], %s646_s25 }
  0x36   : > { %v648_v14 = vld [vmem:[%s954_s27] ss:$0 sm:$0xff] (!%p296_p0)  ;;  %v651_v17 = vld [vmem:[%s954_s27 + $0x3] ss:$0 sm:$0xff] (!%p296_p0)  ;;  %v652_v20 = vld [vmem:[%s954_s27 + $0x6] ss:$0 sm:$0xff] (!%p296_p0) }
  0x37   : > { %s957_s24 = scalar_lea.vmem (!%p296_p0), [#allocation2], %s679_s21  ;;  %v656_v26 = vld [vmem:[%s954_s27 + $0x1] ss:$0 sm:$0xff] (!%p296_p0)  ;;  %v659_v33 = vld [vmem:[%s954_s27 + $0x4] ss:$0 sm:$0xff] (!%p296_p0)  ;;  %p339_p1 = scmp.lt.s32.totalorder (!%p296_p0), %s806_s16, 1 }
  0x38   : > { %v342_v15 = vld [vmem:[%s957_s24] sm:$0x1] (!%p296_p0)  ;;  %v343_v16 = vld [vmem:[%s957_s24 + $0x2] sm:$0x1] (!%p296_p0)  ;;  %v649_v19 = vld [vmem:[%s957_s24 + $0xc] sm:$0x1] (!%p296_p0) }
  0x39   : > { %v346_v18 = vunpack.c.l.bf16 (!%p296_p0), %v342_v15  ;;  %v653_v21 = vld [vmem:[%s957_s24 + $0x6] sm:$0x1] (!%p296_p0)  ;;  %v347_v22 = vunpack.c.l.bf16 (!%p296_p0), %v343_v16  ;;  %v358_v23 = vunpack.c.l.bf16 (!%p296_p0), %v649_v19  ;;  %v657_v27 = vld [vmem:[%s957_s24 + $0x12] sm:$0x1] (!%p296_p0)  ;;  %v654_v30 = vld [vmem:[%s957_s24 + $0x8] sm:$0x1] (!%p296_p0) }
  0x3a   : > { %v383_v24 = vunpack.c.l.bf16 (!%p296_p0), %v653_v21  ;;  %v397_v31 = vunpack.c.l.bf16 (!%p296_p0), %v657_v27  ;;  %v417_v32 = vld [vmem:[%s957_s24] sm:$0x3] (!%p296_p0)  ;;  %v661_v34 = vld [vmem:[%s954_s27 + $0x2] ss:$0 sm:$0xff] (!%p296_p0)  ;;  %v664_v36 = vld [vmem:[%s957_s24 + $0xc] sm:$0x3] (!%p296_p0)  ;;  %v384_v43 = vunpack.c.l.bf16 (!%p296_p0), %v654_v30 }
  0x3b   : > { %v352_v25 = vmul.f32 %v648_v14, %v346_v18  ;;  %v364_v28 = vmul.f32 %v651_v17, %v358_v23  ;;  %v374_v29 = vmul.f32 %v652_v20, %v347_v22  ;;  %v421_v35 = vunpack.c.l.bf16 %v417_v32  ;;  %v418_v39 = vld [vmem:[%s957_s24 + $0x2] sm:$0x3]  ;;  %v344_v41 = vld [vmem:[%s957_s24 + $0x4] sm:$0x1]  ;;  %v650_v42 = vld [vmem:[%s957_s24 + $0xe] sm:$0x1] }
  0x3c   : > { %v389_v38 = vmul.f32 %v656_v26, %v383_v24  ;;  %v442_v40 = vunpack.c.l.bf16 %v664_v36  ;;  %v660_v44 = vld [vmem:[%s954_s27 + $0x7] ss:$0 sm:$0xff]  ;;  %v666_v45 = vld [vmem:[%s954_s27 + $0x5] ss:$0 sm:$0xff]  ;;  %v353_v46 = vmul.f32 %v648_v14, %v347_v22  ;;  %v359_v47 = vunpack.c.l.bf16 %v650_v42  ;;  %v658_v49 = vld [vmem:[%s957_s24 + $0x14] sm:$0x1] }
  0x3d   : > { %v366_v37 = vadd.f32 %v364_v28, %v352_v25  ;;  %v369_v48 = vunpack.c.l.bf16 %v344_v41  ;;  %v403_v51 = vmul.f32 %v659_v33, %v397_v31  ;;  %v427_v52 = vmul.f32 %v661_v34, %v421_v35  ;;  %v655_v53 = vld [vmem:[%s957_s24 + $0xa] sm:$0x1]  ;;  %v665_v54 = vld [vmem:[%s957_s24 + $0xe] sm:$0x3]  ;;  %v669_v56 = vld [vmem:[%s954_s27 + $0x8] ss:$0 sm:$0xff] }
  0x3e   : > { %v422_v55 = vunpack.c.l.bf16 %v418_v39  ;;  %v365_v57 = vmul.f32 %v651_v17, %v359_v47  ;;  %v398_v59 = vunpack.c.l.bf16 %v658_v49  ;;  %v413_v61 = vmul.f32 %v660_v44, %v384_v43  ;;  %v419_v63 = vld [vmem:[%s957_s24 + $0x4] sm:$0x3]  ;;  %s340_s12 = scalar_select %p339_p1, %s806_s16, 1 }
  0x3f   : > { %v376_v50 = vadd.f32 %v374_v29, %v366_v37  ;;  %v375_v58 = vmul.f32 %v652_v20, %v369_v48  ;;  %v448_v62 = vmul.f32 %v666_v45, %v442_v40  ;;  %v390_v1 = vmul.f32 %v656_v26, %v384_v43  ;;  %s647_s7 = sshll.u32 %s302_s4, 1  ;;  %s674_s9 = sshll.u32 (%p925_p10), %s810_s17, 2 }
  0x40   : > { %v367_v0 = vadd.f32 %v365_v57, %v353_v46  ;;  %v408_v2 = vunpack.c.l.bf16 %v655_v53  ;;  %v443_v3 = vunpack.c.l.bf16 %v665_v54  ;;  %v662_v5 = vrot.slane %v427_v52, 9  ;;  %s341_s30 = scalar_lea.vmem %s1027_s2, %s340_s12  ;;  %s337_s8 = scalar_lea.vmem [#allocation4], %s647_s7 }
  0x41   : > { %v391_v60 = vadd.f32 %v389_v38, %v376_v50  ;;  %v466_v6 = vmul.f32 %v669_v56, %v422_v55  ;;  %v404_v8 = vmul.f32 %v659_v33, %v398_v59  ;;  %v428_v9 = vmul.f32 %v661_v34, %v422_v55  ;;  %v672_v22 = vld [vmem:[%s341_s30] ss:$0 sm:$0xff]  ;;  %s501_s14 = sadd.s32 (%p925_p10), %s806_s16, %s674_s9 }
  0x42   : > { %v377_v7 = vadd.f32 %v375_v58, %v367_v0  ;;  %v461_v10 = vunpack.c.l.bf16 %v419_v63  ;;  %v667_v12 = vrot.slane %v448_v62, 9  ;;  %v414_v14 = vmul.f32 %v660_v44, %v408_v2  ;;  %s502_s11 = scalar_lea.vmem (%p925_p10), %s1028_s3, %s501_s14 }
  0x43   : > { %v405_v4 = vadd.f32 %v403_v51, %v391_v60  ;;  %v449_v15 = vmul.f32 %v666_v45, %v443_v3  ;;  %v670_v17 = vrot.slane %v466_v6, 9  ;;  %v663_v19 = vrot.slane %v428_v9, 9 }
  0x44   : > { %v392_v13 = vadd.f32 %v390_v1, %v377_v7  ;;  %v467_v20 = vmul.f32 %v669_v56, %v461_v10 }
  0x45   : > { %v415_v11 = vadd.f32 %v413_v61, %v405_v4  ;;  %v668_v24 = vrot.slane %v449_v15, 9 }
  0x46   : > { %v406_v18 = vadd.f32 %v404_v8, %v392_v13  ;;  %v671_v27 = vrot.slane %v467_v20, 9 }
  0x47   : > { %v437_v16 = vadd.f32 %v662_v5, %v415_v11 }
  0x48   : > { %v416_v23 = vadd.f32 %v414_v14, %v406_v18 }
  0x49   : > { %v458_v21 = vadd.f32 %v667_v12, %v437_v16 }
  0x4a   : > { %v438_v26 = vadd.f32 %v663_v19, %v416_v23 }
  0x4b   : > { %v476_v25 = vadd.f32 %v670_v17, %v458_v21 }
  0x4c   : > { %v459_v29 = vadd.f32 %v668_v24, %v438_v26 }
  0x4d   : > { %v485_v28 = vadd.f32 %v672_v22, %v476_v25 }
  0x4e   : > { %v477_v31 = vadd.f32 %v671_v27, %v459_v29 }
  0x4f   : > { %v487_v30 = vmax.f32 %v485_v28, 0.0 }
  0x50   : > { %v486_v33 = vadd.f32 %v672_v22, %v477_v31  ;;  %499 = sbr.rel (!%p925_p10) target bundleno = 95 (0x5f), region = 115 }
  0x51   : > { %v489_v32 = vpack.c.bf16 %v487_v30, %v487_v30 }
  0x52   : > { %v488_v34 = vmax.f32 %v486_v33, 0.0 }
  0x53   : > { %491 = vst [vmem:[%s337_s8] sm:$0x1] %v489_v32 }
  0x54   : > { %v490_v35 = vpack.c.bf16 %v488_v34, %v488_v34 }
  0x56   : > { %492 = vst [vmem:[%s337_s8 + $0x1] sm:$0x1] %v490_v35 }
  0x5a   : > { %v518_v36 = vld [vmem:[%s337_s8] sm:$0x1] }
  0x5b   : > { %519 = vst [vmem:[%s502_s11] sm:$0x1] %v518_v36 }
  0x5d   : > { %v520_v37 = vld [vmem:[%s337_s8 + $0x1] sm:$0x1] }
  0x5e   : > { %521 = vst [vmem:[%s502_s11 + $0x2] sm:$0x1] %v520_v37 }
  0x5f PF: > { %s13_s20 = sadd.s32 1, %s822_s20   ;;  %s1032_s12 = smov %s794_s13 }
  0x60   : > { %p10_p2 = scmp.ge.s32.totalorder %s13_s20, 6   ;;  %s1033_s13 = smov %s912_s28 }
  0x61   : > { %s1034_s14 = smov %s802_s15  ;;  %s1035_s15 = smov %s930_s6 }
  0x62   : > { %s1036_s16 = smov %s814_s18  ;;  %s1037_s17 = smov %s818_s19 }
  0x63   : > { %s1038_s18 = smov %s1041_s22  ;;  %s1039_s19 = smov %s1045_s23 }
  0x64   :  { %12 = sbr.rel (!%p10_p2) target bundleno = 5 (0x5), region = 194 }

// kernel: _lambda_.29
= control target key start
LH: loop header
LB: loop body
LE: loop exit
PB: predicated region body
PF: predicated region fallthrough
CT: control target
= control target key end

     0   :  { %s361_s1 = inlined_call_operand.vmem [shape: bf16[256,128], index: 1, kind: input, shape index: {}]   ;;  %s362_s0 = inlined_call_operand.vmem [shape: bf16[8,256], index: 0, kind: input, shape index: {}]   ;;  %s363_s2 = inlined_call_operand.vmem [shape: f32[1,128], index: 2, kind: input, shape index: {}]   ;;  %s364_s3 = inlined_call_operand.vmem [shape: f32[1,128], index: 3, kind: input, shape index: {}]   ;;  %s365_s4 = inlined_call_operand.vmem [shape: bf16[8,128], index: 4, kind: output, shape index: {}]  }
   0x1   :  { %v258_v0 = vld [vmem:[%s361_s1 + $0x40] sm:$0xff]   ;;  %v260_v2 = vld [vmem:[%s361_s1 + $0x48] sm:$0xff]   ;;  %v262_v4 = vld [vmem:[%s361_s1 + $0x50] sm:$0xff]  }
   0x2   :  { %v259_v1 = vld [vmem:[%s361_s1] sm:$0xff]   ;;  %236 = vmatprep.subr.bf16.mxu0 %v258_v0  ;;  %v261_v3 = vld [vmem:[%s361_s1 + $0x8] sm:$0xff]   ;;  %v263_v5 = vld [vmem:[%s361_s1 + $0x10] sm:$0xff]  }
   0x3   :  { %237 = vmatpush3.bf16.msra.mxu0 %v259_v1  ;;  %v264_v6 = vld [vmem:[%s361_s1 + $0x58] sm:$0xff]   ;;  %v266_v8 = vld [vmem:[%s361_s1 + $0x60] sm:$0xff]   ;;  %v268_v10 = vld [vmem:[%s361_s1 + $0x68] sm:$0xff]  }
   0x4   :  { %238 = vmatprep.subr.bf16.mxu0 %v260_v2  ;;  %v265_v7 = vld [vmem:[%s361_s1 + $0x18] sm:$0xff]   ;;  %v267_v9 = vld [vmem:[%s361_s1 + $0x20] sm:$0xff]   ;;  %v269_v13 = vld [vmem:[%s361_s1 + $0x28] sm:$0xff]  }
   0x5   :  { %v18_v11 = vld [vmem:[%s362_s0] sm:$0xff]  ;;  %v270_v14 = vld [vmem:[%s361_s1 + $0x70] sm:$0xff]   ;;  %v272_v16 = vld [vmem:[%s361_s1 + $0x78] sm:$0xff]  }
   0x6   :  { %v217_v12 = vcombine.high %v18_v11, %v18_v11  ;;  %v271_v15 = vld [vmem:[%s361_s1 + $0x30] sm:$0xff]   ;;  %v273_v17 = vld [vmem:[%s361_s1 + $0x38] sm:$0xff]   ;;  %v216_v18 = vcombine.low %v18_v11, %v18_v11  ;;  %v234_v21 = vld [vmem:[%s363_s2] ss:$0 sm:$0xff] }
   0x7   :  { %239 = vmatpush3.bf16.msra.mxu0 %v261_v3  ;;  %v235_v24 = vld [vmem:[%s364_s3] ss:$0 sm:$0xff] }
   0x8   :  { %240 = vmatprep.subr.bf16.mxu0 %v262_v4  ;;  %186 = vmatprep.mubr.bf16.mxu0 %v217_v12 }
   0xb   :  { %241 = vmatpush3.bf16.msra.mxu0 %v263_v5 }
   0xc   :  { %242 = vmatprep.subr.bf16.mxu0 %v264_v6 }
   0xf   :  { %243 = vmatpush3.bf16.msra.mxu0 %v265_v7 }
  0x10   :  { %244 = vmatprep.subr.bf16.mxu0 %v266_v8 }
  0x13   :  { %245 = vmatpush3.bf16.msra.mxu0 %v267_v9 }
  0x14   :  { %246 = vmatprep.subr.bf16.mxu0 %v268_v10 }
  0x17   :  { %247 = vmatpush3.bf16.msra.mxu0 %v269_v13 }
  0x18   :  { %248 = vmatprep.subr.bf16.mxu0 %v270_v14 }
  0x1b   :  { %249 = vmatpush3.bf16.msra.mxu0 %v271_v15 }
  0x1c   :  { %250 = vmatprep.subr.bf16.mxu0 %v272_v16 }
  0x1f   :  { %251 = vmatpush3.bf16.msra.mxu0 %v273_v17 }
  0x22   :  { %187 = vmatmul.mubr.bf16.vlgmr.msra.gmra.mrb[0].mxu0 %v216_v18 }
  0xf5   :  { %v252_v19 = vpop.f32.mrb[0].mxu0 }
  0xf6   :  { %v253_v20 = vpop.f32.mrb[1].mxu0 }
  0xf7   :  { %v254_v22 = vadd.f32 %v253_v20, %v252_v19  ;;  %v255_v23 = vpop.f32.mrb[2].mxu0 }
  0xf8   :  { %v256_v25 = vpop.f32.mrb[3].mxu0 }
  0xf9   :  { %v201_v26 = vmul.f32 %v254_v22, %v234_v21 }
  0xfb   :  { %v209_v27 = vadd.f32 %v235_v24, %v201_v26 }
  0xfd   :  { %v210_v28 = vpack.c.bf16 %v209_v27, %v209_v27 }
  0xff   :  { %211 = vst [vmem:[%s365_s4] sm:$0xf] %v210_v28 }

// kernel: _lambda_.30
= control target key start
LH: loop header
LB: loop body
LE: loop exit
PB: predicated region body
PF: predicated region fallthrough
CT: control target
= control target key end

     0   :  { %v242_v1 = vmov 0   ;;  %v158_v18 = vlaneseq  ;;  %s328_s1 = inlined_call_operand.vmem [shape: bf16[128,256], index: 1, kind: input, shape index: {}]   ;;  %s329_s0 = inlined_call_operand.vmem [shape: bf16[8,128], index: 0, kind: input, shape index: {}]   ;;  %s330_s2 = inlined_call_operand.vmem [shape: f32[1,256], index: 2, kind: input, shape index: {}]   ;;  %s331_s3 = inlined_call_operand.vmem [shape: f32[1,256], index: 3, kind: input, shape index: {}]   ;;  %s332_s4 = inlined_call_operand.vmem [shape: bf16[8,256], index: 4, kind: output, shape index: {}]  }
   0x1   :  { %v218_v0 = vld [vmem:[%s328_s1 + $0x4] ss:$8 sps:$4 sm:$0xff]   ;;  %147 = vmatprep.mubr.bf16.mxu0 %v242_v1  ;;  %v220_v2 = vld [vmem:[%s328_s1] ss:$8 sps:$4 sm:$0xff]   ;;  %v221_v3 = vld [vmem:[%s328_s1 + $0x14] ss:$8 sps:$4 sm:$0xff]  }
   0x2   :  { %115 = vmatprep.subr.bf16.mxu0 %v218_v0  ;;  %v223_v4 = vld [vmem:[%s328_s1 + $0x10] ss:$8 sps:$4 sm:$0xff]   ;;  %v224_v5 = vld [vmem:[%s328_s1 + $0x24] ss:$8 sps:$4 sm:$0xff]   ;;  %v226_v6 = vld [vmem:[%s328_s1 + $0x20] ss:$8 sps:$4 sm:$0xff]  }
   0x3   :  { %116 = vmatpush1.bf16.msra.mxu0 %v220_v2  ;;  %v227_v7 = vld [vmem:[%s328_s1 + $0x34] ss:$8 sps:$4 sm:$0xff]   ;;  %v229_v8 = vld [vmem:[%s328_s1 + $0x30] ss:$8 sps:$4 sm:$0xff]   ;;  %v230_v9 = vld [vmem:[%s328_s1 + $0x44] ss:$8 sps:$4 sm:$0xff]  }
   0x4   :  { %117 = vmatprep.subr.bf16.mxu0 %v221_v3  ;;  %v232_v10 = vld [vmem:[%s328_s1 + $0x40] ss:$8 sps:$4 sm:$0xff]   ;;  %v233_v11 = vld [vmem:[%s328_s1 + $0x54] ss:$8 sps:$4 sm:$0xff]   ;;  %v235_v12 = vld [vmem:[%s328_s1 + $0x50] ss:$8 sps:$4 sm:$0xff]  }
   0x5   :  { %v236_v13 = vld [vmem:[%s328_s1 + $0x64] ss:$8 sps:$4 sm:$0xff]   ;;  %v238_v14 = vld [vmem:[%s328_s1 + $0x60] ss:$8 sps:$4 sm:$0xff]   ;;  %v239_v15 = vld [vmem:[%s328_s1 + $0x74] ss:$8 sps:$4 sm:$0xff]  }
   0x6   :  { %v241_v16 = vld [vmem:[%s328_s1 + $0x70] ss:$8 sps:$4 sm:$0xff]   ;;  %v18_v17 = vld [vmem:[%s329_s0] sm:$0xf]  ;;  %v159_v19 = vshrl.u32 %v158_v18, 7 }
   0x7   :  { %118 = vmatpush1.bf16.msra.mxu0 %v223_v4  ;;  %v156_v21 = vld [vmem:[%s330_s2] sm:$0x3] }
   0x8   :  { %119 = vmatprep.subr.bf16.mxu0 %v224_v5  ;;  %v160_v20 = vsub.s32 0, %v159_v19  ;;  %v164_v22 = vsub.s32 1, %v159_v19  ;;  %v170_v23 = vld [vmem:[%s331_s3] sm:$0x3] }
   0xa   :  { %v161_v24 = vrot.slane %v156_v21, %v160_v20  ;;  %v165_v25 = vrot.slane %v156_v21, %v164_v22  ;;  %v175_v26 = vrot.slane %v170_v23, %v160_v20  ;;  %v179_v28 = vrot.slane %v170_v23, %v164_v22 }
   0xb   :  { %120 = vmatpush1.bf16.msra.mxu0 %v226_v6 }
   0xc   :  { %121 = vmatprep.subr.bf16.mxu0 %v227_v7 }
   0xf   :  { %122 = vmatpush1.bf16.msra.mxu0 %v229_v8 }
  0x10   :  { %123 = vmatprep.subr.bf16.mxu0 %v230_v9 }
  0x13   :  { %124 = vmatpush1.bf16.msra.mxu0 %v232_v10 }
  0x14   :  { %125 = vmatprep.subr.bf16.mxu0 %v233_v11 }
  0x17   :  { %126 = vmatpush1.bf16.msra.mxu0 %v235_v12 }
  0x18   :  { %127 = vmatprep.subr.bf16.mxu0 %v236_v13 }
  0x1b   :  { %128 = vmatpush1.bf16.msra.mxu0 %v238_v14 }
  0x1c   :  { %129 = vmatprep.subr.bf16.mxu0 %v239_v15 }
  0x1f   :  { %130 = vmatpush1.bf16.msra.mxu0 %v241_v16 }
  0x22   :  { %148 = vmatmul.mubr.bf16.vlgmr.msra.gmra.mrb[0].mxu0 %v18_v17 }
  0xf5   :  { %v149_v27 = vpop.f32.mrb[0].mxu0 }
  0xf6   :  { %v168_v29 = vmul.f32 %v161_v24, %v149_v27  ;;  %v151_v30 = vpop.f32.mrb[1].mxu0 }
  0xf7   :  { %v169_v31 = vmul.f32 %v165_v25, %v151_v30  ;;  %v153_v32 = vpop.f32.mrb[2].mxu0 }
  0xf8   :  { %v182_v33 = vadd.f32 %v175_v26, %v168_v29  ;;  %v154_v34 = vpop.f32.mrb[3].mxu0 }
  0xf9   :  { %v183_v35 = vadd.f32 %v179_v28, %v169_v31 }
  0xfa   :  { %v184_v36 = vmax.f32 %v182_v33, 0.0 }
  0xfb   :  { %v185_v37 = vmax.f32 %v183_v35, 0.0 }
  0xfd   :  { %v216_v38 = vpack.c.bf16 %v185_v37, %v184_v36 }
  0xff   :  { %194 = vst [vmem:[%s332_s4] sm:$0xff] %v216_v38 }

// kernel: _lambda_.31
= control target key start
LH: loop header
LB: loop body
LE: loop exit
PB: predicated region body
PF: predicated region fallthrough
CT: control target
= control target key end

     0   :  { %s820_s12 = smov 0   ;;  %s822_s13 = smov 0   ;;  %s998_s0 = inlined_call_operand.vmem [shape: bf16[2,4,4,256], index: 0, kind: input, shape index: {}]   ;;  %s999_s1 = inlined_call_operand.vmem [shape: f32[9,256], index: 1, kind: input, shape index: {}]   ;;  %s1000_s2 = inlined_call_operand.vmem [shape: f32[1,256], index: 2, kind: input, shape index: {}]   ;;  %s1001_s3 = inlined_call_operand.vmem [shape: bf16[2,2,2,256], index: 3, kind: output, shape index: {}]  }
   0x1   :  { %s824_s14 = smov 0   ;;  %s826_s15 = smov 0  }
   0x2   :  { %s828_s16 = smov 0   ;;  %s830_s17 = smov 0  }
   0x3   :  { %s832_s18 = smov 0   ;;  %s834_s19 = smov 0  }
   0x4   :  { %s836_s20 = smov 0  }
   0x5 LB: > { %s617_s21 = sadd.s32 4294967295, %s798_s20   ;;  %s22_s22 = sadd.s32 1, %s790_s18  ;;  %s798_s20 = sphi %s836_s20, %s13_s20   ;;  %s794_s19 = sphi %s834_s19, %s1012_s19   ;;  %s790_s18 = sphi %s832_s18, %s1011_s18   ;;  %s786_s17 = sphi %s830_s17, %s1010_s17   ;;  %s782_s16 = sphi %s828_s16, %s1009_s16   ;;  %s778_s15 = sphi %s826_s15, %s1008_s15   ;;  %s774_s14 = sphi %s824_s14, %s1007_s14   ;;  %s770_s13 = sphi %s822_s13, %s1006_s13   ;;  %s766_s12 = sphi %s820_s12, %s1005_s12  }
   0x6   : > { %p23_p0 = scmp.ge.s32.totalorder %s22_s22, 2  ;;  %s25_s23 = sadd.s32 1, %s794_s19 }
   0x7   : > { %s34_s24 = sadd.s32 1, %s778_s15  ;;  %p41_p1 = scmp.ne.s32.totalorder %s778_s15, %s774_s14 }
   0x8   : > { %s1014_s22 = smov (%p23_p0, %s22_s22), 0  ;;  %s1016_s23 = smov (!%p23_p0, %s25_s23), %s794_s19 }
   0x9   : > { %s30_s25 = ssub.s32 %s790_s18, %s1014_s22  ;;  %p42_p2 = scmp.eq.s32.totalorder %s798_s20, 0 }
   0xa   : > { %p27_p3 = scmp.ge.s32.totalorder %s1016_s23, 2  ;;  %p58_p4 = scmp.eq.s32.totalorder %s30_s25, 0 }
   0xb   : > { %p880_p5 = por %p42_p2, %p41_p1  ;;  %s60_s27 = sadd.s32 1, %s770_s13 }
   0xc   : > { %s1018_s23 = smov (%p27_p3, %s1016_s23), 0  ;;  %p67_p6 = scmp.ne.s32.totalorder %s770_s13, %s766_s12 }
   0xd   : > { %s888_s28 = scalar_select %p58_p4, %s770_s13, %s60_s27  }
   0xe   : > { %s29_s29 = ssub.s32 %s794_s19, %s1018_s23  ;;  %p125_p7 = scmp.eq.s32.totalorder %s617_s21, 3 }
   0xf   : > { %s31_s30 = sor.u32 %s30_s25, %s29_s29  ;;  %p894_p9 = por %p67_p6, %p42_p2 }
  0x10   : > { %p32_p8 = scmp.eq.s32.totalorder %s31_s30, 0  ;;  %p901_p10 = por %p125_p7, %p41_p1 }
  0x11   : > { %p620_p11 = scmp.ge.s32.totalorder %s798_s20, 4 }
  0x12   : > { %s906_s6 = scalar_select %p32_p8, %s778_s15, %s34_s24  }
  0x13   : > { %147 = sbr.rel (%p620_p11) target bundleno = 41 (0x29), region = 16 }
  0x1a   : > { %150 = sbr.rel (!%p880_p5) target bundleno = 34 (0x22), region = 20  ;;  %s152_s7 = sand.u32 (%p880_p5), 1, %s778_s15  }
  0x1b   : > { %s622_s8 = sshll.u32 (%p880_p5), %s794_s19, 3  ;;  %s621_s9 = sshll.u32 (%p880_p5), %s152_s7, 3 }
  0x1c   : > { %s156_s10 = sadd.s32 (%p880_p5), %s790_s18, %s622_s8  ;;  %s154_s24 = scalar_lea.vmem (%p880_p5), [#allocation2], %s621_s9 }
  0x1d   : > { %s623_s11 = sshll.u32 (%p880_p5), %s156_s10, 1 }
  0x1e   : > { %s158_s27 = scalar_lea.vmem (%p880_p5), %s998_s0, %s623_s11 }
  0x1f   : > { %v174_v0 = vld [vmem:[%s158_s27] sm:$0x3] (%p880_p5)  ;;  %v176_v1 = vld [vmem:[%s158_s27 + $0x4] sm:$0x3] (%p880_p5)  ;;  %v178_v2 = vld [vmem:[%s158_s27 + $0x8] sm:$0x3] (%p880_p5) }
  0x20   : > { %175 = vst [vmem:[%s154_s24] sm:$0x3] (%p880_p5), %v174_v0  ;;  %177 = vst [vmem:[%s154_s24 + $0x2] sm:$0x3] (%p880_p5), %v176_v1  ;;  %v180_v3 = vld [vmem:[%s158_s27 + $0xc] sm:$0x3] (%p880_p5) }
  0x21   : > { %179 = vst [vmem:[%s154_s24 + $0x4] sm:$0x3] %v178_v2  ;;  %181 = vst [vmem:[%s154_s24 + $0x6] sm:$0x3] %v180_v3 }
  0x22 PF: > { %212 = sbr.rel (!%p894_p9) target bundleno = 41 (0x29), region = 61  ;;  %s214_s26 = sand.u32 (%p894_p9), 1, %s770_s13  }
  0x23   : > { %s625_s29 = sshll.u32 (%p894_p9), %s790_s18, 3  ;;  %s624_s30 = sshll.u32 (%p894_p9), %s214_s26, 4 }
  0x24   : > { %s218_s10 = scalar_lea.vmem (%p894_p9), %s999_s1, %s625_s29  ;;  %s216_s9 = scalar_lea.vmem (%p894_p9), [#allocation3], %s624_s30 }
  0x25   : > { %v248_v4 = vld [vmem:[%s218_s10] sm:$0xff] (%p894_p9)  ;;  %v250_v5 = vld [vmem:[%s218_s10 + $0x10] sm:$0xff] (%p894_p9) }
  0x26   : > { %249 = vst [vmem:[%s216_s9] sm:$0xff] (%p894_p9), %v248_v4  ;;  %251 = vst [vmem:[%s216_s9 + $0x8] sm:$0xff] (%p894_p9), %v250_v5 }
  0x29 PF: > { %p626_p12 = scmp.ge.s32.totalorder %s798_s20, 1  ;;  %p262_p13 = scmp.lt.s32.totalorder %s798_s20, 5 }
  0x2b   : > { %p263_p0 = pnand %p626_p12, %p262_p13 }
  0x2c   : > { %s269_s4 = sand.u32 (!%p263_p0), 1, %s774_s14   ;;  %s276_s11 = sand.u32 (!%p263_p0), 1, %s766_s12  }
  0x2d   : > { %266 = sbr.rel (%p263_p0) target bundleno = 87 (0x57), region = 103  ;;  %s627_s21 = sshll.u32 (!%p263_p0), %s269_s4, 3 }
  0x2e   : > { %s628_s25 = sshll.u32 (!%p263_p0), %s276_s11, 4  ;;  %s930_s27 = scalar_lea.vmem (!%p263_p0), [#allocation2], %s627_s21 }
  0x2f   : > { %v308_v6 = vld [vmem:[%s930_s27] sm:$0x1] (!%p263_p0)  ;;  %v309_v7 = vld [vmem:[%s930_s27 + $0x2] sm:$0x1] (!%p263_p0)  ;;  %v310_v8 = vld [vmem:[%s930_s27 + $0x4] sm:$0x1] (!%p263_p0) }
  0x30   : > { %s935_s24 = scalar_lea.vmem (!%p263_p0), [#allocation3], %s628_s25  ;;  %v313_v10 = vunpack.c.l.bf16 (!%p263_p0), %v308_v6  ;;  %v314_v11 = vunpack.c.l.bf16 (!%p263_p0), %v309_v7  ;;  %v322_v13 = vunpack.c.l.bf16 (!%p263_p0), %v310_v8  ;;  %v341_v17 = vld [vmem:[%s930_s27] sm:$0x3] (!%p263_p0)  ;;  %v342_v18 = vld [vmem:[%s930_s27 + $0x2] sm:$0x3] (!%p263_p0)  ;;  %p305_p1 = scmp.lt.s32.totalorder (!%p263_p0), %s782_s16, 1 }
  0x31   : > { %v630_v9 = vld [vmem:[%s935_s24] ss:$0 sm:$0xff] (!%p263_p0)  ;;  %v631_v12 = vld [vmem:[%s935_s24 + $0x3] ss:$0 sm:$0xff] (!%p263_p0)  ;;  %v632_v14 = vld [vmem:[%s935_s24 + $0x6] ss:$0 sm:$0xff] (!%p263_p0)  ;;  %v346_v22 = vunpack.c.l.bf16 (!%p263_p0), %v341_v17  ;;  %v347_v23 = vunpack.c.l.bf16 (!%p263_p0), %v342_v18 }
  0x32   : > { %v319_v15 = vmul.f32 (!%p263_p0), %v630_v9, %v313_v10  ;;  %v327_v16 = vmul.f32 (!%p263_p0), %v631_v12, %v314_v11  ;;  %v343_v19 = vld [vmem:[%s930_s27 + $0x4] sm:$0x3] (!%p263_p0)  ;;  %v337_v20 = vmul.f32 (!%p263_p0), %v632_v14, %v322_v13  ;;  %v633_v21 = vld [vmem:[%s935_s24 + $0x1] ss:$0 sm:$0xff] (!%p263_p0)  ;;  %v636_v24 = vld [vmem:[%s935_s24 + $0x4] ss:$0 sm:$0xff] (!%p263_p0)  ;;  %v320_v31 = vmul.f32 (!%p263_p0), %v630_v9, %v314_v11 }
  0x33   : > { %v365_v25 = vunpack.c.l.bf16 (!%p263_p0), %v343_v19  ;;  %v639_v26 = vld [vmem:[%s935_s24 + $0x7] ss:$0 sm:$0xff] (!%p263_p0)  ;;  %v400_v28 = vld [vmem:[%s930_s27] sm:$0x2] (!%p263_p0)  ;;  %v401_v29 = vld [vmem:[%s930_s27 + $0x2] sm:$0x2] (!%p263_p0)  ;;  %v328_v32 = vmul.f32 (!%p263_p0), %v631_v12, %v322_v13  ;;  %v352_v33 = vmul.f32 (!%p263_p0), %v633_v21, %v346_v22  ;;  %v370_v34 = vmul.f32 (!%p263_p0), %v636_v24, %v347_v23 }
  0x34   : > { %v329_v27 = vadd.f32 %v327_v16, %v319_v15  ;;  %v402_v30 = vld [vmem:[%s930_s27 + $0x4] sm:$0x2]  ;;  %v642_v36 = vld [vmem:[%s935_s24 + $0x2] ss:$0 sm:$0xff]  ;;  %v405_v37 = vunpack.c.l.bf16 %v400_v28  ;;  %v406_v39 = vunpack.c.l.bf16 %v401_v29  ;;  %v645_v40 = vld [vmem:[%s935_s24 + $0x5] ss:$0 sm:$0xff]  ;;  %v353_v51 = vmul.f32 %v633_v21, %v347_v23 }
  0x35   : > { %v388_v35 = vmul.f32 %v639_v26, %v365_v25  ;;  %v311_v41 = vld [vmem:[%s930_s27 + $0x6] sm:$0x1]  ;;  %v634_v43 = vrot.slane %v352_v33, 9  ;;  %v637_v44 = vrot.slane %v370_v34, 9  ;;  %v424_v46 = vunpack.c.l.bf16 %v402_v30  ;;  %v648_v48 = vld [vmem:[%s935_s24 + $0x8] ss:$0 sm:$0xff] }
  0x36   : > { %v339_v38 = vadd.f32 %v337_v20, %v329_v27  ;;  %v344_v42 = vld [vmem:[%s930_s27 + $0x6] sm:$0x3]  ;;  %v411_v45 = vmul.f32 %v642_v36, %v405_v37  ;;  %v330_v49 = vadd.f32 %v328_v32, %v320_v31  ;;  %v332_v50 = vunpack.c.l.bf16 %v311_v41  ;;  %s306_s12 = scalar_select %p305_p1, %s782_s16, 1 }
  0x37   : > { %v640_v47 = vrot.slane %v388_v35, 9  ;;  %v429_v53 = vmul.f32 %v645_v40, %v406_v39  ;;  %v371_v54 = vmul.f32 %v636_v24, %v365_v25  ;;  %v383_v55 = vunpack.c.l.bf16 %v344_v42  ;;  %v403_v56 = vld [vmem:[%s930_s27 + $0x6] sm:$0x2]  ;;  %s629_s7 = sshll.u32 %s269_s4, 1  ;;  %s653_s10 = sshll.u32 (%p901_p10), %s786_s17, 2 }
  0x38   : > { %v362_v52 = vadd.f32 %v634_v43, %v339_v38  ;;  %v338_v57 = vmul.f32 %v632_v14, %v332_v50  ;;  %v635_v58 = vrot.slane %v353_v51, 9  ;;  %v643_v60 = vrot.slane %v411_v45, 10  ;;  %s307_s30 = scalar_lea.vmem %s1000_s2, %s306_s12  ;;  %s304_s8 = scalar_lea.vmem [#allocation4], %s629_s7 }
  0x39   : > { %v447_v61 = vmul.f32 %v648_v48, %v424_v46  ;;  %v389_v62 = vmul.f32 %v639_v26, %v383_v55  ;;  %v638_v0 = vrot.slane %v371_v54, 9  ;;  %v412_v1 = vmul.f32 %v642_v36, %v406_v39  ;;  %v651_v14 = vld [vmem:[%s307_s30] ss:$0 sm:$0xff]  ;;  %s482_s14 = sadd.s32 (%p901_p10), %s782_s16, %s653_s10 }
  0x3a   : > { %v380_v59 = vadd.f32 %v637_v44, %v362_v52  ;;  %v340_v63 = vadd.f32 %v338_v57, %v330_v49  ;;  %v442_v2 = vunpack.c.l.bf16 %v403_v56  ;;  %v646_v4 = vrot.slane %v429_v53, 10  ;;  %s483_s11 = scalar_lea.vmem (%p901_p10), %s1001_s3, %s482_s14 }
  0x3b   : > { %v641_v6 = vrot.slane %v389_v62, 9  ;;  %v430_v7 = vmul.f32 %v645_v40, %v424_v46  ;;  %v649_v9 = vrot.slane %v447_v61, 10  ;;  %v644_v11 = vrot.slane %v412_v1, 10 }
  0x3c   : > { %v398_v3 = vadd.f32 %v640_v47, %v380_v59  ;;  %v363_v5 = vadd.f32 %v635_v58, %v340_v63  ;;  %v448_v12 = vmul.f32 %v648_v48, %v442_v2 }
  0x3d   : > { %v647_v16 = vrot.slane %v430_v7, 10 }
  0x3e   : > { %v421_v8 = vadd.f32 %v643_v60, %v398_v3  ;;  %v381_v10 = vadd.f32 %v638_v0, %v363_v5  ;;  %v650_v19 = vrot.slane %v448_v12, 10 }
  0x40   : > { %v439_v13 = vadd.f32 %v646_v4, %v421_v8  ;;  %v399_v15 = vadd.f32 %v641_v6, %v381_v10 }
  0x42   : > { %v457_v17 = vadd.f32 %v649_v9, %v439_v13  ;;  %v422_v18 = vadd.f32 %v644_v11, %v399_v15 }
  0x44   : > { %v466_v20 = vadd.f32 %v651_v14, %v457_v17  ;;  %v440_v21 = vadd.f32 %v647_v16, %v422_v18 }
  0x46   : > { %v468_v22 = vmax.f32 %v466_v20, 0.0  ;;  %v458_v23 = vadd.f32 %v650_v19, %v440_v21 }
  0x48   : > { %v470_v24 = vpack.c.bf16 %v468_v22, %v468_v22  ;;  %v467_v25 = vadd.f32 %v651_v14, %v458_v23  ;;  %480 = sbr.rel (!%p901_p10) target bundleno = 87 (0x57), region = 115 }
  0x4a   : > { %472 = vst [vmem:[%s304_s8] sm:$0x1] %v470_v24  ;;  %v469_v26 = vmax.f32 %v467_v25, 0.0 }
  0x4c   : > { %v471_v27 = vpack.c.bf16 %v469_v26, %v469_v26 }
  0x4e   : > { %473 = vst [vmem:[%s304_s8 + $0x1] sm:$0x1] %v471_v27 }
  0x51   : > { %v499_v28 = vld [vmem:[%s304_s8] sm:$0x1] }
  0x52   : > { %500 = vst [vmem:[%s483_s11] sm:$0x1] %v499_v28 }
  0x55   : > { %v501_v29 = vld [vmem:[%s304_s8 + $0x1] sm:$0x1] }
  0x56   : > { %502 = vst [vmem:[%s483_s11 + $0x2] sm:$0x1] %v501_v29 }
  0x57 PF: > { %s13_s20 = sadd.s32 1, %s798_s20   ;;  %s1005_s12 = smov %s770_s13 }
  0x58   : > { %p10_p2 = scmp.ge.s32.totalorder %s13_s20, 6   ;;  %s1006_s13 = smov %s888_s28 }
  0x59   : > { %s1007_s14 = smov %s778_s15  ;;  %s1008_s15 = smov %s906_s6 }
  0x5a   : > { %s1009_s16 = smov %s790_s18  ;;  %s1010_s17 = smov %s794_s19 }
  0x5b   : > { %s1011_s18 = smov %s1014_s22  ;;  %s1012_s19 = smov %s1018_s23 }
  0x5c   :  { %12 = sbr.rel (!%p10_p2) target bundleno = 5 (0x5), region = 191 }

// kernel: _lambda_.32
= control target key start
LH: loop header
LB: loop body
LE: loop exit
PB: predicated region body
PF: predicated region fallthrough
CT: control target
= control target key end

     0   :  { %s375_s1 = inlined_call_operand.vmem [shape: bf16[256,128], index: 1, kind: input, shape index: {}]   ;;  %s376_s0 = inlined_call_operand.vmem [shape: bf16[8,256], index: 0, kind: input, shape index: {}]   ;;  %s377_s2 = inlined_call_operand.vmem [shape: f32[1,128], index: 2, kind: input, shape index: {}]   ;;  %s378_s4 = inlined_call_operand.vmem [shape: bf16[8,128], index: 4, kind: input, shape index: {}]   ;;  %s379_s3 = inlined_call_operand.vmem [shape: f32[1,128], index: 3, kind: input, shape index: {}]   ;;  %s380_s5 = inlined_call_operand.vmem [shape: bf16[8,128], index: 5, kind: output, shape index: {}]  }
   0x1   :  { %v264_v0 = vld [vmem:[%s375_s1 + $0x40] sm:$0xff]   ;;  %v266_v2 = vld [vmem:[%s375_s1 + $0x48] sm:$0xff]   ;;  %v268_v4 = vld [vmem:[%s375_s1 + $0x50] sm:$0xff]  }
   0x2   :  { %v265_v1 = vld [vmem:[%s375_s1] sm:$0xff]   ;;  %242 = vmatprep.subr.bf16.mxu0 %v264_v0  ;;  %v267_v3 = vld [vmem:[%s375_s1 + $0x8] sm:$0xff]   ;;  %v269_v5 = vld [vmem:[%s375_s1 + $0x10] sm:$0xff]  }
   0x3   :  { %243 = vmatpush3.bf16.msra.mxu0 %v265_v1  ;;  %v270_v6 = vld [vmem:[%s375_s1 + $0x58] sm:$0xff]   ;;  %v272_v8 = vld [vmem:[%s375_s1 + $0x60] sm:$0xff]   ;;  %v274_v10 = vld [vmem:[%s375_s1 + $0x68] sm:$0xff]  }
   0x4   :  { %244 = vmatprep.subr.bf16.mxu0 %v266_v2  ;;  %v271_v7 = vld [vmem:[%s375_s1 + $0x18] sm:$0xff]   ;;  %v273_v9 = vld [vmem:[%s375_s1 + $0x20] sm:$0xff]   ;;  %v275_v13 = vld [vmem:[%s375_s1 + $0x28] sm:$0xff]  }
   0x5   :  { %v21_v11 = vld [vmem:[%s376_s0] sm:$0xff]  ;;  %v276_v14 = vld [vmem:[%s375_s1 + $0x70] sm:$0xff]   ;;  %v278_v16 = vld [vmem:[%s375_s1 + $0x78] sm:$0xff]  }
   0x6   :  { %v223_v12 = vcombine.high %v21_v11, %v21_v11  ;;  %v277_v15 = vld [vmem:[%s375_s1 + $0x30] sm:$0xff]   ;;  %v279_v17 = vld [vmem:[%s375_s1 + $0x38] sm:$0xff]   ;;  %v222_v18 = vcombine.low %v21_v11, %v21_v11  ;;  %v240_v21 = vld [vmem:[%s377_s2] ss:$0 sm:$0xff] }
   0x7   :  { %245 = vmatpush3.bf16.msra.mxu0 %v267_v3  ;;  %v213_v22 = vld [vmem:[%s378_s4] sm:$0xf] }
   0x8   :  { %246 = vmatprep.subr.bf16.mxu0 %v268_v4  ;;  %189 = vmatprep.mubr.bf16.mxu0 %v223_v12  ;;  %v241_v25 = vld [vmem:[%s379_s3] ss:$0 sm:$0xff]  ;;  %v214_v28 = vunpack.c.l.bf16 %v213_v22 }
   0xb   :  { %247 = vmatpush3.bf16.msra.mxu0 %v269_v5 }
   0xc   :  { %248 = vmatprep.subr.bf16.mxu0 %v270_v6 }
   0xf   :  { %249 = vmatpush3.bf16.msra.mxu0 %v271_v7 }
  0x10   :  { %250 = vmatprep.subr.bf16.mxu0 %v272_v8 }
  0x13   :  { %251 = vmatpush3.bf16.msra.mxu0 %v273_v9 }
  0x14   :  { %252 = vmatprep.subr.bf16.mxu0 %v274_v10 }
  0x17   :  { %253 = vmatpush3.bf16.msra.mxu0 %v275_v13 }
  0x18   :  { %254 = vmatprep.subr.bf16.mxu0 %v276_v14 }
  0x1b   :  { %255 = vmatpush3.bf16.msra.mxu0 %v277_v15 }
  0x1c   :  { %256 = vmatprep.subr.bf16.mxu0 %v278_v16 }
  0x1f   :  { %257 = vmatpush3.bf16.msra.mxu0 %v279_v17 }
  0x22   :  { %190 = vmatmul.mubr.bf16.vlgmr.msra.gmra.mrb[0].mxu0 %v222_v18 }
  0xf5   :  { %v258_v19 = vpop.f32.mrb[0].mxu0 }
  0xf6   :  { %v259_v20 = vpop.f32.mrb[1].mxu0 }
  0xf7   :  { %v260_v23 = vadd.f32 %v259_v20, %v258_v19  ;;  %v261_v24 = vpop.f32.mrb[2].mxu0 }
  0xf8   :  { %v262_v26 = vpop.f32.mrb[3].mxu0 }
  0xf9   :  { %v204_v27 = vmul.f32 %v260_v23, %v240_v21 }
  0xfb   :  { %v212_v29 = vadd.f32 %v241_v25, %v204_v27 }
  0xfd   :  { %v215_v30 = vadd.f32 %v214_v28, %v212_v29 }
  0xff   :  { %v216_v31 = vpack.c.bf16 %v215_v30, %v215_v30 }
 0x101   :  { %217 = vst [vmem:[%s380_s5] sm:$0xf] %v216_v31 }

// kernel: _lambda_.34
= control target key start
LH: loop header
LB: loop body
LE: loop exit
PB: predicated region body
PF: predicated region fallthrough
CT: control target
= control target key end

     0   :  { %s384_s6 = smov 0   ;;  %s386_s7 = smov 0   ;;  %s436_s0 = inlined_call_operand.vmem [shape: bf16[2,4,1280], index: 0, kind: input, shape index: {}]   ;;  %s437_s1 = inlined_call_operand.vmem [shape: f32[2,1280], index: 1, kind: output, shape index: {}]  }
   0x1   :  { %s388_s8 = smov 0  }
   0x2 LB: > { %s306_s9 = sadd.s32 4294967295, %s371_s8   ;;  %s401_s10 = sadd.s32 1, %s371_s8   ;;  %s371_s8 = sphi %s388_s8, %s440_s8   ;;  %s367_s7 = sphi %s386_s7, %s439_s7   ;;  %s363_s6 = sphi %s384_s6, %s438_s6  }
   0x3   : > { %s15_s11 = ssub.s32 %s371_s8, %s401_s10  ;;  %s18_s12 = sadd.s32 1, %s367_s7 }
   0x4   : > { %p16_p0 = scmp.eq.s32.totalorder %s15_s11, 0  ;;  %p25_p1 = scmp.ne.s32.totalorder %s367_s7, %s363_s6 }
   0x5   : > { %p26_p2 = scmp.eq.s32.totalorder %s371_s8, 0  ;;  %p309_p4 = scmp.ge.s32.totalorder %s371_s8, 5 }
   0x6   : > { %s410_s13 = scalar_select %p16_p0, %s367_s7, %s18_s12  }
   0x7   : > { %p27_p3 = por %p26_p2, %p25_p1  ;;  %77 = sbr.rel (%p309_p4) target bundleno = 21 (0x15), region = 16 }
   0xe   : > { %80 = sbr.rel (!%p27_p3) target bundleno = 21 (0x15), region = 20  ;;  %s82_s14 = sand.u32 (%p27_p3), 1, %s367_s7  }
   0xf   : > { %s319_s15 = sshll.u32 (%p27_p3), %s371_s8, 2  ;;  %s310_s16 = sshll.u32 (%p27_p3), %s82_s14, 3 }
  0x10   : > { %s87_s19 = scalar_lea.vmem (%p27_p3), %s436_s0, %s319_s15  ;;  %s84_s20 = scalar_lea.vmem (%p27_p3), [#allocation2], %s310_s16 }
  0x11   : > { %v103_v0 = vld [vmem:[%s87_s19] sm:$0xf] (%p27_p3)  ;;  %v105_v1 = vld [vmem:[%s87_s19 + $0x14] sm:$0xf] (%p27_p3) }
  0x12   : > { %104 = vst [vmem:[%s84_s20] sm:$0xf] (%p27_p3), %v103_v0  ;;  %106 = vst [vmem:[%s84_s20 + $0x4] sm:$0xf] (%p27_p3), %v105_v1 }
  0x15 PF: > { %p313_p5 = scmp.ge.s32.totalorder %s371_s8, 1  ;;  %p132_p6 = scmp.lt.s32.totalorder %s371_s8, 6 }
  0x17   : > { %p133_p7 = pnand %p313_p5, %p132_p6 }
  0x18   : > { %s139_s21 = sand.u32 (!%p133_p7), 1, %s363_s6   ;;  %vm175_vm0 = vcmask (!%p133_p7), 1043456   ;;  %v373_v21 = vmov (!%p133_p7), 1983009808   ;;  %v217_v23 = vlaneseq (!%p133_p7)  ;;  %s315_s24 = sshll.u32 (!%p133_p7), %s306_s9, 1  ;;  %vm234_vm1 = vcmask (!%p133_p7), 1041409  }
  0x19   : > { %136 = sbr.rel (%p133_p7) target bundleno = 58 (0x3a), region = 61  ;;  %s314_s22 = sshll.u32 (!%p133_p7), %s139_s21, 3  ;;  %v215_v22 = vunpack.c.l.s4 (!%p133_p7), %v373_v21  ;;  %vm236_vm2 = vcmask (!%p133_p7), 1043459   ;;  %vm238_vm3 = vcmask (!%p133_p7), 1045509   ;;  %vm240_vm4 = vcmask (!%p133_p7), 1047559  }
  0x1a   : > { %s141_s23 = scalar_lea.vmem (!%p133_p7), [#allocation2], %s314_s22  ;;  %v218_v33 = vshrl.u32 (!%p133_p7), %v217_v23, 7  ;;  %p160_p8 = scmp.lt.s32.totalorder (!%p133_p7), %s315_s24, 9 }
  0x1b   : > { %v321_v2 = vld [vmem:[%s141_s23] sm:$0xff] (!%p133_p7)   ;;  %v216_v32 = vunpack.c.0.s8 (!%p133_p7), %v215_v22 }
  0x1c   : > { %v322_v3 = vunpack.c.l.bf16 (!%p133_p7), %v321_v2  ;;  %v323_v4 = vunpack.c.h.bf16 (!%p133_p7), %v321_v2 }
  0x1d   : > { %v219_v44 = vsub.s32 (!%p133_p7), %v216_v32, %v218_v33 }
  0x1e   : > { %v171_v5 = vcombine.high (!%p133_p7), %v322_v3, %v322_v3  ;;  %v172_v6 = vcombine.high (!%p133_p7), %v323_v4, %v323_v4  ;;  %v176_v7 = vsel (!%p133_p7), %vm175_vm0, %v322_v3, 0.0  ;;  %v190_v8 = vsel (!%p133_p7), %vm175_vm0, %v323_v4, 0.0 }
  0x1f   : > { %v177_v9 = vrot.slane (!%p133_p7), %v176_v7, 4  ;;  %v191_v10 = vrot.slane (!%p133_p7), %v190_v8, 4 }
  0x20   : > { %v183_v11 = vsel %vm175_vm0, %v171_v5, 0.0  ;;  %v197_v12 = vsel %vm175_vm0, %v172_v6, 0.0  ;;  %s442_s24 = smov (!%p160_p8, %s315_s24), 9 }
  0x21   : > { %v178_v13 = vadd.f32 %v177_v9, %v176_v7  ;;  %v184_v14 = vrot.slane %v183_v11, 4  ;;  %v192_v15 = vadd.f32 %v191_v10, %v190_v8  ;;  %v198_v16 = vrot.slane %v197_v12, 4  ;;  %s316_s25 = sshll.u32 %s442_s24, 1 }
  0x22   : > { %s163_s28 = scalar_lea.vmem %s437_s1, %s316_s25 }
  0x23   : > { %v179_v17 = vrot.slane %v178_v13, 2  ;;  %v185_v18 = vadd.f32 %v184_v14, %v183_v11  ;;  %v193_v19 = vrot.slane %v192_v15, 2  ;;  %v199_v20 = vadd.f32 %v198_v16, %v197_v12 }
  0x25   : > { %v180_v24 = vadd.f32 %v179_v17, %v178_v13  ;;  %v186_v25 = vrot.slane %v185_v18, 2  ;;  %v194_v26 = vadd.f32 %v193_v19, %v192_v15  ;;  %v200_v27 = vrot.slane %v199_v20, 2 }
  0x27   : > { %v181_v28 = vrot.slane %v180_v24, 1  ;;  %v187_v29 = vadd.f32 %v186_v25, %v185_v18  ;;  %v195_v30 = vrot.slane %v194_v26, 1  ;;  %v201_v31 = vadd.f32 %v200_v27, %v199_v20 }
  0x29   : > { %v182_v34 = vadd.f32 %v181_v28, %v180_v24  ;;  %v188_v35 = vrot.slane %v187_v29, 1  ;;  %v196_v36 = vadd.f32 %v195_v30, %v194_v26  ;;  %v202_v37 = vrot.slane %v201_v31, 1 }
  0x2b   : > { %v189_v38 = vadd.f32 %v188_v35, %v187_v29  ;;  %v203_v39 = vadd.f32 %v202_v37, %v201_v31  ;;  %v205_v40 = vmul.f32 0.25, %v182_v34  ;;  %v207_v41 = vmul.f32 0.25, %v196_v36 }
  0x2d   : > { %v206_v42 = vmul.f32 0.25, %v189_v38  ;;  %v208_v43 = vmul.f32 0.25, %v203_v39 }
  0x2f   : > { %v213_v45 = vcombine.low %v205_v40, %v206_v42  ;;  %v221_v46 = vcombine.low %v207_v41, %v208_v43 }
  0x31   : > { %v220_v47 = vrot.slane %v213_v45, %v219_v44  ;;  %v228_v48 = vrot.slane %v221_v46, %v219_v44 }
  0x33   : > { %v233_v49 = vrot.slane %v228_v48, 7 }
  0x35   : > { %v235_v50 = vsel %vm234_vm1, %v233_v49, %v220_v47 }
  0x36   : > { %v237_v51 = vsel %vm236_vm2, %v233_v49, %v235_v50 }
  0x37   : > { %v239_v52 = vsel %vm238_vm3, %v233_v49, %v237_v51 }
  0x38   : > { %v241_v53 = vsel %vm240_vm4, %v233_v49, %v239_v52 }
  0x39   : > { %243 = vst [vmem:[%s163_s28] sm:$0xf] %v241_v53 }
  0x3a PF: > { %p8_p9 = scmp.ge.s32.totalorder %s401_s10, 7   ;;  %s438_s6 = smov %s367_s7 }
  0x3b   : > { %s439_s7 = smov %s410_s13  ;;  %s440_s8 = smov %s401_s10 }
  0x3c   :  { %10 = sbr.rel (!%p8_p9) target bundleno = 2 (0x2), region = 100 }

// kernel: _lambda_.33
= control target key start
LH: loop header
LB: loop body
LE: loop exit
PB: predicated region body
PF: predicated region fallthrough
CT: control target
= control target key end

     0   :  { %v1102_v1 = vmov 0   ;;  %s1432_s1 = inlined_call_operand.vmem [shape: bf16[128,1280], index: 1, kind: input, shape index: {}]   ;;  %s1433_s0 = inlined_call_operand.vmem [shape: bf16[8,128], index: 0, kind: input, shape index: {}]   ;;  %s1434_s2 = inlined_call_operand.vmem [shape: f32[1,1280], index: 2, kind: input, shape index: {}]   ;;  %s1435_s3 = inlined_call_operand.vmem [shape: f32[1,1280], index: 3, kind: input, shape index: {}]   ;;  %s1436_s4 = inlined_call_operand.vmem [shape: bf16[8,1280], index: 4, kind: output, shape index: {}]  }
   0x1   :  { %v982_v0 = vld [vmem:[%s1432_s1 + $0x4] ss:$40 sps:$4 sm:$0xff]   ;;  %531 = vmatprep.mubr.bf16.mxu0 %v1102_v1  ;;  %572 = vmatprep.mubr.bf16.mxu1 %v1102_v1  ;;  %v984_v2 = vld [vmem:[%s1432_s1] ss:$40 sps:$4 sm:$0xff]   ;;  %v985_v3 = vld [vmem:[%s1432_s1 + $0x54] ss:$40 sps:$4 sm:$0xff]  }
   0x2   :  { %499 = vmatprep.subr.bf16.mxu0 %v982_v0  ;;  %v987_v4 = vld [vmem:[%s1432_s1 + $0x50] ss:$40 sps:$4 sm:$0xff]   ;;  %v988_v5 = vld [vmem:[%s1432_s1 + $0xa4] ss:$40 sps:$4 sm:$0xff]   ;;  %v990_v6 = vld [vmem:[%s1432_s1 + $0xa0] ss:$40 sps:$4 sm:$0xff]  }
   0x3   :  { %500 = vmatpush1.bf16.msra.mxu0 %v984_v2  ;;  %v991_v7 = vld [vmem:[%s1432_s1 + $0xf4] ss:$40 sps:$4 sm:$0xff]   ;;  %v993_v8 = vld [vmem:[%s1432_s1 + $0xf0] ss:$40 sps:$4 sm:$0xff]   ;;  %v994_v11 = vld [vmem:[%s1432_s1 + $0x144] ss:$40 sps:$4 sm:$0xff]  }
   0x4   :  { %501 = vmatprep.subr.bf16.mxu0 %v985_v3  ;;  %v1006_v9 = vld [vmem:[%s1432_s1 + $0xc] ss:$40 sps:$4 sm:$0xff]   ;;  %v1008_v10 = vld [vmem:[%s1432_s1 + $0x8] ss:$40 sps:$4 sm:$0xff]   ;;  %v1012_v12 = vld [vmem:[%s1432_s1 + $0x5c] ss:$40 sps:$4 sm:$0xff]  }
   0x5   :  { %540 = vmatprep.subr.bf16.mxu1 %v1006_v9  ;;  %v1014_v13 = vld [vmem:[%s1432_s1 + $0x58] ss:$40 sps:$4 sm:$0xff]   ;;  %v997_v15 = vld [vmem:[%s1432_s1 + $0x194] ss:$40 sps:$4 sm:$0xff]   ;;  %v1020_v18 = vld [vmem:[%s1432_s1 + $0xa8] ss:$40 sps:$4 sm:$0xff]  }
   0x6   :  { %541 = vmatpush1.bf16.msra.mxu1 %v1008_v10  ;;  %v996_v14 = vld [vmem:[%s1432_s1 + $0x140] ss:$40 sps:$4 sm:$0xff]   ;;  %v1018_v16 = vld [vmem:[%s1432_s1 + $0xac] ss:$40 sps:$4 sm:$0xff]   ;;  %v999_v17 = vld [vmem:[%s1432_s1 + $0x190] ss:$40 sps:$4 sm:$0xff]  }
   0x7   :  { %502 = vmatpush1.bf16.msra.mxu0 %v987_v4  ;;  %542 = vmatprep.subr.bf16.mxu1 %v1012_v12  ;;  %v1024_v19 = vld [vmem:[%s1432_s1 + $0xfc] ss:$40 sps:$4 sm:$0xff]   ;;  %v1002_v21 = vld [vmem:[%s1432_s1 + $0x1e0] ss:$40 sps:$4 sm:$0xff]   ;;  %v1030_v23 = vld [vmem:[%s1432_s1 + $0x14c] ss:$40 sps:$4 sm:$0xff]  }
   0x8   :  { %503 = vmatprep.subr.bf16.mxu0 %v988_v5  ;;  %v1000_v20 = vld [vmem:[%s1432_s1 + $0x1e4] ss:$40 sps:$4 sm:$0xff]   ;;  %v1026_v22 = vld [vmem:[%s1432_s1 + $0xf8] ss:$40 sps:$4 sm:$0xff]   ;;  %v1003_v24 = vld [vmem:[%s1432_s1 + $0x234] ss:$40 sps:$4 sm:$0xff]  }
   0x9   :  { %v1005_v25 = vld [vmem:[%s1432_s1 + $0x230] ss:$40 sps:$4 sm:$0xff]   ;;  %v1036_v27 = vld [vmem:[%s1432_s1 + $0x19c] ss:$40 sps:$4 sm:$0xff]   ;;  %v1217_v29 = vld [vmem:[%s1433_s0] sm:$0xf] }
   0xa   :  { %543 = vmatpush1.bf16.msra.mxu1 %v1014_v13  ;;  %v1032_v26 = vld [vmem:[%s1432_s1 + $0x148] ss:$40 sps:$4 sm:$0xff]   ;;  %v1011_v28 = vld [vmem:[%s1432_s1 + $0x14] ss:$40 sps:$4 sm:$0xff]   ;;  %v1038_v31 = vld [vmem:[%s1432_s1 + $0x198] ss:$40 sps:$4 sm:$0xff]  }
   0xb   :  { %504 = vmatpush1.bf16.msra.mxu0 %v990_v6  ;;  %544 = vmatprep.subr.bf16.mxu1 %v1018_v16  ;;  %v1009_v30 = vld [vmem:[%s1432_s1 + $0x10] ss:$40 sps:$4 sm:$0xff]   ;;  %v1042_v32 = vld [vmem:[%s1432_s1 + $0x1ec] ss:$40 sps:$4 sm:$0xff]   ;;  %v1015_v34 = vld [vmem:[%s1432_s1 + $0x60] ss:$40 sps:$4 sm:$0xff]  }
   0xc   :  { %505 = vmatprep.subr.bf16.mxu0 %v991_v7  ;;  %v1017_v33 = vld [vmem:[%s1432_s1 + $0x64] ss:$40 sps:$4 sm:$0xff]   ;;  %v1044_v35 = vld [vmem:[%s1432_s1 + $0x1e8] ss:$40 sps:$4 sm:$0xff]   ;;  %v1023_v37 = vld [vmem:[%s1432_s1 + $0xb4] ss:$40 sps:$4 sm:$0xff]  }
   0xd   :  { %v1048_v36 = vld [vmem:[%s1432_s1 + $0x23c] ss:$40 sps:$4 sm:$0xff]   ;;  %v1021_v38 = vld [vmem:[%s1432_s1 + $0xb0] ss:$40 sps:$4 sm:$0xff]   ;;  %v1027_v42 = vld [vmem:[%s1432_s1 + $0x100] ss:$40 sps:$4 sm:$0xff]  }
   0xe   :  { %545 = vmatpush1.bf16.msra.mxu1 %v1020_v18  ;;  %v1050_v39 = vld [vmem:[%s1432_s1 + $0x238] ss:$40 sps:$4 sm:$0xff]   ;;  %v1056_v40 = vld [vmem:[%s1432_s1 + $0x1c] ss:$40 sps:$4 sm:$0xff]   ;;  %v1062_v44 = vld [vmem:[%s1432_s1 + $0x6c] ss:$40 sps:$4 sm:$0xff]   ;;  %v708_v18 = vlaneseq }
   0xf   :  { %506 = vmatpush1.bf16.msra.mxu0 %v993_v8  ;;  %546 = vmatprep.subr.bf16.mxu1 %v1024_v19  ;;  %v1029_v41 = vld [vmem:[%s1432_s1 + $0x104] ss:$40 sps:$4 sm:$0xff]   ;;  %v1054_v43 = vld [vmem:[%s1432_s1 + $0x18] ss:$40 sps:$4 sm:$0xff]   ;;  %v1035_v45 = vld [vmem:[%s1432_s1 + $0x154] ss:$40 sps:$4 sm:$0xff]  }
  0x10   :  { %507 = vmatprep.subr.bf16.mxu0 %v994_v11  ;;  %v1033_v46 = vld [vmem:[%s1432_s1 + $0x150] ss:$40 sps:$4 sm:$0xff]   ;;  %v1068_v48 = vld [vmem:[%s1432_s1 + $0xbc] ss:$40 sps:$4 sm:$0xff]   ;;  %v1039_v50 = vld [vmem:[%s1432_s1 + $0x1a0] ss:$40 sps:$4 sm:$0xff]  }
  0x11   :  { %v1060_v47 = vld [vmem:[%s1432_s1 + $0x68] ss:$40 sps:$4 sm:$0xff]   ;;  %v1041_v49 = vld [vmem:[%s1432_s1 + $0x1a4] ss:$40 sps:$4 sm:$0xff]   ;;  %v1066_v51 = vld [vmem:[%s1432_s1 + $0xb8] ss:$40 sps:$4 sm:$0xff]  }
  0x12   :  { %547 = vmatpush1.bf16.msra.mxu1 %v1026_v22  ;;  %v1074_v52 = vld [vmem:[%s1432_s1 + $0x10c] ss:$40 sps:$4 sm:$0xff]   ;;  %v1072_v54 = vld [vmem:[%s1432_s1 + $0x108] ss:$40 sps:$4 sm:$0xff]   ;;  %v1080_v56 = vld [vmem:[%s1432_s1 + $0x15c] ss:$40 sps:$4 sm:$0xff]  }
  0x13   :  { %508 = vmatpush1.bf16.msra.mxu0 %v996_v14  ;;  %548 = vmatprep.subr.bf16.mxu1 %v1030_v23  ;;  %v1047_v53 = vld [vmem:[%s1432_s1 + $0x1f4] ss:$40 sps:$4 sm:$0xff]   ;;  %v1045_v55 = vld [vmem:[%s1432_s1 + $0x1f0] ss:$40 sps:$4 sm:$0xff]   ;;  %v1053_v57 = vld [vmem:[%s1432_s1 + $0x244] ss:$40 sps:$4 sm:$0xff]  }
  0x14   :  { %509 = vmatprep.subr.bf16.mxu0 %v997_v15  ;;  %v1078_v58 = vld [vmem:[%s1432_s1 + $0x158] ss:$40 sps:$4 sm:$0xff]   ;;  %v1086_v60 = vld [vmem:[%s1432_s1 + $0x1ac] ss:$40 sps:$4 sm:$0xff]   ;;  %v1084_v62 = vld [vmem:[%s1432_s1 + $0x1a8] ss:$40 sps:$4 sm:$0xff]  }
  0x15   :  { %v1051_v59 = vld [vmem:[%s1432_s1 + $0x240] ss:$40 sps:$4 sm:$0xff]   ;;  %v1059_v61 = vld [vmem:[%s1432_s1 + $0x24] ss:$40 sps:$4 sm:$0xff]   ;;  %v1065_v2 = vld [vmem:[%s1432_s1 + $0x74] ss:$40 sps:$4 sm:$0xff]  }
  0x16   :  { %549 = vmatpush1.bf16.msra.mxu1 %v1032_v26  ;;  %v1057_v63 = vld [vmem:[%s1432_s1 + $0x20] ss:$40 sps:$4 sm:$0xff]   ;;  %v1092_v0 = vld [vmem:[%s1432_s1 + $0x1fc] ss:$40 sps:$4 sm:$0xff]   ;;  %v1063_v4 = vld [vmem:[%s1432_s1 + $0x70] ss:$40 sps:$4 sm:$0xff]  }
  0x17   :  { %510 = vmatpush1.bf16.msra.mxu0 %v999_v17  ;;  %550 = vmatprep.subr.bf16.mxu1 %v1036_v27  ;;  %v1090_v3 = vld [vmem:[%s1432_s1 + $0x1f8] ss:$40 sps:$4 sm:$0xff]   ;;  %v1098_v5 = vld [vmem:[%s1432_s1 + $0x24c] ss:$40 sps:$4 sm:$0xff]   ;;  %v1096_v7 = vld [vmem:[%s1432_s1 + $0x248] ss:$40 sps:$4 sm:$0xff]  }
  0x18   :  { %511 = vmatprep.subr.bf16.mxu0 %v1000_v20  ;;  %v1071_v6 = vld [vmem:[%s1432_s1 + $0xc4] ss:$40 sps:$4 sm:$0xff]   ;;  %v1069_v8 = vld [vmem:[%s1432_s1 + $0xc0] ss:$40 sps:$4 sm:$0xff]   ;;  %v1077_v9 = vld [vmem:[%s1432_s1 + $0x114] ss:$40 sps:$4 sm:$0xff]  }
  0x19   :  { %v1083_v10 = vld [vmem:[%s1432_s1 + $0x164] ss:$40 sps:$4 sm:$0xff]   ;;  %v1081_v11 = vld [vmem:[%s1432_s1 + $0x160] ss:$40 sps:$4 sm:$0xff]   ;;  %v1089_v12 = vld [vmem:[%s1432_s1 + $0x1b4] ss:$40 sps:$4 sm:$0xff]  }
  0x1a   :  { %551 = vmatpush1.bf16.msra.mxu1 %v1038_v31  ;;  %v1087_v13 = vld [vmem:[%s1432_s1 + $0x1b0] ss:$40 sps:$4 sm:$0xff]   ;;  %v1095_v14 = vld [vmem:[%s1432_s1 + $0x204] ss:$40 sps:$4 sm:$0xff]   ;;  %v1093_v15 = vld [vmem:[%s1432_s1 + $0x200] ss:$40 sps:$4 sm:$0xff]  }
  0x1b   :  { %512 = vmatpush1.bf16.msra.mxu0 %v1002_v21  ;;  %552 = vmatprep.subr.bf16.mxu1 %v1042_v32  ;;  %v1101_v16 = vld [vmem:[%s1432_s1 + $0x254] ss:$40 sps:$4 sm:$0xff]   ;;  %v1099_v17 = vld [vmem:[%s1432_s1 + $0x250] ss:$40 sps:$4 sm:$0xff]   ;;  %v1383_v19 = vshrl.u32 %v708_v18, 7  ;;  %v704_v21 = vld [vmem:[%s1434_s2] sm:$0xff] }
  0x1c   :  { %513 = vmatprep.subr.bf16.mxu0 %v1003_v24  ;;  %v768_v23 = vld [vmem:[%s1435_s3] sm:$0xff] }
  0x1d   :  { %v1386_v20 = vsub.s32 0, %v1383_v19  ;;  %v1392_v22 = vsub.s32 1, %v1383_v19 }
  0x1e   :  { %553 = vmatpush1.bf16.msra.mxu1 %v1044_v35 }
  0x1f   :  { %514 = vmatpush1.bf16.msra.mxu0 %v1005_v25  ;;  %554 = vmatprep.subr.bf16.mxu1 %v1048_v36  ;;  %v711_v24 = vrot.slane %v704_v21, %v1386_v20  ;;  %v715_v25 = vrot.slane %v704_v21, %v1392_v22  ;;  %v775_v26 = vrot.slane %v768_v23, %v1386_v20  ;;  %v718_v36 = vsub.s32 2, %v1383_v19 }
  0x20   :  { %581 = vmatprep.subr.bf16.mxu0 %v1011_v28  ;;  %v779_v28 = vrot.slane %v768_v23, %v1392_v22 }
  0x22   :  { %532 = vmatmul.mubr.bf16.vlgmr.msra.gmra.mrb[0].mxu0 %v1217_v29  ;;  %555 = vmatpush1.bf16.msra.mxu1 %v1050_v39 }
  0x23   :  { %582 = vmatpush1.bf16.msra.mxu0 %v1009_v30  ;;  %613 = vmatprep.mubr.bf16.mxu0 %v1102_v1 }
  0x24   :  { %583 = vmatprep.subr.bf16.mxu0 %v1017_v33  ;;  %622 = vmatprep.subr.bf16.mxu1 %v1056_v40 }
  0x25   :  { %573 = vmatmul.mubr.bf16.vlgmr.msra.gmra.mrb[0].mxu1 %v1217_v29 }
  0x26   :  { %623 = vmatpush1.bf16.msra.mxu1 %v1054_v43  ;;  %654 = vmatprep.mubr.bf16.mxu1 %v1102_v1  ;;  %v783_v43 = vrot.slane %v768_v23, %v718_v36 }
  0x27   :  { %584 = vmatpush1.bf16.msra.mxu0 %v1015_v34  ;;  %624 = vmatprep.subr.bf16.mxu1 %v1062_v44 }
  0x28   :  { %585 = vmatprep.subr.bf16.mxu0 %v1023_v37 }
  0x2a   :  { %625 = vmatpush1.bf16.msra.mxu1 %v1060_v47 }
  0x2b   :  { %586 = vmatpush1.bf16.msra.mxu0 %v1021_v38  ;;  %626 = vmatprep.subr.bf16.mxu1 %v1068_v48  ;;  %v722_v38 = vsub.s32 3, %v1383_v19 }
  0x2c   :  { %587 = vmatprep.subr.bf16.mxu0 %v1029_v41  ;;  %v719_v41 = vrot.slane %v704_v21, %v718_v36 }
  0x2e   :  { %627 = vmatpush1.bf16.msra.mxu1 %v1066_v51 }
  0x2f   :  { %588 = vmatpush1.bf16.msra.mxu0 %v1027_v42  ;;  %628 = vmatprep.subr.bf16.mxu1 %v1074_v52  ;;  %v723_v42 = vrot.slane %v704_v21, %v722_v38 }
  0x30   :  { %589 = vmatprep.subr.bf16.mxu0 %v1035_v45  ;;  %v787_v45 = vrot.slane %v768_v23, %v722_v38 }
  0x32   :  { %629 = vmatpush1.bf16.msra.mxu1 %v1072_v54 }
  0x33   :  { %590 = vmatpush1.bf16.msra.mxu0 %v1033_v46  ;;  %630 = vmatprep.subr.bf16.mxu1 %v1080_v56  ;;  %v726_v56 = vsub.s32 4, %v1383_v19 }
  0x34   :  { %591 = vmatprep.subr.bf16.mxu0 %v1041_v49 }
  0x36   :  { %631 = vmatpush1.bf16.msra.mxu1 %v1078_v58  ;;  %v727_v58 = vrot.slane %v704_v21, %v726_v56 }
  0x37   :  { %592 = vmatpush1.bf16.msra.mxu0 %v1039_v50  ;;  %632 = vmatprep.subr.bf16.mxu1 %v1086_v60  ;;  %v791_v60 = vrot.slane %v768_v23, %v726_v56 }
  0x38   :  { %593 = vmatprep.subr.bf16.mxu0 %v1047_v53 }
  0x3a   :  { %633 = vmatpush1.bf16.msra.mxu1 %v1084_v62 }
  0x3b   :  { %594 = vmatpush1.bf16.msra.mxu0 %v1045_v55  ;;  %634 = vmatprep.subr.bf16.mxu1 %v1092_v0 }
  0x3c   :  { %595 = vmatprep.subr.bf16.mxu0 %v1053_v57  ;;  %v730_v57 = vsub.s32 5, %v1383_v19 }
  0x3e   :  { %635 = vmatpush1.bf16.msra.mxu1 %v1090_v3  ;;  %v795_v62 = vrot.slane %v768_v23, %v730_v57 }
  0x3f   :  { %596 = vmatpush1.bf16.msra.mxu0 %v1051_v59  ;;  %636 = vmatprep.subr.bf16.mxu1 %v1098_v5  ;;  %v731_v59 = vrot.slane %v704_v21, %v730_v57 }
  0x40   :  { %663 = vmatprep.subr.bf16.mxu0 %v1059_v61 }
  0x42   :  { %614 = vmatmul.mubr.bf16.vlgmr.msra.gmra.mrb[4].mxu0 %v1217_v29  ;;  %637 = vmatpush1.bf16.msra.mxu1 %v1096_v7  ;;  %v734_v7 = vsub.s32 6, %v1383_v19 }
  0x43   :  { %664 = vmatpush1.bf16.msra.mxu0 %v1057_v63  ;;  %695 = vmatprep.mubr.bf16.mxu0 %v1102_v1  ;;  %v1075_v1 = vld [vmem:[%s1432_s1 + $0x110] ss:$40 sps:$4 sm:$0xff]  }
  0x44   :  { %665 = vmatprep.subr.bf16.mxu0 %v1065_v2 }
  0x45   :  { %655 = vmatmul.mubr.bf16.vlgmr.msra.gmra.mrb[4].mxu1 %v1217_v29 }
  0x47   :  { %666 = vmatpush1.bf16.msra.mxu0 %v1063_v4 }
  0x48   :  { %667 = vmatprep.subr.bf16.mxu0 %v1071_v6 }
  0x4b   :  { %668 = vmatpush1.bf16.msra.mxu0 %v1069_v8 }
  0x4c   :  { %669 = vmatprep.subr.bf16.mxu0 %v1077_v9  ;;  %v738_v9 = vsub.s32 7, %v1383_v19 }
  0x4f   :  { %670 = vmatpush1.bf16.msra.mxu0 %v1075_v1 }
  0x50   :  { %671 = vmatprep.subr.bf16.mxu0 %v1083_v10 }
  0x53   :  { %672 = vmatpush1.bf16.msra.mxu0 %v1081_v11  ;;  %v735_v11 = vrot.slane %v704_v21, %v734_v7 }
  0x54   :  { %673 = vmatprep.subr.bf16.mxu0 %v1089_v12  ;;  %v739_v12 = vrot.slane %v704_v21, %v738_v9  ;;  %v705_v21 = vld [vmem:[%s1434_s2 + $0x8] sm:$0x3] }
  0x57   :  { %674 = vmatpush1.bf16.msra.mxu0 %v1087_v13  ;;  %v799_v13 = vrot.slane %v768_v23, %v734_v7 }
  0x58   :  { %675 = vmatprep.subr.bf16.mxu0 %v1095_v14 }
  0x5b   :  { %676 = vmatpush1.bf16.msra.mxu0 %v1093_v15  ;;  %v803_v15 = vrot.slane %v768_v23, %v738_v9  ;;  %v769_v23 = vld [vmem:[%s1435_s3 + $0x8] sm:$0x3] }
  0x5c   :  { %677 = vmatprep.subr.bf16.mxu0 %v1101_v16 }
  0x5f   :  { %678 = vmatpush1.bf16.msra.mxu0 %v1099_v17 }
  0x62   :  { %696 = vmatmul.mubr.bf16.vlgmr.msra.gmra.mrb[8].mxu0 %v1217_v29 }
  0xf5   :  { %v533_v27 = vpop.f32.mrb[0].mxu0 }
  0xf6   :  { %v758_v29 = vmul.f32 %v711_v24, %v533_v27  ;;  %v535_v30 = vpop.f32.mrb[1].mxu0 }
  0xf7   :  { %v759_v31 = vmul.f32 %v715_v25, %v535_v30  ;;  %v537_v32 = vpop.f32.mrb[2].mxu0  ;;  %v743_v30 = vrot.slane %v705_v21, %v1386_v20 }
  0xf8   :  { %v822_v33 = vadd.f32 %v775_v26, %v758_v29  ;;  %v538_v34 = vpop.f32.mrb[3].mxu0  ;;  %v574_v44 = vpop.f32.mrb[0].mxu1  ;;  %v807_v32 = vrot.slane %v769_v23, %v1386_v20 }
  0xf9   :  { %v823_v35 = vadd.f32 %v779_v28, %v759_v31  ;;  %v760_v46 = vmul.f32 %v719_v41, %v574_v44  ;;  %v576_v47 = vpop.f32.mrb[1].mxu1  ;;  %v747_v31 = vrot.slane %v705_v21, %v1392_v22  ;;  %v811_v34 = vrot.slane %v769_v23, %v1392_v22 }
  0xfa   :  { %v832_v37 = vmax.f32 %v822_v33, 0.0  ;;  %v761_v48 = vmul.f32 %v723_v42, %v576_v47  ;;  %v578_v49 = vpop.f32.mrb[2].mxu1 }
  0xfb   :  { %v833_v39 = vmax.f32 %v823_v35, 0.0  ;;  %v824_v50 = vadd.f32 %v783_v43, %v760_v46  ;;  %v579_v51 = vpop.f32.mrb[3].mxu1 }
  0xfc   :  { %v825_v52 = vadd.f32 %v787_v45, %v761_v48 }
  0xfd   :  { %v976_v40 = vpack.c.bf16 %v833_v39, %v832_v37  ;;  %v834_v53 = vmax.f32 %v824_v50, 0.0 }
  0xfe   :  { %v835_v54 = vmax.f32 %v825_v52, 0.0 }
  0xff   :  { %882 = vst [vmem:[%s1436_s4] sm:$0xff] %v976_v40 }
 0x100   :  { %v977_v55 = vpack.c.bf16 %v835_v54, %v834_v53 }
 0x102   :  { %883 = vst [vmem:[%s1436_s4 + $0x8] sm:$0xff] %v977_v55 }
 0x115   :  { %v615_v61 = vpop.f32.mrb[4].mxu0 }
 0x116   :  { %v762_v63 = vmul.f32 %v727_v58, %v615_v61  ;;  %v617_v0 = vpop.f32.mrb[5].mxu0 }
 0x117   :  { %v763_v2 = vmul.f32 %v731_v59, %v617_v0  ;;  %v619_v3 = vpop.f32.mrb[6].mxu0 }
 0x118   :  { %v826_v4 = vadd.f32 %v791_v60, %v762_v63  ;;  %v620_v5 = vpop.f32.mrb[7].mxu0  ;;  %v656_v14 = vpop.f32.mrb[4].mxu1 }
 0x119   :  { %v827_v6 = vadd.f32 %v795_v62, %v763_v2  ;;  %v764_v16 = vmul.f32 %v735_v11, %v656_v14  ;;  %v658_v17 = vpop.f32.mrb[5].mxu1 }
 0x11a   :  { %v836_v8 = vmax.f32 %v826_v4, 0.0  ;;  %v765_v18 = vmul.f32 %v739_v12, %v658_v17  ;;  %v660_v24 = vpop.f32.mrb[6].mxu1 }
 0x11b   :  { %v837_v1 = vmax.f32 %v827_v6, 0.0  ;;  %v828_v25 = vadd.f32 %v799_v13, %v764_v16  ;;  %v661_v26 = vpop.f32.mrb[7].mxu1 }
 0x11c   :  { %v829_v27 = vadd.f32 %v803_v15, %v765_v18 }
 0x11d   :  { %v978_v10 = vpack.c.bf16 %v837_v1, %v836_v8  ;;  %v838_v28 = vmax.f32 %v828_v25, 0.0 }
 0x11e   :  { %v839_v19 = vmax.f32 %v829_v27, 0.0 }
 0x11f   :  { %884 = vst [vmem:[%s1436_s4 + $0x10] sm:$0xff] %v978_v10 }
 0x120   :  { %v979_v29 = vpack.c.bf16 %v839_v19, %v838_v28 }
 0x122   :  { %885 = vst [vmem:[%s1436_s4 + $0x18] sm:$0xff] %v979_v29 }
 0x135   :  { %v697_v33 = vpop.f32.mrb[8].mxu0 }
 0x136   :  { %v766_v35 = vmul.f32 %v743_v30, %v697_v33  ;;  %v699_v36 = vpop.f32.mrb[9].mxu0 }
 0x137   :  { %v767_v37 = vmul.f32 %v747_v31, %v699_v36  ;;  %v701_v38 = vpop.f32.mrb[10].mxu0 }
 0x138   :  { %v830_v39 = vadd.f32 %v807_v32, %v766_v35  ;;  %v702_v40 = vpop.f32.mrb[11].mxu0 }
 0x139   :  { %v831_v41 = vadd.f32 %v811_v34, %v767_v37 }
 0x13a   :  { %v840_v42 = vmax.f32 %v830_v39, 0.0 }
 0x13b   :  { %v841_v43 = vmax.f32 %v831_v41, 0.0 }
 0x13d   :  { %v980_v44 = vpack.c.bf16 %v841_v43, %v840_v42 }
 0x13f   :  { %886 = vst [vmem:[%s1436_s4 + $0x20] sm:$0xff] %v980_v44 }

// kernel: _lambda_.35
= control target key start
LH: loop header
LB: loop body
LE: loop exit
PB: predicated region body
PF: predicated region fallthrough
CT: control target
= control target key end

     0   :  { %s1500_s1 = inlined_call_operand.vmem [shape: bf16[1280,128], index: 1, kind: input, shape index: {}]   ;;  %s1501_s0 = inlined_call_operand.vmem [shape: bf16[8,1280], index: 0, kind: input, shape index: {}]   ;;  %s1502_s2 = inlined_call_operand.vmem [shape: f32[1,128], index: 2, kind: input, shape index: {}]   ;;  %s1503_s3 = inlined_call_operand.vmem [shape: f32[1,128], index: 3, kind: input, shape index: {}]   ;;  %s1504_s4 = inlined_call_operand.vmem [shape: f32[8,128], index: 4, kind: output, shape index: {}]  }
   0x1   :  { %v1121_v0 = vld [vmem:[%s1500_s1 + $0x40] sm:$0xff]   ;;  %v1125_v4 = vld [vmem:[%s1500_s1 + $0x48] sm:$0xff]   ;;  %v1129_v8 = vld [vmem:[%s1500_s1 + $0x50] sm:$0xff]  }
   0x2   :  { %v1122_v1 = vld [vmem:[%s1500_s1 + $0xc0] sm:$0xff]   ;;  %1011 = vmatprep.subr.bf16.mxu0 %v1121_v0  ;;  %v1126_v5 = vld [vmem:[%s1500_s1 + $0xc8] sm:$0xff]   ;;  %v1130_v9 = vld [vmem:[%s1500_s1 + $0xd0] sm:$0xff]  }
   0x3   :  { %v1123_v2 = vld [vmem:[%s1500_s1] sm:$0xff]   ;;  %1033 = vmatprep.subr.bf16.mxu1 %v1122_v1  ;;  %v1127_v6 = vld [vmem:[%s1500_s1 + $0x8] sm:$0xff]   ;;  %v1131_v10 = vld [vmem:[%s1500_s1 + $0x10] sm:$0xff]  }
   0x4   :  { %v1124_v3 = vld [vmem:[%s1500_s1 + $0x80] sm:$0xff]   ;;  %1012 = vmatpush3.bf16.msra.mxu0 %v1123_v2  ;;  %v1128_v7 = vld [vmem:[%s1500_s1 + $0x88] sm:$0xff]   ;;  %v1132_v11 = vld [vmem:[%s1500_s1 + $0x90] sm:$0xff]  }
   0x5   :  { %1034 = vmatpush3.bf16.msra.mxu1 %v1124_v3  ;;  %1013 = vmatprep.subr.bf16.mxu0 %v1125_v4  ;;  %v1133_v12 = vld [vmem:[%s1500_s1 + $0x58] sm:$0xff]   ;;  %v1137_v16 = vld [vmem:[%s1500_s1 + $0x60] sm:$0xff]   ;;  %v1141_v20 = vld [vmem:[%s1500_s1 + $0x68] sm:$0xff]  }
   0x6   :  { %1035 = vmatprep.subr.bf16.mxu1 %v1126_v5  ;;  %v1134_v13 = vld [vmem:[%s1500_s1 + $0xd8] sm:$0xff]   ;;  %v1138_v17 = vld [vmem:[%s1500_s1 + $0xe0] sm:$0xff]   ;;  %v1142_v21 = vld [vmem:[%s1500_s1 + $0xe8] sm:$0xff]  }
   0x7   :  { %v1135_v14 = vld [vmem:[%s1500_s1 + $0x18] sm:$0xff]   ;;  %v1139_v18 = vld [vmem:[%s1500_s1 + $0x20] sm:$0xff]   ;;  %v1143_v22 = vld [vmem:[%s1500_s1 + $0x28] sm:$0xff]  }
   0x8   :  { %1014 = vmatpush3.bf16.msra.mxu0 %v1127_v6  ;;  %v1136_v15 = vld [vmem:[%s1500_s1 + $0x98] sm:$0xff]   ;;  %v1140_v19 = vld [vmem:[%s1500_s1 + $0xa0] sm:$0xff]   ;;  %v1144_v23 = vld [vmem:[%s1500_s1 + $0xa8] sm:$0xff]  }
   0x9   :  { %1036 = vmatpush3.bf16.msra.mxu1 %v1128_v7  ;;  %1015 = vmatprep.subr.bf16.mxu0 %v1129_v8  ;;  %v1145_v24 = vld [vmem:[%s1500_s1 + $0x70] sm:$0xff]   ;;  %v1149_v28 = vld [vmem:[%s1500_s1 + $0x78] sm:$0xff]   ;;  %v18_v32 = vld [vmem:[%s1501_s0] sm:$0xff] }
   0xa   :  { %1037 = vmatprep.subr.bf16.mxu1 %v1130_v9  ;;  %v1146_v25 = vld [vmem:[%s1500_s1 + $0xf0] sm:$0xff]   ;;  %v1150_v29 = vld [vmem:[%s1500_s1 + $0xf8] sm:$0xff]   ;;  %v19_v33 = vld [vmem:[%s1501_s0 + $0x8] sm:$0xff]  ;;  %v919_v34 = vcombine.low %v18_v32, %v18_v32  ;;  %v920_v35 = vcombine.high %v18_v32, %v18_v32 }
   0xb   :  { %v1147_v26 = vld [vmem:[%s1500_s1 + $0x30] sm:$0xff]   ;;  %v1151_v30 = vld [vmem:[%s1500_s1 + $0x38] sm:$0xff]   ;;  %v921_v36 = vcombine.low %v19_v33, %v19_v33  ;;  %v922_v37 = vcombine.high %v19_v33, %v19_v33  ;;  %v1157_v38 = vld [vmem:[%s1500_s1 + $0x140] sm:$0xff]  }
   0xc   :  { %1016 = vmatpush3.bf16.msra.mxu0 %v1131_v10  ;;  %v1148_v27 = vld [vmem:[%s1500_s1 + $0xb0] sm:$0xff]   ;;  %v1152_v31 = vld [vmem:[%s1500_s1 + $0xb8] sm:$0xff]   ;;  %v1158_v39 = vld [vmem:[%s1500_s1 + $0x100] sm:$0xff]   ;;  %730 = vmatprep.mubr.bf16.mxu0 %v920_v35 }
   0xd   :  { %1038 = vmatpush3.bf16.msra.mxu1 %v1132_v11  ;;  %1017 = vmatprep.subr.bf16.mxu0 %v1133_v12  ;;  %v1159_v40 = vld [vmem:[%s1500_s1 + $0x1c0] sm:$0xff]   ;;  %v1161_v42 = vld [vmem:[%s1500_s1 + $0x148] sm:$0xff]   ;;  %v1165_v46 = vld [vmem:[%s1500_s1 + $0x150] sm:$0xff]  }
   0xe   :  { %1039 = vmatprep.subr.bf16.mxu1 %v1134_v13  ;;  %770 = vmatprep.mubr.bf16.mxu1 %v922_v37  ;;  %v1160_v41 = vld [vmem:[%s1500_s1 + $0x180] sm:$0xff]   ;;  %v1162_v43 = vld [vmem:[%s1500_s1 + $0x108] sm:$0xff]   ;;  %v1166_v47 = vld [vmem:[%s1500_s1 + $0x110] sm:$0xff]  }
   0xf   :  { %v1163_v44 = vld [vmem:[%s1500_s1 + $0x1c8] sm:$0xff]   ;;  %v1167_v48 = vld [vmem:[%s1500_s1 + $0x1d0] sm:$0xff]   ;;  %v1169_v50 = vld [vmem:[%s1500_s1 + $0x158] sm:$0xff]  }
  0x10   :  { %1018 = vmatpush3.bf16.msra.mxu0 %v1135_v14  ;;  %v1164_v45 = vld [vmem:[%s1500_s1 + $0x188] sm:$0xff]   ;;  %v1168_v49 = vld [vmem:[%s1500_s1 + $0x190] sm:$0xff]   ;;  %v1170_v51 = vld [vmem:[%s1500_s1 + $0x118] sm:$0xff]  }
  0x11   :  { %1040 = vmatpush3.bf16.msra.mxu1 %v1136_v15  ;;  %1019 = vmatprep.subr.bf16.mxu0 %v1137_v16  ;;  %v1171_v52 = vld [vmem:[%s1500_s1 + $0x1d8] sm:$0xff]   ;;  %v1173_v54 = vld [vmem:[%s1500_s1 + $0x160] sm:$0xff]   ;;  %v1177_v58 = vld [vmem:[%s1500_s1 + $0x168] sm:$0xff]  }
  0x12   :  { %1041 = vmatprep.subr.bf16.mxu1 %v1138_v17  ;;  %v1172_v53 = vld [vmem:[%s1500_s1 + $0x198] sm:$0xff]   ;;  %v1174_v55 = vld [vmem:[%s1500_s1 + $0x120] sm:$0xff]   ;;  %v1178_v59 = vld [vmem:[%s1500_s1 + $0x128] sm:$0xff]  }
  0x13   :  { %v1175_v56 = vld [vmem:[%s1500_s1 + $0x1e0] sm:$0xff]   ;;  %v1179_v60 = vld [vmem:[%s1500_s1 + $0x1e8] sm:$0xff]   ;;  %v1181_v62 = vld [vmem:[%s1500_s1 + $0x170] sm:$0xff]  }
  0x14   :  { %1020 = vmatpush3.bf16.msra.mxu0 %v1139_v18  ;;  %v1176_v57 = vld [vmem:[%s1500_s1 + $0x1a0] sm:$0xff]   ;;  %v1180_v61 = vld [vmem:[%s1500_s1 + $0x1a8] sm:$0xff]   ;;  %v1182_v63 = vld [vmem:[%s1500_s1 + $0x130] sm:$0xff]  }
  0x15   :  { %1042 = vmatpush3.bf16.msra.mxu1 %v1140_v19  ;;  %1021 = vmatprep.subr.bf16.mxu0 %v1141_v20  ;;  %v1183_v0 = vld [vmem:[%s1500_s1 + $0x1f0] sm:$0xff]   ;;  %v1185_v2 = vld [vmem:[%s1500_s1 + $0x178] sm:$0xff]   ;;  %v1191_v9 = vld [vmem:[%s1500_s1 + $0x240] sm:$0xff]  }
  0x16   :  { %1043 = vmatprep.subr.bf16.mxu1 %v1142_v21  ;;  %v1184_v1 = vld [vmem:[%s1500_s1 + $0x1b0] sm:$0xff]   ;;  %v1186_v3 = vld [vmem:[%s1500_s1 + $0x138] sm:$0xff]   ;;  %v1194_v13 = vld [vmem:[%s1500_s1 + $0x200] sm:$0xff]  }
  0x17   :  { %v1187_v4 = vld [vmem:[%s1500_s1 + $0x1f8] sm:$0xff]   ;;  %v20_v5 = vld [vmem:[%s1501_s0 + $0x10] sm:$0xff]  ;;  %v1195_v14 = vld [vmem:[%s1500_s1 + $0x248] sm:$0xff]  }
  0x18   :  { %1022 = vmatpush3.bf16.msra.mxu0 %v1143_v22  ;;  %v924_v6 = vcombine.high %v20_v5, %v20_v5  ;;  %v1190_v7 = vld [vmem:[%s1500_s1 + $0x1b8] sm:$0xff]   ;;  %v923_v8 = vcombine.low %v20_v5, %v20_v5  ;;  %v1196_v15 = vld [vmem:[%s1500_s1 + $0x208] sm:$0xff]   ;;  %v1197_v16 = vld [vmem:[%s1500_s1 + $0x250] sm:$0xff]  }
  0x19   :  { %1044 = vmatpush3.bf16.msra.mxu1 %v1144_v23  ;;  %1023 = vmatprep.subr.bf16.mxu0 %v1145_v24  ;;  %v21_v10 = vld [vmem:[%s1501_s0 + $0x18] sm:$0xff]  ;;  %v1198_v17 = vld [vmem:[%s1500_s1 + $0x210] sm:$0xff]   ;;  %v1201_v20 = vld [vmem:[%s1500_s1 + $0x260] sm:$0xff]  }
  0x1a   :  { %1045 = vmatprep.subr.bf16.mxu1 %v1146_v25  ;;  %v925_v11 = vcombine.low %v21_v10, %v21_v10  ;;  %v926_v12 = vcombine.high %v21_v10, %v21_v10  ;;  %v1199_v18 = vld [vmem:[%s1500_s1 + $0x258] sm:$0xff]   ;;  %v22_v21 = vld [vmem:[%s1501_s0 + $0x20] sm:$0xff]  ;;  %v1203_v24 = vld [vmem:[%s1500_s1 + $0x268] sm:$0xff]  }
  0x1b   :  { %v1200_v19 = vld [vmem:[%s1500_s1 + $0x218] sm:$0xff]   ;;  %v1202_v22 = vld [vmem:[%s1500_s1 + $0x220] sm:$0xff]   ;;  %v928_v23 = vcombine.high %v22_v21, %v22_v21  ;;  %v1204_v25 = vld [vmem:[%s1500_s1 + $0x228] sm:$0xff]  }
  0x1c   :  { %1024 = vmatpush3.bf16.msra.mxu0 %v1147_v26  ;;  %v1205_v26 = vld [vmem:[%s1500_s1 + $0x270] sm:$0xff]  }
  0x1d   :  { %1046 = vmatpush3.bf16.msra.mxu1 %v1148_v27  ;;  %1025 = vmatprep.subr.bf16.mxu0 %v1149_v28  ;;  %v1206_v27 = vld [vmem:[%s1500_s1 + $0x230] sm:$0xff]   ;;  %v1207_v28 = vld [vmem:[%s1500_s1 + $0x278] sm:$0xff]  }
  0x1e   :  { %1047 = vmatprep.subr.bf16.mxu1 %v1150_v29  ;;  %v1208_v29 = vld [vmem:[%s1500_s1 + $0x238] sm:$0xff]  }
  0x20   :  { %1026 = vmatpush3.bf16.msra.mxu0 %v1151_v30  ;;  %v927_v30 = vcombine.low %v22_v21, %v22_v21 }
  0x21   :  { %1048 = vmatpush3.bf16.msra.mxu1 %v1152_v31  ;;  %1055 = vmatprep.subr.bf16.mxu0 %v1157_v38 }
  0x22   :  { %1077 = vmatprep.subr.bf16.mxu1 %v1159_v40 }
  0x23   :  { %731 = vmatmul.mubr.bf16.vlgmr.msra.gmra.mrb[0].mxu0 %v919_v34 }
  0x24   :  { %771 = vmatmul.mubr.bf16.vlgmr.msra.gmra.mrb[0].mxu1 %v921_v36  ;;  %1056 = vmatpush3.bf16.msra.mxu0 %v1158_v39 }
  0x25   :  { %1078 = vmatpush3.bf16.msra.mxu1 %v1160_v41  ;;  %1057 = vmatprep.subr.bf16.mxu0 %v1161_v42 }
  0x26   :  { %1079 = vmatprep.subr.bf16.mxu1 %v1163_v44  ;;  %810 = vmatprep.mubr.bf16.mxu0 %v924_v6 }
  0x27   :  { %850 = vmatprep.mubr.bf16.mxu1 %v926_v12 }
  0x28   :  { %1058 = vmatpush3.bf16.msra.mxu0 %v1162_v43 }
  0x29   :  { %1080 = vmatpush3.bf16.msra.mxu1 %v1164_v45  ;;  %1059 = vmatprep.subr.bf16.mxu0 %v1165_v46 }
  0x2a   :  { %1081 = vmatprep.subr.bf16.mxu1 %v1167_v48 }
  0x2c   :  { %1060 = vmatpush3.bf16.msra.mxu0 %v1166_v47 }
  0x2d   :  { %1082 = vmatpush3.bf16.msra.mxu1 %v1168_v49  ;;  %1061 = vmatprep.subr.bf16.mxu0 %v1169_v50 }
  0x2e   :  { %1083 = vmatprep.subr.bf16.mxu1 %v1171_v52 }
  0x30   :  { %1062 = vmatpush3.bf16.msra.mxu0 %v1170_v51 }
  0x31   :  { %1084 = vmatpush3.bf16.msra.mxu1 %v1172_v53  ;;  %1063 = vmatprep.subr.bf16.mxu0 %v1173_v54 }
  0x32   :  { %1085 = vmatprep.subr.bf16.mxu1 %v1175_v56 }
  0x34   :  { %1064 = vmatpush3.bf16.msra.mxu0 %v1174_v55 }
  0x35   :  { %1086 = vmatpush3.bf16.msra.mxu1 %v1176_v57  ;;  %1065 = vmatprep.subr.bf16.mxu0 %v1177_v58  ;;  %v1009_v58 = vld [vmem:[%s1502_s2] ss:$0 sm:$0xff] }
  0x36   :  { %1087 = vmatprep.subr.bf16.mxu1 %v1179_v60 }
  0x38   :  { %1066 = vmatpush3.bf16.msra.mxu0 %v1178_v59 }
  0x39   :  { %1088 = vmatpush3.bf16.msra.mxu1 %v1180_v61  ;;  %1067 = vmatprep.subr.bf16.mxu0 %v1181_v62  ;;  %v1010_v61 = vld [vmem:[%s1503_s3] ss:$0 sm:$0xff] }
  0x3a   :  { %1089 = vmatprep.subr.bf16.mxu1 %v1183_v0 }
  0x3c   :  { %1068 = vmatpush3.bf16.msra.mxu0 %v1182_v63 }
  0x3d   :  { %1090 = vmatpush3.bf16.msra.mxu1 %v1184_v1  ;;  %1069 = vmatprep.subr.bf16.mxu0 %v1185_v2 }
  0x3e   :  { %1091 = vmatprep.subr.bf16.mxu1 %v1187_v4 }
  0x40   :  { %1070 = vmatpush3.bf16.msra.mxu0 %v1186_v3 }
  0x41   :  { %1092 = vmatpush3.bf16.msra.mxu1 %v1190_v7  ;;  %1099 = vmatprep.subr.bf16.mxu0 %v1191_v9 }
  0x43   :  { %811 = vmatmul.mubr.bf16.vlgmr.msra.gmra.mrb[4].mxu0 %v923_v8 }
  0x44   :  { %1100 = vmatpush3.bf16.msra.mxu0 %v1194_v13  ;;  %851 = vmatmul.mubr.bf16.vlgmr.msra.gmra.mrb[4].mxu1 %v925_v11 }
  0x45   :  { %1101 = vmatprep.subr.bf16.mxu0 %v1195_v14  ;;  %890 = vmatprep.mubr.bf16.mxu0 %v928_v23 }
  0x48   :  { %1102 = vmatpush3.bf16.msra.mxu0 %v1196_v15 }
  0x49   :  { %1103 = vmatprep.subr.bf16.mxu0 %v1197_v16 }
  0x4c   :  { %1104 = vmatpush3.bf16.msra.mxu0 %v1198_v17 }
  0x4d   :  { %1105 = vmatprep.subr.bf16.mxu0 %v1199_v18 }
  0x50   :  { %1106 = vmatpush3.bf16.msra.mxu0 %v1200_v19 }
  0x51   :  { %1107 = vmatprep.subr.bf16.mxu0 %v1201_v20 }
  0x54   :  { %1108 = vmatpush3.bf16.msra.mxu0 %v1202_v22 }
  0x55   :  { %1109 = vmatprep.subr.bf16.mxu0 %v1203_v24 }
  0x58   :  { %1110 = vmatpush3.bf16.msra.mxu0 %v1204_v25 }
  0x59   :  { %1111 = vmatprep.subr.bf16.mxu0 %v1205_v26 }
  0x5c   :  { %1112 = vmatpush3.bf16.msra.mxu0 %v1206_v27 }
  0x5d   :  { %1113 = vmatprep.subr.bf16.mxu0 %v1207_v28 }
  0x60   :  { %1114 = vmatpush3.bf16.msra.mxu0 %v1208_v29 }
  0x63   :  { %891 = vmatmul.mubr.bf16.vlgmr.msra.gmra.mrb[8].mxu0 %v927_v30 }
  0xf6   :  { %v1027_v31 = vpop.f32.mrb[0].mxu0 }
  0xf7   :  { %v1049_v32 = vpop.f32.mrb[0].mxu1  ;;  %v1028_v33 = vpop.f32.mrb[1].mxu0 }
  0xf8   :  { %v1050_v34 = vpop.f32.mrb[1].mxu1  ;;  %v1029_v35 = vadd.f32 %v1028_v33, %v1027_v31  ;;  %v1030_v37 = vpop.f32.mrb[2].mxu0 }
  0xf9   :  { %v1051_v36 = vadd.f32 %v1050_v34, %v1049_v32  ;;  %v1052_v38 = vpop.f32.mrb[2].mxu1  ;;  %v1031_v39 = vpop.f32.mrb[3].mxu0 }
  0xfa   :  { %v1053_v40 = vpop.f32.mrb[3].mxu1 }
  0xfb   :  { %v773_v41 = vadd.f32 %v1051_v36, %v1029_v35 }
 0x116   :  { %v1071_v42 = vpop.f32.mrb[4].mxu0 }
 0x117   :  { %v1072_v43 = vpop.f32.mrb[5].mxu0  ;;  %v1093_v44 = vpop.f32.mrb[4].mxu1 }
 0x118   :  { %v1073_v45 = vadd.f32 %v1072_v43, %v1071_v42  ;;  %v1074_v46 = vpop.f32.mrb[6].mxu0  ;;  %v1094_v47 = vpop.f32.mrb[5].mxu1 }
 0x119   :  { %v1075_v48 = vpop.f32.mrb[7].mxu0  ;;  %v1095_v49 = vadd.f32 %v1094_v47, %v1093_v44  ;;  %v1096_v50 = vpop.f32.mrb[6].mxu1 }
 0x11a   :  { %v813_v51 = vadd.f32 %v1073_v45, %v773_v41  ;;  %v1097_v52 = vpop.f32.mrb[7].mxu1 }
 0x11c   :  { %v853_v53 = vadd.f32 %v1095_v49, %v813_v51 }
 0x136   :  { %v1115_v54 = vpop.f32.mrb[8].mxu0 }
 0x137   :  { %v1116_v55 = vpop.f32.mrb[9].mxu0 }
 0x138   :  { %v1117_v56 = vadd.f32 %v1116_v55, %v1115_v54  ;;  %v1118_v57 = vpop.f32.mrb[10].mxu0 }
 0x139   :  { %v1119_v59 = vpop.f32.mrb[11].mxu0 }
 0x13a   :  { %v893_v60 = vadd.f32 %v1117_v56, %v853_v53 }
 0x13c   :  { %v905_v62 = vmul.f32 %v1009_v58, %v893_v60 }
 0x13e   :  { %v913_v63 = vadd.f32 %v1010_v61, %v905_v62 }
 0x140   :  { %914 = vst [vmem:[%s1504_s4] sm:$0xff] %v913_v63 }

</bundles_post_ra>
